<compile_context>
chip_gen: v6e
topology: v6e:2x2x1
jax: 0.10.0
libtpu: 0.0.40
codegen_flags: <defaults>
</compile_context>

<pallas_src>
import jax
import jax.numpy as jnp
import numpy as np
from jax.experimental import pallas as pl
from jax.experimental.pallas import tpu as pltpu

NEG_SLOPE = 0.01   # nn.LeakyReLU default
BN_EPS = 1e-5      # nn.BatchNorm2d default


# ---------------------------------------------------------------- kernel -----

def _fused_kernel(xcol_ref, w1_ref, b1_ref,
                  cw1_ref, cb1_ref, g1_ref, be1_ref,
                  wc2t_ref, cb2_ref, g2_ref, be2_ref,
                  w2h_ref, b2_ref, w3t_ref, b3_ref,
                  out_ref, hres, fbuf):
    B, P, _ = xcol_ref.shape          # (batch, 100 pixels, 1)
    C = cw1_ref.shape[1]              # padded channel count (128)
    CR = fbuf.shape[1] // P           # real channel count (64)
    inv_n = 1.0 / float(B * P)

    w1 = w1_ref[...]
    b1 = b1_ref[...]
    cw1 = cw1_ref[...]
    cb1 = cb1_ref[...]

    # ---- linear1 + conv1 (1x1, 1->64 padded to 128), per-batch (P, C) slabs ----
    # y1[b, p] = sum_k W1[p, k] * x[b, k] + b1[p]; computed lane-broadcast so the
    # result is already replicated across the channel lanes (used by conv1 and the
    # broadcast residual).
    pix = []   # x_init broadcast over channels
    h1 = []    # conv1 output
    for b in range(B):
        xb = jnp.broadcast_to(xcol_ref[b], (P, C))                       # x[b,:] as rows
        pb = jnp.dot(w1, xb, preferred_element_type=jnp.float32) + b1    # (P, C)
        pix.append(pb)
        h1.append(pb * cw1 + cb1)

    # ---- bn1: training-mode batch stats, one pass (sum & sum of squares) -------
    s1 = sum(jnp.sum(h, axis=0, keepdims=True) for h in h1)
    q1 = sum(jnp.sum(h * h, axis=0, keepdims=True) for h in h1)
    mu1 = s1 * inv_n
    var1 = jnp.maximum(q1 * inv_n - mu1 * mu1, 0.0)
    a1 = jax.lax.rsqrt(var1 + BN_EPS) * g1_ref[...]
    c1 = be1_ref[...] - mu1 * a1

    # ---- conv2 (1x1, 64->64, padded to 128x128) ---------------------------------
    wc2t = wc2t_ref[...]
    cb2 = cb2_ref[...]
    h2 = [jnp.dot(h1[b] * a1 + c1, wc2t, preferred_element_type=jnp.float32) + cb2
          for b in range(B)]

    # ---- bn2 --------------------------------------------------------------------
    s2 = sum(jnp.sum(h, axis=0, keepdims=True) for h in h2)
    q2 = sum(jnp.sum(h * h, axis=0, keepdims=True) for h in h2)
    mu2 = s2 * inv_n
    var2 = jnp.maximum(q2 * inv_n - mu2 * mu2, 0.0)
    a2 = jax.lax.rsqrt(var2 + BN_EPS) * g2_ref[...]
    c2 = be2_ref[...] - mu2 * a2

    # ---- bn2 affine + residual (x_init broadcast over channels) -----------------
    for b in range(B):
        hres[b] = h2[b] * a2 + c2 + pix[b]

    # ---- re-layout to the head's (pre-permuted) feature order -------------------
    # fbuf[b, p*64 + c] = hres[b, p, c]  (only the 64 real channels; padded ones
    # have zero rows in W2h anyway).
    for b in range(B):
        for p_ in range(P):
            fbuf[b:b + 1, p_ * CR:(p_ + 1) * CR] = hres[b:b + 1, p_, 0:CR]

    # ---- head: linear2 -> LeakyReLU -> linear3 -> LeakyReLU ---------------------
    feat = fbuf[...].astype(w2h_ref.dtype)                 # bf16, MXU-native
    z = jnp.dot(feat, w2h_ref[...], preferred_element_type=jnp.float32) + b2_ref[...]
    z = jnp.where(z >= 0, z, NEG_SLOPE * z)
    z = jnp.dot(z, w3t_ref[...], preferred_element_type=jnp.float32) + b3_ref[...]
    out_ref[...] = jnp.where(z >= 0, z, NEG_SLOPE * z)


# ------------------------------------------------------ parameter prep -------

def prepare_params(p, cpad=128):
    """One-time prep (outside jit): transposes, channel padding, W2 permutation, bf16."""
    f32 = jnp.float32
    P = p["W1"].shape[0]              # 100
    cr = p["Wc2"].shape[1]            # 64 real channels
    o2 = p["W2"].shape[0]             # 128

    def row_pad(v):
        return jnp.zeros((1, cpad), f32).at[0, :v.shape[0]].set(jnp.asarray(v, f32))

    wc2t = jnp.zeros((cpad, cpad), f32).at[:cr, :cr].set(jnp.asarray(p["Wc2"], f32).T)

    # W2 columns are in torch channel-major flatten order (c*100 + p); re-order to the
    # kernel's pixel-major order (p*64 + c) and transpose so the head is feat @ W2h.
    w2 = jnp.asarray(p["W2"], f32).reshape(o2, cr, P)            # [o, c, p]
    w2h = jnp.transpose(w2, (2, 1, 0)).reshape(P * cr, o2)       # [p*64 + c, o]

    return dict(
        W1=jnp.asarray(p["W1"], f32),                            # used untransposed
        b1c=jnp.asarray(p["b1"], f32).reshape(P, 1),
        cw1=row_pad(p["wc1"]), cb1=row_pad(p["bc1"]),
        g1=row_pad(p["g1"]), be1=row_pad(p["be1"]),
        Wc2T=wc2t, cb2=row_pad(p["bc2"]),
        g2=row_pad(p["g2"]), be2=row_pad(p["be2"]),
        W2h=w2h.astype(jnp.bfloat16),                            # (6400, 128) bf16
        b2=jnp.asarray(p["b2"], f32).reshape(1, o2),
        W3T=jnp.asarray(p["W3"], f32).T,                         # (128, 100)
        b3=jnp.asarray(p["b3"], f32).reshape(1, -1),
    )


# ---------------------------------------------------------------- wrapper ----

@jax.jit
def resnet_forward(x, pp):
    B = x.shape[0]
    P = x.shape[1] * x.shape[2] * x.shape[3]
    C = pp["cw1"].shape[1]
    xcol = x.reshape(B, P, 1).astype(jnp.float32)      # x.view(B, -1), as per-batch columns
    args = (xcol, pp["W1"], pp["b1c"],
            pp["cw1"], pp["cb1"], pp["g1"], pp["be1"],
            pp["Wc2T"], pp["cb2"], pp["g2"], pp["be2"],
            pp["W2h"], pp["b2"], pp["W3T"], pp["b3"])
    return pl.pallas_call(
        _fused_kernel,
        out_shape=jax.ShapeDtypeStruct((B, pp["W3T"].shape[1]), jnp.float32),
        in_specs=[pl.BlockSpec(memory_space=pltpu.MemorySpace.VMEM)] * len(args),
        out_specs=pl.BlockSpec(memory_space=pltpu.MemorySpace.VMEM),
        scratch_shapes=[
            pltpu.VMEM((B, P, C), jnp.float32),                # resblock output
            pltpu.VMEM((B, pp["W2h"].shape[0]), jnp.float32),  # flattened features
        ],
    )(*args)


# ------------------------------------------------------ numpy reference ------

def reference_forward(x, p):
    x = np.asarray(x, np.float64)
    pn = {k: np.asarray(v, np.float64) for k, v in p.items()}
    B = x.shape[0]
    init_shape = x.shape

    h = x.reshape(B, -1) @ pn["W1"].T + pn["b1"]
    h = h.reshape(init_shape)                                 # (B,1,10,10)
    x_init = h

    # conv1 1x1 (1->64)
    h = h[:, 0:1] * pn["wc1"][None, :, None, None] + pn["bc1"][None, :, None, None]

    def bn(a, g, b):
        mu = a.mean(axis=(0, 2, 3), keepdims=True)
        var = ((a - mu) ** 2).mean(axis=(0, 2, 3), keepdims=True)
        return ((a - mu) / np.sqrt(var + BN_EPS)
                * g[None, :, None, None] + b[None, :, None, None])

    h = bn(h, pn["g1"], pn["be1"])
    h = np.einsum("dc,bchw->bdhw", pn["Wc2"], h) + pn["bc2"][None, :, None, None]
    h = bn(h, pn["g2"], pn["be2"])
    h = h + x_init                                            # broadcast residual

    h = h.reshape(B, -1)
    h = h @ pn["W2"].T + pn["b2"]
    h = np.where(h >= 0, h, NEG_SLOPE * h)
    h = h @ pn["W3"].T + pn["b3"]
    h = np.where(h >= 0, h, NEG_SLOPE * h)
    return h


# -------------------------------------------------------------------- main ---

if __name__ == "__main__":
    B, board_x, board_y = 2, 10, 10        # forward() implies a 10x10 single-plane board
    P = board_x * board_y                  # 100
    f32 = jnp.float32

    key = jax.random.PRNGKey(0)
    ks = jax.random.split(key, 16)
    params = {
        "W1":  0.05 * jax.random.normal(ks[0], (P, P), f32),          # linear1
        "b1":  0.05 * jax.random.normal(ks[1], (P,), f32),
        "wc1": 0.50 * jax.random.normal(ks[2], (64,), f32),           # conv1 (64,1,1,1)
        "bc1": 0.10 * jax.random.normal(ks[3], (64,), f32),
        "g1":  1.0 + 0.10 * jax.random.normal(ks[4], (64,), f32),     # bn1
        "be1": 0.10 * jax.random.normal(ks[5], (64,), f32),
        "Wc2": 0.10 * jax.random.normal(ks[6], (64, 64), f32),        # conv2 (64,64,1,1)
        "bc2": 0.10 * jax.random.normal(ks[7], (64,), f32),
        "g2":  1.0 + 0.10 * jax.random.normal(ks[8], (64,), f32),     # bn2
        "be2": 0.10 * jax.random.normal(ks[9], (64,), f32),
        "W2":  0.02 * jax.random.normal(ks[10], (128, 64 * P), f32),  # linear2
        "b2":  0.05 * jax.random.normal(ks[11], (128,), f32),
        "W3":  0.10 * jax.random.normal(ks[12], (P, 128), f32),       # linear3
        "b3":  0.05 * jax.random.normal(ks[13], (P,), f32),
    }
    x = jax.random.normal(ks[14], (B, 1, board_x, board_y), f32)

    prepared = prepare_params(params)       # one-time weight prep (outside jit)

    out = resnet_forward(x, prepared)
    out = jax.block_until_ready(out)

    ref = reference_forward(np.asarray(x), params)
    np.testing.assert_allclose(np.asarray(out), ref, rtol=2e-2, atol=2e-2)
    print("KERNEL_OK")
</pallas_src>

<mosaic_0001>
module attributes {stable_mosaic.version = 11 : i64} {
  func.func @_fused_kernel(%arg0: memref<2x100x1xf32, #tpu.memory_space<vmem>>, %arg1: memref<100x100xf32, #tpu.memory_space<vmem>>, %arg2: memref<100x1xf32, #tpu.memory_space<vmem>>, %arg3: memref<1x128xf32, #tpu.memory_space<vmem>>, %arg4: memref<1x128xf32, #tpu.memory_space<vmem>>, %arg5: memref<1x128xf32, #tpu.memory_space<vmem>>, %arg6: memref<1x128xf32, #tpu.memory_space<vmem>>, %arg7: memref<128x128xf32, #tpu.memory_space<vmem>>, %arg8: memref<1x128xf32, #tpu.memory_space<vmem>>, %arg9: memref<1x128xf32, #tpu.memory_space<vmem>>, %arg10: memref<1x128xf32, #tpu.memory_space<vmem>>, %arg11: memref<6400x128xbf16, #tpu.memory_space<vmem>>, %arg12: memref<1x128xf32, #tpu.memory_space<vmem>>, %arg13: memref<128x100xf32, #tpu.memory_space<vmem>>, %arg14: memref<1x100xf32, #tpu.memory_space<vmem>>, %arg15: memref<2x100xf32, #tpu.memory_space<vmem>>, %arg16: memref<2x100x128xf32, #tpu.memory_space<vmem>>, %arg17: memref<2x6400xf32, #tpu.memory_space<vmem>>) attributes {dimension_semantics = [], scalar_prefetch = 0 : i64, scratch_operands = 2 : i64, tpu.core_type = #tpu.core_type<tc>} {
    %c0 = arith.constant 0 : index
    %c0_0 = arith.constant 0 : index
    %0 = vector.load %arg1[%c0, %c0_0] : memref<100x100xf32, #tpu.memory_space<vmem>>, vector<100x100xf32>
    %c0_1 = arith.constant 0 : index
    %c0_2 = arith.constant 0 : index
    %1 = vector.load %arg2[%c0_1, %c0_2] : memref<100x1xf32, #tpu.memory_space<vmem>>, vector<100x1xf32>
    %c0_3 = arith.constant 0 : index
    %c0_4 = arith.constant 0 : index
    %2 = vector.load %arg3[%c0_3, %c0_4] : memref<1x128xf32, #tpu.memory_space<vmem>>, vector<1x128xf32>
    %c0_5 = arith.constant 0 : index
    %c0_6 = arith.constant 0 : index
    %3 = vector.load %arg4[%c0_5, %c0_6] : memref<1x128xf32, #tpu.memory_space<vmem>>, vector<1x128xf32>
    %c0_7 = arith.constant 0 : index
    %c0_8 = arith.constant 0 : index
    %c0_9 = arith.constant 0 : index
    %4 = vector.load %arg0[%c0_7, %c0_8, %c0_9] : memref<2x100x1xf32, #tpu.memory_space<vmem>>, vector<1x100x1xf32>
    %5 = vector.shape_cast %4 : vector<1x100x1xf32> to vector<100x1xf32>
    %6 = vector.shape_cast %5 : vector<100x1xf32> to vector<100x1xf32>
    %7 = vector.broadcast %6 : vector<100x1xf32> to vector<100x128xf32>
    %cst = arith.constant dense<0.000000e+00> : vector<100x128xf32>
    %8 = tpu.matmul %0, %7, %cst {dimension_numbers = #tpu.dot_dimension_numbers<[1], [0], [0], [1], [0, 0, 1, 1], [], []>} : vector<100x100xf32>, vector<100x128xf32>, vector<100x128xf32> -> vector<100x128xf32>
    %9 = vector.broadcast %1 : vector<100x1xf32> to vector<100x128xf32>
    %10 = arith.addf %8, %9 : vector<100x128xf32>
    %11 = vector.broadcast %2 : vector<1x128xf32> to vector<100x128xf32>
    %12 = arith.mulf %10, %11 : vector<100x128xf32>
    %13 = vector.broadcast %3 : vector<1x128xf32> to vector<100x128xf32>
    %14 = arith.addf %12, %13 : vector<100x128xf32>
    %c1 = arith.constant 1 : index
    %c0_10 = arith.constant 0 : index
    %c0_11 = arith.constant 0 : index
    %15 = vector.load %arg0[%c1, %c0_10, %c0_11] : memref<2x100x1xf32, #tpu.memory_space<vmem>>, vector<1x100x1xf32>
    %16 = vector.shape_cast %15 : vector<1x100x1xf32> to vector<100x1xf32>
    %17 = vector.shape_cast %16 : vector<100x1xf32> to vector<100x1xf32>
    %18 = vector.broadcast %17 : vector<100x1xf32> to vector<100x128xf32>
    %cst_12 = arith.constant dense<0.000000e+00> : vector<100x128xf32>
    %19 = tpu.matmul %0, %18, %cst_12 {dimension_numbers = #tpu.dot_dimension_numbers<[1], [0], [0], [1], [0, 0, 1, 1], [], []>} : vector<100x100xf32>, vector<100x128xf32>, vector<100x128xf32> -> vector<100x128xf32>
    %20 = vector.broadcast %1 : vector<100x1xf32> to vector<100x128xf32>
    %21 = arith.addf %19, %20 : vector<100x128xf32>
    %22 = vector.broadcast %2 : vector<1x128xf32> to vector<100x128xf32>
    %23 = arith.mulf %21, %22 : vector<100x128xf32>
    %24 = vector.broadcast %3 : vector<1x128xf32> to vector<100x128xf32>
    %25 = arith.addf %23, %24 : vector<100x128xf32>
    %cst_13 = arith.constant dense<0.000000e+00> : vector<128xf32>
    %26 = vector.multi_reduction <add>, %14, %cst_13 [0] : vector<100x128xf32> to vector<128xf32>
    %27 = vector.shape_cast %26 : vector<128xf32> to vector<1x128xf32>
    %cst_14 = arith.constant 0.000000e+00 : f32
    %28 = vector.broadcast %cst_14 : f32 to vector<1x128xf32>
    %29 = arith.addf %28, %27 : vector<1x128xf32>
    %cst_15 = arith.constant dense<0.000000e+00> : vector<128xf32>
    %30 = vector.multi_reduction <add>, %25, %cst_15 [0] : vector<100x128xf32> to vector<128xf32>
    %31 = vector.shape_cast %30 : vector<128xf32> to vector<1x128xf32>
    %32 = arith.addf %29, %31 : vector<1x128xf32>
    %33 = arith.mulf %14, %14 : vector<100x128xf32>
    %cst_16 = arith.constant dense<0.000000e+00> : vector<128xf32>
    %34 = vector.multi_reduction <add>, %33, %cst_16 [0] : vector<100x128xf32> to vector<128xf32>
    %35 = vector.shape_cast %34 : vector<128xf32> to vector<1x128xf32>
    %cst_17 = arith.constant 0.000000e+00 : f32
    %36 = vector.broadcast %cst_17 : f32 to vector<1x128xf32>
    %37 = arith.addf %36, %35 : vector<1x128xf32>
    %38 = arith.mulf %25, %25 : vector<100x128xf32>
    %cst_18 = arith.constant dense<0.000000e+00> : vector<128xf32>
    %39 = vector.multi_reduction <add>, %38, %cst_18 [0] : vector<100x128xf32> to vector<128xf32>
    %40 = vector.shape_cast %39 : vector<128xf32> to vector<1x128xf32>
    %41 = arith.addf %37, %40 : vector<1x128xf32>
    %cst_19 = arith.constant 5.000000e-03 : f32
    %42 = vector.broadcast %cst_19 : f32 to vector<1x128xf32>
    %43 = arith.mulf %32, %42 : vector<1x128xf32>
    %cst_20 = arith.constant 5.000000e-03 : f32
    %44 = vector.broadcast %cst_20 : f32 to vector<1x128xf32>
    %45 = arith.mulf %41, %44 : vector<1x128xf32>
    %46 = arith.mulf %43, %43 : vector<1x128xf32>
    %47 = arith.subf %45, %46 : vector<1x128xf32>
    %cst_21 = arith.constant 0.000000e+00 : f32
    %48 = vector.broadcast %cst_21 : f32 to vector<1x128xf32>
    %49 = arith.maximumf %47, %48 : vector<1x128xf32>
    %cst_22 = arith.constant 9.99999974E-6 : f32
    %50 = vector.broadcast %cst_22 : f32 to vector<1x128xf32>
    %51 = arith.addf %49, %50 : vector<1x128xf32>
    %52 = math.rsqrt %51 : vector<1x128xf32>
    %c0_23 = arith.constant 0 : index
    %c0_24 = arith.constant 0 : index
    %53 = vector.load %arg5[%c0_23, %c0_24] : memref<1x128xf32, #tpu.memory_space<vmem>>, vector<1x128xf32>
    %54 = arith.mulf %52, %53 : vector<1x128xf32>
    %c0_25 = arith.constant 0 : index
    %c0_26 = arith.constant 0 : index
    %55 = vector.load %arg6[%c0_25, %c0_26] : memref<1x128xf32, #tpu.memory_space<vmem>>, vector<1x128xf32>
    %56 = arith.mulf %43, %54 : vector<1x128xf32>
    %57 = arith.subf %55, %56 : vector<1x128xf32>
    %c0_27 = arith.constant 0 : index
    %c0_28 = arith.constant 0 : index
    %58 = vector.load %arg7[%c0_27, %c0_28] : memref<128x128xf32, #tpu.memory_space<vmem>>, vector<128x128xf32>
    %c0_29 = arith.constant 0 : index
    %c0_30 = arith.constant 0 : index
    %59 = vector.load %arg8[%c0_29, %c0_30] : memref<1x128xf32, #tpu.memory_space<vmem>>, vector<1x128xf32>
    %60 = vector.broadcast %54 : vector<1x128xf32> to vector<100x128xf32>
    %61 = arith.mulf %14, %60 : vector<100x128xf32>
    %62 = vector.broadcast %57 : vector<1x128xf32> to vector<100x128xf32>
    %63 = arith.addf %61, %62 : vector<100x128xf32>
    %cst_31 = arith.constant dense<0.000000e+00> : vector<100x128xf32>
    %64 = tpu.matmul %63, %58, %cst_31 {dimension_numbers = #tpu.dot_dimension_numbers<[1], [0], [0], [1], [0, 0, 1, 1], [], []>} : vector<100x128xf32>, vector<128x128xf32>, vector<100x128xf32> -> vector<100x128xf32>
    %65 = vector.broadcast %59 : vector<1x128xf32> to vector<100x128xf32>
    %66 = arith.addf %64, %65 : vector<100x128xf32>
    %67 = vector.broadcast %54 : vector<1x128xf32> to vector<100x128xf32>
    %68 = arith.mulf %25, %67 : vector<100x128xf32>
    %69 = vector.broadcast %57 : vector<1x128xf32> to vector<100x128xf32>
    %70 = arith.addf %68, %69 : vector<100x128xf32>
    %cst_32 = arith.constant dense<0.000000e+00> : vector<100x128xf32>
    %71 = tpu.matmul %70, %58, %cst_32 {dimension_numbers = #tpu.dot_dimension_numbers<[1], [0], [0], [1], [0, 0, 1, 1], [], []>} : vector<100x128xf32>, vector<128x128xf32>, vector<100x128xf32> -> vector<100x128xf32>
    %72 = vector.broadcast %59 : vector<1x128xf32> to vector<100x128xf32>
    %73 = arith.addf %71, %72 : vector<100x128xf32>
    %cst_33 = arith.constant dense<0.000000e+00> : vector<128xf32>
    %74 = vector.multi_reduction <add>, %66, %cst_33 [0] : vector<100x128xf32> to vector<128xf32>
    %75 = vector.shape_cast %74 : vector<128xf32> to vector<1x128xf32>
    %cst_34 = arith.constant 0.000000e+00 : f32
    %76 = vector.broadcast %cst_34 : f32 to vector<1x128xf32>
    %77 = arith.addf %76, %75 : vector<1x128xf32>
    %cst_35 = arith.constant dense<0.000000e+00> : vector<128xf32>
    %78 = vector.multi_reduction <add>, %73, %cst_35 [0] : vector<100x128xf32> to vector<128xf32>
    %79 = vector.shape_cast %78 : vector<128xf32> to vector<1x128xf32>
    %80 = arith.addf %77, %79 : vector<1x128xf32>
    %81 = arith.mulf %66, %66 : vector<100x128xf32>
    %cst_36 = arith.constant dense<0.000000e+00> : vector<128xf32>
    %82 = vector.multi_reduction <add>, %81, %cst_36 [0] : vector<100x128xf32> to vector<128xf32>
    %83 = vector.shape_cast %82 : vector<128xf32> to vector<1x128xf32>
    %cst_37 = arith.constant 0.000000e+00 : f32
    %84 = vector.broadcast %cst_37 : f32 to vector<1x128xf32>
    %85 = arith.addf %84, %83 : vector<1x128xf32>
    %86 = arith.mulf %73, %73 : vector<100x128xf32>
    %cst_38 = arith.constant dense<0.000000e+00> : vector<128xf32>
    %87 = vector.multi_reduction <add>, %86, %cst_38 [0] : vector<100x128xf32> to vector<128xf32>
    %88 = vector.shape_cast %87 : vector<128xf32> to vector<1x128xf32>
    %89 = arith.addf %85, %88 : vector<1x128xf32>
    %cst_39 = arith.constant 5.000000e-03 : f32
    %90 = vector.broadcast %cst_39 : f32 to vector<1x128xf32>
    %91 = arith.mulf %80, %90 : vector<1x128xf32>
    %cst_40 = arith.constant 5.000000e-03 : f32
    %92 = vector.broadcast %cst_40 : f32 to vector<1x128xf32>
    %93 = arith.mulf %89, %92 : vector<1x128xf32>
    %94 = arith.mulf %91, %91 : vector<1x128xf32>
    %95 = arith.subf %93, %94 : vector<1x128xf32>
    %cst_41 = arith.constant 0.000000e+00 : f32
    %96 = vector.broadcast %cst_41 : f32 to vector<1x128xf32>
    %97 = arith.maximumf %95, %96 : vector<1x128xf32>
    %cst_42 = arith.constant 9.99999974E-6 : f32
    %98 = vector.broadcast %cst_42 : f32 to vector<1x128xf32>
    %99 = arith.addf %97, %98 : vector<1x128xf32>
    %100 = math.rsqrt %99 : vector<1x128xf32>
    %c0_43 = arith.constant 0 : index
    %c0_44 = arith.constant 0 : index
    %101 = vector.load %arg9[%c0_43, %c0_44] : memref<1x128xf32, #tpu.memory_space<vmem>>, vector<1x128xf32>
    %102 = arith.mulf %100, %101 : vector<1x128xf32>
    %c0_45 = arith.constant 0 : index
    %c0_46 = arith.constant 0 : index
    %103 = vector.load %arg10[%c0_45, %c0_46] : memref<1x128xf32, #tpu.memory_space<vmem>>, vector<1x128xf32>
    %104 = arith.mulf %91, %102 : vector<1x128xf32>
    %105 = arith.subf %103, %104 : vector<1x128xf32>
    %106 = vector.broadcast %102 : vector<1x128xf32> to vector<100x128xf32>
    %107 = arith.mulf %66, %106 : vector<100x128xf32>
    %108 = vector.broadcast %105 : vector<1x128xf32> to vector<100x128xf32>
    %109 = arith.addf %107, %108 : vector<100x128xf32>
    %110 = arith.addf %109, %10 : vector<100x128xf32>
    %c0_47 = arith.constant 0 : index
    %c0_48 = arith.constant 0 : index
    %c0_49 = arith.constant 0 : index
    %111 = vector.load %arg16[%c0_47, %c0_48, %c0_49] : memref<2x100x128xf32, #tpu.memory_space<vmem>>, vector<1x100x128xf32>
    %112 = vector.shape_cast %111 : vector<1x100x128xf32> to vector<100x128xf32>
    %113 = vector.shape_cast %110 : vector<100x128xf32> to vector<1x100x128xf32>
    tpu.vector_store %arg16[%c0_47, %c0_48, %c0_49], %113 {strides = array<i32>} : memref<2x100x128xf32, #tpu.memory_space<vmem>>, vector<1x100x128xf32>,
    %114 = vector.broadcast %102 : vector<1x128xf32> to vector<100x128xf32>
    %115 = arith.mulf %73, %114 : vector<100x128xf32>
    %116 = vector.broadcast %105 : vector<1x128xf32> to vector<100x128xf32>
    %117 = arith.addf %115, %116 : vector<100x128xf32>
    %118 = arith.addf %117, %21 : vector<100x128xf32>
    %c1_50 = arith.constant 1 : index
    %c0_51 = arith.constant 0 : index
    %c0_52 = arith.constant 0 : index
    %119 = vector.load %arg16[%c1_50, %c0_51, %c0_52] : memref<2x100x128xf32, #tpu.memory_space<vmem>>, vector<1x100x128xf32>
    %120 = vector.shape_cast %119 : vector<1x100x128xf32> to vector<100x128xf32>
    %121 = vector.shape_cast %118 : vector<100x128xf32> to vector<1x100x128xf32>
    tpu.vector_store %arg16[%c1_50, %c0_51, %c0_52], %121 {strides = array<i32>} : memref<2x100x128xf32, #tpu.memory_space<vmem>>, vector<1x100x128xf32>,
    %c0_53 = arith.constant 0 : index
    %c0_54 = arith.constant 0 : index
    %c0_55 = arith.constant 0 : index
    %122 = vector.load %arg16[%c0_53, %c0_54, %c0_55] : memref<2x100x128xf32, #tpu.memory_space<vmem>>, vector<1x1x64xf32>
    %123 = vector.shape_cast %122 : vector<1x1x64xf32> to vector<1x64xf32>
    %c0_56 = arith.constant 0 : index
    %c0_57 = arith.constant 0 : index
    %124 = vector.load %arg17[%c0_56, %c0_57] : memref<2x6400xf32, #tpu.memory_space<vmem>>, vector<1x64xf32>
    tpu.vector_store %arg17[%c0_56, %c0_57], %123 {strides = array<i32>} : memref<2x6400xf32, #tpu.memory_space<vmem>>, vector<1x64xf32>,
    %c0_58 = arith.constant 0 : index
    %c1_59 = arith.constant 1 : index
    %c0_60 = arith.constant 0 : index
    %125 = vector.load %arg16[%c0_58, %c1_59, %c0_60] : memref<2x100x128xf32, #tpu.memory_space<vmem>>, vector<1x1x64xf32>
    %126 = vector.shape_cast %125 : vector<1x1x64xf32> to vector<1x64xf32>
    %c0_61 = arith.constant 0 : index
    %c64 = arith.constant 64 : index
    %127 = vector.load %arg17[%c0_61, %c64] : memref<2x6400xf32, #tpu.memory_space<vmem>>, vector<1x64xf32>
    tpu.vector_store %arg17[%c0_61, %c64], %126 {strides = array<i32>} : memref<2x6400xf32, #tpu.memory_space<vmem>>, vector<1x64xf32>,
    %c0_62 = arith.constant 0 : index
    %c2 = arith.constant 2 : index
    %c0_63 = arith.constant 0 : index
    %128 = vector.load %arg16[%c0_62, %c2, %c0_63] : memref<2x100x128xf32, #tpu.memory_space<vmem>>, vector<1x1x64xf32>
    %129 = vector.shape_cast %128 : vector<1x1x64xf32> to vector<1x64xf32>
    %c0_64 = arith.constant 0 : index
    %c128 = arith.constant 128 : index
    %130 = vector.load %arg17[%c0_64, %c128] : memref<2x6400xf32, #tpu.memory_space<vmem>>, vector<1x64xf32>
    tpu.vector_store %arg17[%c0_64, %c128], %129 {strides = array<i32>} : memref<2x6400xf32, #tpu.memory_space<vmem>>, vector<1x64xf32>,
    %c0_65 = arith.constant 0 : index
    %c3 = arith.constant 3 : index
    %c0_66 = arith.constant 0 : index
    %131 = vector.load %arg16[%c0_65, %c3, %c0_66] : memref<2x100x128xf32, #tpu.memory_space<vmem>>, vector<1x1x64xf32>
    %132 = vector.shape_cast %131 : vector<1x1x64xf32> to vector<1x64xf32>
    %c0_67 = arith.constant 0 : index
    %c192 = arith.constant 192 : index
    %133 = vector.load %arg17[%c0_67, %c192] : memref<2x6400xf32, #tpu.memory_space<vmem>>, vector<1x64xf32>
    tpu.vector_store %arg17[%c0_67, %c192], %132 {strides = array<i32>} : memref<2x6400xf32, #tpu.memory_space<vmem>>, vector<1x64xf32>,
    %c0_68 = arith.constant 0 : index
    %c4 = arith.constant 4 : index
    %c0_69 = arith.constant 0 : index
    %134 = vector.load %arg16[%c0_68, %c4, %c0_69] : memref<2x100x128xf32, #tpu.memory_space<vmem>>, vector<1x1x64xf32>
    %135 = vector.shape_cast %134 : vector<1x1x64xf32> to vector<1x64xf32>
    %c0_70 = arith.constant 0 : index
    %c256 = arith.constant 256 : index
    %136 = vector.load %arg17[%c0_70, %c256] : memref<2x6400xf32, #tpu.memory_space<vmem>>, vector<1x64xf32>
    tpu.vector_store %arg17[%c0_70, %c256], %135 {strides = array<i32>} : memref<2x6400xf32, #tpu.memory_space<vmem>>, vector<1x64xf32>,
    %c0_71 = arith.constant 0 : index
    %c5 = arith.constant 5 : index
    %c0_72 = arith.constant 0 : index
    %137 = vector.load %arg16[%c0_71, %c5, %c0_72] : memref<2x100x128xf32, #tpu.memory_space<vmem>>, vector<1x1x64xf32>
    %138 = vector.shape_cast %137 : vector<1x1x64xf32> to vector<1x64xf32>
    %c0_73 = arith.constant 0 : index
    %c320 = arith.constant 320 : index
    %139 = vector.load %arg17[%c0_73, %c320] : memref<2x6400xf32, #tpu.memory_space<vmem>>, vector<1x64xf32>
    tpu.vector_store %arg17[%c0_73, %c320], %138 {strides = array<i32>} : memref<2x6400xf32, #tpu.memory_space<vmem>>, vector<1x64xf32>,
    %c0_74 = arith.constant 0 : index
    %c6 = arith.constant 6 : index
    %c0_75 = arith.constant 0 : index
    %140 = vector.load %arg16[%c0_74, %c6, %c0_75] : memref<2x100x128xf32, #tpu.memory_space<vmem>>, vector<1x1x64xf32>
    %141 = vector.shape_cast %140 : vector<1x1x64xf32> to vector<1x64xf32>
    %c0_76 = arith.constant 0 : index
    %c384 = arith.constant 384 : index
    %142 = vector.load %arg17[%c0_76, %c384] : memref<2x6400xf32, #tpu.memory_space<vmem>>, vector<1x64xf32>
    tpu.vector_store %arg17[%c0_76, %c384], %141 {strides = array<i32>} : memref<2x6400xf32, #tpu.memory_space<vmem>>, vector<1x64xf32>,
    %c0_77 = arith.constant 0 : index
    %c7 = arith.constant 7 : index
    %c0_78 = arith.constant 0 : index
    %143 = vector.load %arg16[%c0_77, %c7, %c0_78] : memref<2x100x128xf32, #tpu.memory_space<vmem>>, vector<1x1x64xf32>
    %144 = vector.shape_cast %143 : vector<1x1x64xf32> to vector<1x64xf32>
    %c0_79 = arith.constant 0 : index
    %c448 = arith.constant 448 : index
    %145 = vector.load %arg17[%c0_79, %c448] : memref<2x6400xf32, #tpu.memory_space<vmem>>, vector<1x64xf32>
    tpu.vector_store %arg17[%c0_79, %c448], %144 {strides = array<i32>} : memref<2x6400xf32, #tpu.memory_space<vmem>>, vector<1x64xf32>,
    %c0_80 = arith.constant 0 : index
    %c8 = arith.constant 8 : index
    %c0_81 = arith.constant 0 : index
    %146 = vector.load %arg16[%c0_80, %c8, %c0_81] : memref<2x100x128xf32, #tpu.memory_space<vmem>>, vector<1x1x64xf32>
    %147 = vector.shape_cast %146 : vector<1x1x64xf32> to vector<1x64xf32>
    %c0_82 = arith.constant 0 : index
    %c512 = arith.constant 512 : index
    %148 = vector.load %arg17[%c0_82, %c512] : memref<2x6400xf32, #tpu.memory_space<vmem>>, vector<1x64xf32>
    tpu.vector_store %arg17[%c0_82, %c512], %147 {strides = array<i32>} : memref<2x6400xf32, #tpu.memory_space<vmem>>, vector<1x64xf32>,
    %c0_83 = arith.constant 0 : index
    %c9 = arith.constant 9 : index
    %c0_84 = arith.constant 0 : index
    %149 = vector.load %arg16[%c0_83, %c9, %c0_84] : memref<2x100x128xf32, #tpu.memory_space<vmem>>, vector<1x1x64xf32>
    %150 = vector.shape_cast %149 : vector<1x1x64xf32> to vector<1x64xf32>
    %c0_85 = arith.constant 0 : index
    %c576 = arith.constant 576 : index
    %151 = vector.load %arg17[%c0_85, %c576] : memref<2x6400xf32, #tpu.memory_space<vmem>>, vector<1x64xf32>
    tpu.vector_store %arg17[%c0_85, %c576], %150 {strides = array<i32>} : memref<2x6400xf32, #tpu.memory_space<vmem>>, vector<1x64xf32>,
    %c0_86 = arith.constant 0 : index
    %c10 = arith.constant 10 : index
    %c0_87 = arith.constant 0 : index
    %152 = vector.load %arg16[%c0_86, %c10, %c0_87] : memref<2x100x128xf32, #tpu.memory_space<vmem>>, vector<1x1x64xf32>
    %153 = vector.shape_cast %152 : vector<1x1x64xf32> to vector<1x64xf32>
    %c0_88 = arith.constant 0 : index
    %c640 = arith.constant 640 : index
    %154 = vector.load %arg17[%c0_88, %c640] : memref<2x6400xf32, #tpu.memory_space<vmem>>, vector<1x64xf32>
    tpu.vector_store %arg17[%c0_88, %c640], %153 {strides = array<i32>} : memref<2x6400xf32, #tpu.memory_space<vmem>>, vector<1x64xf32>,
    %c0_89 = arith.constant 0 : index
    %c11 = arith.constant 11 : index
    %c0_90 = arith.constant 0 : index
    %155 = vector.load %arg16[%c0_89, %c11, %c0_90] : memref<2x100x128xf32, #tpu.memory_space<vmem>>, vector<1x1x64xf32>
    %156 = vector.shape_cast %155 : vector<1x1x64xf32> to vector<1x64xf32>
    %c0_91 = arith.constant 0 : index
    %c704 = arith.constant 704 : index
    %157 = vector.load %arg17[%c0_91, %c704] : memref<2x6400xf32, #tpu.memory_space<vmem>>, vector<1x64xf32>
    tpu.vector_store %arg17[%c0_91, %c704], %156 {strides = array<i32>} : memref<2x6400xf32, #tpu.memory_space<vmem>>, vector<1x64xf32>,
    %c0_92 = arith.constant 0 : index
    %c12 = arith.constant 12 : index
    %c0_93 = arith.constant 0 : index
    %158 = vector.load %arg16[%c0_92, %c12, %c0_93] : memref<2x100x128xf32, #tpu.memory_space<vmem>>, vector<1x1x64xf32>
    %159 = vector.shape_cast %158 : vector<1x1x64xf32> to vector<1x64xf32>
    %c0_94 = arith.constant 0 : index
    %c768 = arith.constant 768 : index
    %160 = vector.load %arg17[%c0_94, %c768] : memref<2x6400xf32, #tpu.memory_space<vmem>>, vector<1x64xf32>
    tpu.vector_store %arg17[%c0_94, %c768], %159 {strides = array<i32>} : memref<2x6400xf32, #tpu.memory_space<vmem>>, vector<1x64xf32>,
    %c0_95 = arith.constant 0 : index
    %c13 = arith.constant 13 : index
    %c0_96 = arith.constant 0 : index
    %161 = vector.load %arg16[%c0_95, %c13, %c0_96] : memref<2x100x128xf32, #tpu.memory_space<vmem>>, vector<1x1x64xf32>
    %162 = vector.shape_cast %161 : vector<1x1x64xf32> to vector<1x64xf32>
    %c0_97 = arith.constant 0 : index
    %c832 = arith.constant 832 : index
    %163 = vector.load %arg17[%c0_97, %c832] : memref<2x6400xf32, #tpu.memory_space<vmem>>, vector<1x64xf32>
    tpu.vector_store %arg17[%c0_97, %c832], %162 {strides = array<i32>} : memref<2x6400xf32, #tpu.memory_space<vmem>>, vector<1x64xf32>,
    %c0_98 = arith.constant 0 : index
    %c14 = arith.constant 14 : index
    %c0_99 = arith.constant 0 : index
    %164 = vector.load %arg16[%c0_98, %c14, %c0_99] : memref<2x100x128xf32, #tpu.memory_space<vmem>>, vector<1x1x64xf32>
    %165 = vector.shape_cast %164 : vector<1x1x64xf32> to vector<1x64xf32>
    %c0_100 = arith.constant 0 : index
    %c896 = arith.constant 896 : index
    %166 = vector.load %arg17[%c0_100, %c896] : memref<2x6400xf32, #tpu.memory_space<vmem>>, vector<1x64xf32>
    tpu.vector_store %arg17[%c0_100, %c896], %165 {strides = array<i32>} : memref<2x6400xf32, #tpu.memory_space<vmem>>, vector<1x64xf32>,
    %c0_101 = arith.constant 0 : index
    %c15 = arith.constant 15 : index
    %c0_102 = arith.constant 0 : index
    %167 = vector.load %arg16[%c0_101, %c15, %c0_102] : memref<2x100x128xf32, #tpu.memory_space<vmem>>, vector<1x1x64xf32>
    %168 = vector.shape_cast %167 : vector<1x1x64xf32> to vector<1x64xf32>
    %c0_103 = arith.constant 0 : index
    %c960 = arith.constant 960 : index
    %169 = vector.load %arg17[%c0_103, %c960] : memref<2x6400xf32, #tpu.memory_space<vmem>>, vector<1x64xf32>
    tpu.vector_store %arg17[%c0_103, %c960], %168 {strides = array<i32>} : memref<2x6400xf32, #tpu.memory_space<vmem>>, vector<1x64xf32>,
    %c0_104 = arith.constant 0 : index
    %c16 = arith.constant 16 : index
    %c0_105 = arith.constant 0 : index
    %170 = vector.load %arg16[%c0_104, %c16, %c0_105] : memref<2x100x128xf32, #tpu.memory_space<vmem>>, vector<1x1x64xf32>
    %171 = vector.shape_cast %170 : vector<1x1x64xf32> to vector<1x64xf32>
    %c0_106 = arith.constant 0 : index
    %c1024 = arith.constant 1024 : index
    %172 = vector.load %arg17[%c0_106, %c1024] : memref<2x6400xf32, #tpu.memory_space<vmem>>, vector<1x64xf32>
    tpu.vector_store %arg17[%c0_106, %c1024], %171 {strides = array<i32>} : memref<2x6400xf32, #tpu.memory_space<vmem>>, vector<1x64xf32>,
    %c0_107 = arith.constant 0 : index
    %c17 = arith.constant 17 : index
    %c0_108 = arith.constant 0 : index
    %173 = vector.load %arg16[%c0_107, %c17, %c0_108] : memref<2x100x128xf32, #tpu.memory_space<vmem>>, vector<1x1x64xf32>
    %174 = vector.shape_cast %173 : vector<1x1x64xf32> to vector<1x64xf32>
    %c0_109 = arith.constant 0 : index
    %c1088 = arith.constant 1088 : index
    %175 = vector.load %arg17[%c0_109, %c1088] : memref<2x6400xf32, #tpu.memory_space<vmem>>, vector<1x64xf32>
    tpu.vector_store %arg17[%c0_109, %c1088], %174 {strides = array<i32>} : memref<2x6400xf32, #tpu.memory_space<vmem>>, vector<1x64xf32>,
    %c0_110 = arith.constant 0 : index
    %c18 = arith.constant 18 : index
    %c0_111 = arith.constant 0 : index
    %176 = vector.load %arg16[%c0_110, %c18, %c0_111] : memref<2x100x128xf32, #tpu.memory_space<vmem>>, vector<1x1x64xf32>
    %177 = vector.shape_cast %176 : vector<1x1x64xf32> to vector<1x64xf32>
    %c0_112 = arith.constant 0 : index
    %c1152 = arith.constant 1152 : index
    %178 = vector.load %arg17[%c0_112, %c1152] : memref<2x6400xf32, #tpu.memory_space<vmem>>, vector<1x64xf32>
    tpu.vector_store %arg17[%c0_112, %c1152], %177 {strides = array<i32>} : memref<2x6400xf32, #tpu.memory_space<vmem>>, vector<1x64xf32>,
    %c0_113 = arith.constant 0 : index
    %c19 = arith.constant 19 : index
    %c0_114 = arith.constant 0 : index
    %179 = vector.load %arg16[%c0_113, %c19, %c0_114] : memref<2x100x128xf32, #tpu.memory_space<vmem>>, vector<1x1x64xf32>
    %180 = vector.shape_cast %179 : vector<1x1x64xf32> to vector<1x64xf32>
    %c0_115 = arith.constant 0 : index
    %c1216 = arith.constant 1216 : index
    %181 = vector.load %arg17[%c0_115, %c1216] : memref<2x6400xf32, #tpu.memory_space<vmem>>, vector<1x64xf32>
    tpu.vector_store %arg17[%c0_115, %c1216], %180 {strides = array<i32>} : memref<2x6400xf32, #tpu.memory_space<vmem>>, vector<1x64xf32>,
    %c0_116 = arith.constant 0 : index
    %c20 = arith.constant 20 : index
    %c0_117 = arith.constant 0 : index
    %182 = vector.load %arg16[%c0_116, %c20, %c0_117] : memref<2x100x128xf32, #tpu.memory_space<vmem>>, vector<1x1x64xf32>
    %183 = vector.shape_cast %182 : vector<1x1x64xf32> to vector<1x64xf32>
    %c0_118 = arith.constant 0 : index
    %c1280 = arith.constant 1280 : index
    %184 = vector.load %arg17[%c0_118, %c1280] : memref<2x6400xf32, #tpu.memory_space<vmem>>, vector<1x64xf32>
    tpu.vector_store %arg17[%c0_118, %c1280], %183 {strides = array<i32>} : memref<2x6400xf32, #tpu.memory_space<vmem>>, vector<1x64xf32>,
    %c0_119 = arith.constant 0 : index
    %c21 = arith.constant 21 : index
    %c0_120 = arith.constant 0 : index
    %185 = vector.load %arg16[%c0_119, %c21, %c0_120] : memref<2x100x128xf32, #tpu.memory_space<vmem>>, vector<1x1x64xf32>
    %186 = vector.shape_cast %185 : vector<1x1x64xf32> to vector<1x64xf32>
    %c0_121 = arith.constant 0 : index
    %c1344 = arith.constant 1344 : index
    %187 = vector.load %arg17[%c0_121, %c1344] : memref<2x6400xf32, #tpu.memory_space<vmem>>, vector<1x64xf32>
    tpu.vector_store %arg17[%c0_121, %c1344], %186 {strides = array<i32>} : memref<2x6400xf32, #tpu.memory_space<vmem>>, vector<1x64xf32>,
    %c0_122 = arith.constant 0 : index
    %c22 = arith.constant 22 : index
    %c0_123 = arith.constant 0 : index
    %188 = vector.load %arg16[%c0_122, %c22, %c0_123] : memref<2x100x128xf32, #tpu.memory_space<vmem>>, vector<1x1x64xf32>
    %189 = vector.shape_cast %188 : vector<1x1x64xf32> to vector<1x64xf32>
    %c0_124 = arith.constant 0 : index
    %c1408 = arith.constant 1408 : index
    %190 = vector.load %arg17[%c0_124, %c1408] : memref<2x6400xf32, #tpu.memory_space<vmem>>, vector<1x64xf32>
    tpu.vector_store %arg17[%c0_124, %c1408], %189 {strides = array<i32>} : memref<2x6400xf32, #tpu.memory_space<vmem>>, vector<1x64xf32>,
    %c0_125 = arith.constant 0 : index
    %c23 = arith.constant 23 : index
    %c0_126 = arith.constant 0 : index
    %191 = vector.load %arg16[%c0_125, %c23, %c0_126] : memref<2x100x128xf32, #tpu.memory_space<vmem>>, vector<1x1x64xf32>
    %192 = vector.shape_cast %191 : vector<1x1x64xf32> to vector<1x64xf32>
    %c0_127 = arith.constant 0 : index
    %c1472 = arith.constant 1472 : index
    %193 = vector.load %arg17[%c0_127, %c1472] : memref<2x6400xf32, #tpu.memory_space<vmem>>, vector<1x64xf32>
    tpu.vector_store %arg17[%c0_127, %c1472], %192 {strides = array<i32>} : memref<2x6400xf32, #tpu.memory_space<vmem>>, vector<1x64xf32>,
    %c0_128 = arith.constant 0 : index
    %c24 = arith.constant 24 : index
    %c0_129 = arith.constant 0 : index
    %194 = vector.load %arg16[%c0_128, %c24, %c0_129] : memref<2x100x128xf32, #tpu.memory_space<vmem>>, vector<1x1x64xf32>
    %195 = vector.shape_cast %194 : vector<1x1x64xf32> to vector<1x64xf32>
    %c0_130 = arith.constant 0 : index
    %c1536 = arith.constant 1536 : index
    %196 = vector.load %arg17[%c0_130, %c1536] : memref<2x6400xf32, #tpu.memory_space<vmem>>, vector<1x64xf32>
    tpu.vector_store %arg17[%c0_130, %c1536], %195 {strides = array<i32>} : memref<2x6400xf32, #tpu.memory_space<vmem>>, vector<1x64xf32>,
    %c0_131 = arith.constant 0 : index
    %c25 = arith.constant 25 : index
    %c0_132 = arith.constant 0 : index
    %197 = vector.load %arg16[%c0_131, %c25, %c0_132] : memref<2x100x128xf32, #tpu.memory_space<vmem>>, vector<1x1x64xf32>
    %198 = vector.shape_cast %197 : vector<1x1x64xf32> to vector<1x64xf32>
    %c0_133 = arith.constant 0 : index
    %c1600 = arith.constant 1600 : index
    %199 = vector.load %arg17[%c0_133, %c1600] : memref<2x6400xf32, #tpu.memory_space<vmem>>, vector<1x64xf32>
    tpu.vector_store %arg17[%c0_133, %c1600], %198 {strides = array<i32>} : memref<2x6400xf32, #tpu.memory_space<vmem>>, vector<1x64xf32>,
    %c0_134 = arith.constant 0 : index
    %c26 = arith.constant 26 : index
    %c0_135 = arith.constant 0 : index
    %200 = vector.load %arg16[%c0_134, %c26, %c0_135] : memref<2x100x128xf32, #tpu.memory_space<vmem>>, vector<1x1x64xf32>
    %201 = vector.shape_cast %200 : vector<1x1x64xf32> to vector<1x64xf32>
    %c0_136 = arith.constant 0 : index
    %c1664 = arith.constant 1664 : index
    %202 = vector.load %arg17[%c0_136, %c1664] : memref<2x6400xf32, #tpu.memory_space<vmem>>, vector<1x64xf32>
    tpu.vector_store %arg17[%c0_136, %c1664], %201 {strides = array<i32>} : memref<2x6400xf32, #tpu.memory_space<vmem>>, vector<1x64xf32>,
    %c0_137 = arith.constant 0 : index
    %c27 = arith.constant 27 : index
    %c0_138 = arith.constant 0 : index
    %203 = vector.load %arg16[%c0_137, %c27, %c0_138] : memref<2x100x128xf32, #tpu.memory_space<vmem>>, vector<1x1x64xf32>
    %204 = vector.shape_cast %203 : vector<1x1x64xf32> to vector<1x64xf32>
    %c0_139 = arith.constant 0 : index
    %c1728 = arith.constant 1728 : index
    %205 = vector.load %arg17[%c0_139, %c1728] : memref<2x6400xf32, #tpu.memory_space<vmem>>, vector<1x64xf32>
    tpu.vector_store %arg17[%c0_139, %c1728], %204 {strides = array<i32>} : memref<2x6400xf32, #tpu.memory_space<vmem>>, vector<1x64xf32>,
    %c0_140 = arith.constant 0 : index
    %c28 = arith.constant 28 : index
    %c0_141 = arith.constant 0 : index
    %206 = vector.load %arg16[%c0_140, %c28, %c0_141] : memref<2x100x128xf32, #tpu.memory_space<vmem>>, vector<1x1x64xf32>
    %207 = vector.shape_cast %206 : vector<1x1x64xf32> to vector<1x64xf32>
    %c0_142 = arith.constant 0 : index
    %c1792 = arith.constant 1792 : index
    %208 = vector.load %arg17[%c0_142, %c1792] : memref<2x6400xf32, #tpu.memory_space<vmem>>, vector<1x64xf32>
    tpu.vector_store %arg17[%c0_142, %c1792], %207 {strides = array<i32>} : memref<2x6400xf32, #tpu.memory_space<vmem>>, vector<1x64xf32>,
    %c0_143 = arith.constant 0 : index
    %c29 = arith.constant 29 : index
    %c0_144 = arith.constant 0 : index
    %209 = vector.load %arg16[%c0_143, %c29, %c0_144] : memref<2x100x128xf32, #tpu.memory_space<vmem>>, vector<1x1x64xf32>
    %210 = vector.shape_cast %209 : vector<1x1x64xf32> to vector<1x64xf32>
    %c0_145 = arith.constant 0 : index
    %c1856 = arith.constant 1856 : index
    %211 = vector.load %arg17[%c0_145, %c1856] : memref<2x6400xf32, #tpu.memory_space<vmem>>, vector<1x64xf32>
    tpu.vector_store %arg17[%c0_145, %c1856], %210 {strides = array<i32>} : memref<2x6400xf32, #tpu.memory_space<vmem>>, vector<1x64xf32>,
    %c0_146 = arith.constant 0 : index
    %c30 = arith.constant 30 : index
    %c0_147 = arith.constant 0 : index
    %212 = vector.load %arg16[%c0_146, %c30, %c0_147] : memref<2x100x128xf32, #tpu.memory_space<vmem>>, vector<1x1x64xf32>
    %213 = vector.shape_cast %212 : vector<1x1x64xf32> to vector<1x64xf32>
    %c0_148 = arith.constant 0 : index
    %c1920 = arith.constant 1920 : index
    %214 = vector.load %arg17[%c0_148, %c1920] : memref<2x6400xf32, #tpu.memory_space<vmem>>, vector<1x64xf32>
    tpu.vector_store %arg17[%c0_148, %c1920], %213 {strides = array<i32>} : memref<2x6400xf32, #tpu.memory_space<vmem>>, vector<1x64xf32>,
    %c0_149 = arith.constant 0 : index
    %c31 = arith.constant 31 : index
    %c0_150 = arith.constant 0 : index
    %215 = vector.load %arg16[%c0_149, %c31, %c0_150] : memref<2x100x128xf32, #tpu.memory_space<vmem>>, vector<1x1x64xf32>
    %216 = vector.shape_cast %215 : vector<1x1x64xf32> to vector<1x64xf32>
    %c0_151 = arith.constant 0 : index
    %c1984 = arith.constant 1984 : index
    %217 = vector.load %arg17[%c0_151, %c1984] : memref<2x6400xf32, #tpu.memory_space<vmem>>, vector<1x64xf32>
    tpu.vector_store %arg17[%c0_151, %c1984], %216 {strides = array<i32>} : memref<2x6400xf32, #tpu.memory_space<vmem>>, vector<1x64xf32>,
    %c0_152 = arith.constant 0 : index
    %c32 = arith.constant 32 : index
    %c0_153 = arith.constant 0 : index
    %218 = vector.load %arg16[%c0_152, %c32, %c0_153] : memref<2x100x128xf32, #tpu.memory_space<vmem>>, vector<1x1x64xf32>
    %219 = vector.shape_cast %218 : vector<1x1x64xf32> to vector<1x64xf32>
    %c0_154 = arith.constant 0 : index
    %c2048 = arith.constant 2048 : index
    %220 = vector.load %arg17[%c0_154, %c2048] : memref<2x6400xf32, #tpu.memory_space<vmem>>, vector<1x64xf32>
    tpu.vector_store %arg17[%c0_154, %c2048], %219 {strides = array<i32>} : memref<2x6400xf32, #tpu.memory_space<vmem>>, vector<1x64xf32>,
    %c0_155 = arith.constant 0 : index
    %c33 = arith.constant 33 : index
    %c0_156 = arith.constant 0 : index
    %221 = vector.load %arg16[%c0_155, %c33, %c0_156] : memref<2x100x128xf32, #tpu.memory_space<vmem>>, vector<1x1x64xf32>
    %222 = vector.shape_cast %221 : vector<1x1x64xf32> to vector<1x64xf32>
    %c0_157 = arith.constant 0 : index
    %c2112 = arith.constant 2112 : index
    %223 = vector.load %arg17[%c0_157, %c2112] : memref<2x6400xf32, #tpu.memory_space<vmem>>, vector<1x64xf32>
    tpu.vector_store %arg17[%c0_157, %c2112], %222 {strides = array<i32>} : memref<2x6400xf32, #tpu.memory_space<vmem>>, vector<1x64xf32>,
    %c0_158 = arith.constant 0 : index
    %c34 = arith.constant 34 : index
    %c0_159 = arith.constant 0 : index
    %224 = vector.load %arg16[%c0_158, %c34, %c0_159] : memref<2x100x128xf32, #tpu.memory_space<vmem>>, vector<1x1x64xf32>
    %225 = vector.shape_cast %224 : vector<1x1x64xf32> to vector<1x64xf32>
    %c0_160 = arith.constant 0 : index
    %c2176 = arith.constant 2176 : index
    %226 = vector.load %arg17[%c0_160, %c2176] : memref<2x6400xf32, #tpu.memory_space<vmem>>, vector<1x64xf32>
    tpu.vector_store %arg17[%c0_160, %c2176], %225 {strides = array<i32>} : memref<2x6400xf32, #tpu.memory_space<vmem>>, vector<1x64xf32>,
    %c0_161 = arith.constant 0 : index
    %c35 = arith.constant 35 : index
    %c0_162 = arith.constant 0 : index
    %227 = vector.load %arg16[%c0_161, %c35, %c0_162] : memref<2x100x128xf32, #tpu.memory_space<vmem>>, vector<1x1x64xf32>
    %228 = vector.shape_cast %227 : vector<1x1x64xf32> to vector<1x64xf32>
    %c0_163 = arith.constant 0 : index
    %c2240 = arith.constant 2240 : index
    %229 = vector.load %arg17[%c0_163, %c2240] : memref<2x6400xf32, #tpu.memory_space<vmem>>, vector<1x64xf32>
    tpu.vector_store %arg17[%c0_163, %c2240], %228 {strides = array<i32>} : memref<2x6400xf32, #tpu.memory_space<vmem>>, vector<1x64xf32>,
    %c0_164 = arith.constant 0 : index
    %c36 = arith.constant 36 : index
    %c0_165 = arith.constant 0 : index
    %230 = vector.load %arg16[%c0_164, %c36, %c0_165] : memref<2x100x128xf32, #tpu.memory_space<vmem>>, vector<1x1x64xf32>
    %231 = vector.shape_cast %230 : vector<1x1x64xf32> to vector<1x64xf32>
    %c0_166 = arith.constant 0 : index
    %c2304 = arith.constant 2304 : index
    %232 = vector.load %arg17[%c0_166, %c2304] : memref<2x6400xf32, #tpu.memory_space<vmem>>, vector<1x64xf32>
    tpu.vector_store %arg17[%c0_166, %c2304], %231 {strides = array<i32>} : memref<2x6400xf32, #tpu.memory_space<vmem>>, vector<1x64xf32>,
    %c0_167 = arith.constant 0 : index
    %c37 = arith.constant 37 : index
    %c0_168 = arith.constant 0 : index
    %233 = vector.load %arg16[%c0_167, %c37, %c0_168] : memref<2x100x128xf32, #tpu.memory_space<vmem>>, vector<1x1x64xf32>
    %234 = vector.shape_cast %233 : vector<1x1x64xf32> to vector<1x64xf32>
    %c0_169 = arith.constant 0 : index
    %c2368 = arith.constant 2368 : index
    %235 = vector.load %arg17[%c0_169, %c2368] : memref<2x6400xf32, #tpu.memory_space<vmem>>, vector<1x64xf32>
    tpu.vector_store %arg17[%c0_169, %c2368], %234 {strides = array<i32>} : memref<2x6400xf32, #tpu.memory_space<vmem>>, vector<1x64xf32>,
    %c0_170 = arith.constant 0 : index
    %c38 = arith.constant 38 : index
    %c0_171 = arith.constant 0 : index
    %236 = vector.load %arg16[%c0_170, %c38, %c0_171] : memref<2x100x128xf32, #tpu.memory_space<vmem>>, vector<1x1x64xf32>
    %237 = vector.shape_cast %236 : vector<1x1x64xf32> to vector<1x64xf32>
    %c0_172 = arith.constant 0 : index
    %c2432 = arith.constant 2432 : index
    %238 = vector.load %arg17[%c0_172, %c2432] : memref<2x6400xf32, #tpu.memory_space<vmem>>, vector<1x64xf32>
    tpu.vector_store %arg17[%c0_172, %c2432], %237 {strides = array<i32>} : memref<2x6400xf32, #tpu.memory_space<vmem>>, vector<1x64xf32>,
    %c0_173 = arith.constant 0 : index
    %c39 = arith.constant 39 : index
    %c0_174 = arith.constant 0 : index
    %239 = vector.load %arg16[%c0_173, %c39, %c0_174] : memref<2x100x128xf32, #tpu.memory_space<vmem>>, vector<1x1x64xf32>
    %240 = vector.shape_cast %239 : vector<1x1x64xf32> to vector<1x64xf32>
    %c0_175 = arith.constant 0 : index
    %c2496 = arith.constant 2496 : index
    %241 = vector.load %arg17[%c0_175, %c2496] : memref<2x6400xf32, #tpu.memory_space<vmem>>, vector<1x64xf32>
    tpu.vector_store %arg17[%c0_175, %c2496], %240 {strides = array<i32>} : memref<2x6400xf32, #tpu.memory_space<vmem>>, vector<1x64xf32>,
    %c0_176 = arith.constant 0 : index
    %c40 = arith.constant 40 : index
    %c0_177 = arith.constant 0 : index
    %242 = vector.load %arg16[%c0_176, %c40, %c0_177] : memref<2x100x128xf32, #tpu.memory_space<vmem>>, vector<1x1x64xf32>
    %243 = vector.shape_cast %242 : vector<1x1x64xf32> to vector<1x64xf32>
    %c0_178 = arith.constant 0 : index
    %c2560 = arith.constant 2560 : index
    %244 = vector.load %arg17[%c0_178, %c2560] : memref<2x6400xf32, #tpu.memory_space<vmem>>, vector<1x64xf32>
    tpu.vector_store %arg17[%c0_178, %c2560], %243 {strides = array<i32>} : memref<2x6400xf32, #tpu.memory_space<vmem>>, vector<1x64xf32>,
    %c0_179 = arith.constant 0 : index
    %c41 = arith.constant 41 : index
    %c0_180 = arith.constant 0 : index
    %245 = vector.load %arg16[%c0_179, %c41, %c0_180] : memref<2x100x128xf32, #tpu.memory_space<vmem>>, vector<1x1x64xf32>
    %246 = vector.shape_cast %245 : vector<1x1x64xf32> to vector<1x64xf32>
    %c0_181 = arith.constant 0 : index
    %c2624 = arith.constant 2624 : index
    %247 = vector.load %arg17[%c0_181, %c2624] : memref<2x6400xf32, #tpu.memory_space<vmem>>, vector<1x64xf32>
    tpu.vector_store %arg17[%c0_181, %c2624], %246 {strides = array<i32>} : memref<2x6400xf32, #tpu.memory_space<vmem>>, vector<1x64xf32>,
    %c0_182 = arith.constant 0 : index
    %c42 = arith.constant 42 : index
    %c0_183 = arith.constant 0 : index
    %248 = vector.load %arg16[%c0_182, %c42, %c0_183] : memref<2x100x128xf32, #tpu.memory_space<vmem>>, vector<1x1x64xf32>
    %249 = vector.shape_cast %248 : vector<1x1x64xf32> to vector<1x64xf32>
    %c0_184 = arith.constant 0 : index
    %c2688 = arith.constant 2688 : index
    %250 = vector.load %arg17[%c0_184, %c2688] : memref<2x6400xf32, #tpu.memory_space<vmem>>, vector<1x64xf32>
    tpu.vector_store %arg17[%c0_184, %c2688], %249 {strides = array<i32>} : memref<2x6400xf32, #tpu.memory_space<vmem>>, vector<1x64xf32>,
    %c0_185 = arith.constant 0 : index
    %c43 = arith.constant 43 : index
    %c0_186 = arith.constant 0 : index
    %251 = vector.load %arg16[%c0_185, %c43, %c0_186] : memref<2x100x128xf32, #tpu.memory_space<vmem>>, vector<1x1x64xf32>
    %252 = vector.shape_cast %251 : vector<1x1x64xf32> to vector<1x64xf32>
    %c0_187 = arith.constant 0 : index
    %c2752 = arith.constant 2752 : index
    %253 = vector.load %arg17[%c0_187, %c2752] : memref<2x6400xf32, #tpu.memory_space<vmem>>, vector<1x64xf32>
    tpu.vector_store %arg17[%c0_187, %c2752], %252 {strides = array<i32>} : memref<2x6400xf32, #tpu.memory_space<vmem>>, vector<1x64xf32>,
    %c0_188 = arith.constant 0 : index
    %c44 = arith.constant 44 : index
    %c0_189 = arith.constant 0 : index
    %254 = vector.load %arg16[%c0_188, %c44, %c0_189] : memref<2x100x128xf32, #tpu.memory_space<vmem>>, vector<1x1x64xf32>
    %255 = vector.shape_cast %254 : vector<1x1x64xf32> to vector<1x64xf32>
    %c0_190 = arith.constant 0 : index
    %c2816 = arith.constant 2816 : index
    %256 = vector.load %arg17[%c0_190, %c2816] : memref<2x6400xf32, #tpu.memory_space<vmem>>, vector<1x64xf32>
    tpu.vector_store %arg17[%c0_190, %c2816], %255 {strides = array<i32>} : memref<2x6400xf32, #tpu.memory_space<vmem>>, vector<1x64xf32>,
    %c0_191 = arith.constant 0 : index
    %c45 = arith.constant 45 : index
    %c0_192 = arith.constant 0 : index
    %257 = vector.load %arg16[%c0_191, %c45, %c0_192] : memref<2x100x128xf32, #tpu.memory_space<vmem>>, vector<1x1x64xf32>
    %258 = vector.shape_cast %257 : vector<1x1x64xf32> to vector<1x64xf32>
    %c0_193 = arith.constant 0 : index
    %c2880 = arith.constant 2880 : index
    %259 = vector.load %arg17[%c0_193, %c2880] : memref<2x6400xf32, #tpu.memory_space<vmem>>, vector<1x64xf32>
    tpu.vector_store %arg17[%c0_193, %c2880], %258 {strides = array<i32>} : memref<2x6400xf32, #tpu.memory_space<vmem>>, vector<1x64xf32>,
    %c0_194 = arith.constant 0 : index
    %c46 = arith.constant 46 : index
    %c0_195 = arith.constant 0 : index
    %260 = vector.load %arg16[%c0_194, %c46, %c0_195] : memref<2x100x128xf32, #tpu.memory_space<vmem>>, vector<1x1x64xf32>
    %261 = vector.shape_cast %260 : vector<1x1x64xf32> to vector<1x64xf32>
    %c0_196 = arith.constant 0 : index
    %c2944 = arith.constant 2944 : index
    %262 = vector.load %arg17[%c0_196, %c2944] : memref<2x6400xf32, #tpu.memory_space<vmem>>, vector<1x64xf32>
    tpu.vector_store %arg17[%c0_196, %c2944], %261 {strides = array<i32>} : memref<2x6400xf32, #tpu.memory_space<vmem>>, vector<1x64xf32>,
    %c0_197 = arith.constant 0 : index
    %c47 = arith.constant 47 : index
    %c0_198 = arith.constant 0 : index
    %263 = vector.load %arg16[%c0_197, %c47, %c0_198] : memref<2x100x128xf32, #tpu.memory_space<vmem>>, vector<1x1x64xf32>
    %264 = vector.shape_cast %263 : vector<1x1x64xf32> to vector<1x64xf32>
    %c0_199 = arith.constant 0 : index
    %c3008 = arith.constant 3008 : index
    %265 = vector.load %arg17[%c0_199, %c3008] : memref<2x6400xf32, #tpu.memory_space<vmem>>, vector<1x64xf32>
    tpu.vector_store %arg17[%c0_199, %c3008], %264 {strides = array<i32>} : memref<2x6400xf32, #tpu.memory_space<vmem>>, vector<1x64xf32>,
    %c0_200 = arith.constant 0 : index
    %c48 = arith.constant 48 : index
    %c0_201 = arith.constant 0 : index
    %266 = vector.load %arg16[%c0_200, %c48, %c0_201] : memref<2x100x128xf32, #tpu.memory_space<vmem>>, vector<1x1x64xf32>
    %267 = vector.shape_cast %266 : vector<1x1x64xf32> to vector<1x64xf32>
    %c0_202 = arith.constant 0 : index
    %c3072 = arith.constant 3072 : index
    %268 = vector.load %arg17[%c0_202, %c3072] : memref<2x6400xf32, #tpu.memory_space<vmem>>, vector<1x64xf32>
    tpu.vector_store %arg17[%c0_202, %c3072], %267 {strides = array<i32>} : memref<2x6400xf32, #tpu.memory_space<vmem>>, vector<1x64xf32>,
    %c0_203 = arith.constant 0 : index
    %c49 = arith.constant 49 : index
    %c0_204 = arith.constant 0 : index
    %269 = vector.load %arg16[%c0_203, %c49, %c0_204] : memref<2x100x128xf32, #tpu.memory_space<vmem>>, vector<1x1x64xf32>
    %270 = vector.shape_cast %269 : vector<1x1x64xf32> to vector<1x64xf32>
    %c0_205 = arith.constant 0 : index
    %c3136 = arith.constant 3136 : index
    %271 = vector.load %arg17[%c0_205, %c3136] : memref<2x6400xf32, #tpu.memory_space<vmem>>, vector<1x64xf32>
    tpu.vector_store %arg17[%c0_205, %c3136], %270 {strides = array<i32>} : memref<2x6400xf32, #tpu.memory_space<vmem>>, vector<1x64xf32>,
    %c0_206 = arith.constant 0 : index
    %c50 = arith.constant 50 : index
    %c0_207 = arith.constant 0 : index
    %272 = vector.load %arg16[%c0_206, %c50, %c0_207] : memref<2x100x128xf32, #tpu.memory_space<vmem>>, vector<1x1x64xf32>
    %273 = vector.shape_cast %272 : vector<1x1x64xf32> to vector<1x64xf32>
    %c0_208 = arith.constant 0 : index
    %c3200 = arith.constant 3200 : index
    %274 = vector.load %arg17[%c0_208, %c3200] : memref<2x6400xf32, #tpu.memory_space<vmem>>, vector<1x64xf32>
    tpu.vector_store %arg17[%c0_208, %c3200], %273 {strides = array<i32>} : memref<2x6400xf32, #tpu.memory_space<vmem>>, vector<1x64xf32>,
    %c0_209 = arith.constant 0 : index
    %c51 = arith.constant 51 : index
    %c0_210 = arith.constant 0 : index
    %275 = vector.load %arg16[%c0_209, %c51, %c0_210] : memref<2x100x128xf32, #tpu.memory_space<vmem>>, vector<1x1x64xf32>
    %276 = vector.shape_cast %275 : vector<1x1x64xf32> to vector<1x64xf32>
    %c0_211 = arith.constant 0 : index
    %c3264 = arith.constant 3264 : index
    %277 = vector.load %arg17[%c0_211, %c3264] : memref<2x6400xf32, #tpu.memory_space<vmem>>, vector<1x64xf32>
    tpu.vector_store %arg17[%c0_211, %c3264], %276 {strides = array<i32>} : memref<2x6400xf32, #tpu.memory_space<vmem>>, vector<1x64xf32>,
    %c0_212 = arith.constant 0 : index
    %c52 = arith.constant 52 : index
    %c0_213 = arith.constant 0 : index
    %278 = vector.load %arg16[%c0_212, %c52, %c0_213] : memref<2x100x128xf32, #tpu.memory_space<vmem>>, vector<1x1x64xf32>
    %279 = vector.shape_cast %278 : vector<1x1x64xf32> to vector<1x64xf32>
    %c0_214 = arith.constant 0 : index
    %c3328 = arith.constant 3328 : index
    %280 = vector.load %arg17[%c0_214, %c3328] : memref<2x6400xf32, #tpu.memory_space<vmem>>, vector<1x64xf32>
    tpu.vector_store %arg17[%c0_214, %c3328], %279 {strides = array<i32>} : memref<2x6400xf32, #tpu.memory_space<vmem>>, vector<1x64xf32>,
    %c0_215 = arith.constant 0 : index
    %c53 = arith.constant 53 : index
    %c0_216 = arith.constant 0 : index
    %281 = vector.load %arg16[%c0_215, %c53, %c0_216] : memref<2x100x128xf32, #tpu.memory_space<vmem>>, vector<1x1x64xf32>
    %282 = vector.shape_cast %281 : vector<1x1x64xf32> to vector<1x64xf32>
    %c0_217 = arith.constant 0 : index
    %c3392 = arith.constant 3392 : index
    %283 = vector.load %arg17[%c0_217, %c3392] : memref<2x6400xf32, #tpu.memory_space<vmem>>, vector<1x64xf32>
    tpu.vector_store %arg17[%c0_217, %c3392], %282 {strides = array<i32>} : memref<2x6400xf32, #tpu.memory_space<vmem>>, vector<1x64xf32>,
    %c0_218 = arith.constant 0 : index
    %c54 = arith.constant 54 : index
    %c0_219 = arith.constant 0 : index
    %284 = vector.load %arg16[%c0_218, %c54, %c0_219] : memref<2x100x128xf32, #tpu.memory_space<vmem>>, vector<1x1x64xf32>
    %285 = vector.shape_cast %284 : vector<1x1x64xf32> to vector<1x64xf32>
    %c0_220 = arith.constant 0 : index
    %c3456 = arith.constant 3456 : index
    %286 = vector.load %arg17[%c0_220, %c3456] : memref<2x6400xf32, #tpu.memory_space<vmem>>, vector<1x64xf32>
    tpu.vector_store %arg17[%c0_220, %c3456], %285 {strides = array<i32>} : memref<2x6400xf32, #tpu.memory_space<vmem>>, vector<1x64xf32>,
    %c0_221 = arith.constant 0 : index
    %c55 = arith.constant 55 : index
    %c0_222 = arith.constant 0 : index
    %287 = vector.load %arg16[%c0_221, %c55, %c0_222] : memref<2x100x128xf32, #tpu.memory_space<vmem>>, vector<1x1x64xf32>
    %288 = vector.shape_cast %287 : vector<1x1x64xf32> to vector<1x64xf32>
    %c0_223 = arith.constant 0 : index
    %c3520 = arith.constant 3520 : index
    %289 = vector.load %arg17[%c0_223, %c3520] : memref<2x6400xf32, #tpu.memory_space<vmem>>, vector<1x64xf32>
    tpu.vector_store %arg17[%c0_223, %c3520], %288 {strides = array<i32>} : memref<2x6400xf32, #tpu.memory_space<vmem>>, vector<1x64xf32>,
    %c0_224 = arith.constant 0 : index
    %c56 = arith.constant 56 : index
    %c0_225 = arith.constant 0 : index
    %290 = vector.load %arg16[%c0_224, %c56, %c0_225] : memref<2x100x128xf32, #tpu.memory_space<vmem>>, vector<1x1x64xf32>
    %291 = vector.shape_cast %290 : vector<1x1x64xf32> to vector<1x64xf32>
    %c0_226 = arith.constant 0 : index
    %c3584 = arith.constant 3584 : index
    %292 = vector.load %arg17[%c0_226, %c3584] : memref<2x6400xf32, #tpu.memory_space<vmem>>, vector<1x64xf32>
    tpu.vector_store %arg17[%c0_226, %c3584], %291 {strides = array<i32>} : memref<2x6400xf32, #tpu.memory_space<vmem>>, vector<1x64xf32>,
    %c0_227 = arith.constant 0 : index
    %c57 = arith.constant 57 : index
    %c0_228 = arith.constant 0 : index
    %293 = vector.load %arg16[%c0_227, %c57, %c0_228] : memref<2x100x128xf32, #tpu.memory_space<vmem>>, vector<1x1x64xf32>
    %294 = vector.shape_cast %293 : vector<1x1x64xf32> to vector<1x64xf32>
    %c0_229 = arith.constant 0 : index
    %c3648 = arith.constant 3648 : index
    %295 = vector.load %arg17[%c0_229, %c3648] : memref<2x6400xf32, #tpu.memory_space<vmem>>, vector<1x64xf32>
    tpu.vector_store %arg17[%c0_229, %c3648], %294 {strides = array<i32>} : memref<2x6400xf32, #tpu.memory_space<vmem>>, vector<1x64xf32>,
    %c0_230 = arith.constant 0 : index
    %c58 = arith.constant 58 : index
    %c0_231 = arith.constant 0 : index
    %296 = vector.load %arg16[%c0_230, %c58, %c0_231] : memref<2x100x128xf32, #tpu.memory_space<vmem>>, vector<1x1x64xf32>
    %297 = vector.shape_cast %296 : vector<1x1x64xf32> to vector<1x64xf32>
    %c0_232 = arith.constant 0 : index
    %c3712 = arith.constant 3712 : index
    %298 = vector.load %arg17[%c0_232, %c3712] : memref<2x6400xf32, #tpu.memory_space<vmem>>, vector<1x64xf32>
    tpu.vector_store %arg17[%c0_232, %c3712], %297 {strides = array<i32>} : memref<2x6400xf32, #tpu.memory_space<vmem>>, vector<1x64xf32>,
    %c0_233 = arith.constant 0 : index
    %c59 = arith.constant 59 : index
    %c0_234 = arith.constant 0 : index
    %299 = vector.load %arg16[%c0_233, %c59, %c0_234] : memref<2x100x128xf32, #tpu.memory_space<vmem>>, vector<1x1x64xf32>
    %300 = vector.shape_cast %299 : vector<1x1x64xf32> to vector<1x64xf32>
    %c0_235 = arith.constant 0 : index
    %c3776 = arith.constant 3776 : index
    %301 = vector.load %arg17[%c0_235, %c3776] : memref<2x6400xf32, #tpu.memory_space<vmem>>, vector<1x64xf32>
    tpu.vector_store %arg17[%c0_235, %c3776], %300 {strides = array<i32>} : memref<2x6400xf32, #tpu.memory_space<vmem>>, vector<1x64xf32>,
    %c0_236 = arith.constant 0 : index
    %c60 = arith.constant 60 : index
    %c0_237 = arith.constant 0 : index
    %302 = vector.load %arg16[%c0_236, %c60, %c0_237] : memref<2x100x128xf32, #tpu.memory_space<vmem>>, vector<1x1x64xf32>
    %303 = vector.shape_cast %302 : vector<1x1x64xf32> to vector<1x64xf32>
    %c0_238 = arith.constant 0 : index
    %c3840 = arith.constant 3840 : index
    %304 = vector.load %arg17[%c0_238, %c3840] : memref<2x6400xf32, #tpu.memory_space<vmem>>, vector<1x64xf32>
    tpu.vector_store %arg17[%c0_238, %c3840], %303 {strides = array<i32>} : memref<2x6400xf32, #tpu.memory_space<vmem>>, vector<1x64xf32>,
    %c0_239 = arith.constant 0 : index
    %c61 = arith.constant 61 : index
    %c0_240 = arith.constant 0 : index
    %305 = vector.load %arg16[%c0_239, %c61, %c0_240] : memref<2x100x128xf32, #tpu.memory_space<vmem>>, vector<1x1x64xf32>
    %306 = vector.shape_cast %305 : vector<1x1x64xf32> to vector<1x64xf32>
    %c0_241 = arith.constant 0 : index
    %c3904 = arith.constant 3904 : index
    %307 = vector.load %arg17[%c0_241, %c3904] : memref<2x6400xf32, #tpu.memory_space<vmem>>, vector<1x64xf32>
    tpu.vector_store %arg17[%c0_241, %c3904], %306 {strides = array<i32>} : memref<2x6400xf32, #tpu.memory_space<vmem>>, vector<1x64xf32>,
    %c0_242 = arith.constant 0 : index
    %c62 = arith.constant 62 : index
    %c0_243 = arith.constant 0 : index
    %308 = vector.load %arg16[%c0_242, %c62, %c0_243] : memref<2x100x128xf32, #tpu.memory_space<vmem>>, vector<1x1x64xf32>
    %309 = vector.shape_cast %308 : vector<1x1x64xf32> to vector<1x64xf32>
    %c0_244 = arith.constant 0 : index
    %c3968 = arith.constant 3968 : index
    %310 = vector.load %arg17[%c0_244, %c3968] : memref<2x6400xf32, #tpu.memory_space<vmem>>, vector<1x64xf32>
    tpu.vector_store %arg17[%c0_244, %c3968], %309 {strides = array<i32>} : memref<2x6400xf32, #tpu.memory_space<vmem>>, vector<1x64xf32>,
    %c0_245 = arith.constant 0 : index
    %c63 = arith.constant 63 : index
    %c0_246 = arith.constant 0 : index
    %311 = vector.load %arg16[%c0_245, %c63, %c0_246] : memref<2x100x128xf32, #tpu.memory_space<vmem>>, vector<1x1x64xf32>
    %312 = vector.shape_cast %311 : vector<1x1x64xf32> to vector<1x64xf32>
    %c0_247 = arith.constant 0 : index
    %c4032 = arith.constant 4032 : index
    %313 = vector.load %arg17[%c0_247, %c4032] : memref<2x6400xf32, #tpu.memory_space<vmem>>, vector<1x64xf32>
    tpu.vector_store %arg17[%c0_247, %c4032], %312 {strides = array<i32>} : memref<2x6400xf32, #tpu.memory_space<vmem>>, vector<1x64xf32>,
    %c0_248 = arith.constant 0 : index
    %c64_249 = arith.constant 64 : index
    %c0_250 = arith.constant 0 : index
    %314 = vector.load %arg16[%c0_248, %c64_249, %c0_250] : memref<2x100x128xf32, #tpu.memory_space<vmem>>, vector<1x1x64xf32>
    %315 = vector.shape_cast %314 : vector<1x1x64xf32> to vector<1x64xf32>
    %c0_251 = arith.constant 0 : index
    %c4096 = arith.constant 4096 : index
    %316 = vector.load %arg17[%c0_251, %c4096] : memref<2x6400xf32, #tpu.memory_space<vmem>>, vector<1x64xf32>
    tpu.vector_store %arg17[%c0_251, %c4096], %315 {strides = array<i32>} : memref<2x6400xf32, #tpu.memory_space<vmem>>, vector<1x64xf32>,
    %c0_252 = arith.constant 0 : index
    %c65 = arith.constant 65 : index
    %c0_253 = arith.constant 0 : index
    %317 = vector.load %arg16[%c0_252, %c65, %c0_253] : memref<2x100x128xf32, #tpu.memory_space<vmem>>, vector<1x1x64xf32>
    %318 = vector.shape_cast %317 : vector<1x1x64xf32> to vector<1x64xf32>
    %c0_254 = arith.constant 0 : index
    %c4160 = arith.constant 4160 : index
    %319 = vector.load %arg17[%c0_254, %c4160] : memref<2x6400xf32, #tpu.memory_space<vmem>>, vector<1x64xf32>
    tpu.vector_store %arg17[%c0_254, %c4160], %318 {strides = array<i32>} : memref<2x6400xf32, #tpu.memory_space<vmem>>, vector<1x64xf32>,
    %c0_255 = arith.constant 0 : index
    %c66 = arith.constant 66 : index
    %c0_256 = arith.constant 0 : index
    %320 = vector.load %arg16[%c0_255, %c66, %c0_256] : memref<2x100x128xf32, #tpu.memory_space<vmem>>, vector<1x1x64xf32>
    %321 = vector.shape_cast %320 : vector<1x1x64xf32> to vector<1x64xf32>
    %c0_257 = arith.constant 0 : index
    %c4224 = arith.constant 4224 : index
    %322 = vector.load %arg17[%c0_257, %c4224] : memref<2x6400xf32, #tpu.memory_space<vmem>>, vector<1x64xf32>
    tpu.vector_store %arg17[%c0_257, %c4224], %321 {strides = array<i32>} : memref<2x6400xf32, #tpu.memory_space<vmem>>, vector<1x64xf32>,
    %c0_258 = arith.constant 0 : index
    %c67 = arith.constant 67 : index
    %c0_259 = arith.constant 0 : index
    %323 = vector.load %arg16[%c0_258, %c67, %c0_259] : memref<2x100x128xf32, #tpu.memory_space<vmem>>, vector<1x1x64xf32>
    %324 = vector.shape_cast %323 : vector<1x1x64xf32> to vector<1x64xf32>
    %c0_260 = arith.constant 0 : index
    %c4288 = arith.constant 4288 : index
    %325 = vector.load %arg17[%c0_260, %c4288] : memref<2x6400xf32, #tpu.memory_space<vmem>>, vector<1x64xf32>
    tpu.vector_store %arg17[%c0_260, %c4288], %324 {strides = array<i32>} : memref<2x6400xf32, #tpu.memory_space<vmem>>, vector<1x64xf32>,
    %c0_261 = arith.constant 0 : index
    %c68 = arith.constant 68 : index
    %c0_262 = arith.constant 0 : index
    %326 = vector.load %arg16[%c0_261, %c68, %c0_262] : memref<2x100x128xf32, #tpu.memory_space<vmem>>, vector<1x1x64xf32>
    %327 = vector.shape_cast %326 : vector<1x1x64xf32> to vector<1x64xf32>
    %c0_263 = arith.constant 0 : index
    %c4352 = arith.constant 4352 : index
    %328 = vector.load %arg17[%c0_263, %c4352] : memref<2x6400xf32, #tpu.memory_space<vmem>>, vector<1x64xf32>
    tpu.vector_store %arg17[%c0_263, %c4352], %327 {strides = array<i32>} : memref<2x6400xf32, #tpu.memory_space<vmem>>, vector<1x64xf32>,
    %c0_264 = arith.constant 0 : index
    %c69 = arith.constant 69 : index
    %c0_265 = arith.constant 0 : index
    %329 = vector.load %arg16[%c0_264, %c69, %c0_265] : memref<2x100x128xf32, #tpu.memory_space<vmem>>, vector<1x1x64xf32>
    %330 = vector.shape_cast %329 : vector<1x1x64xf32> to vector<1x64xf32>
    %c0_266 = arith.constant 0 : index
    %c4416 = arith.constant 4416 : index
    %331 = vector.load %arg17[%c0_266, %c4416] : memref<2x6400xf32, #tpu.memory_space<vmem>>, vector<1x64xf32>
    tpu.vector_store %arg17[%c0_266, %c4416], %330 {strides = array<i32>} : memref<2x6400xf32, #tpu.memory_space<vmem>>, vector<1x64xf32>,
    %c0_267 = arith.constant 0 : index
    %c70 = arith.constant 70 : index
    %c0_268 = arith.constant 0 : index
    %332 = vector.load %arg16[%c0_267, %c70, %c0_268] : memref<2x100x128xf32, #tpu.memory_space<vmem>>, vector<1x1x64xf32>
    %333 = vector.shape_cast %332 : vector<1x1x64xf32> to vector<1x64xf32>
    %c0_269 = arith.constant 0 : index
    %c4480 = arith.constant 4480 : index
    %334 = vector.load %arg17[%c0_269, %c4480] : memref<2x6400xf32, #tpu.memory_space<vmem>>, vector<1x64xf32>
    tpu.vector_store %arg17[%c0_269, %c4480], %333 {strides = array<i32>} : memref<2x6400xf32, #tpu.memory_space<vmem>>, vector<1x64xf32>,
    %c0_270 = arith.constant 0 : index
    %c71 = arith.constant 71 : index
    %c0_271 = arith.constant 0 : index
    %335 = vector.load %arg16[%c0_270, %c71, %c0_271] : memref<2x100x128xf32, #tpu.memory_space<vmem>>, vector<1x1x64xf32>
    %336 = vector.shape_cast %335 : vector<1x1x64xf32> to vector<1x64xf32>
    %c0_272 = arith.constant 0 : index
    %c4544 = arith.constant 4544 : index
    %337 = vector.load %arg17[%c0_272, %c4544] : memref<2x6400xf32, #tpu.memory_space<vmem>>, vector<1x64xf32>
    tpu.vector_store %arg17[%c0_272, %c4544], %336 {strides = array<i32>} : memref<2x6400xf32, #tpu.memory_space<vmem>>, vector<1x64xf32>,
    %c0_273 = arith.constant 0 : index
    %c72 = arith.constant 72 : index
    %c0_274 = arith.constant 0 : index
    %338 = vector.load %arg16[%c0_273, %c72, %c0_274] : memref<2x100x128xf32, #tpu.memory_space<vmem>>, vector<1x1x64xf32>
    %339 = vector.shape_cast %338 : vector<1x1x64xf32> to vector<1x64xf32>
    %c0_275 = arith.constant 0 : index
    %c4608 = arith.constant 4608 : index
    %340 = vector.load %arg17[%c0_275, %c4608] : memref<2x6400xf32, #tpu.memory_space<vmem>>, vector<1x64xf32>
    tpu.vector_store %arg17[%c0_275, %c4608], %339 {strides = array<i32>} : memref<2x6400xf32, #tpu.memory_space<vmem>>, vector<1x64xf32>,
    %c0_276 = arith.constant 0 : index
    %c73 = arith.constant 73 : index
    %c0_277 = arith.constant 0 : index
    %341 = vector.load %arg16[%c0_276, %c73, %c0_277] : memref<2x100x128xf32, #tpu.memory_space<vmem>>, vector<1x1x64xf32>
    %342 = vector.shape_cast %341 : vector<1x1x64xf32> to vector<1x64xf32>
    %c0_278 = arith.constant 0 : index
    %c4672 = arith.constant 4672 : index
    %343 = vector.load %arg17[%c0_278, %c4672] : memref<2x6400xf32, #tpu.memory_space<vmem>>, vector<1x64xf32>
    tpu.vector_store %arg17[%c0_278, %c4672], %342 {strides = array<i32>} : memref<2x6400xf32, #tpu.memory_space<vmem>>, vector<1x64xf32>,
    %c0_279 = arith.constant 0 : index
    %c74 = arith.constant 74 : index
    %c0_280 = arith.constant 0 : index
    %344 = vector.load %arg16[%c0_279, %c74, %c0_280] : memref<2x100x128xf32, #tpu.memory_space<vmem>>, vector<1x1x64xf32>
    %345 = vector.shape_cast %344 : vector<1x1x64xf32> to vector<1x64xf32>
    %c0_281 = arith.constant 0 : index
    %c4736 = arith.constant 4736 : index
    %346 = vector.load %arg17[%c0_281, %c4736] : memref<2x6400xf32, #tpu.memory_space<vmem>>, vector<1x64xf32>
    tpu.vector_store %arg17[%c0_281, %c4736], %345 {strides = array<i32>} : memref<2x6400xf32, #tpu.memory_space<vmem>>, vector<1x64xf32>,
    %c0_282 = arith.constant 0 : index
    %c75 = arith.constant 75 : index
    %c0_283 = arith.constant 0 : index
    %347 = vector.load %arg16[%c0_282, %c75, %c0_283] : memref<2x100x128xf32, #tpu.memory_space<vmem>>, vector<1x1x64xf32>
    %348 = vector.shape_cast %347 : vector<1x1x64xf32> to vector<1x64xf32>
    %c0_284 = arith.constant 0 : index
    %c4800 = arith.constant 4800 : index
    %349 = vector.load %arg17[%c0_284, %c4800] : memref<2x6400xf32, #tpu.memory_space<vmem>>, vector<1x64xf32>
    tpu.vector_store %arg17[%c0_284, %c4800], %348 {strides = array<i32>} : memref<2x6400xf32, #tpu.memory_space<vmem>>, vector<1x64xf32>,
    %c0_285 = arith.constant 0 : index
    %c76 = arith.constant 76 : index
    %c0_286 = arith.constant 0 : index
    %350 = vector.load %arg16[%c0_285, %c76, %c0_286] : memref<2x100x128xf32, #tpu.memory_space<vmem>>, vector<1x1x64xf32>
    %351 = vector.shape_cast %350 : vector<1x1x64xf32> to vector<1x64xf32>
    %c0_287 = arith.constant 0 : index
    %c4864 = arith.constant 4864 : index
    %352 = vector.load %arg17[%c0_287, %c4864] : memref<2x6400xf32, #tpu.memory_space<vmem>>, vector<1x64xf32>
    tpu.vector_store %arg17[%c0_287, %c4864], %351 {strides = array<i32>} : memref<2x6400xf32, #tpu.memory_space<vmem>>, vector<1x64xf32>,
    %c0_288 = arith.constant 0 : index
    %c77 = arith.constant 77 : index
    %c0_289 = arith.constant 0 : index
    %353 = vector.load %arg16[%c0_288, %c77, %c0_289] : memref<2x100x128xf32, #tpu.memory_space<vmem>>, vector<1x1x64xf32>
    %354 = vector.shape_cast %353 : vector<1x1x64xf32> to vector<1x64xf32>
    %c0_290 = arith.constant 0 : index
    %c4928 = arith.constant 4928 : index
    %355 = vector.load %arg17[%c0_290, %c4928] : memref<2x6400xf32, #tpu.memory_space<vmem>>, vector<1x64xf32>
    tpu.vector_store %arg17[%c0_290, %c4928], %354 {strides = array<i32>} : memref<2x6400xf32, #tpu.memory_space<vmem>>, vector<1x64xf32>,
    %c0_291 = arith.constant 0 : index
    %c78 = arith.constant 78 : index
    %c0_292 = arith.constant 0 : index
    %356 = vector.load %arg16[%c0_291, %c78, %c0_292] : memref<2x100x128xf32, #tpu.memory_space<vmem>>, vector<1x1x64xf32>
    %357 = vector.shape_cast %356 : vector<1x1x64xf32> to vector<1x64xf32>
    %c0_293 = arith.constant 0 : index
    %c4992 = arith.constant 4992 : index
    %358 = vector.load %arg17[%c0_293, %c4992] : memref<2x6400xf32, #tpu.memory_space<vmem>>, vector<1x64xf32>
    tpu.vector_store %arg17[%c0_293, %c4992], %357 {strides = array<i32>} : memref<2x6400xf32, #tpu.memory_space<vmem>>, vector<1x64xf32>,
    %c0_294 = arith.constant 0 : index
    %c79 = arith.constant 79 : index
    %c0_295 = arith.constant 0 : index
    %359 = vector.load %arg16[%c0_294, %c79, %c0_295] : memref<2x100x128xf32, #tpu.memory_space<vmem>>, vector<1x1x64xf32>
    %360 = vector.shape_cast %359 : vector<1x1x64xf32> to vector<1x64xf32>
    %c0_296 = arith.constant 0 : index
    %c5056 = arith.constant 5056 : index
    %361 = vector.load %arg17[%c0_296, %c5056] : memref<2x6400xf32, #tpu.memory_space<vmem>>, vector<1x64xf32>
    tpu.vector_store %arg17[%c0_296, %c5056], %360 {strides = array<i32>} : memref<2x6400xf32, #tpu.memory_space<vmem>>, vector<1x64xf32>,
    %c0_297 = arith.constant 0 : index
    %c80 = arith.constant 80 : index
    %c0_298 = arith.constant 0 : index
    %362 = vector.load %arg16[%c0_297, %c80, %c0_298] : memref<2x100x128xf32, #tpu.memory_space<vmem>>, vector<1x1x64xf32>
    %363 = vector.shape_cast %362 : vector<1x1x64xf32> to vector<1x64xf32>
    %c0_299 = arith.constant 0 : index
    %c5120 = arith.constant 5120 : index
    %364 = vector.load %arg17[%c0_299, %c5120] : memref<2x6400xf32, #tpu.memory_space<vmem>>, vector<1x64xf32>
    tpu.vector_store %arg17[%c0_299, %c5120], %363 {strides = array<i32>} : memref<2x6400xf32, #tpu.memory_space<vmem>>, vector<1x64xf32>,
    %c0_300 = arith.constant 0 : index
    %c81 = arith.constant 81 : index
    %c0_301 = arith.constant 0 : index
    %365 = vector.load %arg16[%c0_300, %c81, %c0_301] : memref<2x100x128xf32, #tpu.memory_space<vmem>>, vector<1x1x64xf32>
    %366 = vector.shape_cast %365 : vector<1x1x64xf32> to vector<1x64xf32>
    %c0_302 = arith.constant 0 : index
    %c5184 = arith.constant 5184 : index
    %367 = vector.load %arg17[%c0_302, %c5184] : memref<2x6400xf32, #tpu.memory_space<vmem>>, vector<1x64xf32>
    tpu.vector_store %arg17[%c0_302, %c5184], %366 {strides = array<i32>} : memref<2x6400xf32, #tpu.memory_space<vmem>>, vector<1x64xf32>,
    %c0_303 = arith.constant 0 : index
    %c82 = arith.constant 82 : index
    %c0_304 = arith.constant 0 : index
    %368 = vector.load %arg16[%c0_303, %c82, %c0_304] : memref<2x100x128xf32, #tpu.memory_space<vmem>>, vector<1x1x64xf32>
    %369 = vector.shape_cast %368 : vector<1x1x64xf32> to vector<1x64xf32>
    %c0_305 = arith.constant 0 : index
    %c5248 = arith.constant 5248 : index
    %370 = vector.load %arg17[%c0_305, %c5248] : memref<2x6400xf32, #tpu.memory_space<vmem>>, vector<1x64xf32>
    tpu.vector_store %arg17[%c0_305, %c5248], %369 {strides = array<i32>} : memref<2x6400xf32, #tpu.memory_space<vmem>>, vector<1x64xf32>,
    %c0_306 = arith.constant 0 : index
    %c83 = arith.constant 83 : index
    %c0_307 = arith.constant 0 : index
    %371 = vector.load %arg16[%c0_306, %c83, %c0_307] : memref<2x100x128xf32, #tpu.memory_space<vmem>>, vector<1x1x64xf32>
    %372 = vector.shape_cast %371 : vector<1x1x64xf32> to vector<1x64xf32>
    %c0_308 = arith.constant 0 : index
    %c5312 = arith.constant 5312 : index
    %373 = vector.load %arg17[%c0_308, %c5312] : memref<2x6400xf32, #tpu.memory_space<vmem>>, vector<1x64xf32>
    tpu.vector_store %arg17[%c0_308, %c5312], %372 {strides = array<i32>} : memref<2x6400xf32, #tpu.memory_space<vmem>>, vector<1x64xf32>,
    %c0_309 = arith.constant 0 : index
    %c84 = arith.constant 84 : index
    %c0_310 = arith.constant 0 : index
    %374 = vector.load %arg16[%c0_309, %c84, %c0_310] : memref<2x100x128xf32, #tpu.memory_space<vmem>>, vector<1x1x64xf32>
    %375 = vector.shape_cast %374 : vector<1x1x64xf32> to vector<1x64xf32>
    %c0_311 = arith.constant 0 : index
    %c5376 = arith.constant 5376 : index
    %376 = vector.load %arg17[%c0_311, %c5376] : memref<2x6400xf32, #tpu.memory_space<vmem>>, vector<1x64xf32>
    tpu.vector_store %arg17[%c0_311, %c5376], %375 {strides = array<i32>} : memref<2x6400xf32, #tpu.memory_space<vmem>>, vector<1x64xf32>,
    %c0_312 = arith.constant 0 : index
    %c85 = arith.constant 85 : index
    %c0_313 = arith.constant 0 : index
    %377 = vector.load %arg16[%c0_312, %c85, %c0_313] : memref<2x100x128xf32, #tpu.memory_space<vmem>>, vector<1x1x64xf32>
    %378 = vector.shape_cast %377 : vector<1x1x64xf32> to vector<1x64xf32>
    %c0_314 = arith.constant 0 : index
    %c5440 = arith.constant 5440 : index
    %379 = vector.load %arg17[%c0_314, %c5440] : memref<2x6400xf32, #tpu.memory_space<vmem>>, vector<1x64xf32>
    tpu.vector_store %arg17[%c0_314, %c5440], %378 {strides = array<i32>} : memref<2x6400xf32, #tpu.memory_space<vmem>>, vector<1x64xf32>,
    %c0_315 = arith.constant 0 : index
    %c86 = arith.constant 86 : index
    %c0_316 = arith.constant 0 : index
    %380 = vector.load %arg16[%c0_315, %c86, %c0_316] : memref<2x100x128xf32, #tpu.memory_space<vmem>>, vector<1x1x64xf32>
    %381 = vector.shape_cast %380 : vector<1x1x64xf32> to vector<1x64xf32>
    %c0_317 = arith.constant 0 : index
    %c5504 = arith.constant 5504 : index
    %382 = vector.load %arg17[%c0_317, %c5504] : memref<2x6400xf32, #tpu.memory_space<vmem>>, vector<1x64xf32>
    tpu.vector_store %arg17[%c0_317, %c5504], %381 {strides = array<i32>} : memref<2x6400xf32, #tpu.memory_space<vmem>>, vector<1x64xf32>,
    %c0_318 = arith.constant 0 : index
    %c87 = arith.constant 87 : index
    %c0_319 = arith.constant 0 : index
    %383 = vector.load %arg16[%c0_318, %c87, %c0_319] : memref<2x100x128xf32, #tpu.memory_space<vmem>>, vector<1x1x64xf32>
    %384 = vector.shape_cast %383 : vector<1x1x64xf32> to vector<1x64xf32>
    %c0_320 = arith.constant 0 : index
    %c5568 = arith.constant 5568 : index
    %385 = vector.load %arg17[%c0_320, %c5568] : memref<2x6400xf32, #tpu.memory_space<vmem>>, vector<1x64xf32>
    tpu.vector_store %arg17[%c0_320, %c5568], %384 {strides = array<i32>} : memref<2x6400xf32, #tpu.memory_space<vmem>>, vector<1x64xf32>,
    %c0_321 = arith.constant 0 : index
    %c88 = arith.constant 88 : index
    %c0_322 = arith.constant 0 : index
    %386 = vector.load %arg16[%c0_321, %c88, %c0_322] : memref<2x100x128xf32, #tpu.memory_space<vmem>>, vector<1x1x64xf32>
    %387 = vector.shape_cast %386 : vector<1x1x64xf32> to vector<1x64xf32>
    %c0_323 = arith.constant 0 : index
    %c5632 = arith.constant 5632 : index
    %388 = vector.load %arg17[%c0_323, %c5632] : memref<2x6400xf32, #tpu.memory_space<vmem>>, vector<1x64xf32>
    tpu.vector_store %arg17[%c0_323, %c5632], %387 {strides = array<i32>} : memref<2x6400xf32, #tpu.memory_space<vmem>>, vector<1x64xf32>,
    %c0_324 = arith.constant 0 : index
    %c89 = arith.constant 89 : index
    %c0_325 = arith.constant 0 : index
    %389 = vector.load %arg16[%c0_324, %c89, %c0_325] : memref<2x100x128xf32, #tpu.memory_space<vmem>>, vector<1x1x64xf32>
    %390 = vector.shape_cast %389 : vector<1x1x64xf32> to vector<1x64xf32>
    %c0_326 = arith.constant 0 : index
    %c5696 = arith.constant 5696 : index
    %391 = vector.load %arg17[%c0_326, %c5696] : memref<2x6400xf32, #tpu.memory_space<vmem>>, vector<1x64xf32>
    tpu.vector_store %arg17[%c0_326, %c5696], %390 {strides = array<i32>} : memref<2x6400xf32, #tpu.memory_space<vmem>>, vector<1x64xf32>,
    %c0_327 = arith.constant 0 : index
    %c90 = arith.constant 90 : index
    %c0_328 = arith.constant 0 : index
    %392 = vector.load %arg16[%c0_327, %c90, %c0_328] : memref<2x100x128xf32, #tpu.memory_space<vmem>>, vector<1x1x64xf32>
    %393 = vector.shape_cast %392 : vector<1x1x64xf32> to vector<1x64xf32>
    %c0_329 = arith.constant 0 : index
    %c5760 = arith.constant 5760 : index
    %394 = vector.load %arg17[%c0_329, %c5760] : memref<2x6400xf32, #tpu.memory_space<vmem>>, vector<1x64xf32>
    tpu.vector_store %arg17[%c0_329, %c5760], %393 {strides = array<i32>} : memref<2x6400xf32, #tpu.memory_space<vmem>>, vector<1x64xf32>,
    %c0_330 = arith.constant 0 : index
    %c91 = arith.constant 91 : index
    %c0_331 = arith.constant 0 : index
    %395 = vector.load %arg16[%c0_330, %c91, %c0_331] : memref<2x100x128xf32, #tpu.memory_space<vmem>>, vector<1x1x64xf32>
    %396 = vector.shape_cast %395 : vector<1x1x64xf32> to vector<1x64xf32>
    %c0_332 = arith.constant 0 : index
    %c5824 = arith.constant 5824 : index
    %397 = vector.load %arg17[%c0_332, %c5824] : memref<2x6400xf32, #tpu.memory_space<vmem>>, vector<1x64xf32>
    tpu.vector_store %arg17[%c0_332, %c5824], %396 {strides = array<i32>} : memref<2x6400xf32, #tpu.memory_space<vmem>>, vector<1x64xf32>,
    %c0_333 = arith.constant 0 : index
    %c92 = arith.constant 92 : index
    %c0_334 = arith.constant 0 : index
    %398 = vector.load %arg16[%c0_333, %c92, %c0_334] : memref<2x100x128xf32, #tpu.memory_space<vmem>>, vector<1x1x64xf32>
    %399 = vector.shape_cast %398 : vector<1x1x64xf32> to vector<1x64xf32>
    %c0_335 = arith.constant 0 : index
    %c5888 = arith.constant 5888 : index
    %400 = vector.load %arg17[%c0_335, %c5888] : memref<2x6400xf32, #tpu.memory_space<vmem>>, vector<1x64xf32>
    tpu.vector_store %arg17[%c0_335, %c5888], %399 {strides = array<i32>} : memref<2x6400xf32, #tpu.memory_space<vmem>>, vector<1x64xf32>,
    %c0_336 = arith.constant 0 : index
    %c93 = arith.constant 93 : index
    %c0_337 = arith.constant 0 : index
    %401 = vector.load %arg16[%c0_336, %c93, %c0_337] : memref<2x100x128xf32, #tpu.memory_space<vmem>>, vector<1x1x64xf32>
    %402 = vector.shape_cast %401 : vector<1x1x64xf32> to vector<1x64xf32>
    %c0_338 = arith.constant 0 : index
    %c5952 = arith.constant 5952 : index
    %403 = vector.load %arg17[%c0_338, %c5952] : memref<2x6400xf32, #tpu.memory_space<vmem>>, vector<1x64xf32>
    tpu.vector_store %arg17[%c0_338, %c5952], %402 {strides = array<i32>} : memref<2x6400xf32, #tpu.memory_space<vmem>>, vector<1x64xf32>,
    %c0_339 = arith.constant 0 : index
    %c94 = arith.constant 94 : index
    %c0_340 = arith.constant 0 : index
    %404 = vector.load %arg16[%c0_339, %c94, %c0_340] : memref<2x100x128xf32, #tpu.memory_space<vmem>>, vector<1x1x64xf32>
    %405 = vector.shape_cast %404 : vector<1x1x64xf32> to vector<1x64xf32>
    %c0_341 = arith.constant 0 : index
    %c6016 = arith.constant 6016 : index
    %406 = vector.load %arg17[%c0_341, %c6016] : memref<2x6400xf32, #tpu.memory_space<vmem>>, vector<1x64xf32>
    tpu.vector_store %arg17[%c0_341, %c6016], %405 {strides = array<i32>} : memref<2x6400xf32, #tpu.memory_space<vmem>>, vector<1x64xf32>,
    %c0_342 = arith.constant 0 : index
    %c95 = arith.constant 95 : index
    %c0_343 = arith.constant 0 : index
    %407 = vector.load %arg16[%c0_342, %c95, %c0_343] : memref<2x100x128xf32, #tpu.memory_space<vmem>>, vector<1x1x64xf32>
    %408 = vector.shape_cast %407 : vector<1x1x64xf32> to vector<1x64xf32>
    %c0_344 = arith.constant 0 : index
    %c6080 = arith.constant 6080 : index
    %409 = vector.load %arg17[%c0_344, %c6080] : memref<2x6400xf32, #tpu.memory_space<vmem>>, vector<1x64xf32>
    tpu.vector_store %arg17[%c0_344, %c6080], %408 {strides = array<i32>} : memref<2x6400xf32, #tpu.memory_space<vmem>>, vector<1x64xf32>,
    %c0_345 = arith.constant 0 : index
    %c96 = arith.constant 96 : index
    %c0_346 = arith.constant 0 : index
    %410 = vector.load %arg16[%c0_345, %c96, %c0_346] : memref<2x100x128xf32, #tpu.memory_space<vmem>>, vector<1x1x64xf32>
    %411 = vector.shape_cast %410 : vector<1x1x64xf32> to vector<1x64xf32>
    %c0_347 = arith.constant 0 : index
    %c6144 = arith.constant 6144 : index
    %412 = vector.load %arg17[%c0_347, %c6144] : memref<2x6400xf32, #tpu.memory_space<vmem>>, vector<1x64xf32>
    tpu.vector_store %arg17[%c0_347, %c6144], %411 {strides = array<i32>} : memref<2x6400xf32, #tpu.memory_space<vmem>>, vector<1x64xf32>,
    %c0_348 = arith.constant 0 : index
    %c97 = arith.constant 97 : index
    %c0_349 = arith.constant 0 : index
    %413 = vector.load %arg16[%c0_348, %c97, %c0_349] : memref<2x100x128xf32, #tpu.memory_space<vmem>>, vector<1x1x64xf32>
    %414 = vector.shape_cast %413 : vector<1x1x64xf32> to vector<1x64xf32>
    %c0_350 = arith.constant 0 : index
    %c6208 = arith.constant 6208 : index
    %415 = vector.load %arg17[%c0_350, %c6208] : memref<2x6400xf32, #tpu.memory_space<vmem>>, vector<1x64xf32>
    tpu.vector_store %arg17[%c0_350, %c6208], %414 {strides = array<i32>} : memref<2x6400xf32, #tpu.memory_space<vmem>>, vector<1x64xf32>,
    %c0_351 = arith.constant 0 : index
    %c98 = arith.constant 98 : index
    %c0_352 = arith.constant 0 : index
    %416 = vector.load %arg16[%c0_351, %c98, %c0_352] : memref<2x100x128xf32, #tpu.memory_space<vmem>>, vector<1x1x64xf32>
    %417 = vector.shape_cast %416 : vector<1x1x64xf32> to vector<1x64xf32>
    %c0_353 = arith.constant 0 : index
    %c6272 = arith.constant 6272 : index
    %418 = vector.load %arg17[%c0_353, %c6272] : memref<2x6400xf32, #tpu.memory_space<vmem>>, vector<1x64xf32>
    tpu.vector_store %arg17[%c0_353, %c6272], %417 {strides = array<i32>} : memref<2x6400xf32, #tpu.memory_space<vmem>>, vector<1x64xf32>,
    %c0_354 = arith.constant 0 : index
    %c99 = arith.constant 99 : index
    %c0_355 = arith.constant 0 : index
    %419 = vector.load %arg16[%c0_354, %c99, %c0_355] : memref<2x100x128xf32, #tpu.memory_space<vmem>>, vector<1x1x64xf32>
    %420 = vector.shape_cast %419 : vector<1x1x64xf32> to vector<1x64xf32>
    %c0_356 = arith.constant 0 : index
    %c6336 = arith.constant 6336 : index
    %421 = vector.load %arg17[%c0_356, %c6336] : memref<2x6400xf32, #tpu.memory_space<vmem>>, vector<1x64xf32>
    tpu.vector_store %arg17[%c0_356, %c6336], %420 {strides = array<i32>} : memref<2x6400xf32, #tpu.memory_space<vmem>>, vector<1x64xf32>,
    %c1_357 = arith.constant 1 : index
    %c0_358 = arith.constant 0 : index
    %c0_359 = arith.constant 0 : index
    %422 = vector.load %arg16[%c1_357, %c0_358, %c0_359] : memref<2x100x128xf32, #tpu.memory_space<vmem>>, vector<1x1x64xf32>
    %423 = vector.shape_cast %422 : vector<1x1x64xf32> to vector<1x64xf32>
    %c1_360 = arith.constant 1 : index
    %c0_361 = arith.constant 0 : index
    %424 = vector.load %arg17[%c1_360, %c0_361] : memref<2x6400xf32, #tpu.memory_space<vmem>>, vector<1x64xf32>
    tpu.vector_store %arg17[%c1_360, %c0_361], %423 {strides = array<i32>} : memref<2x6400xf32, #tpu.memory_space<vmem>>, vector<1x64xf32>,
    %c1_362 = arith.constant 1 : index
    %c1_363 = arith.constant 1 : index
    %c0_364 = arith.constant 0 : index
    %425 = vector.load %arg16[%c1_362, %c1_363, %c0_364] : memref<2x100x128xf32, #tpu.memory_space<vmem>>, vector<1x1x64xf32>
    %426 = vector.shape_cast %425 : vector<1x1x64xf32> to vector<1x64xf32>
    %c1_365 = arith.constant 1 : index
    %c64_366 = arith.constant 64 : index
    %427 = vector.load %arg17[%c1_365, %c64_366] : memref<2x6400xf32, #tpu.memory_space<vmem>>, vector<1x64xf32>
    tpu.vector_store %arg17[%c1_365, %c64_366], %426 {strides = array<i32>} : memref<2x6400xf32, #tpu.memory_space<vmem>>, vector<1x64xf32>,
    %c1_367 = arith.constant 1 : index
    %c2_368 = arith.constant 2 : index
    %c0_369 = arith.constant 0 : index
    %428 = vector.load %arg16[%c1_367, %c2_368, %c0_369] : memref<2x100x128xf32, #tpu.memory_space<vmem>>, vector<1x1x64xf32>
    %429 = vector.shape_cast %428 : vector<1x1x64xf32> to vector<1x64xf32>
    %c1_370 = arith.constant 1 : index
    %c128_371 = arith.constant 128 : index
    %430 = vector.load %arg17[%c1_370, %c128_371] : memref<2x6400xf32, #tpu.memory_space<vmem>>, vector<1x64xf32>
    tpu.vector_store %arg17[%c1_370, %c128_371], %429 {strides = array<i32>} : memref<2x6400xf32, #tpu.memory_space<vmem>>, vector<1x64xf32>,
    %c1_372 = arith.constant 1 : index
    %c3_373 = arith.constant 3 : index
    %c0_374 = arith.constant 0 : index
    %431 = vector.load %arg16[%c1_372, %c3_373, %c0_374] : memref<2x100x128xf32, #tpu.memory_space<vmem>>, vector<1x1x64xf32>
    %432 = vector.shape_cast %431 : vector<1x1x64xf32> to vector<1x64xf32>
    %c1_375 = arith.constant 1 : index
    %c192_376 = arith.constant 192 : index
    %433 = vector.load %arg17[%c1_375, %c192_376] : memref<2x6400xf32, #tpu.memory_space<vmem>>, vector<1x64xf32>
    tpu.vector_store %arg17[%c1_375, %c192_376], %432 {strides = array<i32>} : memref<2x6400xf32, #tpu.memory_space<vmem>>, vector<1x64xf32>,
    %c1_377 = arith.constant 1 : index
    %c4_378 = arith.constant 4 : index
    %c0_379 = arith.constant 0 : index
    %434 = vector.load %arg16[%c1_377, %c4_378, %c0_379] : memref<2x100x128xf32, #tpu.memory_space<vmem>>, vector<1x1x64xf32>
    %435 = vector.shape_cast %434 : vector<1x1x64xf32> to vector<1x64xf32>
    %c1_380 = arith.constant 1 : index
    %c256_381 = arith.constant 256 : index
    %436 = vector.load %arg17[%c1_380, %c256_381] : memref<2x6400xf32, #tpu.memory_space<vmem>>, vector<1x64xf32>
    tpu.vector_store %arg17[%c1_380, %c256_381], %435 {strides = array<i32>} : memref<2x6400xf32, #tpu.memory_space<vmem>>, vector<1x64xf32>,
    %c1_382 = arith.constant 1 : index
    %c5_383 = arith.constant 5 : index
    %c0_384 = arith.constant 0 : index
    %437 = vector.load %arg16[%c1_382, %c5_383, %c0_384] : memref<2x100x128xf32, #tpu.memory_space<vmem>>, vector<1x1x64xf32>
    %438 = vector.shape_cast %437 : vector<1x1x64xf32> to vector<1x64xf32>
    %c1_385 = arith.constant 1 : index
    %c320_386 = arith.constant 320 : index
    %439 = vector.load %arg17[%c1_385, %c320_386] : memref<2x6400xf32, #tpu.memory_space<vmem>>, vector<1x64xf32>
    tpu.vector_store %arg17[%c1_385, %c320_386], %438 {strides = array<i32>} : memref<2x6400xf32, #tpu.memory_space<vmem>>, vector<1x64xf32>,
    %c1_387 = arith.constant 1 : index
    %c6_388 = arith.constant 6 : index
    %c0_389 = arith.constant 0 : index
    %440 = vector.load %arg16[%c1_387, %c6_388, %c0_389] : memref<2x100x128xf32, #tpu.memory_space<vmem>>, vector<1x1x64xf32>
    %441 = vector.shape_cast %440 : vector<1x1x64xf32> to vector<1x64xf32>
    %c1_390 = arith.constant 1 : index
    %c384_391 = arith.constant 384 : index
    %442 = vector.load %arg17[%c1_390, %c384_391] : memref<2x6400xf32, #tpu.memory_space<vmem>>, vector<1x64xf32>
    tpu.vector_store %arg17[%c1_390, %c384_391], %441 {strides = array<i32>} : memref<2x6400xf32, #tpu.memory_space<vmem>>, vector<1x64xf32>,
    %c1_392 = arith.constant 1 : index
    %c7_393 = arith.constant 7 : index
    %c0_394 = arith.constant 0 : index
    %443 = vector.load %arg16[%c1_392, %c7_393, %c0_394] : memref<2x100x128xf32, #tpu.memory_space<vmem>>, vector<1x1x64xf32>
    %444 = vector.shape_cast %443 : vector<1x1x64xf32> to vector<1x64xf32>
    %c1_395 = arith.constant 1 : index
    %c448_396 = arith.constant 448 : index
    %445 = vector.load %arg17[%c1_395, %c448_396] : memref<2x6400xf32, #tpu.memory_space<vmem>>, vector<1x64xf32>
    tpu.vector_store %arg17[%c1_395, %c448_396], %444 {strides = array<i32>} : memref<2x6400xf32, #tpu.memory_space<vmem>>, vector<1x64xf32>,
    %c1_397 = arith.constant 1 : index
    %c8_398 = arith.constant 8 : index
    %c0_399 = arith.constant 0 : index
    %446 = vector.load %arg16[%c1_397, %c8_398, %c0_399] : memref<2x100x128xf32, #tpu.memory_space<vmem>>, vector<1x1x64xf32>
    %447 = vector.shape_cast %446 : vector<1x1x64xf32> to vector<1x64xf32>
    %c1_400 = arith.constant 1 : index
    %c512_401 = arith.constant 512 : index
    %448 = vector.load %arg17[%c1_400, %c512_401] : memref<2x6400xf32, #tpu.memory_space<vmem>>, vector<1x64xf32>
    tpu.vector_store %arg17[%c1_400, %c512_401], %447 {strides = array<i32>} : memref<2x6400xf32, #tpu.memory_space<vmem>>, vector<1x64xf32>,
    %c1_402 = arith.constant 1 : index
    %c9_403 = arith.constant 9 : index
    %c0_404 = arith.constant 0 : index
    %449 = vector.load %arg16[%c1_402, %c9_403, %c0_404] : memref<2x100x128xf32, #tpu.memory_space<vmem>>, vector<1x1x64xf32>
    %450 = vector.shape_cast %449 : vector<1x1x64xf32> to vector<1x64xf32>
    %c1_405 = arith.constant 1 : index
    %c576_406 = arith.constant 576 : index
    %451 = vector.load %arg17[%c1_405, %c576_406] : memref<2x6400xf32, #tpu.memory_space<vmem>>, vector<1x64xf32>
    tpu.vector_store %arg17[%c1_405, %c576_406], %450 {strides = array<i32>} : memref<2x6400xf32, #tpu.memory_space<vmem>>, vector<1x64xf32>,
    %c1_407 = arith.constant 1 : index
    %c10_408 = arith.constant 10 : index
    %c0_409 = arith.constant 0 : index
    %452 = vector.load %arg16[%c1_407, %c10_408, %c0_409] : memref<2x100x128xf32, #tpu.memory_space<vmem>>, vector<1x1x64xf32>
    %453 = vector.shape_cast %452 : vector<1x1x64xf32> to vector<1x64xf32>
    %c1_410 = arith.constant 1 : index
    %c640_411 = arith.constant 640 : index
    %454 = vector.load %arg17[%c1_410, %c640_411] : memref<2x6400xf32, #tpu.memory_space<vmem>>, vector<1x64xf32>
    tpu.vector_store %arg17[%c1_410, %c640_411], %453 {strides = array<i32>} : memref<2x6400xf32, #tpu.memory_space<vmem>>, vector<1x64xf32>,
    %c1_412 = arith.constant 1 : index
    %c11_413 = arith.constant 11 : index
    %c0_414 = arith.constant 0 : index
    %455 = vector.load %arg16[%c1_412, %c11_413, %c0_414] : memref<2x100x128xf32, #tpu.memory_space<vmem>>, vector<1x1x64xf32>
    %456 = vector.shape_cast %455 : vector<1x1x64xf32> to vector<1x64xf32>
    %c1_415 = arith.constant 1 : index
    %c704_416 = arith.constant 704 : index
    %457 = vector.load %arg17[%c1_415, %c704_416] : memref<2x6400xf32, #tpu.memory_space<vmem>>, vector<1x64xf32>
    tpu.vector_store %arg17[%c1_415, %c704_416], %456 {strides = array<i32>} : memref<2x6400xf32, #tpu.memory_space<vmem>>, vector<1x64xf32>,
    %c1_417 = arith.constant 1 : index
    %c12_418 = arith.constant 12 : index
    %c0_419 = arith.constant 0 : index
    %458 = vector.load %arg16[%c1_417, %c12_418, %c0_419] : memref<2x100x128xf32, #tpu.memory_space<vmem>>, vector<1x1x64xf32>
    %459 = vector.shape_cast %458 : vector<1x1x64xf32> to vector<1x64xf32>
    %c1_420 = arith.constant 1 : index
    %c768_421 = arith.constant 768 : index
    %460 = vector.load %arg17[%c1_420, %c768_421] : memref<2x6400xf32, #tpu.memory_space<vmem>>, vector<1x64xf32>
    tpu.vector_store %arg17[%c1_420, %c768_421], %459 {strides = array<i32>} : memref<2x6400xf32, #tpu.memory_space<vmem>>, vector<1x64xf32>,
    %c1_422 = arith.constant 1 : index
    %c13_423 = arith.constant 13 : index
    %c0_424 = arith.constant 0 : index
    %461 = vector.load %arg16[%c1_422, %c13_423, %c0_424] : memref<2x100x128xf32, #tpu.memory_space<vmem>>, vector<1x1x64xf32>
    %462 = vector.shape_cast %461 : vector<1x1x64xf32> to vector<1x64xf32>
    %c1_425 = arith.constant 1 : index
    %c832_426 = arith.constant 832 : index
    %463 = vector.load %arg17[%c1_425, %c832_426] : memref<2x6400xf32, #tpu.memory_space<vmem>>, vector<1x64xf32>
    tpu.vector_store %arg17[%c1_425, %c832_426], %462 {strides = array<i32>} : memref<2x6400xf32, #tpu.memory_space<vmem>>, vector<1x64xf32>,
    %c1_427 = arith.constant 1 : index
    %c14_428 = arith.constant 14 : index
    %c0_429 = arith.constant 0 : index
    %464 = vector.load %arg16[%c1_427, %c14_428, %c0_429] : memref<2x100x128xf32, #tpu.memory_space<vmem>>, vector<1x1x64xf32>
    %465 = vector.shape_cast %464 : vector<1x1x64xf32> to vector<1x64xf32>
    %c1_430 = arith.constant 1 : index
    %c896_431 = arith.constant 896 : index
    %466 = vector.load %arg17[%c1_430, %c896_431] : memref<2x6400xf32, #tpu.memory_space<vmem>>, vector<1x64xf32>
    tpu.vector_store %arg17[%c1_430, %c896_431], %465 {strides = array<i32>} : memref<2x6400xf32, #tpu.memory_space<vmem>>, vector<1x64xf32>,
    %c1_432 = arith.constant 1 : index
    %c15_433 = arith.constant 15 : index
    %c0_434 = arith.constant 0 : index
    %467 = vector.load %arg16[%c1_432, %c15_433, %c0_434] : memref<2x100x128xf32, #tpu.memory_space<vmem>>, vector<1x1x64xf32>
    %468 = vector.shape_cast %467 : vector<1x1x64xf32> to vector<1x64xf32>
    %c1_435 = arith.constant 1 : index
    %c960_436 = arith.constant 960 : index
    %469 = vector.load %arg17[%c1_435, %c960_436] : memref<2x6400xf32, #tpu.memory_space<vmem>>, vector<1x64xf32>
    tpu.vector_store %arg17[%c1_435, %c960_436], %468 {strides = array<i32>} : memref<2x6400xf32, #tpu.memory_space<vmem>>, vector<1x64xf32>,
    %c1_437 = arith.constant 1 : index
    %c16_438 = arith.constant 16 : index
    %c0_439 = arith.constant 0 : index
    %470 = vector.load %arg16[%c1_437, %c16_438, %c0_439] : memref<2x100x128xf32, #tpu.memory_space<vmem>>, vector<1x1x64xf32>
    %471 = vector.shape_cast %470 : vector<1x1x64xf32> to vector<1x64xf32>
    %c1_440 = arith.constant 1 : index
    %c1024_441 = arith.constant 1024 : index
    %472 = vector.load %arg17[%c1_440, %c1024_441] : memref<2x6400xf32, #tpu.memory_space<vmem>>, vector<1x64xf32>
    tpu.vector_store %arg17[%c1_440, %c1024_441], %471 {strides = array<i32>} : memref<2x6400xf32, #tpu.memory_space<vmem>>, vector<1x64xf32>,
    %c1_442 = arith.constant 1 : index
    %c17_443 = arith.constant 17 : index
    %c0_444 = arith.constant 0 : index
    %473 = vector.load %arg16[%c1_442, %c17_443, %c0_444] : memref<2x100x128xf32, #tpu.memory_space<vmem>>, vector<1x1x64xf32>
    %474 = vector.shape_cast %473 : vector<1x1x64xf32> to vector<1x64xf32>
    %c1_445 = arith.constant 1 : index
    %c1088_446 = arith.constant 1088 : index
    %475 = vector.load %arg17[%c1_445, %c1088_446] : memref<2x6400xf32, #tpu.memory_space<vmem>>, vector<1x64xf32>
    tpu.vector_store %arg17[%c1_445, %c1088_446], %474 {strides = array<i32>} : memref<2x6400xf32, #tpu.memory_space<vmem>>, vector<1x64xf32>,
    %c1_447 = arith.constant 1 : index
    %c18_448 = arith.constant 18 : index
    %c0_449 = arith.constant 0 : index
    %476 = vector.load %arg16[%c1_447, %c18_448, %c0_449] : memref<2x100x128xf32, #tpu.memory_space<vmem>>, vector<1x1x64xf32>
    %477 = vector.shape_cast %476 : vector<1x1x64xf32> to vector<1x64xf32>
    %c1_450 = arith.constant 1 : index
    %c1152_451 = arith.constant 1152 : index
    %478 = vector.load %arg17[%c1_450, %c1152_451] : memref<2x6400xf32, #tpu.memory_space<vmem>>, vector<1x64xf32>
    tpu.vector_store %arg17[%c1_450, %c1152_451], %477 {strides = array<i32>} : memref<2x6400xf32, #tpu.memory_space<vmem>>, vector<1x64xf32>,
    %c1_452 = arith.constant 1 : index
    %c19_453 = arith.constant 19 : index
    %c0_454 = arith.constant 0 : index
    %479 = vector.load %arg16[%c1_452, %c19_453, %c0_454] : memref<2x100x128xf32, #tpu.memory_space<vmem>>, vector<1x1x64xf32>
    %480 = vector.shape_cast %479 : vector<1x1x64xf32> to vector<1x64xf32>
    %c1_455 = arith.constant 1 : index
    %c1216_456 = arith.constant 1216 : index
    %481 = vector.load %arg17[%c1_455, %c1216_456] : memref<2x6400xf32, #tpu.memory_space<vmem>>, vector<1x64xf32>
    tpu.vector_store %arg17[%c1_455, %c1216_456], %480 {strides = array<i32>} : memref<2x6400xf32, #tpu.memory_space<vmem>>, vector<1x64xf32>,
    %c1_457 = arith.constant 1 : index
    %c20_458 = arith.constant 20 : index
    %c0_459 = arith.constant 0 : index
    %482 = vector.load %arg16[%c1_457, %c20_458, %c0_459] : memref<2x100x128xf32, #tpu.memory_space<vmem>>, vector<1x1x64xf32>
    %483 = vector.shape_cast %482 : vector<1x1x64xf32> to vector<1x64xf32>
    %c1_460 = arith.constant 1 : index
    %c1280_461 = arith.constant 1280 : index
    %484 = vector.load %arg17[%c1_460, %c1280_461] : memref<2x6400xf32, #tpu.memory_space<vmem>>, vector<1x64xf32>
    tpu.vector_store %arg17[%c1_460, %c1280_461], %483 {strides = array<i32>} : memref<2x6400xf32, #tpu.memory_space<vmem>>, vector<1x64xf32>,
    %c1_462 = arith.constant 1 : index
    %c21_463 = arith.constant 21 : index
    %c0_464 = arith.constant 0 : index
    %485 = vector.load %arg16[%c1_462, %c21_463, %c0_464] : memref<2x100x128xf32, #tpu.memory_space<vmem>>, vector<1x1x64xf32>
    %486 = vector.shape_cast %485 : vector<1x1x64xf32> to vector<1x64xf32>
    %c1_465 = arith.constant 1 : index
    %c1344_466 = arith.constant 1344 : index
    %487 = vector.load %arg17[%c1_465, %c1344_466] : memref<2x6400xf32, #tpu.memory_space<vmem>>, vector<1x64xf32>
    tpu.vector_store %arg17[%c1_465, %c1344_466], %486 {strides = array<i32>} : memref<2x6400xf32, #tpu.memory_space<vmem>>, vector<1x64xf32>,
    %c1_467 = arith.constant 1 : index
    %c22_468 = arith.constant 22 : index
    %c0_469 = arith.constant 0 : index
    %488 = vector.load %arg16[%c1_467, %c22_468, %c0_469] : memref<2x100x128xf32, #tpu.memory_space<vmem>>, vector<1x1x64xf32>
    %489 = vector.shape_cast %488 : vector<1x1x64xf32> to vector<1x64xf32>
    %c1_470 = arith.constant 1 : index
    %c1408_471 = arith.constant 1408 : index
    %490 = vector.load %arg17[%c1_470, %c1408_471] : memref<2x6400xf32, #tpu.memory_space<vmem>>, vector<1x64xf32>
    tpu.vector_store %arg17[%c1_470, %c1408_471], %489 {strides = array<i32>} : memref<2x6400xf32, #tpu.memory_space<vmem>>, vector<1x64xf32>,
    %c1_472 = arith.constant 1 : index
    %c23_473 = arith.constant 23 : index
    %c0_474 = arith.constant 0 : index
    %491 = vector.load %arg16[%c1_472, %c23_473, %c0_474] : memref<2x100x128xf32, #tpu.memory_space<vmem>>, vector<1x1x64xf32>
    %492 = vector.shape_cast %491 : vector<1x1x64xf32> to vector<1x64xf32>
    %c1_475 = arith.constant 1 : index
    %c1472_476 = arith.constant 1472 : index
    %493 = vector.load %arg17[%c1_475, %c1472_476] : memref<2x6400xf32, #tpu.memory_space<vmem>>, vector<1x64xf32>
    tpu.vector_store %arg17[%c1_475, %c1472_476], %492 {strides = array<i32>} : memref<2x6400xf32, #tpu.memory_space<vmem>>, vector<1x64xf32>,
    %c1_477 = arith.constant 1 : index
    %c24_478 = arith.constant 24 : index
    %c0_479 = arith.constant 0 : index
    %494 = vector.load %arg16[%c1_477, %c24_478, %c0_479] : memref<2x100x128xf32, #tpu.memory_space<vmem>>, vector<1x1x64xf32>
    %495 = vector.shape_cast %494 : vector<1x1x64xf32> to vector<1x64xf32>
    %c1_480 = arith.constant 1 : index
    %c1536_481 = arith.constant 1536 : index
    %496 = vector.load %arg17[%c1_480, %c1536_481] : memref<2x6400xf32, #tpu.memory_space<vmem>>, vector<1x64xf32>
    tpu.vector_store %arg17[%c1_480, %c1536_481], %495 {strides = array<i32>} : memref<2x6400xf32, #tpu.memory_space<vmem>>, vector<1x64xf32>,
    %c1_482 = arith.constant 1 : index
    %c25_483 = arith.constant 25 : index
    %c0_484 = arith.constant 0 : index
    %497 = vector.load %arg16[%c1_482, %c25_483, %c0_484] : memref<2x100x128xf32, #tpu.memory_space<vmem>>, vector<1x1x64xf32>
    %498 = vector.shape_cast %497 : vector<1x1x64xf32> to vector<1x64xf32>
    %c1_485 = arith.constant 1 : index
    %c1600_486 = arith.constant 1600 : index
    %499 = vector.load %arg17[%c1_485, %c1600_486] : memref<2x6400xf32, #tpu.memory_space<vmem>>, vector<1x64xf32>
    tpu.vector_store %arg17[%c1_485, %c1600_486], %498 {strides = array<i32>} : memref<2x6400xf32, #tpu.memory_space<vmem>>, vector<1x64xf32>,
    %c1_487 = arith.constant 1 : index
    %c26_488 = arith.constant 26 : index
    %c0_489 = arith.constant 0 : index
    %500 = vector.load %arg16[%c1_487, %c26_488, %c0_489] : memref<2x100x128xf32, #tpu.memory_space<vmem>>, vector<1x1x64xf32>
    %501 = vector.shape_cast %500 : vector<1x1x64xf32> to vector<1x64xf32>
    %c1_490 = arith.constant 1 : index
    %c1664_491 = arith.constant 1664 : index
    %502 = vector.load %arg17[%c1_490, %c1664_491] : memref<2x6400xf32, #tpu.memory_space<vmem>>, vector<1x64xf32>
    tpu.vector_store %arg17[%c1_490, %c1664_491], %501 {strides = array<i32>} : memref<2x6400xf32, #tpu.memory_space<vmem>>, vector<1x64xf32>,
    %c1_492 = arith.constant 1 : index
    %c27_493 = arith.constant 27 : index
    %c0_494 = arith.constant 0 : index
    %503 = vector.load %arg16[%c1_492, %c27_493, %c0_494] : memref<2x100x128xf32, #tpu.memory_space<vmem>>, vector<1x1x64xf32>
    %504 = vector.shape_cast %503 : vector<1x1x64xf32> to vector<1x64xf32>
    %c1_495 = arith.constant 1 : index
    %c1728_496 = arith.constant 1728 : index
    %505 = vector.load %arg17[%c1_495, %c1728_496] : memref<2x6400xf32, #tpu.memory_space<vmem>>, vector<1x64xf32>
    tpu.vector_store %arg17[%c1_495, %c1728_496], %504 {strides = array<i32>} : memref<2x6400xf32, #tpu.memory_space<vmem>>, vector<1x64xf32>,
    %c1_497 = arith.constant 1 : index
    %c28_498 = arith.constant 28 : index
    %c0_499 = arith.constant 0 : index
    %506 = vector.load %arg16[%c1_497, %c28_498, %c0_499] : memref<2x100x128xf32, #tpu.memory_space<vmem>>, vector<1x1x64xf32>
    %507 = vector.shape_cast %506 : vector<1x1x64xf32> to vector<1x64xf32>
    %c1_500 = arith.constant 1 : index
    %c1792_501 = arith.constant 1792 : index
    %508 = vector.load %arg17[%c1_500, %c1792_501] : memref<2x6400xf32, #tpu.memory_space<vmem>>, vector<1x64xf32>
    tpu.vector_store %arg17[%c1_500, %c1792_501], %507 {strides = array<i32>} : memref<2x6400xf32, #tpu.memory_space<vmem>>, vector<1x64xf32>,
    %c1_502 = arith.constant 1 : index
    %c29_503 = arith.constant 29 : index
    %c0_504 = arith.constant 0 : index
    %509 = vector.load %arg16[%c1_502, %c29_503, %c0_504] : memref<2x100x128xf32, #tpu.memory_space<vmem>>, vector<1x1x64xf32>
    %510 = vector.shape_cast %509 : vector<1x1x64xf32> to vector<1x64xf32>
    %c1_505 = arith.constant 1 : index
    %c1856_506 = arith.constant 1856 : index
    %511 = vector.load %arg17[%c1_505, %c1856_506] : memref<2x6400xf32, #tpu.memory_space<vmem>>, vector<1x64xf32>
    tpu.vector_store %arg17[%c1_505, %c1856_506], %510 {strides = array<i32>} : memref<2x6400xf32, #tpu.memory_space<vmem>>, vector<1x64xf32>,
    %c1_507 = arith.constant 1 : index
    %c30_508 = arith.constant 30 : index
    %c0_509 = arith.constant 0 : index
    %512 = vector.load %arg16[%c1_507, %c30_508, %c0_509] : memref<2x100x128xf32, #tpu.memory_space<vmem>>, vector<1x1x64xf32>
    %513 = vector.shape_cast %512 : vector<1x1x64xf32> to vector<1x64xf32>
    %c1_510 = arith.constant 1 : index
    %c1920_511 = arith.constant 1920 : index
    %514 = vector.load %arg17[%c1_510, %c1920_511] : memref<2x6400xf32, #tpu.memory_space<vmem>>, vector<1x64xf32>
    tpu.vector_store %arg17[%c1_510, %c1920_511], %513 {strides = array<i32>} : memref<2x6400xf32, #tpu.memory_space<vmem>>, vector<1x64xf32>,
    %c1_512 = arith.constant 1 : index
    %c31_513 = arith.constant 31 : index
    %c0_514 = arith.constant 0 : index
    %515 = vector.load %arg16[%c1_512, %c31_513, %c0_514] : memref<2x100x128xf32, #tpu.memory_space<vmem>>, vector<1x1x64xf32>
    %516 = vector.shape_cast %515 : vector<1x1x64xf32> to vector<1x64xf32>
    %c1_515 = arith.constant 1 : index
    %c1984_516 = arith.constant 1984 : index
    %517 = vector.load %arg17[%c1_515, %c1984_516] : memref<2x6400xf32, #tpu.memory_space<vmem>>, vector<1x64xf32>
    tpu.vector_store %arg17[%c1_515, %c1984_516], %516 {strides = array<i32>} : memref<2x6400xf32, #tpu.memory_space<vmem>>, vector<1x64xf32>,
    %c1_517 = arith.constant 1 : index
    %c32_518 = arith.constant 32 : index
    %c0_519 = arith.constant 0 : index
    %518 = vector.load %arg16[%c1_517, %c32_518, %c0_519] : memref<2x100x128xf32, #tpu.memory_space<vmem>>, vector<1x1x64xf32>
    %519 = vector.shape_cast %518 : vector<1x1x64xf32> to vector<1x64xf32>
    %c1_520 = arith.constant 1 : index
    %c2048_521 = arith.constant 2048 : index
    %520 = vector.load %arg17[%c1_520, %c2048_521] : memref<2x6400xf32, #tpu.memory_space<vmem>>, vector<1x64xf32>
    tpu.vector_store %arg17[%c1_520, %c2048_521], %519 {strides = array<i32>} : memref<2x6400xf32, #tpu.memory_space<vmem>>, vector<1x64xf32>,
    %c1_522 = arith.constant 1 : index
    %c33_523 = arith.constant 33 : index
    %c0_524 = arith.constant 0 : index
    %521 = vector.load %arg16[%c1_522, %c33_523, %c0_524] : memref<2x100x128xf32, #tpu.memory_space<vmem>>, vector<1x1x64xf32>
    %522 = vector.shape_cast %521 : vector<1x1x64xf32> to vector<1x64xf32>
    %c1_525 = arith.constant 1 : index
    %c2112_526 = arith.constant 2112 : index
    %523 = vector.load %arg17[%c1_525, %c2112_526] : memref<2x6400xf32, #tpu.memory_space<vmem>>, vector<1x64xf32>
    tpu.vector_store %arg17[%c1_525, %c2112_526], %522 {strides = array<i32>} : memref<2x6400xf32, #tpu.memory_space<vmem>>, vector<1x64xf32>,
    %c1_527 = arith.constant 1 : index
    %c34_528 = arith.constant 34 : index
    %c0_529 = arith.constant 0 : index
    %524 = vector.load %arg16[%c1_527, %c34_528, %c0_529] : memref<2x100x128xf32, #tpu.memory_space<vmem>>, vector<1x1x64xf32>
    %525 = vector.shape_cast %524 : vector<1x1x64xf32> to vector<1x64xf32>
    %c1_530 = arith.constant 1 : index
    %c2176_531 = arith.constant 2176 : index
    %526 = vector.load %arg17[%c1_530, %c2176_531] : memref<2x6400xf32, #tpu.memory_space<vmem>>, vector<1x64xf32>
    tpu.vector_store %arg17[%c1_530, %c2176_531], %525 {strides = array<i32>} : memref<2x6400xf32, #tpu.memory_space<vmem>>, vector<1x64xf32>,
    %c1_532 = arith.constant 1 : index
    %c35_533 = arith.constant 35 : index
    %c0_534 = arith.constant 0 : index
    %527 = vector.load %arg16[%c1_532, %c35_533, %c0_534] : memref<2x100x128xf32, #tpu.memory_space<vmem>>, vector<1x1x64xf32>
    %528 = vector.shape_cast %527 : vector<1x1x64xf32> to vector<1x64xf32>
    %c1_535 = arith.constant 1 : index
    %c2240_536 = arith.constant 2240 : index
    %529 = vector.load %arg17[%c1_535, %c2240_536] : memref<2x6400xf32, #tpu.memory_space<vmem>>, vector<1x64xf32>
    tpu.vector_store %arg17[%c1_535, %c2240_536], %528 {strides = array<i32>} : memref<2x6400xf32, #tpu.memory_space<vmem>>, vector<1x64xf32>,
    %c1_537 = arith.constant 1 : index
    %c36_538 = arith.constant 36 : index
    %c0_539 = arith.constant 0 : index
    %530 = vector.load %arg16[%c1_537, %c36_538, %c0_539] : memref<2x100x128xf32, #tpu.memory_space<vmem>>, vector<1x1x64xf32>
    %531 = vector.shape_cast %530 : vector<1x1x64xf32> to vector<1x64xf32>
    %c1_540 = arith.constant 1 : index
    %c2304_541 = arith.constant 2304 : index
    %532 = vector.load %arg17[%c1_540, %c2304_541] : memref<2x6400xf32, #tpu.memory_space<vmem>>, vector<1x64xf32>
    tpu.vector_store %arg17[%c1_540, %c2304_541], %531 {strides = array<i32>} : memref<2x6400xf32, #tpu.memory_space<vmem>>, vector<1x64xf32>,
    %c1_542 = arith.constant 1 : index
    %c37_543 = arith.constant 37 : index
    %c0_544 = arith.constant 0 : index
    %533 = vector.load %arg16[%c1_542, %c37_543, %c0_544] : memref<2x100x128xf32, #tpu.memory_space<vmem>>, vector<1x1x64xf32>
    %534 = vector.shape_cast %533 : vector<1x1x64xf32> to vector<1x64xf32>
    %c1_545 = arith.constant 1 : index
    %c2368_546 = arith.constant 2368 : index
    %535 = vector.load %arg17[%c1_545, %c2368_546] : memref<2x6400xf32, #tpu.memory_space<vmem>>, vector<1x64xf32>
    tpu.vector_store %arg17[%c1_545, %c2368_546], %534 {strides = array<i32>} : memref<2x6400xf32, #tpu.memory_space<vmem>>, vector<1x64xf32>,
    %c1_547 = arith.constant 1 : index
    %c38_548 = arith.constant 38 : index
    %c0_549 = arith.constant 0 : index
    %536 = vector.load %arg16[%c1_547, %c38_548, %c0_549] : memref<2x100x128xf32, #tpu.memory_space<vmem>>, vector<1x1x64xf32>
    %537 = vector.shape_cast %536 : vector<1x1x64xf32> to vector<1x64xf32>
    %c1_550 = arith.constant 1 : index
    %c2432_551 = arith.constant 2432 : index
    %538 = vector.load %arg17[%c1_550, %c2432_551] : memref<2x6400xf32, #tpu.memory_space<vmem>>, vector<1x64xf32>
    tpu.vector_store %arg17[%c1_550, %c2432_551], %537 {strides = array<i32>} : memref<2x6400xf32, #tpu.memory_space<vmem>>, vector<1x64xf32>,
    %c1_552 = arith.constant 1 : index
    %c39_553 = arith.constant 39 : index
    %c0_554 = arith.constant 0 : index
    %539 = vector.load %arg16[%c1_552, %c39_553, %c0_554] : memref<2x100x128xf32, #tpu.memory_space<vmem>>, vector<1x1x64xf32>
    %540 = vector.shape_cast %539 : vector<1x1x64xf32> to vector<1x64xf32>
    %c1_555 = arith.constant 1 : index
    %c2496_556 = arith.constant 2496 : index
    %541 = vector.load %arg17[%c1_555, %c2496_556] : memref<2x6400xf32, #tpu.memory_space<vmem>>, vector<1x64xf32>
    tpu.vector_store %arg17[%c1_555, %c2496_556], %540 {strides = array<i32>} : memref<2x6400xf32, #tpu.memory_space<vmem>>, vector<1x64xf32>,
    %c1_557 = arith.constant 1 : index
    %c40_558 = arith.constant 40 : index
    %c0_559 = arith.constant 0 : index
    %542 = vector.load %arg16[%c1_557, %c40_558, %c0_559] : memref<2x100x128xf32, #tpu.memory_space<vmem>>, vector<1x1x64xf32>
    %543 = vector.shape_cast %542 : vector<1x1x64xf32> to vector<1x64xf32>
    %c1_560 = arith.constant 1 : index
    %c2560_561 = arith.constant 2560 : index
    %544 = vector.load %arg17[%c1_560, %c2560_561] : memref<2x6400xf32, #tpu.memory_space<vmem>>, vector<1x64xf32>
    tpu.vector_store %arg17[%c1_560, %c2560_561], %543 {strides = array<i32>} : memref<2x6400xf32, #tpu.memory_space<vmem>>, vector<1x64xf32>,
    %c1_562 = arith.constant 1 : index
    %c41_563 = arith.constant 41 : index
    %c0_564 = arith.constant 0 : index
    %545 = vector.load %arg16[%c1_562, %c41_563, %c0_564] : memref<2x100x128xf32, #tpu.memory_space<vmem>>, vector<1x1x64xf32>
    %546 = vector.shape_cast %545 : vector<1x1x64xf32> to vector<1x64xf32>
    %c1_565 = arith.constant 1 : index
    %c2624_566 = arith.constant 2624 : index
    %547 = vector.load %arg17[%c1_565, %c2624_566] : memref<2x6400xf32, #tpu.memory_space<vmem>>, vector<1x64xf32>
    tpu.vector_store %arg17[%c1_565, %c2624_566], %546 {strides = array<i32>} : memref<2x6400xf32, #tpu.memory_space<vmem>>, vector<1x64xf32>,
    %c1_567 = arith.constant 1 : index
    %c42_568 = arith.constant 42 : index
    %c0_569 = arith.constant 0 : index
    %548 = vector.load %arg16[%c1_567, %c42_568, %c0_569] : memref<2x100x128xf32, #tpu.memory_space<vmem>>, vector<1x1x64xf32>
    %549 = vector.shape_cast %548 : vector<1x1x64xf32> to vector<1x64xf32>
    %c1_570 = arith.constant 1 : index
    %c2688_571 = arith.constant 2688 : index
    %550 = vector.load %arg17[%c1_570, %c2688_571] : memref<2x6400xf32, #tpu.memory_space<vmem>>, vector<1x64xf32>
    tpu.vector_store %arg17[%c1_570, %c2688_571], %549 {strides = array<i32>} : memref<2x6400xf32, #tpu.memory_space<vmem>>, vector<1x64xf32>,
    %c1_572 = arith.constant 1 : index
    %c43_573 = arith.constant 43 : index
    %c0_574 = arith.constant 0 : index
    %551 = vector.load %arg16[%c1_572, %c43_573, %c0_574] : memref<2x100x128xf32, #tpu.memory_space<vmem>>, vector<1x1x64xf32>
    %552 = vector.shape_cast %551 : vector<1x1x64xf32> to vector<1x64xf32>
    %c1_575 = arith.constant 1 : index
    %c2752_576 = arith.constant 2752 : index
    %553 = vector.load %arg17[%c1_575, %c2752_576] : memref<2x6400xf32, #tpu.memory_space<vmem>>, vector<1x64xf32>
    tpu.vector_store %arg17[%c1_575, %c2752_576], %552 {strides = array<i32>} : memref<2x6400xf32, #tpu.memory_space<vmem>>, vector<1x64xf32>,
    %c1_577 = arith.constant 1 : index
    %c44_578 = arith.constant 44 : index
    %c0_579 = arith.constant 0 : index
    %554 = vector.load %arg16[%c1_577, %c44_578, %c0_579] : memref<2x100x128xf32, #tpu.memory_space<vmem>>, vector<1x1x64xf32>
    %555 = vector.shape_cast %554 : vector<1x1x64xf32> to vector<1x64xf32>
    %c1_580 = arith.constant 1 : index
    %c2816_581 = arith.constant 2816 : index
    %556 = vector.load %arg17[%c1_580, %c2816_581] : memref<2x6400xf32, #tpu.memory_space<vmem>>, vector<1x64xf32>
    tpu.vector_store %arg17[%c1_580, %c2816_581], %555 {strides = array<i32>} : memref<2x6400xf32, #tpu.memory_space<vmem>>, vector<1x64xf32>,
    %c1_582 = arith.constant 1 : index
    %c45_583 = arith.constant 45 : index
    %c0_584 = arith.constant 0 : index
    %557 = vector.load %arg16[%c1_582, %c45_583, %c0_584] : memref<2x100x128xf32, #tpu.memory_space<vmem>>, vector<1x1x64xf32>
    %558 = vector.shape_cast %557 : vector<1x1x64xf32> to vector<1x64xf32>
    %c1_585 = arith.constant 1 : index
    %c2880_586 = arith.constant 2880 : index
    %559 = vector.load %arg17[%c1_585, %c2880_586] : memref<2x6400xf32, #tpu.memory_space<vmem>>, vector<1x64xf32>
    tpu.vector_store %arg17[%c1_585, %c2880_586], %558 {strides = array<i32>} : memref<2x6400xf32, #tpu.memory_space<vmem>>, vector<1x64xf32>,
    %c1_587 = arith.constant 1 : index
    %c46_588 = arith.constant 46 : index
    %c0_589 = arith.constant 0 : index
    %560 = vector.load %arg16[%c1_587, %c46_588, %c0_589] : memref<2x100x128xf32, #tpu.memory_space<vmem>>, vector<1x1x64xf32>
    %561 = vector.shape_cast %560 : vector<1x1x64xf32> to vector<1x64xf32>
    %c1_590 = arith.constant 1 : index
    %c2944_591 = arith.constant 2944 : index
    %562 = vector.load %arg17[%c1_590, %c2944_591] : memref<2x6400xf32, #tpu.memory_space<vmem>>, vector<1x64xf32>
    tpu.vector_store %arg17[%c1_590, %c2944_591], %561 {strides = array<i32>} : memref<2x6400xf32, #tpu.memory_space<vmem>>, vector<1x64xf32>,
    %c1_592 = arith.constant 1 : index
    %c47_593 = arith.constant 47 : index
    %c0_594 = arith.constant 0 : index
    %563 = vector.load %arg16[%c1_592, %c47_593, %c0_594] : memref<2x100x128xf32, #tpu.memory_space<vmem>>, vector<1x1x64xf32>
    %564 = vector.shape_cast %563 : vector<1x1x64xf32> to vector<1x64xf32>
    %c1_595 = arith.constant 1 : index
    %c3008_596 = arith.constant 3008 : index
    %565 = vector.load %arg17[%c1_595, %c3008_596] : memref<2x6400xf32, #tpu.memory_space<vmem>>, vector<1x64xf32>
    tpu.vector_store %arg17[%c1_595, %c3008_596], %564 {strides = array<i32>} : memref<2x6400xf32, #tpu.memory_space<vmem>>, vector<1x64xf32>,
    %c1_597 = arith.constant 1 : index
    %c48_598 = arith.constant 48 : index
    %c0_599 = arith.constant 0 : index
    %566 = vector.load %arg16[%c1_597, %c48_598, %c0_599] : memref<2x100x128xf32, #tpu.memory_space<vmem>>, vector<1x1x64xf32>
    %567 = vector.shape_cast %566 : vector<1x1x64xf32> to vector<1x64xf32>
    %c1_600 = arith.constant 1 : index
    %c3072_601 = arith.constant 3072 : index
    %568 = vector.load %arg17[%c1_600, %c3072_601] : memref<2x6400xf32, #tpu.memory_space<vmem>>, vector<1x64xf32>
    tpu.vector_store %arg17[%c1_600, %c3072_601], %567 {strides = array<i32>} : memref<2x6400xf32, #tpu.memory_space<vmem>>, vector<1x64xf32>,
    %c1_602 = arith.constant 1 : index
    %c49_603 = arith.constant 49 : index
    %c0_604 = arith.constant 0 : index
    %569 = vector.load %arg16[%c1_602, %c49_603, %c0_604] : memref<2x100x128xf32, #tpu.memory_space<vmem>>, vector<1x1x64xf32>
    %570 = vector.shape_cast %569 : vector<1x1x64xf32> to vector<1x64xf32>
    %c1_605 = arith.constant 1 : index
    %c3136_606 = arith.constant 3136 : index
    %571 = vector.load %arg17[%c1_605, %c3136_606] : memref<2x6400xf32, #tpu.memory_space<vmem>>, vector<1x64xf32>
    tpu.vector_store %arg17[%c1_605, %c3136_606], %570 {strides = array<i32>} : memref<2x6400xf32, #tpu.memory_space<vmem>>, vector<1x64xf32>,
    %c1_607 = arith.constant 1 : index
    %c50_608 = arith.constant 50 : index
    %c0_609 = arith.constant 0 : index
    %572 = vector.load %arg16[%c1_607, %c50_608, %c0_609] : memref<2x100x128xf32, #tpu.memory_space<vmem>>, vector<1x1x64xf32>
    %573 = vector.shape_cast %572 : vector<1x1x64xf32> to vector<1x64xf32>
    %c1_610 = arith.constant 1 : index
    %c3200_611 = arith.constant 3200 : index
    %574 = vector.load %arg17[%c1_610, %c3200_611] : memref<2x6400xf32, #tpu.memory_space<vmem>>, vector<1x64xf32>
    tpu.vector_store %arg17[%c1_610, %c3200_611], %573 {strides = array<i32>} : memref<2x6400xf32, #tpu.memory_space<vmem>>, vector<1x64xf32>,
    %c1_612 = arith.constant 1 : index
    %c51_613 = arith.constant 51 : index
    %c0_614 = arith.constant 0 : index
    %575 = vector.load %arg16[%c1_612, %c51_613, %c0_614] : memref<2x100x128xf32, #tpu.memory_space<vmem>>, vector<1x1x64xf32>
    %576 = vector.shape_cast %575 : vector<1x1x64xf32> to vector<1x64xf32>
    %c1_615 = arith.constant 1 : index
    %c3264_616 = arith.constant 3264 : index
    %577 = vector.load %arg17[%c1_615, %c3264_616] : memref<2x6400xf32, #tpu.memory_space<vmem>>, vector<1x64xf32>
    tpu.vector_store %arg17[%c1_615, %c3264_616], %576 {strides = array<i32>} : memref<2x6400xf32, #tpu.memory_space<vmem>>, vector<1x64xf32>,
    %c1_617 = arith.constant 1 : index
    %c52_618 = arith.constant 52 : index
    %c0_619 = arith.constant 0 : index
    %578 = vector.load %arg16[%c1_617, %c52_618, %c0_619] : memref<2x100x128xf32, #tpu.memory_space<vmem>>, vector<1x1x64xf32>
    %579 = vector.shape_cast %578 : vector<1x1x64xf32> to vector<1x64xf32>
    %c1_620 = arith.constant 1 : index
    %c3328_621 = arith.constant 3328 : index
    %580 = vector.load %arg17[%c1_620, %c3328_621] : memref<2x6400xf32, #tpu.memory_space<vmem>>, vector<1x64xf32>
    tpu.vector_store %arg17[%c1_620, %c3328_621], %579 {strides = array<i32>} : memref<2x6400xf32, #tpu.memory_space<vmem>>, vector<1x64xf32>,
    %c1_622 = arith.constant 1 : index
    %c53_623 = arith.constant 53 : index
    %c0_624 = arith.constant 0 : index
    %581 = vector.load %arg16[%c1_622, %c53_623, %c0_624] : memref<2x100x128xf32, #tpu.memory_space<vmem>>, vector<1x1x64xf32>
    %582 = vector.shape_cast %581 : vector<1x1x64xf32> to vector<1x64xf32>
    %c1_625 = arith.constant 1 : index
    %c3392_626 = arith.constant 3392 : index
    %583 = vector.load %arg17[%c1_625, %c3392_626] : memref<2x6400xf32, #tpu.memory_space<vmem>>, vector<1x64xf32>
    tpu.vector_store %arg17[%c1_625, %c3392_626], %582 {strides = array<i32>} : memref<2x6400xf32, #tpu.memory_space<vmem>>, vector<1x64xf32>,
    %c1_627 = arith.constant 1 : index
    %c54_628 = arith.constant 54 : index
    %c0_629 = arith.constant 0 : index
    %584 = vector.load %arg16[%c1_627, %c54_628, %c0_629] : memref<2x100x128xf32, #tpu.memory_space<vmem>>, vector<1x1x64xf32>
    %585 = vector.shape_cast %584 : vector<1x1x64xf32> to vector<1x64xf32>
    %c1_630 = arith.constant 1 : index
    %c3456_631 = arith.constant 3456 : index
    %586 = vector.load %arg17[%c1_630, %c3456_631] : memref<2x6400xf32, #tpu.memory_space<vmem>>, vector<1x64xf32>
    tpu.vector_store %arg17[%c1_630, %c3456_631], %585 {strides = array<i32>} : memref<2x6400xf32, #tpu.memory_space<vmem>>, vector<1x64xf32>,
    %c1_632 = arith.constant 1 : index
    %c55_633 = arith.constant 55 : index
    %c0_634 = arith.constant 0 : index
    %587 = vector.load %arg16[%c1_632, %c55_633, %c0_634] : memref<2x100x128xf32, #tpu.memory_space<vmem>>, vector<1x1x64xf32>
    %588 = vector.shape_cast %587 : vector<1x1x64xf32> to vector<1x64xf32>
    %c1_635 = arith.constant 1 : index
    %c3520_636 = arith.constant 3520 : index
    %589 = vector.load %arg17[%c1_635, %c3520_636] : memref<2x6400xf32, #tpu.memory_space<vmem>>, vector<1x64xf32>
    tpu.vector_store %arg17[%c1_635, %c3520_636], %588 {strides = array<i32>} : memref<2x6400xf32, #tpu.memory_space<vmem>>, vector<1x64xf32>,
    %c1_637 = arith.constant 1 : index
    %c56_638 = arith.constant 56 : index
    %c0_639 = arith.constant 0 : index
    %590 = vector.load %arg16[%c1_637, %c56_638, %c0_639] : memref<2x100x128xf32, #tpu.memory_space<vmem>>, vector<1x1x64xf32>
    %591 = vector.shape_cast %590 : vector<1x1x64xf32> to vector<1x64xf32>
    %c1_640 = arith.constant 1 : index
    %c3584_641 = arith.constant 3584 : index
    %592 = vector.load %arg17[%c1_640, %c3584_641] : memref<2x6400xf32, #tpu.memory_space<vmem>>, vector<1x64xf32>
    tpu.vector_store %arg17[%c1_640, %c3584_641], %591 {strides = array<i32>} : memref<2x6400xf32, #tpu.memory_space<vmem>>, vector<1x64xf32>,
    %c1_642 = arith.constant 1 : index
    %c57_643 = arith.constant 57 : index
    %c0_644 = arith.constant 0 : index
    %593 = vector.load %arg16[%c1_642, %c57_643, %c0_644] : memref<2x100x128xf32, #tpu.memory_space<vmem>>, vector<1x1x64xf32>
    %594 = vector.shape_cast %593 : vector<1x1x64xf32> to vector<1x64xf32>
    %c1_645 = arith.constant 1 : index
    %c3648_646 = arith.constant 3648 : index
    %595 = vector.load %arg17[%c1_645, %c3648_646] : memref<2x6400xf32, #tpu.memory_space<vmem>>, vector<1x64xf32>
    tpu.vector_store %arg17[%c1_645, %c3648_646], %594 {strides = array<i32>} : memref<2x6400xf32, #tpu.memory_space<vmem>>, vector<1x64xf32>,
    %c1_647 = arith.constant 1 : index
    %c58_648 = arith.constant 58 : index
    %c0_649 = arith.constant 0 : index
    %596 = vector.load %arg16[%c1_647, %c58_648, %c0_649] : memref<2x100x128xf32, #tpu.memory_space<vmem>>, vector<1x1x64xf32>
    %597 = vector.shape_cast %596 : vector<1x1x64xf32> to vector<1x64xf32>
    %c1_650 = arith.constant 1 : index
    %c3712_651 = arith.constant 3712 : index
    %598 = vector.load %arg17[%c1_650, %c3712_651] : memref<2x6400xf32, #tpu.memory_space<vmem>>, vector<1x64xf32>
    tpu.vector_store %arg17[%c1_650, %c3712_651], %597 {strides = array<i32>} : memref<2x6400xf32, #tpu.memory_space<vmem>>, vector<1x64xf32>,
    %c1_652 = arith.constant 1 : index
    %c59_653 = arith.constant 59 : index
    %c0_654 = arith.constant 0 : index
    %599 = vector.load %arg16[%c1_652, %c59_653, %c0_654] : memref<2x100x128xf32, #tpu.memory_space<vmem>>, vector<1x1x64xf32>
    %600 = vector.shape_cast %599 : vector<1x1x64xf32> to vector<1x64xf32>
    %c1_655 = arith.constant 1 : index
    %c3776_656 = arith.constant 3776 : index
    %601 = vector.load %arg17[%c1_655, %c3776_656] : memref<2x6400xf32, #tpu.memory_space<vmem>>, vector<1x64xf32>
    tpu.vector_store %arg17[%c1_655, %c3776_656], %600 {strides = array<i32>} : memref<2x6400xf32, #tpu.memory_space<vmem>>, vector<1x64xf32>,
    %c1_657 = arith.constant 1 : index
    %c60_658 = arith.constant 60 : index
    %c0_659 = arith.constant 0 : index
    %602 = vector.load %arg16[%c1_657, %c60_658, %c0_659] : memref<2x100x128xf32, #tpu.memory_space<vmem>>, vector<1x1x64xf32>
    %603 = vector.shape_cast %602 : vector<1x1x64xf32> to vector<1x64xf32>
    %c1_660 = arith.constant 1 : index
    %c3840_661 = arith.constant 3840 : index
    %604 = vector.load %arg17[%c1_660, %c3840_661] : memref<2x6400xf32, #tpu.memory_space<vmem>>, vector<1x64xf32>
    tpu.vector_store %arg17[%c1_660, %c3840_661], %603 {strides = array<i32>} : memref<2x6400xf32, #tpu.memory_space<vmem>>, vector<1x64xf32>,
    %c1_662 = arith.constant 1 : index
    %c61_663 = arith.constant 61 : index
    %c0_664 = arith.constant 0 : index
    %605 = vector.load %arg16[%c1_662, %c61_663, %c0_664] : memref<2x100x128xf32, #tpu.memory_space<vmem>>, vector<1x1x64xf32>
    %606 = vector.shape_cast %605 : vector<1x1x64xf32> to vector<1x64xf32>
    %c1_665 = arith.constant 1 : index
    %c3904_666 = arith.constant 3904 : index
    %607 = vector.load %arg17[%c1_665, %c3904_666] : memref<2x6400xf32, #tpu.memory_space<vmem>>, vector<1x64xf32>
    tpu.vector_store %arg17[%c1_665, %c3904_666], %606 {strides = array<i32>} : memref<2x6400xf32, #tpu.memory_space<vmem>>, vector<1x64xf32>,
    %c1_667 = arith.constant 1 : index
    %c62_668 = arith.constant 62 : index
    %c0_669 = arith.constant 0 : index
    %608 = vector.load %arg16[%c1_667, %c62_668, %c0_669] : memref<2x100x128xf32, #tpu.memory_space<vmem>>, vector<1x1x64xf32>
    %609 = vector.shape_cast %608 : vector<1x1x64xf32> to vector<1x64xf32>
    %c1_670 = arith.constant 1 : index
    %c3968_671 = arith.constant 3968 : index
    %610 = vector.load %arg17[%c1_670, %c3968_671] : memref<2x6400xf32, #tpu.memory_space<vmem>>, vector<1x64xf32>
    tpu.vector_store %arg17[%c1_670, %c3968_671], %609 {strides = array<i32>} : memref<2x6400xf32, #tpu.memory_space<vmem>>, vector<1x64xf32>,
    %c1_672 = arith.constant 1 : index
    %c63_673 = arith.constant 63 : index
    %c0_674 = arith.constant 0 : index
    %611 = vector.load %arg16[%c1_672, %c63_673, %c0_674] : memref<2x100x128xf32, #tpu.memory_space<vmem>>, vector<1x1x64xf32>
    %612 = vector.shape_cast %611 : vector<1x1x64xf32> to vector<1x64xf32>
    %c1_675 = arith.constant 1 : index
    %c4032_676 = arith.constant 4032 : index
    %613 = vector.load %arg17[%c1_675, %c4032_676] : memref<2x6400xf32, #tpu.memory_space<vmem>>, vector<1x64xf32>
    tpu.vector_store %arg17[%c1_675, %c4032_676], %612 {strides = array<i32>} : memref<2x6400xf32, #tpu.memory_space<vmem>>, vector<1x64xf32>,
    %c1_677 = arith.constant 1 : index
    %c64_678 = arith.constant 64 : index
    %c0_679 = arith.constant 0 : index
    %614 = vector.load %arg16[%c1_677, %c64_678, %c0_679] : memref<2x100x128xf32, #tpu.memory_space<vmem>>, vector<1x1x64xf32>
    %615 = vector.shape_cast %614 : vector<1x1x64xf32> to vector<1x64xf32>
    %c1_680 = arith.constant 1 : index
    %c4096_681 = arith.constant 4096 : index
    %616 = vector.load %arg17[%c1_680, %c4096_681] : memref<2x6400xf32, #tpu.memory_space<vmem>>, vector<1x64xf32>
    tpu.vector_store %arg17[%c1_680, %c4096_681], %615 {strides = array<i32>} : memref<2x6400xf32, #tpu.memory_space<vmem>>, vector<1x64xf32>,
    %c1_682 = arith.constant 1 : index
    %c65_683 = arith.constant 65 : index
    %c0_684 = arith.constant 0 : index
    %617 = vector.load %arg16[%c1_682, %c65_683, %c0_684] : memref<2x100x128xf32, #tpu.memory_space<vmem>>, vector<1x1x64xf32>
    %618 = vector.shape_cast %617 : vector<1x1x64xf32> to vector<1x64xf32>
    %c1_685 = arith.constant 1 : index
    %c4160_686 = arith.constant 4160 : index
    %619 = vector.load %arg17[%c1_685, %c4160_686] : memref<2x6400xf32, #tpu.memory_space<vmem>>, vector<1x64xf32>
    tpu.vector_store %arg17[%c1_685, %c4160_686], %618 {strides = array<i32>} : memref<2x6400xf32, #tpu.memory_space<vmem>>, vector<1x64xf32>,
    %c1_687 = arith.constant 1 : index
    %c66_688 = arith.constant 66 : index
    %c0_689 = arith.constant 0 : index
    %620 = vector.load %arg16[%c1_687, %c66_688, %c0_689] : memref<2x100x128xf32, #tpu.memory_space<vmem>>, vector<1x1x64xf32>
    %621 = vector.shape_cast %620 : vector<1x1x64xf32> to vector<1x64xf32>
    %c1_690 = arith.constant 1 : index
    %c4224_691 = arith.constant 4224 : index
    %622 = vector.load %arg17[%c1_690, %c4224_691] : memref<2x6400xf32, #tpu.memory_space<vmem>>, vector<1x64xf32>
    tpu.vector_store %arg17[%c1_690, %c4224_691], %621 {strides = array<i32>} : memref<2x6400xf32, #tpu.memory_space<vmem>>, vector<1x64xf32>,
    %c1_692 = arith.constant 1 : index
    %c67_693 = arith.constant 67 : index
    %c0_694 = arith.constant 0 : index
    %623 = vector.load %arg16[%c1_692, %c67_693, %c0_694] : memref<2x100x128xf32, #tpu.memory_space<vmem>>, vector<1x1x64xf32>
    %624 = vector.shape_cast %623 : vector<1x1x64xf32> to vector<1x64xf32>
    %c1_695 = arith.constant 1 : index
    %c4288_696 = arith.constant 4288 : index
    %625 = vector.load %arg17[%c1_695, %c4288_696] : memref<2x6400xf32, #tpu.memory_space<vmem>>, vector<1x64xf32>
    tpu.vector_store %arg17[%c1_695, %c4288_696], %624 {strides = array<i32>} : memref<2x6400xf32, #tpu.memory_space<vmem>>, vector<1x64xf32>,
    %c1_697 = arith.constant 1 : index
    %c68_698 = arith.constant 68 : index
    %c0_699 = arith.constant 0 : index
    %626 = vector.load %arg16[%c1_697, %c68_698, %c0_699] : memref<2x100x128xf32, #tpu.memory_space<vmem>>, vector<1x1x64xf32>
    %627 = vector.shape_cast %626 : vector<1x1x64xf32> to vector<1x64xf32>
    %c1_700 = arith.constant 1 : index
    %c4352_701 = arith.constant 4352 : index
    %628 = vector.load %arg17[%c1_700, %c4352_701] : memref<2x6400xf32, #tpu.memory_space<vmem>>, vector<1x64xf32>
    tpu.vector_store %arg17[%c1_700, %c4352_701], %627 {strides = array<i32>} : memref<2x6400xf32, #tpu.memory_space<vmem>>, vector<1x64xf32>,
    %c1_702 = arith.constant 1 : index
    %c69_703 = arith.constant 69 : index
    %c0_704 = arith.constant 0 : index
    %629 = vector.load %arg16[%c1_702, %c69_703, %c0_704] : memref<2x100x128xf32, #tpu.memory_space<vmem>>, vector<1x1x64xf32>
    %630 = vector.shape_cast %629 : vector<1x1x64xf32> to vector<1x64xf32>
    %c1_705 = arith.constant 1 : index
    %c4416_706 = arith.constant 4416 : index
    %631 = vector.load %arg17[%c1_705, %c4416_706] : memref<2x6400xf32, #tpu.memory_space<vmem>>, vector<1x64xf32>
    tpu.vector_store %arg17[%c1_705, %c4416_706], %630 {strides = array<i32>} : memref<2x6400xf32, #tpu.memory_space<vmem>>, vector<1x64xf32>,
    %c1_707 = arith.constant 1 : index
    %c70_708 = arith.constant 70 : index
    %c0_709 = arith.constant 0 : index
    %632 = vector.load %arg16[%c1_707, %c70_708, %c0_709] : memref<2x100x128xf32, #tpu.memory_space<vmem>>, vector<1x1x64xf32>
    %633 = vector.shape_cast %632 : vector<1x1x64xf32> to vector<1x64xf32>
    %c1_710 = arith.constant 1 : index
    %c4480_711 = arith.constant 4480 : index
    %634 = vector.load %arg17[%c1_710, %c4480_711] : memref<2x6400xf32, #tpu.memory_space<vmem>>, vector<1x64xf32>
    tpu.vector_store %arg17[%c1_710, %c4480_711], %633 {strides = array<i32>} : memref<2x6400xf32, #tpu.memory_space<vmem>>, vector<1x64xf32>,
    %c1_712 = arith.constant 1 : index
    %c71_713 = arith.constant 71 : index
    %c0_714 = arith.constant 0 : index
    %635 = vector.load %arg16[%c1_712, %c71_713, %c0_714] : memref<2x100x128xf32, #tpu.memory_space<vmem>>, vector<1x1x64xf32>
    %636 = vector.shape_cast %635 : vector<1x1x64xf32> to vector<1x64xf32>
    %c1_715 = arith.constant 1 : index
    %c4544_716 = arith.constant 4544 : index
    %637 = vector.load %arg17[%c1_715, %c4544_716] : memref<2x6400xf32, #tpu.memory_space<vmem>>, vector<1x64xf32>
    tpu.vector_store %arg17[%c1_715, %c4544_716], %636 {strides = array<i32>} : memref<2x6400xf32, #tpu.memory_space<vmem>>, vector<1x64xf32>,
    %c1_717 = arith.constant 1 : index
    %c72_718 = arith.constant 72 : index
    %c0_719 = arith.constant 0 : index
    %638 = vector.load %arg16[%c1_717, %c72_718, %c0_719] : memref<2x100x128xf32, #tpu.memory_space<vmem>>, vector<1x1x64xf32>
    %639 = vector.shape_cast %638 : vector<1x1x64xf32> to vector<1x64xf32>
    %c1_720 = arith.constant 1 : index
    %c4608_721 = arith.constant 4608 : index
    %640 = vector.load %arg17[%c1_720, %c4608_721] : memref<2x6400xf32, #tpu.memory_space<vmem>>, vector<1x64xf32>
    tpu.vector_store %arg17[%c1_720, %c4608_721], %639 {strides = array<i32>} : memref<2x6400xf32, #tpu.memory_space<vmem>>, vector<1x64xf32>,
    %c1_722 = arith.constant 1 : index
    %c73_723 = arith.constant 73 : index
    %c0_724 = arith.constant 0 : index
    %641 = vector.load %arg16[%c1_722, %c73_723, %c0_724] : memref<2x100x128xf32, #tpu.memory_space<vmem>>, vector<1x1x64xf32>
    %642 = vector.shape_cast %641 : vector<1x1x64xf32> to vector<1x64xf32>
    %c1_725 = arith.constant 1 : index
    %c4672_726 = arith.constant 4672 : index
    %643 = vector.load %arg17[%c1_725, %c4672_726] : memref<2x6400xf32, #tpu.memory_space<vmem>>, vector<1x64xf32>
    tpu.vector_store %arg17[%c1_725, %c4672_726], %642 {strides = array<i32>} : memref<2x6400xf32, #tpu.memory_space<vmem>>, vector<1x64xf32>,
    %c1_727 = arith.constant 1 : index
    %c74_728 = arith.constant 74 : index
    %c0_729 = arith.constant 0 : index
    %644 = vector.load %arg16[%c1_727, %c74_728, %c0_729] : memref<2x100x128xf32, #tpu.memory_space<vmem>>, vector<1x1x64xf32>
    %645 = vector.shape_cast %644 : vector<1x1x64xf32> to vector<1x64xf32>
    %c1_730 = arith.constant 1 : index
    %c4736_731 = arith.constant 4736 : index
    %646 = vector.load %arg17[%c1_730, %c4736_731] : memref<2x6400xf32, #tpu.memory_space<vmem>>, vector<1x64xf32>
    tpu.vector_store %arg17[%c1_730, %c4736_731], %645 {strides = array<i32>} : memref<2x6400xf32, #tpu.memory_space<vmem>>, vector<1x64xf32>,
    %c1_732 = arith.constant 1 : index
    %c75_733 = arith.constant 75 : index
    %c0_734 = arith.constant 0 : index
    %647 = vector.load %arg16[%c1_732, %c75_733, %c0_734] : memref<2x100x128xf32, #tpu.memory_space<vmem>>, vector<1x1x64xf32>
    %648 = vector.shape_cast %647 : vector<1x1x64xf32> to vector<1x64xf32>
    %c1_735 = arith.constant 1 : index
    %c4800_736 = arith.constant 4800 : index
    %649 = vector.load %arg17[%c1_735, %c4800_736] : memref<2x6400xf32, #tpu.memory_space<vmem>>, vector<1x64xf32>
    tpu.vector_store %arg17[%c1_735, %c4800_736], %648 {strides = array<i32>} : memref<2x6400xf32, #tpu.memory_space<vmem>>, vector<1x64xf32>,
    %c1_737 = arith.constant 1 : index
    %c76_738 = arith.constant 76 : index
    %c0_739 = arith.constant 0 : index
    %650 = vector.load %arg16[%c1_737, %c76_738, %c0_739] : memref<2x100x128xf32, #tpu.memory_space<vmem>>, vector<1x1x64xf32>
    %651 = vector.shape_cast %650 : vector<1x1x64xf32> to vector<1x64xf32>
    %c1_740 = arith.constant 1 : index
    %c4864_741 = arith.constant 4864 : index
    %652 = vector.load %arg17[%c1_740, %c4864_741] : memref<2x6400xf32, #tpu.memory_space<vmem>>, vector<1x64xf32>
    tpu.vector_store %arg17[%c1_740, %c4864_741], %651 {strides = array<i32>} : memref<2x6400xf32, #tpu.memory_space<vmem>>, vector<1x64xf32>,
    %c1_742 = arith.constant 1 : index
    %c77_743 = arith.constant 77 : index
    %c0_744 = arith.constant 0 : index
    %653 = vector.load %arg16[%c1_742, %c77_743, %c0_744] : memref<2x100x128xf32, #tpu.memory_space<vmem>>, vector<1x1x64xf32>
    %654 = vector.shape_cast %653 : vector<1x1x64xf32> to vector<1x64xf32>
    %c1_745 = arith.constant 1 : index
    %c4928_746 = arith.constant 4928 : index
    %655 = vector.load %arg17[%c1_745, %c4928_746] : memref<2x6400xf32, #tpu.memory_space<vmem>>, vector<1x64xf32>
    tpu.vector_store %arg17[%c1_745, %c4928_746], %654 {strides = array<i32>} : memref<2x6400xf32, #tpu.memory_space<vmem>>, vector<1x64xf32>,
    %c1_747 = arith.constant 1 : index
    %c78_748 = arith.constant 78 : index
    %c0_749 = arith.constant 0 : index
    %656 = vector.load %arg16[%c1_747, %c78_748, %c0_749] : memref<2x100x128xf32, #tpu.memory_space<vmem>>, vector<1x1x64xf32>
    %657 = vector.shape_cast %656 : vector<1x1x64xf32> to vector<1x64xf32>
    %c1_750 = arith.constant 1 : index
    %c4992_751 = arith.constant 4992 : index
    %658 = vector.load %arg17[%c1_750, %c4992_751] : memref<2x6400xf32, #tpu.memory_space<vmem>>, vector<1x64xf32>
    tpu.vector_store %arg17[%c1_750, %c4992_751], %657 {strides = array<i32>} : memref<2x6400xf32, #tpu.memory_space<vmem>>, vector<1x64xf32>,
    %c1_752 = arith.constant 1 : index
    %c79_753 = arith.constant 79 : index
    %c0_754 = arith.constant 0 : index
    %659 = vector.load %arg16[%c1_752, %c79_753, %c0_754] : memref<2x100x128xf32, #tpu.memory_space<vmem>>, vector<1x1x64xf32>
    %660 = vector.shape_cast %659 : vector<1x1x64xf32> to vector<1x64xf32>
    %c1_755 = arith.constant 1 : index
    %c5056_756 = arith.constant 5056 : index
    %661 = vector.load %arg17[%c1_755, %c5056_756] : memref<2x6400xf32, #tpu.memory_space<vmem>>, vector<1x64xf32>
    tpu.vector_store %arg17[%c1_755, %c5056_756], %660 {strides = array<i32>} : memref<2x6400xf32, #tpu.memory_space<vmem>>, vector<1x64xf32>,
    %c1_757 = arith.constant 1 : index
    %c80_758 = arith.constant 80 : index
    %c0_759 = arith.constant 0 : index
    %662 = vector.load %arg16[%c1_757, %c80_758, %c0_759] : memref<2x100x128xf32, #tpu.memory_space<vmem>>, vector<1x1x64xf32>
    %663 = vector.shape_cast %662 : vector<1x1x64xf32> to vector<1x64xf32>
    %c1_760 = arith.constant 1 : index
    %c5120_761 = arith.constant 5120 : index
    %664 = vector.load %arg17[%c1_760, %c5120_761] : memref<2x6400xf32, #tpu.memory_space<vmem>>, vector<1x64xf32>
    tpu.vector_store %arg17[%c1_760, %c5120_761], %663 {strides = array<i32>} : memref<2x6400xf32, #tpu.memory_space<vmem>>, vector<1x64xf32>,
    %c1_762 = arith.constant 1 : index
    %c81_763 = arith.constant 81 : index
    %c0_764 = arith.constant 0 : index
    %665 = vector.load %arg16[%c1_762, %c81_763, %c0_764] : memref<2x100x128xf32, #tpu.memory_space<vmem>>, vector<1x1x64xf32>
    %666 = vector.shape_cast %665 : vector<1x1x64xf32> to vector<1x64xf32>
    %c1_765 = arith.constant 1 : index
    %c5184_766 = arith.constant 5184 : index
    %667 = vector.load %arg17[%c1_765, %c5184_766] : memref<2x6400xf32, #tpu.memory_space<vmem>>, vector<1x64xf32>
    tpu.vector_store %arg17[%c1_765, %c5184_766], %666 {strides = array<i32>} : memref<2x6400xf32, #tpu.memory_space<vmem>>, vector<1x64xf32>,
    %c1_767 = arith.constant 1 : index
    %c82_768 = arith.constant 82 : index
    %c0_769 = arith.constant 0 : index
    %668 = vector.load %arg16[%c1_767, %c82_768, %c0_769] : memref<2x100x128xf32, #tpu.memory_space<vmem>>, vector<1x1x64xf32>
    %669 = vector.shape_cast %668 : vector<1x1x64xf32> to vector<1x64xf32>
    %c1_770 = arith.constant 1 : index
    %c5248_771 = arith.constant 5248 : index
    %670 = vector.load %arg17[%c1_770, %c5248_771] : memref<2x6400xf32, #tpu.memory_space<vmem>>, vector<1x64xf32>
    tpu.vector_store %arg17[%c1_770, %c5248_771], %669 {strides = array<i32>} : memref<2x6400xf32, #tpu.memory_space<vmem>>, vector<1x64xf32>,
    %c1_772 = arith.constant 1 : index
    %c83_773 = arith.constant 83 : index
    %c0_774 = arith.constant 0 : index
    %671 = vector.load %arg16[%c1_772, %c83_773, %c0_774] : memref<2x100x128xf32, #tpu.memory_space<vmem>>, vector<1x1x64xf32>
    %672 = vector.shape_cast %671 : vector<1x1x64xf32> to vector<1x64xf32>
    %c1_775 = arith.constant 1 : index
    %c5312_776 = arith.constant 5312 : index
    %673 = vector.load %arg17[%c1_775, %c5312_776] : memref<2x6400xf32, #tpu.memory_space<vmem>>, vector<1x64xf32>
    tpu.vector_store %arg17[%c1_775, %c5312_776], %672 {strides = array<i32>} : memref<2x6400xf32, #tpu.memory_space<vmem>>, vector<1x64xf32>,
    %c1_777 = arith.constant 1 : index
    %c84_778 = arith.constant 84 : index
    %c0_779 = arith.constant 0 : index
    %674 = vector.load %arg16[%c1_777, %c84_778, %c0_779] : memref<2x100x128xf32, #tpu.memory_space<vmem>>, vector<1x1x64xf32>
    %675 = vector.shape_cast %674 : vector<1x1x64xf32> to vector<1x64xf32>
    %c1_780 = arith.constant 1 : index
    %c5376_781 = arith.constant 5376 : index
    %676 = vector.load %arg17[%c1_780, %c5376_781] : memref<2x6400xf32, #tpu.memory_space<vmem>>, vector<1x64xf32>
    tpu.vector_store %arg17[%c1_780, %c5376_781], %675 {strides = array<i32>} : memref<2x6400xf32, #tpu.memory_space<vmem>>, vector<1x64xf32>,
    %c1_782 = arith.constant 1 : index
    %c85_783 = arith.constant 85 : index
    %c0_784 = arith.constant 0 : index
    %677 = vector.load %arg16[%c1_782, %c85_783, %c0_784] : memref<2x100x128xf32, #tpu.memory_space<vmem>>, vector<1x1x64xf32>
    %678 = vector.shape_cast %677 : vector<1x1x64xf32> to vector<1x64xf32>
    %c1_785 = arith.constant 1 : index
    %c5440_786 = arith.constant 5440 : index
    %679 = vector.load %arg17[%c1_785, %c5440_786] : memref<2x6400xf32, #tpu.memory_space<vmem>>, vector<1x64xf32>
    tpu.vector_store %arg17[%c1_785, %c5440_786], %678 {strides = array<i32>} : memref<2x6400xf32, #tpu.memory_space<vmem>>, vector<1x64xf32>,
    %c1_787 = arith.constant 1 : index
    %c86_788 = arith.constant 86 : index
    %c0_789 = arith.constant 0 : index
    %680 = vector.load %arg16[%c1_787, %c86_788, %c0_789] : memref<2x100x128xf32, #tpu.memory_space<vmem>>, vector<1x1x64xf32>
    %681 = vector.shape_cast %680 : vector<1x1x64xf32> to vector<1x64xf32>
    %c1_790 = arith.constant 1 : index
    %c5504_791 = arith.constant 5504 : index
    %682 = vector.load %arg17[%c1_790, %c5504_791] : memref<2x6400xf32, #tpu.memory_space<vmem>>, vector<1x64xf32>
    tpu.vector_store %arg17[%c1_790, %c5504_791], %681 {strides = array<i32>} : memref<2x6400xf32, #tpu.memory_space<vmem>>, vector<1x64xf32>,
    %c1_792 = arith.constant 1 : index
    %c87_793 = arith.constant 87 : index
    %c0_794 = arith.constant 0 : index
    %683 = vector.load %arg16[%c1_792, %c87_793, %c0_794] : memref<2x100x128xf32, #tpu.memory_space<vmem>>, vector<1x1x64xf32>
    %684 = vector.shape_cast %683 : vector<1x1x64xf32> to vector<1x64xf32>
    %c1_795 = arith.constant 1 : index
    %c5568_796 = arith.constant 5568 : index
    %685 = vector.load %arg17[%c1_795, %c5568_796] : memref<2x6400xf32, #tpu.memory_space<vmem>>, vector<1x64xf32>
    tpu.vector_store %arg17[%c1_795, %c5568_796], %684 {strides = array<i32>} : memref<2x6400xf32, #tpu.memory_space<vmem>>, vector<1x64xf32>,
    %c1_797 = arith.constant 1 : index
    %c88_798 = arith.constant 88 : index
    %c0_799 = arith.constant 0 : index
    %686 = vector.load %arg16[%c1_797, %c88_798, %c0_799] : memref<2x100x128xf32, #tpu.memory_space<vmem>>, vector<1x1x64xf32>
    %687 = vector.shape_cast %686 : vector<1x1x64xf32> to vector<1x64xf32>
    %c1_800 = arith.constant 1 : index
    %c5632_801 = arith.constant 5632 : index
    %688 = vector.load %arg17[%c1_800, %c5632_801] : memref<2x6400xf32, #tpu.memory_space<vmem>>, vector<1x64xf32>
    tpu.vector_store %arg17[%c1_800, %c5632_801], %687 {strides = array<i32>} : memref<2x6400xf32, #tpu.memory_space<vmem>>, vector<1x64xf32>,
    %c1_802 = arith.constant 1 : index
    %c89_803 = arith.constant 89 : index
    %c0_804 = arith.constant 0 : index
    %689 = vector.load %arg16[%c1_802, %c89_803, %c0_804] : memref<2x100x128xf32, #tpu.memory_space<vmem>>, vector<1x1x64xf32>
    %690 = vector.shape_cast %689 : vector<1x1x64xf32> to vector<1x64xf32>
    %c1_805 = arith.constant 1 : index
    %c5696_806 = arith.constant 5696 : index
    %691 = vector.load %arg17[%c1_805, %c5696_806] : memref<2x6400xf32, #tpu.memory_space<vmem>>, vector<1x64xf32>
    tpu.vector_store %arg17[%c1_805, %c5696_806], %690 {strides = array<i32>} : memref<2x6400xf32, #tpu.memory_space<vmem>>, vector<1x64xf32>,
    %c1_807 = arith.constant 1 : index
    %c90_808 = arith.constant 90 : index
    %c0_809 = arith.constant 0 : index
    %692 = vector.load %arg16[%c1_807, %c90_808, %c0_809] : memref<2x100x128xf32, #tpu.memory_space<vmem>>, vector<1x1x64xf32>
    %693 = vector.shape_cast %692 : vector<1x1x64xf32> to vector<1x64xf32>
    %c1_810 = arith.constant 1 : index
    %c5760_811 = arith.constant 5760 : index
    %694 = vector.load %arg17[%c1_810, %c5760_811] : memref<2x6400xf32, #tpu.memory_space<vmem>>, vector<1x64xf32>
    tpu.vector_store %arg17[%c1_810, %c5760_811], %693 {strides = array<i32>} : memref<2x6400xf32, #tpu.memory_space<vmem>>, vector<1x64xf32>,
    %c1_812 = arith.constant 1 : index
    %c91_813 = arith.constant 91 : index
    %c0_814 = arith.constant 0 : index
    %695 = vector.load %arg16[%c1_812, %c91_813, %c0_814] : memref<2x100x128xf32, #tpu.memory_space<vmem>>, vector<1x1x64xf32>
    %696 = vector.shape_cast %695 : vector<1x1x64xf32> to vector<1x64xf32>
    %c1_815 = arith.constant 1 : index
    %c5824_816 = arith.constant 5824 : index
    %697 = vector.load %arg17[%c1_815, %c5824_816] : memref<2x6400xf32, #tpu.memory_space<vmem>>, vector<1x64xf32>
    tpu.vector_store %arg17[%c1_815, %c5824_816], %696 {strides = array<i32>} : memref<2x6400xf32, #tpu.memory_space<vmem>>, vector<1x64xf32>,
    %c1_817 = arith.constant 1 : index
    %c92_818 = arith.constant 92 : index
    %c0_819 = arith.constant 0 : index
    %698 = vector.load %arg16[%c1_817, %c92_818, %c0_819] : memref<2x100x128xf32, #tpu.memory_space<vmem>>, vector<1x1x64xf32>
    %699 = vector.shape_cast %698 : vector<1x1x64xf32> to vector<1x64xf32>
    %c1_820 = arith.constant 1 : index
    %c5888_821 = arith.constant 5888 : index
    %700 = vector.load %arg17[%c1_820, %c5888_821] : memref<2x6400xf32, #tpu.memory_space<vmem>>, vector<1x64xf32>
    tpu.vector_store %arg17[%c1_820, %c5888_821], %699 {strides = array<i32>} : memref<2x6400xf32, #tpu.memory_space<vmem>>, vector<1x64xf32>,
    %c1_822 = arith.constant 1 : index
    %c93_823 = arith.constant 93 : index
    %c0_824 = arith.constant 0 : index
    %701 = vector.load %arg16[%c1_822, %c93_823, %c0_824] : memref<2x100x128xf32, #tpu.memory_space<vmem>>, vector<1x1x64xf32>
    %702 = vector.shape_cast %701 : vector<1x1x64xf32> to vector<1x64xf32>
    %c1_825 = arith.constant 1 : index
    %c5952_826 = arith.constant 5952 : index
    %703 = vector.load %arg17[%c1_825, %c5952_826] : memref<2x6400xf32, #tpu.memory_space<vmem>>, vector<1x64xf32>
    tpu.vector_store %arg17[%c1_825, %c5952_826], %702 {strides = array<i32>} : memref<2x6400xf32, #tpu.memory_space<vmem>>, vector<1x64xf32>,
    %c1_827 = arith.constant 1 : index
    %c94_828 = arith.constant 94 : index
    %c0_829 = arith.constant 0 : index
    %704 = vector.load %arg16[%c1_827, %c94_828, %c0_829] : memref<2x100x128xf32, #tpu.memory_space<vmem>>, vector<1x1x64xf32>
    %705 = vector.shape_cast %704 : vector<1x1x64xf32> to vector<1x64xf32>
    %c1_830 = arith.constant 1 : index
    %c6016_831 = arith.constant 6016 : index
    %706 = vector.load %arg17[%c1_830, %c6016_831] : memref<2x6400xf32, #tpu.memory_space<vmem>>, vector<1x64xf32>
    tpu.vector_store %arg17[%c1_830, %c6016_831], %705 {strides = array<i32>} : memref<2x6400xf32, #tpu.memory_space<vmem>>, vector<1x64xf32>,
    %c1_832 = arith.constant 1 : index
    %c95_833 = arith.constant 95 : index
    %c0_834 = arith.constant 0 : index
    %707 = vector.load %arg16[%c1_832, %c95_833, %c0_834] : memref<2x100x128xf32, #tpu.memory_space<vmem>>, vector<1x1x64xf32>
    %708 = vector.shape_cast %707 : vector<1x1x64xf32> to vector<1x64xf32>
    %c1_835 = arith.constant 1 : index
    %c6080_836 = arith.constant 6080 : index
    %709 = vector.load %arg17[%c1_835, %c6080_836] : memref<2x6400xf32, #tpu.memory_space<vmem>>, vector<1x64xf32>
    tpu.vector_store %arg17[%c1_835, %c6080_836], %708 {strides = array<i32>} : memref<2x6400xf32, #tpu.memory_space<vmem>>, vector<1x64xf32>,
    %c1_837 = arith.constant 1 : index
    %c96_838 = arith.constant 96 : index
    %c0_839 = arith.constant 0 : index
    %710 = vector.load %arg16[%c1_837, %c96_838, %c0_839] : memref<2x100x128xf32, #tpu.memory_space<vmem>>, vector<1x1x64xf32>
    %711 = vector.shape_cast %710 : vector<1x1x64xf32> to vector<1x64xf32>
    %c1_840 = arith.constant 1 : index
    %c6144_841 = arith.constant 6144 : index
    %712 = vector.load %arg17[%c1_840, %c6144_841] : memref<2x6400xf32, #tpu.memory_space<vmem>>, vector<1x64xf32>
    tpu.vector_store %arg17[%c1_840, %c6144_841], %711 {strides = array<i32>} : memref<2x6400xf32, #tpu.memory_space<vmem>>, vector<1x64xf32>,
    %c1_842 = arith.constant 1 : index
    %c97_843 = arith.constant 97 : index
    %c0_844 = arith.constant 0 : index
    %713 = vector.load %arg16[%c1_842, %c97_843, %c0_844] : memref<2x100x128xf32, #tpu.memory_space<vmem>>, vector<1x1x64xf32>
    %714 = vector.shape_cast %713 : vector<1x1x64xf32> to vector<1x64xf32>
    %c1_845 = arith.constant 1 : index
    %c6208_846 = arith.constant 6208 : index
    %715 = vector.load %arg17[%c1_845, %c6208_846] : memref<2x6400xf32, #tpu.memory_space<vmem>>, vector<1x64xf32>
    tpu.vector_store %arg17[%c1_845, %c6208_846], %714 {strides = array<i32>} : memref<2x6400xf32, #tpu.memory_space<vmem>>, vector<1x64xf32>,
    %c1_847 = arith.constant 1 : index
    %c98_848 = arith.constant 98 : index
    %c0_849 = arith.constant 0 : index
    %716 = vector.load %arg16[%c1_847, %c98_848, %c0_849] : memref<2x100x128xf32, #tpu.memory_space<vmem>>, vector<1x1x64xf32>
    %717 = vector.shape_cast %716 : vector<1x1x64xf32> to vector<1x64xf32>
    %c1_850 = arith.constant 1 : index
    %c6272_851 = arith.constant 6272 : index
    %718 = vector.load %arg17[%c1_850, %c6272_851] : memref<2x6400xf32, #tpu.memory_space<vmem>>, vector<1x64xf32>
    tpu.vector_store %arg17[%c1_850, %c6272_851], %717 {strides = array<i32>} : memref<2x6400xf32, #tpu.memory_space<vmem>>, vector<1x64xf32>,
    %c1_852 = arith.constant 1 : index
    %c99_853 = arith.constant 99 : index
    %c0_854 = arith.constant 0 : index
    %719 = vector.load %arg16[%c1_852, %c99_853, %c0_854] : memref<2x100x128xf32, #tpu.memory_space<vmem>>, vector<1x1x64xf32>
    %720 = vector.shape_cast %719 : vector<1x1x64xf32> to vector<1x64xf32>
    %c1_855 = arith.constant 1 : index
    %c6336_856 = arith.constant 6336 : index
    %721 = vector.load %arg17[%c1_855, %c6336_856] : memref<2x6400xf32, #tpu.memory_space<vmem>>, vector<1x64xf32>
    tpu.vector_store %arg17[%c1_855, %c6336_856], %720 {strides = array<i32>} : memref<2x6400xf32, #tpu.memory_space<vmem>>, vector<1x64xf32>,
    %c0_857 = arith.constant 0 : index
    %c0_858 = arith.constant 0 : index
    %722 = vector.load %arg17[%c0_857, %c0_858] : memref<2x6400xf32, #tpu.memory_space<vmem>>, vector<2x6400xf32>
    %723 = arith.truncf %722 : vector<2x6400xf32> to vector<2x6400xbf16>
    %c0_859 = arith.constant 0 : index
    %c0_860 = arith.constant 0 : index
    %724 = vector.load %arg11[%c0_859, %c0_860] : memref<6400x128xbf16, #tpu.memory_space<vmem>>, vector<6400x128xbf16>
    %cst_861 = arith.constant dense<0.000000e+00> : vector<2x128xf32>
    %725 = tpu.matmul %723, %724, %cst_861 {dimension_numbers = #tpu.dot_dimension_numbers<[1], [0], [0], [1], [0, 0, 1, 1], [], []>} : vector<2x6400xbf16>, vector<6400x128xbf16>, vector<2x128xf32> -> vector<2x128xf32>
    %c0_862 = arith.constant 0 : index
    %c0_863 = arith.constant 0 : index
    %726 = vector.load %arg12[%c0_862, %c0_863] : memref<1x128xf32, #tpu.memory_space<vmem>>, vector<1x128xf32>
    %727 = vector.broadcast %726 : vector<1x128xf32> to vector<2x128xf32>
    %728 = arith.addf %725, %727 : vector<2x128xf32>
    %cst_864 = arith.constant 0.000000e+00 : f32
    %729 = vector.broadcast %cst_864 : f32 to vector<2x128xf32>
    %730 = arith.cmpf oge, %728, %729 : vector<2x128xf32>
    %cst_865 = arith.constant 0.00999999977 : f32
    %731 = vector.broadcast %cst_865 : f32 to vector<2x128xf32>
    %732 = arith.mulf %731, %728 : vector<2x128xf32>
    %733 = arith.select %730, %728, %732 : vector<2x128xi1>, vector<2x128xf32>
    %c0_866 = arith.constant 0 : index
    %c0_867 = arith.constant 0 : index
    %734 = vector.load %arg13[%c0_866, %c0_867] : memref<128x100xf32, #tpu.memory_space<vmem>>, vector<128x100xf32>
    %cst_868 = arith.constant dense<0.000000e+00> : vector<2x100xf32>
    %735 = tpu.matmul %733, %734, %cst_868 {dimension_numbers = #tpu.dot_dimension_numbers<[1], [0], [0], [1], [0, 0, 1, 1], [], []>} : vector<2x128xf32>, vector<128x100xf32>, vector<2x100xf32> -> vector<2x100xf32>
    %c0_869 = arith.constant 0 : index
    %c0_870 = arith.constant 0 : index
    %736 = vector.load %arg14[%c0_869, %c0_870] : memref<1x100xf32, #tpu.memory_space<vmem>>, vector<1x100xf32>
    %737 = vector.broadcast %736 : vector<1x100xf32> to vector<2x100xf32>
    %738 = arith.addf %735, %737 : vector<2x100xf32>
    %cst_871 = arith.constant 0.000000e+00 : f32
    %739 = vector.broadcast %cst_871 : f32 to vector<2x100xf32>
    %740 = arith.cmpf oge, %738, %739 : vector<2x100xf32>
    %cst_872 = arith.constant 0.00999999977 : f32
    %741 = vector.broadcast %cst_872 : f32 to vector<2x100xf32>
    %742 = arith.mulf %741, %738 : vector<2x100xf32>
    %743 = arith.select %740, %738, %742 : vector<2x100xi1>, vector<2x100xf32>
    %c0_873 = arith.constant 0 : index
    %c0_874 = arith.constant 0 : index
    %744 = vector.load %arg15[%c0_873, %c0_874] : memref<2x100xf32, #tpu.memory_space<vmem>>, vector<2x100xf32>
    tpu.vector_store %arg15[%c0_873, %c0_874], %743 {strides = array<i32>} : memref<2x100xf32, #tpu.memory_space<vmem>>, vector<2x100xf32>,
    return
  }
}

</mosaic_0001>

<bundles_post_ra>
// kernel: resnet_forward.1
= control target key start
LH: loop header
LB: loop body
LE: loop exit
PB: predicated region body
PF: predicated region fallthrough
CT: control target
= control target key end

     0   :  { %20 = vsyncpa [#allocation5], 0  ;;  %s11553_s0 = inlined_call_operand.vmem [shape: f32[2,100,1], index: 0, kind: input, shape index: {}]   ;;  %s11554_s1 = inlined_call_operand.hbm [shape: f32[100,100], index: 1, kind: input, shape index: {}]   ;;  %s11555_s2 = inlined_call_operand.vmem [shape: f32[100,1], index: 2, kind: input, shape index: {}]   ;;  %s11556_s3 = inlined_call_operand.hbm [shape: f32[1,128], index: 3, kind: input, shape index: {}]   ;;  %s11557_s4 = inlined_call_operand.hbm [shape: f32[1,128], index: 4, kind: input, shape index: {}]   ;;  %s11558_s5 = inlined_call_operand.hbm [shape: f32[1,128], index: 5, kind: input, shape index: {}]   ;;  %s11559_s6 = inlined_call_operand.hbm [shape: f32[1,128], index: 6, kind: input, shape index: {}]   ;;  %s11560_s7 = inlined_call_operand.hbm [shape: f32[128,128], index: 7, kind: input, shape index: {}]   ;;  %s11561_s8 = inlined_call_operand.hbm [shape: f32[1,128], index: 8, kind: input, shape index: {}]   ;;  %s11562_s9 = inlined_call_operand.hbm [shape: f32[1,128], index: 9, kind: input, shape index: {}]   ;;  %s11563_s10 = inlined_call_operand.hbm [shape: f32[1,128], index: 10, kind: input, shape index: {}]   ;;  %s11564_s11 = inlined_call_operand.hbm [shape: bf16[6400,128], index: 11, kind: input, shape index: {}]   ;;  %s11565_s12 = inlined_call_operand.hbm [shape: f32[1,128], index: 12, kind: input, shape index: {}]   ;;  %s11566_s13 = inlined_call_operand.vmem [shape: f32[128,100], index: 13, kind: input, shape index: {}]   ;;  %s11567_s14 = inlined_call_operand.hbm [shape: f32[1,100], index: 14, kind: input, shape index: {}]   ;;  %s11568_s15 = inlined_call_operand.hbm [shape: f32[2,100], index: 15, kind: output, shape index: {}]  }
   0x1   :  { %21 = vsyncpa [#allocation8], 0 }
   0x2   :  { %22 = vsyncpa [#allocation11], 0 }
   0x3   :  { %23 = vsyncpa [#allocation14], 0 }
   0x4   :  { %24 = vsyncpa [#allocation17], 0 }
   0x5   :  { %25 = vsyncpa [#allocation20], 0 }
   0x6   :  { %26 = vsyncpa [#allocation23], 0 }
   0x7   :  { %27 = vsyncpa [#allocation6], 0  ;;  %s9923_s18 = smov [#allocation7]   ;;  %s9924_s20 = smov [#allocation10]  }
   0x8   :  { %s50_s19 = sshll.u32 %s9923_s18, 4  ;;  %s70_s21 = sshll.u32 %s9924_s20, 4  ;;  %s51_s19 = int_to_ptr.vmem [resolvable:$true] %s50_s19  ;;  %s71_s21 = int_to_ptr.vmem [resolvable:$true] %s70_s21 }
   0x9   :  { %s9655_s22 = scalar_lea.vmem %s51_s19, 16  ;;  %s9659_s23 = scalar_lea.vmem %s51_s19, 32 }
   0xa   :  { %p9656_p0 = scmp.ne.s32.totalorder %s51_s19, %s9655_s22  ;;  %p9660_p1 = scmp.lt.s32.totalorder %s51_s19, %s51_s19 }
   0xb   :  { %p9661_p2 = scmp.lt.s32.totalorder %s9659_s23, %s9655_s22 }
   0xd   :  { %p9662_p3 = por %p9661_p2, %p9660_p1 }
   0xf   :  { %p9663_p4 = pnand %p9662_p3, %p9656_p0 }
  0x11   :  { %9666 = shalt.err (!%p9663_p4)
}
  0x12   :  { %53 = dma.hbm_to_vmem [thread:$0]  %s11556_s3, 16, %s51_s19, [#allocation8]  }
  0x13   :  { %s9675_s26 = scalar_lea.vmem %s71_s21, 16  ;;  %s9679_s27 = scalar_lea.vmem %s71_s21, 32 }
  0x14   :  { %p9676_p5 = scmp.ne.s32.totalorder %s71_s21, %s9675_s26  ;;  %p9680_p6 = scmp.lt.s32.totalorder %s71_s21, %s71_s21 }
  0x15   :  { %p9681_p7 = scmp.lt.s32.totalorder %s9679_s27, %s9675_s26 }
  0x17   :  { %p9682_p8 = por %p9681_p7, %p9680_p6 }
  0x19   :  { %p9683_p9 = pnand %p9682_p8, %p9676_p5 }
  0x1b   :  { %9686 = shalt.err (!%p9683_p9)
}
  0x1c   :  { %73 = dma.hbm_to_vmem [thread:$0]  %s11558_s5, 16, %s71_s21, [#allocation11]  }
  0x1d   :  { %s9925_s30 = smov [#allocation13]   ;;  %s9926_s17 = smov [#allocation16]  }
  0x1e   :  { %s89_s16 = sshll.u32 %s9925_s30, 4  ;;  %s112_s18 = sshll.u32 %s9926_s17, 4  ;;  %s90_s16 = int_to_ptr.vmem [resolvable:$true] %s89_s16  ;;  %s113_s18 = int_to_ptr.vmem [resolvable:$true] %s112_s18 }
  0x1f   :  { %s9695_s20 = scalar_lea.vmem %s90_s16, 2048  ;;  %p9700_p11 = scmp.lt.s32.totalorder %s90_s16, %s90_s16 }
  0x20   :  { %p9696_p10 = scmp.ne.s32.totalorder %s90_s16, %s9695_s20  ;;  %p9701_p12 = scmp.lt.s32.totalorder %s9695_s20, %s9695_s20 }
  0x22   :  { %p9702_p13 = por %p9701_p12, %p9700_p11 }
  0x24   :  { %p9703_p0 = pnand %p9702_p13, %p9696_p10 }
  0x26   :  { %9706 = shalt.err (!%p9703_p0)
}
  0x27   :  { %s9927_s3 = smov 128   ;;  %s9928_s19 = smov 8  }
  0x28   :  { %95 = dma.hbm_to_vmem [thread:$0]  %s11560_s7, 2048, %s90_s16, [#allocation14], %s9927_s3, %s9927_s3, %s9928_s19  }
  0x29   :  { %s9715_s21 = scalar_lea.vmem %s113_s18, 16  ;;  %s9719_s23 = scalar_lea.vmem %s113_s18, 32 }
  0x2a   :  { %p9716_p1 = scmp.ne.s32.totalorder %s113_s18, %s9715_s21  ;;  %p9720_p2 = scmp.lt.s32.totalorder %s113_s18, %s113_s18 }
  0x2b   :  { %p9721_p3 = scmp.lt.s32.totalorder %s9719_s23, %s9715_s21 }
  0x2d   :  { %p9722_p4 = por %p9721_p3, %p9720_p2 }
  0x2f   :  { %p9723_p5 = pnand %p9722_p4, %p9716_p1 }
  0x31   :  { %9726 = shalt.err (!%p9723_p5)
}
  0x32   :  { %115 = dma.hbm_to_vmem [thread:$0]  %s11562_s9, 16, %s113_s18, [#allocation17]  }
  0x33   :  { %s9929_s26 = smov [#allocation19]  }
  0x34   :  { %s131_s27 = sshll.u32 %s9929_s26, 4  ;;  %s132_s27 = int_to_ptr.vmem [resolvable:$true] %s131_s27 }
  0x35   :  { %s9735_s28 = scalar_lea.vmem %s132_s27, 51200  ;;  %p9740_p7 = scmp.lt.s32.totalorder %s132_s27, %s132_s27 }
  0x36   :  { %p9736_p6 = scmp.ne.s32.totalorder %s132_s27, %s9735_s28  ;;  %p9741_p8 = scmp.lt.s32.totalorder %s9735_s28, %s9735_s28 }
  0x38   :  { %p9742_p9 = por %p9741_p8, %p9740_p7 }
  0x3a   :  { %p9743_p10 = pnand %p9742_p9, %p9736_p6 }
  0x3c   :  { %9746 = shalt.err (!%p9743_p10)
}
  0x3d   :  { %s9930_s7 = smov 64   ;;  %s9931_s29 = smov 4  }
  0x3e   :  { %137 = dma.hbm_to_vmem [thread:$0]  %s11564_s11, 51200, %s132_s27, [#allocation20], %s9930_s7, %s9930_s7, %s9931_s29  }
  0x3f   :  { %s9932_s17 = smov [#allocation4]   ;;  %s9933_s18 = smov [#allocation9]  }
  0x40   :  { %s35_s9 = sshll.u32 %s9932_s17, 4  ;;  %s60_s20 = sshll.u32 %s9933_s18, 4  ;;  %s36_s9 = int_to_ptr.vmem [resolvable:$true] %s35_s9  ;;  %s61_s20 = int_to_ptr.vmem [resolvable:$true] %s60_s20 }
  0x41   :  { %s9755_s22 = scalar_lea.vmem %s36_s9, 1664  ;;  %p9760_p12 = scmp.lt.s32.totalorder %s36_s9, %s36_s9 }
  0x42   :  { %p9756_p11 = scmp.ne.s32.totalorder %s36_s9, %s9755_s22  ;;  %p9761_p13 = scmp.lt.s32.totalorder %s9755_s22, %s9755_s22 }
  0x44   :  { %p9762_p0 = por %p9761_p13, %p9760_p12 }
  0x46   :  { %p9763_p1 = pnand %p9762_p0, %p9756_p11 }
  0x48   :  { %9766 = shalt.err (!%p9763_p1)
}
  0x49   :  { %41 = dma.hbm_to_vmem [thread:$0]  %s11554_s1, 1664, %s36_s9, [#allocation5], %s9927_s3, %s9927_s3, %s9928_s19  }
  0x4a   :  { %s9775_s11 = scalar_lea.vmem %s61_s20, 16  ;;  %s9779_s23 = scalar_lea.vmem %s61_s20, 32 }
  0x4b   :  { %p9776_p2 = scmp.ne.s32.totalorder %s61_s20, %s9775_s11  ;;  %p9780_p3 = scmp.lt.s32.totalorder %s61_s20, %s61_s20 }
  0x4c   :  { %p9781_p4 = scmp.lt.s32.totalorder %s9779_s23, %s9775_s11 }
  0x4e   :  { %p9782_p5 = por %p9781_p4, %p9780_p3 }
  0x50   :  { %p9783_p6 = pnand %p9782_p5, %p9776_p2 }
  0x52   :  { %9786 = shalt.err (!%p9783_p6)
}
  0x53   :  { %63 = dma.hbm_to_vmem [thread:$0]  %s11557_s4, 16, %s61_s20, [#allocation8]  }
  0x54   :  { %s9934_s26 = smov [#allocation12]   ;;  %s9935_s28 = smov [#allocation15]  }
  0x55   :  { %s80_s27 = sshll.u32 %s9934_s26, 4  ;;  %s102_s29 = sshll.u32 %s9935_s28, 4  ;;  %s81_s27 = int_to_ptr.vmem [resolvable:$true] %s80_s27  ;;  %s103_s29 = int_to_ptr.vmem [resolvable:$true] %s102_s29 }
  0x56   :  { %s9795_s30 = scalar_lea.vmem %s81_s27, 16  ;;  %s9799_s1 = scalar_lea.vmem %s81_s27, 32 }
  0x57   :  { %p9796_p7 = scmp.ne.s32.totalorder %s81_s27, %s9795_s30  ;;  %p9800_p8 = scmp.lt.s32.totalorder %s81_s27, %s81_s27 }
  0x58   :  { %p9801_p9 = scmp.lt.s32.totalorder %s9799_s1, %s9795_s30 }
  0x5a   :  { %p9802_p10 = por %p9801_p9, %p9800_p8 }
  0x5c   :  { %p9803_p11 = pnand %p9802_p10, %p9796_p7 }
  0x5e   :  { %9806 = shalt.err (!%p9803_p11)
}
  0x5f   :  { %83 = dma.hbm_to_vmem [thread:$0]  %s11559_s6, 16, %s81_s27, [#allocation11]  }
  0x60   :  { %s9815_s16 = scalar_lea.vmem %s103_s29, 16  ;;  %s9819_s4 = scalar_lea.vmem %s103_s29, 32 }
  0x61   :  { %p9816_p12 = scmp.ne.s32.totalorder %s103_s29, %s9815_s16  ;;  %p9820_p13 = scmp.lt.s32.totalorder %s103_s29, %s103_s29 }
  0x62   :  { %p9821_p0 = scmp.lt.s32.totalorder %s9819_s4, %s9815_s16 }
  0x64   :  { %p9822_p1 = por %p9821_p0, %p9820_p13 }
  0x66   :  { %p9823_p2 = pnand %p9822_p1, %p9816_p12 }
  0x68   :  { %9826 = shalt.err (!%p9823_p2)
}
  0x69   :  { %105 = dma.hbm_to_vmem [thread:$0]  %s11561_s8, 16, %s103_s29, [#allocation14]  }
  0x6a   :  { %s9936_s18 = smov [#allocation18]   ;;  %s9937_s22 = smov [#allocation21]  }
  0x6b   :  { %s122_s20 = sshll.u32 %s9936_s18, 4  ;;  %s144_s5 = sshll.u32 %s9937_s22, 4  ;;  %s123_s20 = int_to_ptr.vmem [resolvable:$true] %s122_s20  ;;  %s145_s5 = int_to_ptr.vmem [resolvable:$true] %s144_s5 }
  0x6c   :  { %s9835_s21 = scalar_lea.vmem %s123_s20, 16  ;;  %s9839_s6 = scalar_lea.vmem %s123_s20, 32 }
  0x6d   :  { %p9836_p3 = scmp.ne.s32.totalorder %s123_s20, %s9835_s21  ;;  %p9840_p4 = scmp.lt.s32.totalorder %s123_s20, %s123_s20 }
  0x6e   :  { %p9841_p5 = scmp.lt.s32.totalorder %s9839_s6, %s9835_s21 }
  0x70   :  { %p9842_p6 = por %p9841_p5, %p9840_p4 }
  0x72   :  { %p9843_p7 = pnand %p9842_p6, %p9836_p3 }
  0x74   :  { %9846 = shalt.err (!%p9843_p7)
}
  0x75   :  { %125 = dma.hbm_to_vmem [thread:$0]  %s11563_s10, 16, %s123_s20, [#allocation17]  }
  0x76   :  { %s9855_s24 = scalar_lea.vmem %s145_s5, 16  ;;  %s9859_s8 = scalar_lea.vmem %s145_s5, 32 }
  0x77   :  { %p9856_p8 = scmp.ne.s32.totalorder %s145_s5, %s9855_s24  ;;  %p9860_p9 = scmp.lt.s32.totalorder %s145_s5, %s145_s5 }
  0x78   :  { %p9861_p10 = scmp.lt.s32.totalorder %s9859_s8, %s9855_s24 }
  0x7a   :  { %p9862_p11 = por %p9861_p10, %p9860_p9 }
  0x7c   :  { %p9863_p12 = pnand %p9862_p11, %p9856_p8 }
  0x7e   :  { %9866 = shalt.err (!%p9863_p12)
}
  0x7f   :  { %147 = dma.hbm_to_vmem [thread:$0]  %s11565_s12, 16, %s145_s5, [#allocation20]  }
  0x80   :  { %s9938_s27 = smov [#allocation22]  }
  0x81   :  { %s156_s28 = sshll.u32 %s9938_s27, 4  ;;  %s157_s28 = int_to_ptr.vmem [resolvable:$true] %s156_s28 }
  0x82   :  { %s9875_s29 = scalar_lea.vmem %s157_s28, 16  ;;  %s9879_s30 = scalar_lea.vmem %s157_s28, 32 }
  0x83   :  { %p9876_p13 = scmp.ne.s32.totalorder %s157_s28, %s9875_s29  ;;  %p9880_p0 = scmp.lt.s32.totalorder %s157_s28, %s157_s28 }
  0x84   :  { %p9881_p1 = scmp.lt.s32.totalorder %s9879_s30, %s9875_s29 }
  0x86   :  { %p9882_p2 = por %p9881_p1, %p9880_p0 }
  0x88   :  { %p9883_p3 = pnand %p9882_p2, %p9876_p13 }
  0x8a   :  { %9886 = shalt.err (!%p9883_p3)
}
  0x8b   :  { %159 = dma.hbm_to_vmem [thread:$0]  %s11567_s14, 16, %s157_s28, [#allocation23]  }
  0x8c   :  { %9907 = dma.done.wait [#allocation5], 1664  }
  0x8d   :  { %9908 = vsyncadd [#allocation5], 4294965632 }
  0x8e   :  { %9909 = dma.done.wait [#allocation8], 32  }
  0x8f   :  { %9910 = vsyncadd [#allocation8], 4294967264 }
  0x90   :  { %9911 = dma.done.wait [#allocation11], 32  }
  0x91   :  { %9912 = vsyncadd [#allocation11], 4294967264 }
  0x92   :  { %9913 = dma.done.wait [#allocation14], 2064  }
  0x93   :  { %9914 = vsyncadd [#allocation14], 4294965232 }
  0x94   :  { %9915 = dma.done.wait [#allocation17], 32  }
  0x95   :  { %9916 = vsyncadd [#allocation17], 4294967264 }
  0x96   :  { %9917 = dma.done.wait [#allocation20], 51216  }
  0x97   :  { %9918 = vsyncadd [#allocation20], 4294916080 }
  0x98   :  { %9919 = dma.done.wait [#allocation23], 16  }
  0x99   :  { %9920 = vsyncadd [#allocation23], 4294967280  ;;  %v9939_v0 = vmov 0   ;;  %v11569_v1 = vmov 0.0   ;;  %v237_v2 = vld [vmem:[%s11553_s0 + $0x60] sm:$0xf] }
  0x9a   :  { %9232 = vset.pattern.permute.xlu1 %v9939_v0  ;;  %9231 = vset.pattern.permute.xlu0 %v9939_v0  ;;  %v236_v3 = vld [vmem:[%s11553_s0 + $0x58] sm:$0xff]  ;;  %v7707_v4 = vld [vmem:[%s11553_s0 + $0xc8] sm:$0xf]  ;;  %v7706_v5 = vld [vmem:[%s11553_s0 + $0xc0] sm:$0xff]  ;;  %vm9941_vm0 = vmmov 0   ;;  %vm407_vm1 = vcmask 1043456  }
  0x9b   :  { %8903 = vmatprep.subr.mxu0 %v11569_v1  ;;  %8968 = vmatprep.subr.mxu1 %v11569_v1  ;;  %v7705_v6 = vld [vmem:[%s11553_s0 + $0xb8] sm:$0xff]  ;;  %v235_v7 = vld [vmem:[%s11553_s0 + $0x50] sm:$0xff]  ;;  %v234_v9 = vld [vmem:[%s11553_s0 + $0x48] sm:$0xff]  ;;  %vm367_vm2 = vcmask 818176   ;;  %vm1511_vm3 = vcmask 516096   ;;  %vm1525_vm4 = vcmask 1040896  }
  0x9c   :  { %300 = vperm.xlu0 %9231, %v237_v2   ;;  %295 = vperm.xlu1 %9232, %v236_v3   ;;  %v7704_v8 = vld [vmem:[%s11553_s0 + $0xb0] sm:$0xff]  ;;  %v7703_v10 = vld [vmem:[%s11553_s0 + $0xa8] sm:$0xff]  ;;  %v233_v11 = vld [vmem:[%s11553_s0 + $0x40] sm:$0xff]  ;;  %vm7656_vm7 = vcmask 812032  }
  0x9d   :  { %v7702_v12 = vld [vmem:[%s11553_s0 + $0xa0] sm:$0xff]  ;;  %v232_v13 = vld [vmem:[%s11553_s0 + $0x38] sm:$0xff]  ;;  %v231_v15 = vld [vmem:[%s11553_s0 + $0x30] sm:$0xff]  ;;  %8929 = vmatprep.mubr.msk.f32.mxu0 %vm9941_vm0, %v11569_v1  ;;  %8994 = vmatprep.mubr.msk.f32.mxu1 %vm9941_vm0, %v11569_v1 }
  0x9e   :  { %v7701_v14 = vld [vmem:[%s11553_s0 + $0x98] sm:$0xff]  ;;  %v7700_v16 = vld [vmem:[%s11553_s0 + $0x90] sm:$0xff]  ;;  %v230_v17 = vld [vmem:[%s11553_s0 + $0x28] sm:$0xff] }
  0x9f   :  { %v7699_v18 = vld [vmem:[%s11553_s0 + $0x88] sm:$0xff]  ;;  %v229_v19 = vld [vmem:[%s11553_s0 + $0x20] sm:$0xff]  ;;  %v228_v21 = vld [vmem:[%s11553_s0 + $0x18] sm:$0xff] }
  0xa0   :  { %654 = vperm.xlu0 %9231, %v7707_v4   ;;  %649 = vperm.xlu1 %9232, %v7706_v5   ;;  %v7698_v20 = vld [vmem:[%s11553_s0 + $0x80] sm:$0xff]  ;;  %v7697_v22 = vld [vmem:[%s11553_s0 + $0x78] sm:$0xff]  ;;  %v227_v23 = vld [vmem:[%s11553_s0 + $0x10] sm:$0xff] }
  0xa1   :  { %v7696_v24 = vld [vmem:[%s11553_s0 + $0x70] sm:$0xff]  ;;  %v226_v25 = vld [vmem:[%s11553_s0 + $0x8] sm:$0xff]  ;;  %v225_v27 = vld [vmem:[%s11553_s0] sm:$0xff] }
  0xa2   :  { %v7695_v26 = vld [vmem:[%s11553_s0 + $0x68] sm:$0xff]  ;;  %v210_v29 = vld [vmem:[%s11555_s2] sm:$0xff]  ;;  %v213_v30 = vld [vmem:[%s11555_s2 + $0x18] sm:$0xff] }
  0xa3   :  { %v211_v28 = vld [vmem:[%s11555_s2 + $0x8] sm:$0xff]  ;;  %v212_v31 = vld [vmem:[%s11555_s2 + $0x10] sm:$0xff]  ;;  %v214_v33 = vld [vmem:[%s11555_s2 + $0x20] sm:$0xff] }
  0xa4   :  { %644 = vperm.xlu1 %9232, %v7705_v6   ;;  %290 = vperm.xlu0 %9231, %v235_v7   ;;  %v215_v32 = vld [vmem:[%s11555_s2 + $0x28] sm:$0xff]  ;;  %v217_v34 = vld [vmem:[%s11555_s2 + $0x38] sm:$0xff]  ;;  %v216_v35 = vld [vmem:[%s11555_s2 + $0x30] sm:$0xff] }
  0xa5   :  { %v219_v36 = vld [vmem:[%s11555_s2 + $0x48] sm:$0xff]  ;;  %v218_v37 = vld [vmem:[%s11555_s2 + $0x40] sm:$0xff]  ;;  %v221_v38 = vld [vmem:[%s11555_s2 + $0x58] sm:$0xff] }
  0xa6   :  { %v220_v39 = vld [vmem:[%s11555_s2 + $0x50] sm:$0xff]  ;;  %v222_v40 = vld [vmem:[%s11555_s2 + $0x60] sm:$0xf]  ;;  %v199_v6 = vld [vmem:[#allocation4 + $0x10] sm:$0xff] }
  0xa7   :  { %v197_v2 = vld [vmem:[#allocation4] sm:$0xff]  ;;  %v198_v5 = vld [vmem:[#allocation4 + $0x8] sm:$0xff]  ;;  %v200_v7 = vld [vmem:[#allocation4 + $0x18] sm:$0xff] }
  0xa8   :  { %639 = vperm.xlu1 %9232, %v7704_v8   ;;  %285 = vperm.xlu0 %9231, %v234_v9   ;;  %v201_v8 = vld [vmem:[#allocation4 + $0x20] sm:$0xff]  ;;  %v202_v9 = vld [vmem:[#allocation4 + $0x28] sm:$0xff] }
  0xac   :  { %634 = vperm.xlu1 %9232, %v7703_v10   ;;  %280 = vperm.xlu0 %9231, %v233_v11   ;;  %v203_v10 = vld [vmem:[#allocation4 + $0x30] sm:$0xff]  ;;  %v204_v11 = vld [vmem:[#allocation4 + $0x38] sm:$0xff] }
  0xb0   :  { %629 = vperm.xlu1 %9232, %v7702_v12   ;;  %275 = vperm.xlu0 %9231, %v232_v13   ;;  %v205_v12 = vld [vmem:[#allocation4 + $0x40] sm:$0xff]  ;;  %v206_v13 = vld [vmem:[#allocation4 + $0x48] sm:$0xff] }
  0xb4   :  { %624 = vperm.xlu1 %9232, %v7701_v14   ;;  %270 = vperm.xlu0 %9231, %v231_v15   ;;  %v207_v14 = vld [vmem:[#allocation4 + $0x50] sm:$0xff]  ;;  %v208_v15 = vld [vmem:[#allocation4 + $0x58] sm:$0xff] }
  0xb8   :  { %619 = vperm.xlu1 %9232, %v7700_v16   ;;  %265 = vperm.xlu0 %9231, %v230_v17   ;;  %v209_v16 = vld [vmem:[#allocation4 + $0x60] sm:$0xf]  ;;  %v947_v17 = vld [vmem:[#allocation13 + $0x78] sm:$0xff] }
  0xbc   :  { %614 = vperm.xlu1 %9232, %v7699_v18   ;;  %260 = vperm.xlu0 %9231, %v229_v19   ;;  %v946_v18 = vld [vmem:[#allocation13 + $0x70] sm:$0xff]  ;;  %v945_v19 = vld [vmem:[#allocation13 + $0x68] sm:$0xff] }
  0xc0   :  { %609 = vperm.xlu1 %9232, %v7698_v20   ;;  %255 = vperm.xlu0 %9231, %v228_v21   ;;  %v944_v20 = vld [vmem:[#allocation13 + $0x60] sm:$0xff]  ;;  %v943_v21 = vld [vmem:[#allocation13 + $0x58] sm:$0xff] }
  0xc4   :  { %604 = vperm.xlu1 %9232, %v7697_v22   ;;  %250 = vperm.xlu0 %9231, %v227_v23   ;;  %v942_v22 = vld [vmem:[#allocation13 + $0x50] sm:$0xff]  ;;  %v941_v23 = vld [vmem:[#allocation13 + $0x48] sm:$0xff] }
  0xc8   :  { %599 = vperm.xlu1 %9232, %v7696_v24   ;;  %245 = vperm.xlu0 %9231, %v226_v25   ;;  %v940_v24 = vld [vmem:[#allocation13 + $0x40] sm:$0xff]  ;;  %v939_v25 = vld [vmem:[#allocation13 + $0x38] sm:$0xff] }
  0xcc   :  { %594 = vperm.xlu1 %9232, %v7695_v26   ;;  %240 = vperm.xlu0 %9231, %v225_v27   ;;  %v938_v26 = vld [vmem:[#allocation13 + $0x30] sm:$0xff]  ;;  %v937_v27 = vld [vmem:[#allocation13 + $0x28] sm:$0xff] }
  0xd0   :  { %309 = vperm.xlu1 %9232, %v211_v28   ;;  %304 = vperm.xlu0 %9231, %v210_v29   ;;  %v936_v28 = vld [vmem:[#allocation13 + $0x20] sm:$0xff]  ;;  %v935_v29 = vld [vmem:[#allocation13 + $0x18] sm:$0xff] }
  0xd4   :  { %319 = vperm.xlu1 %9232, %v213_v30   ;;  %314 = vperm.xlu0 %9231, %v212_v31   ;;  %v934_v30 = vld [vmem:[#allocation13 + $0x10] sm:$0xff]  ;;  %v933_v31 = vld [vmem:[#allocation13 + $0x8] sm:$0xff] }
  0xd8   :  { %329 = vperm.xlu1 %9232, %v215_v32   ;;  %324 = vperm.xlu0 %9231, %v214_v33   ;;  %v932_v32 = vld [vmem:[#allocation13] sm:$0xff] }
  0xdc   :  { %339 = vperm.xlu1 %9232, %v217_v34   ;;  %334 = vperm.xlu0 %9231, %v216_v35  }
  0xe0   :  { %349 = vperm.xlu1 %9232, %v219_v36   ;;  %344 = vperm.xlu0 %9231, %v218_v37  }
  0xe4   :  { %359 = vperm.xlu1 %9232, %v221_v38   ;;  %354 = vperm.xlu0 %9231, %v220_v39  }
  0xe8   :  { %364 = vperm.xlu0 %9231, %v222_v40  }
 0x117   :  { %v301_v41 = vpop.permute.xlu0 %300  ;;  %v296_v42 = vpop.permute.xlu1 %295 }
 0x118   :  { %8904 = vmatpush3.msk.msra.mxu0 %vm407_vm1, %v301_v41 }
 0x119   :  { %8905 = vmatprep.subr.mxu0 %v11569_v1 }
 0x11a   :  { %8906 = vmatpush3.msra.mxu0 %v296_v42 }
 0x11b   :  { %v655_v43 = vpop.permute.xlu0 %654  ;;  %v650_v44 = vpop.permute.xlu1 %649  ;;  %8907 = vmatprep.subr.mxu0 %v11569_v1 }
 0x11c   :  { %8969 = vmatpush3.msk.msra.mxu1 %vm407_vm1, %v655_v43 }
 0x11d   :  { %8970 = vmatprep.subr.mxu1 %v11569_v1 }
 0x11e   :  { %8971 = vmatpush3.msra.mxu1 %v650_v44 }
 0x11f   :  { %8972 = vmatprep.subr.mxu1 %v11569_v1  ;;  %v645_v45 = vpop.permute.xlu1 %644  ;;  %v291_v46 = vpop.permute.xlu0 %290 }
 0x120   :  { %8908 = vmatpush3.msra.mxu0 %v291_v46  ;;  %8973 = vmatpush3.msra.mxu1 %v645_v45 }
 0x121   :  { %8974 = vmatprep.subr.mxu1 %v11569_v1  ;;  %8909 = vmatprep.subr.mxu0 %v11569_v1 }
 0x123   :  { %v640_v47 = vpop.permute.xlu1 %639  ;;  %v286_v48 = vpop.permute.xlu0 %285 }
 0x124   :  { %8910 = vmatpush3.msra.mxu0 %v286_v48  ;;  %8975 = vmatpush3.msra.mxu1 %v640_v47 }
 0x125   :  { %8976 = vmatprep.subr.mxu1 %v11569_v1  ;;  %8911 = vmatprep.subr.mxu0 %v11569_v1 }
 0x127   :  { %v635_v49 = vpop.permute.xlu1 %634  ;;  %v281_v50 = vpop.permute.xlu0 %280 }
 0x128   :  { %8912 = vmatpush3.msra.mxu0 %v281_v50  ;;  %8977 = vmatpush3.msra.mxu1 %v635_v49 }
 0x129   :  { %8978 = vmatprep.subr.mxu1 %v11569_v1  ;;  %8913 = vmatprep.subr.mxu0 %v11569_v1 }
 0x12b   :  { %v630_v51 = vpop.permute.xlu1 %629  ;;  %v276_v52 = vpop.permute.xlu0 %275 }
 0x12c   :  { %8914 = vmatpush3.msra.mxu0 %v276_v52  ;;  %8979 = vmatpush3.msra.mxu1 %v630_v51 }
 0x12d   :  { %8980 = vmatprep.subr.mxu1 %v11569_v1  ;;  %8915 = vmatprep.subr.mxu0 %v11569_v1 }
 0x12f   :  { %v625_v53 = vpop.permute.xlu1 %624  ;;  %v271_v54 = vpop.permute.xlu0 %270 }
 0x130   :  { %8916 = vmatpush3.msra.mxu0 %v271_v54  ;;  %8981 = vmatpush3.msra.mxu1 %v625_v53 }
 0x131   :  { %8982 = vmatprep.subr.mxu1 %v11569_v1  ;;  %8917 = vmatprep.subr.mxu0 %v11569_v1 }
 0x133   :  { %v620_v55 = vpop.permute.xlu1 %619  ;;  %v266_v56 = vpop.permute.xlu0 %265 }
 0x134   :  { %8918 = vmatpush3.msra.mxu0 %v266_v56  ;;  %8983 = vmatpush3.msra.mxu1 %v620_v55  ;;  %v10335_v56 = vld [vmem:[#allocation7] ss:$0 sm:$0xff] }
 0x135   :  { %8984 = vmatprep.subr.mxu1 %v11569_v1  ;;  %8919 = vmatprep.subr.mxu0 %v11569_v1 }
 0x137   :  { %v615_v57 = vpop.permute.xlu1 %614  ;;  %v261_v58 = vpop.permute.xlu0 %260 }
 0x138   :  { %8920 = vmatpush3.msra.mxu0 %v261_v58  ;;  %8985 = vmatpush3.msra.mxu1 %v615_v57 }
 0x139   :  { %8986 = vmatprep.subr.mxu1 %v11569_v1  ;;  %8921 = vmatprep.subr.mxu0 %v11569_v1 }
 0x13b   :  { %v610_v59 = vpop.permute.xlu1 %609  ;;  %v256_v60 = vpop.permute.xlu0 %255 }
 0x13c   :  { %8922 = vmatpush3.msra.mxu0 %v256_v60  ;;  %8987 = vmatpush3.msra.mxu1 %v610_v59 }
 0x13d   :  { %8988 = vmatprep.subr.mxu1 %v11569_v1  ;;  %8923 = vmatprep.subr.mxu0 %v11569_v1 }
 0x13f   :  { %v605_v61 = vpop.permute.xlu1 %604  ;;  %v251_v62 = vpop.permute.xlu0 %250 }
 0x140   :  { %8924 = vmatpush3.msra.mxu0 %v251_v62  ;;  %8989 = vmatpush3.msra.mxu1 %v605_v61 }
 0x141   :  { %8990 = vmatprep.subr.mxu1 %v11569_v1  ;;  %8925 = vmatprep.subr.mxu0 %v11569_v1 }
 0x143   :  { %v600_v63 = vpop.permute.xlu1 %599  ;;  %v246_v0 = vpop.permute.xlu0 %245 }
 0x144   :  { %8926 = vmatpush3.msra.mxu0 %v246_v0  ;;  %8991 = vmatpush3.msra.mxu1 %v600_v63 }
 0x145   :  { %8992 = vmatprep.subr.mxu1 %v11569_v1  ;;  %8927 = vmatprep.subr.mxu0 %v11569_v1 }
 0x147   :  { %v595_v3 = vpop.permute.xlu1 %594  ;;  %v241_v4 = vpop.permute.xlu0 %240 }
 0x148   :  { %8928 = vmatpush3.msra.mxu0 %v241_v4  ;;  %8993 = vmatpush3.msra.mxu1 %v595_v3 }
 0x149   :  { %8930 = vmatmul.mubr.msk.f32.vlgmr.msra.gmra.mxu0 %vm367_vm2, %v197_v2  ;;  %8995 = vmatmul.mubr.msk.f32.vlgmr.msra.gmra.mxu1 %vm367_vm2, %v197_v2 }
 0x14a   :  { %8932 = vmatprep.mubr.msk.f32.mxu0 %vm9941_vm0, %v11569_v1  ;;  %8997 = vmatprep.mubr.msk.f32.mxu1 %vm9941_vm0, %v11569_v1 }
 0x14b   :  { %9033 = vmatprep.subr.mxu0 %v11569_v1  ;;  %9104 = vmatprep.subr.mxu1 %v11569_v1  ;;  %v305_v41 = vpop.permute.xlu0 %304  ;;  %v310_v46 = vpop.permute.xlu1 %309 }
 0x14c   :  { %9034 = vmatpush3.msra.mxu0 %v947_v17  ;;  %9105 = vmatpush3.msra.mxu1 %v947_v17 }
 0x14d   :  { %8933 = vmatmul.mubr.msk.f32.gmra.mxu0 %vm367_vm2, %v198_v5  ;;  %8998 = vmatmul.mubr.msk.f32.gmra.mxu1 %vm367_vm2, %v198_v5 }
 0x14e   :  { %8935 = vmatprep.mubr.msk.f32.mxu0 %vm9941_vm0, %v11569_v1  ;;  %9000 = vmatprep.mubr.msk.f32.mxu1 %vm9941_vm0, %v11569_v1 }
 0x14f   :  { %9035 = vmatprep.subr.mxu0 %v11569_v1  ;;  %9106 = vmatprep.subr.mxu1 %v11569_v1  ;;  %v315_v49 = vpop.permute.xlu0 %314  ;;  %v320_v61 = vpop.permute.xlu1 %319 }
 0x150   :  { %9036 = vmatpush3.msra.mxu0 %v946_v18  ;;  %9107 = vmatpush3.msra.mxu1 %v946_v18 }
 0x151   :  { %8936 = vmatmul.mubr.msk.f32.gmra.mxu0 %vm367_vm2, %v199_v6  ;;  %9001 = vmatmul.mubr.msk.f32.gmra.mxu1 %vm367_vm2, %v199_v6  ;;  %v10349_v6 = vld [vmem:[#allocation9] ss:$0 sm:$0xff] }
 0x152   :  { %8938 = vmatprep.mubr.msk.f32.mxu0 %vm9941_vm0, %v11569_v1  ;;  %9003 = vmatprep.mubr.msk.f32.mxu1 %vm9941_vm0, %v11569_v1 }
 0x153   :  { %9037 = vmatprep.subr.mxu0 %v11569_v1  ;;  %9108 = vmatprep.subr.mxu1 %v11569_v1  ;;  %v325_v5 = vpop.permute.xlu0 %324 }
 0x154   :  { %9038 = vmatpush3.msra.mxu0 %v945_v19  ;;  %9109 = vmatpush3.msra.mxu1 %v945_v19  ;;  %v330_v19 = vpop.permute.xlu1 %329 }
 0x155   :  { %8939 = vmatmul.mubr.msk.f32.gmra.mxu0 %vm367_vm2, %v200_v7  ;;  %9004 = vmatmul.mubr.msk.f32.gmra.mxu1 %vm367_vm2, %v200_v7 }
 0x156   :  { %8941 = vmatprep.mubr.msk.f32.mxu0 %vm9941_vm0, %v11569_v1  ;;  %9006 = vmatprep.mubr.msk.f32.mxu1 %vm9941_vm0, %v11569_v1 }
 0x157   :  { %9039 = vmatprep.subr.mxu0 %v11569_v1  ;;  %9110 = vmatprep.subr.mxu1 %v11569_v1 }
 0x158   :  { %9040 = vmatpush3.msra.mxu0 %v944_v20  ;;  %9111 = vmatpush3.msra.mxu1 %v944_v20 }
 0x159   :  { %8942 = vmatmul.mubr.msk.f32.gmra.mxu0 %vm367_vm2, %v201_v8  ;;  %9007 = vmatmul.mubr.msk.f32.gmra.mxu1 %vm367_vm2, %v201_v8 }
 0x15a   :  { %8944 = vmatprep.mubr.msk.f32.mxu0 %vm9941_vm0, %v11569_v1  ;;  %9009 = vmatprep.mubr.msk.f32.mxu1 %vm9941_vm0, %v11569_v1 }
 0x15b   :  { %9041 = vmatprep.subr.mxu0 %v11569_v1  ;;  %9112 = vmatprep.subr.mxu1 %v11569_v1 }
 0x15c   :  { %9042 = vmatpush3.msra.mxu0 %v943_v21  ;;  %9113 = vmatpush3.msra.mxu1 %v943_v21 }
 0x15d   :  { %8945 = vmatmul.mubr.msk.f32.gmra.mxu0 %vm367_vm2, %v202_v9  ;;  %9010 = vmatmul.mubr.msk.f32.gmra.mxu1 %vm367_vm2, %v202_v9 }
 0x15e   :  { %8947 = vmatprep.mubr.msk.f32.mxu0 %vm9941_vm0, %v11569_v1  ;;  %9012 = vmatprep.mubr.msk.f32.mxu1 %vm9941_vm0, %v11569_v1 }
 0x15f   :  { %9043 = vmatprep.subr.mxu0 %v11569_v1  ;;  %9114 = vmatprep.subr.mxu1 %v11569_v1 }
 0x160   :  { %9044 = vmatpush3.msra.mxu0 %v942_v22  ;;  %9115 = vmatpush3.msra.mxu1 %v942_v22 }
 0x161   :  { %8948 = vmatmul.mubr.msk.f32.gmra.mxu0 %vm367_vm2, %v203_v10  ;;  %9013 = vmatmul.mubr.msk.f32.gmra.mxu1 %vm367_vm2, %v203_v10 }
 0x162   :  { %8950 = vmatprep.mubr.msk.f32.mxu0 %vm9941_vm0, %v11569_v1  ;;  %9015 = vmatprep.mubr.msk.f32.mxu1 %vm9941_vm0, %v11569_v1 }
 0x163   :  { %9045 = vmatprep.subr.mxu0 %v11569_v1  ;;  %9116 = vmatprep.subr.mxu1 %v11569_v1 }
 0x164   :  { %9046 = vmatpush3.msra.mxu0 %v941_v23  ;;  %9117 = vmatpush3.msra.mxu1 %v941_v23 }
 0x165   :  { %8951 = vmatmul.mubr.msk.f32.gmra.mxu0 %vm367_vm2, %v204_v11  ;;  %9016 = vmatmul.mubr.msk.f32.gmra.mxu1 %vm367_vm2, %v204_v11 }
 0x166   :  { %8953 = vmatprep.mubr.msk.f32.mxu0 %vm9941_vm0, %v11569_v1  ;;  %9018 = vmatprep.mubr.msk.f32.mxu1 %vm9941_vm0, %v11569_v1 }
 0x167   :  { %9047 = vmatprep.subr.mxu0 %v11569_v1  ;;  %9118 = vmatprep.subr.mxu1 %v11569_v1 }
 0x168   :  { %9048 = vmatpush3.msra.mxu0 %v940_v24  ;;  %9119 = vmatpush3.msra.mxu1 %v940_v24 }
 0x169   :  { %8954 = vmatmul.mubr.msk.f32.gmra.mxu0 %vm367_vm2, %v205_v12  ;;  %9019 = vmatmul.mubr.msk.f32.gmra.mxu1 %vm367_vm2, %v205_v12 }
 0x16a   :  { %8956 = vmatprep.mubr.msk.f32.mxu0 %vm9941_vm0, %v11569_v1  ;;  %9021 = vmatprep.mubr.msk.f32.mxu1 %vm9941_vm0, %v11569_v1 }
 0x16b   :  { %9049 = vmatprep.subr.mxu0 %v11569_v1  ;;  %9120 = vmatprep.subr.mxu1 %v11569_v1 }
 0x16c   :  { %9050 = vmatpush3.msra.mxu0 %v939_v25  ;;  %9121 = vmatpush3.msra.mxu1 %v939_v25 }
 0x16d   :  { %8957 = vmatmul.mubr.msk.f32.gmra.mxu0 %vm367_vm2, %v206_v13  ;;  %9022 = vmatmul.mubr.msk.f32.gmra.mxu1 %vm367_vm2, %v206_v13 }
 0x16e   :  { %8959 = vmatprep.mubr.msk.f32.mxu0 %vm9941_vm0, %v11569_v1  ;;  %9024 = vmatprep.mubr.msk.f32.mxu1 %vm9941_vm0, %v11569_v1 }
 0x16f   :  { %9051 = vmatprep.subr.mxu0 %v11569_v1  ;;  %9122 = vmatprep.subr.mxu1 %v11569_v1 }
 0x170   :  { %9052 = vmatpush3.msra.mxu0 %v938_v26  ;;  %9123 = vmatpush3.msra.mxu1 %v938_v26 }
 0x171   :  { %8960 = vmatmul.mubr.msk.f32.gmra.mxu0 %vm367_vm2, %v207_v14  ;;  %9025 = vmatmul.mubr.msk.f32.gmra.mxu1 %vm367_vm2, %v207_v14 }
 0x172   :  { %8962 = vmatprep.mubr.msk.f32.mxu0 %vm9941_vm0, %v11569_v1  ;;  %9027 = vmatprep.mubr.msk.f32.mxu1 %vm9941_vm0, %v11569_v1 }
 0x173   :  { %9053 = vmatprep.subr.mxu0 %v11569_v1  ;;  %9124 = vmatprep.subr.mxu1 %v11569_v1 }
 0x174   :  { %9054 = vmatpush3.msra.mxu0 %v937_v27  ;;  %9125 = vmatpush3.msra.mxu1 %v937_v27 }
 0x175   :  { %8963 = vmatmul.mubr.msk.f32.gmra.mxu0 %vm367_vm2, %v208_v15  ;;  %9028 = vmatmul.mubr.msk.f32.gmra.mxu1 %vm367_vm2, %v208_v15 }
 0x176   :  { %8965 = vmatprep.mubr.msk.f32.mxu0 %vm9941_vm0, %v11569_v1  ;;  %9030 = vmatprep.mubr.msk.f32.mxu1 %vm9941_vm0, %v11569_v1 }
 0x177   :  { %9055 = vmatprep.subr.mxu0 %v11569_v1  ;;  %9126 = vmatprep.subr.mxu1 %v11569_v1 }
 0x178   :  { %9056 = vmatpush3.msra.mxu0 %v936_v28  ;;  %9127 = vmatpush3.msra.mxu1 %v936_v28  ;;  %v335_v28 = vpop.permute.xlu0 %334 }
 0x179   :  { %8966 = vmatmul.mubr.msk.f32.gmra.mxu0 %vm367_vm2, %v209_v16  ;;  %9031 = vmatmul.mubr.msk.f32.gmra.mxu1 %vm367_vm2, %v209_v16 }
 0x17a   :  { %9065 = vmatprep.mubr.msk.f32.mxu0 %vm9941_vm0, %v11569_v1  ;;  %9136 = vmatprep.mubr.msk.f32.mxu1 %vm9941_vm0, %v11569_v1 }
 0x17b   :  { %9057 = vmatprep.subr.mxu0 %v11569_v1  ;;  %9128 = vmatprep.subr.mxu1 %v11569_v1 }
 0x17c   :  { %9058 = vmatpush3.msra.mxu0 %v935_v29  ;;  %9129 = vmatpush3.msra.mxu1 %v935_v29 }
 0x17d   :  { %9059 = vmatprep.subr.mxu0 %v11569_v1  ;;  %9130 = vmatprep.subr.mxu1 %v11569_v1 }
 0x17e   :  { %9060 = vmatpush3.msra.mxu0 %v934_v30  ;;  %9131 = vmatpush3.msra.mxu1 %v934_v30 }
 0x17f   :  { %9061 = vmatprep.subr.mxu0 %v11569_v1  ;;  %9132 = vmatprep.subr.mxu1 %v11569_v1 }
 0x180   :  { %9062 = vmatpush3.msra.mxu0 %v933_v31  ;;  %9133 = vmatpush3.msra.mxu1 %v933_v31 }
 0x181   :  { %9063 = vmatprep.subr.mxu0 %v11569_v1  ;;  %9134 = vmatprep.subr.mxu1 %v11569_v1 }
 0x182   :  { %9064 = vmatpush3.msra.mxu0 %v932_v32  ;;  %9135 = vmatpush3.msra.mxu1 %v932_v32 }
 0x209   :  { %v476_v33 = vpop.f32.mrf.mxu0  ;;  %v724_v34 = vpop.f32.mrf.mxu1 }
 0x20a   :  { %v10331_v52 = vadd.f32 %v476_v33, %v305_v41  ;;  %v10333_v53 = vadd.f32 %v724_v34, %v305_v41 }
 0x20b   :  { %v8931_v35 = vpop.f32.mrf.mxu0  ;;  %v8996_v36 = vpop.f32.mrf.mxu1 }
 0x20c   :  { %v546_v0 = vmul.f32 %v10335_v56, %v10331_v52  ;;  %v788_v2 = vmul.f32 %v10335_v56, %v10333_v53 }
 0x20d   :  { %v481_v37 = vpop.f32.mrf.mxu0  ;;  %v729_v38 = vpop.f32.mrf.mxu1 }
 0x20e   :  { %v10327_v50 = vadd.f32 %v481_v37, %v310_v46  ;;  %v10329_v51 = vadd.f32 %v729_v38, %v310_v46  ;;  %v10366_v15 = vadd.f32 %v10349_v6, %v546_v0  ;;  %v10369_v16 = vadd.f32 %v10349_v6, %v788_v2 }
 0x20f   :  { %v8934_v39 = vpop.f32.mrf.mxu0  ;;  %v8999_v40 = vpop.f32.mrf.mxu1 }
 0x210   :  { %v547_v62 = vmul.f32 %v10335_v56, %v10327_v50  ;;  %v789_v63 = vmul.f32 %v10335_v56, %v10329_v51  ;;  %v854_v33 = vmul.f32 %v10366_v15, %v10366_v15  ;;  %v887_v34 = vmul.f32 %v10369_v16, %v10369_v16 }
 0x211   :  { %v486_v42 = vpop.f32.mrf.mxu0  ;;  %v734_v43 = vpop.f32.mrf.mxu1 }
 0x212   :  { %v10337_v57 = vadd.f32 %v486_v42, %v315_v49  ;;  %v10339_v58 = vadd.f32 %v734_v43, %v315_v49  ;;  %v10360_v13 = vadd.f32 %v10349_v6, %v547_v62  ;;  %v10363_v14 = vadd.f32 %v10349_v6, %v789_v63  ;;  %v340_v49 = vpop.permute.xlu1 %339 }
 0x213   :  { %v8937_v44 = vpop.f32.mrf.mxu0  ;;  %v9002_v45 = vpop.f32.mrf.mxu1 }
 0x214   :  { %v548_v7 = vmul.f32 %v10335_v56, %v10337_v57  ;;  %v790_v8 = vmul.f32 %v10335_v56, %v10339_v58  ;;  %v855_v29 = vmul.f32 %v10360_v13, %v10360_v13  ;;  %v888_v30 = vmul.f32 %v10363_v14, %v10363_v14 }
 0x215   :  { %v491_v47 = vpop.f32.mrf.mxu0  ;;  %v739_v48 = vpop.f32.mrf.mxu1  ;;  %v814_v35 = vadd.f32 %v10360_v13, %v10366_v15  ;;  %v834_v36 = vadd.f32 %v10363_v14, %v10369_v16 }
 0x216   :  { %v10355_v9 = vadd.f32 %v491_v47, %v320_v61  ;;  %v10357_v10 = vadd.f32 %v739_v48, %v320_v61  ;;  %v10376_v22 = vadd.f32 %v10349_v6, %v548_v7  ;;  %v10379_v23 = vadd.f32 %v10349_v6, %v790_v8 }
 0x217   :  { %v8940_v54 = vpop.f32.mrf.mxu0  ;;  %v9005_v55 = vpop.f32.mrf.mxu1 }
 0x218   :  { %v549_v24 = vmul.f32 %v10335_v56, %v10355_v9  ;;  %v791_v25 = vmul.f32 %v10335_v56, %v10357_v10  ;;  %v856_v43 = vmul.f32 %v10376_v22, %v10376_v22  ;;  %v889_v44 = vmul.f32 %v10379_v23, %v10379_v23 }
 0x219   :  { %v496_v59 = vpop.f32.mrf.mxu0  ;;  %v744_v60 = vpop.f32.mrf.mxu1  ;;  %v867_v54 = vadd.f32 %v855_v29, %v854_v33  ;;  %v900_v55 = vadd.f32 %v888_v30, %v887_v34  ;;  %v815_v61 = vadd.f32 %v814_v35, %v10376_v22  ;;  %v835_v62 = vadd.f32 %v834_v36, %v10379_v23 }
 0x21a   :  { %v10371_v20 = vadd.f32 %v496_v59, %v325_v5  ;;  %v10373_v21 = vadd.f32 %v744_v60, %v325_v5  ;;  %v10414_v45 = vadd.f32 %v10349_v6, %v549_v24  ;;  %v10417_v46 = vadd.f32 %v10349_v6, %v791_v25  ;;  %v345_v25 = vpop.permute.xlu0 %344 }
 0x21b   :  { %v8943_v3 = vpop.f32.mrf.mxu0  ;;  %v9008_v4 = vpop.f32.mrf.mxu1 }
 0x21c   :  { %11590 = vst [vmem:[#allocation33_spill] sm:$0xff] %v10373_v21  ;;  %v550_v39 = vmul.f32 %v10335_v56, %v10371_v20  ;;  %v792_v40 = vmul.f32 %v10335_v56, %v10373_v21 }
 0x21d   :  { %v501_v11 = vpop.f32.mrf.mxu0  ;;  %v749_v12 = vpop.f32.mrf.mxu1 }
 0x21e   :  { %v10389_v31 = vadd.f32 %v501_v11, %v330_v19  ;;  %v10391_v32 = vadd.f32 %v749_v12, %v330_v19  ;;  %v10430_v4 = vadd.f32 %v10349_v6, %v550_v39  ;;  %v10433_v5 = vadd.f32 %v10349_v6, %v792_v40 }
 0x21f   :  { %v8946_v17 = vpop.f32.mrf.mxu0  ;;  %v9011_v18 = vpop.f32.mrf.mxu1  ;;  %v868_v11 = vadd.f32 %v867_v54, %v856_v43  ;;  %v901_v12 = vadd.f32 %v900_v55, %v889_v44 }
 0x220   :  { %11591 = vst [vmem:[#allocation34_spill] sm:$0xff] %v10389_v31  ;;  %11592 = vst [vmem:[#allocation35_spill] sm:$0xff] %v10391_v32  ;;  %v551_v59 = vmul.f32 %v10335_v56, %v10389_v31  ;;  %v793_v60 = vmul.f32 %v10335_v56, %v10391_v32  ;;  %v857_v17 = vmul.f32 %v10414_v45, %v10414_v45 }
 0x221   :  { %v506_v26 = vpop.f32.mrf.mxu0  ;;  %v754_v27 = vpop.f32.mrf.mxu1  ;;  %v890_v18 = vmul.f32 %v10417_v46, %v10417_v46  ;;  %v858_v39 = vmul.f32 %v10430_v4, %v10430_v4  ;;  %v891_v40 = vmul.f32 %v10433_v5, %v10433_v5 }
 0x222   :  { %v10405_v41 = vadd.f32 %v506_v26, %v335_v28  ;;  %v10407_v42 = vadd.f32 %v754_v27, %v335_v28  ;;  %v816_v26 = vadd.f32 %v815_v61, %v10414_v45  ;;  %v836_v27 = vadd.f32 %v835_v62, %v10417_v46 }
 0x223   :  { %v8949_v37 = vpop.f32.mrf.mxu0  ;;  %v9014_v38 = vpop.f32.mrf.mxu1  ;;  %v10446_v28 = vadd.f32 %v10349_v6, %v551_v59  ;;  %v10449_v29 = vadd.f32 %v10349_v6, %v793_v60 }
 0x224   :  { %11593 = vst [vmem:[#allocation36_spill] sm:$0xff] %v10405_v41  ;;  %11594 = vst [vmem:[#allocation37_spill] sm:$0xff] %v10407_v42  ;;  %v552_v7 = vmul.f32 %v10335_v56, %v10405_v41  ;;  %v794_v8 = vmul.f32 %v10335_v56, %v10407_v42  ;;  %v350_v38 = vpop.permute.xlu1 %349  ;;  %v837_v54 = vadd.f32 %v836_v27, %v10433_v5 }
 0x225   :  { %v511_v47 = vpop.f32.mrf.mxu0  ;;  %v759_v48 = vpop.f32.mrf.mxu1  ;;  %v859_v60 = vmul.f32 %v10446_v28, %v10446_v28  ;;  %v892_v61 = vmul.f32 %v10449_v29, %v10449_v29 }
 0x226   :  { %v10425_v63 = vadd.f32 %v511_v47, %v340_v49  ;;  %v10427_v0 = vadd.f32 %v759_v48, %v340_v49  ;;  %v10464_v43 = vadd.f32 %v10349_v6, %v552_v7  ;;  %v10467_v44 = vadd.f32 %v10349_v6, %v794_v8 }
 0x227   :  { %v8952_v2 = vpop.f32.mrf.mxu0  ;;  %v9017_v3 = vpop.f32.mrf.mxu1  ;;  %v869_v47 = vadd.f32 %v868_v11, %v857_v17  ;;  %v902_v48 = vadd.f32 %v901_v12, %v890_v18  ;;  %v817_v49 = vadd.f32 %v816_v26, %v10430_v4 }
 0x228   :  { %11595 = vst [vmem:[#allocation38_spill] sm:$0xff] %v10425_v63  ;;  %11596 = vst [vmem:[#allocation39_spill] sm:$0xff] %v10427_v0  ;;  %v553_v30 = vmul.f32 %v10335_v56, %v10425_v63  ;;  %v795_v33 = vmul.f32 %v10335_v56, %v10427_v0  ;;  %v355_v18 = vpop.permute.xlu0 %354  ;;  %v893_v26 = vmul.f32 %v10467_v44, %v10467_v44 }
 0x229   :  { %v516_v19 = vpop.f32.mrf.mxu0  ;;  %v764_v24 = vpop.f32.mrf.mxu1  ;;  %v818_v27 = vadd.f32 %v817_v49, %v10446_v28 }
 0x22a   :  { %v10455_v34 = vadd.f32 %v516_v19, %v345_v25  ;;  %v10457_v35 = vadd.f32 %v764_v24, %v345_v25  ;;  %v10480_v3 = vadd.f32 %v10349_v6, %v553_v30  ;;  %v10483_v7 = vadd.f32 %v10349_v6, %v795_v33 }
 0x22b   :  { %v8955_v36 = vpop.f32.mrf.mxu0  ;;  %v9020_v37 = vpop.f32.mrf.mxu1  ;;  %v870_v19 = vadd.f32 %v869_v47, %v858_v39  ;;  %v903_v24 = vadd.f32 %v902_v48, %v891_v40  ;;  %v860_v25 = vmul.f32 %v10464_v43, %v10464_v43  ;;  %v838_v30 = vadd.f32 %v837_v54, %v10449_v29 }
 0x22c   :  { %11597 = vst [vmem:[#allocation40_spill] sm:$0xff] %v10455_v34  ;;  %11598 = vst [vmem:[#allocation41_spill] sm:$0xff] %v10457_v35  ;;  %v554_v8 = vmul.f32 %v10335_v56, %v10455_v34  ;;  %v796_v11 = vmul.f32 %v10335_v56, %v10457_v35  ;;  %v894_v49 = vmul.f32 %v10483_v7, %v10483_v7 }
 0x22d   :  { %v521_v55 = vpop.f32.mrf.mxu0  ;;  %v769_v59 = vpop.f32.mrf.mxu1  ;;  %v871_v39 = vadd.f32 %v870_v19, %v859_v60  ;;  %v904_v40 = vadd.f32 %v903_v24, %v892_v61  ;;  %v819_v61 = vadd.f32 %v818_v27, %v10464_v43 }
 0x22e   :  { %v10475_v62 = vadd.f32 %v521_v55, %v350_v38  ;;  %v10477_v2 = vadd.f32 %v769_v59, %v350_v38  ;;  %v861_v55 = vmul.f32 %v10480_v3, %v10480_v3  ;;  %v10508_v54 = vadd.f32 %v10349_v6, %v554_v8  ;;  %v360_v60 = vpop.permute.xlu1 %359 }
 0x22f   :  { %v8958_v12 = vpop.f32.mrf.mxu0  ;;  %v9023_v17 = vpop.f32.mrf.mxu1  ;;  %v10511_v59 = vadd.f32 %v10349_v6, %v796_v11  ;;  %v872_v19 = vadd.f32 %v871_v39, %v860_v25  ;;  %v905_v24 = vadd.f32 %v904_v40, %v893_v26  ;;  %v820_v27 = vadd.f32 %v819_v61, %v10480_v3 }
 0x230   :  { %11599 = vst [vmem:[#allocation42_spill] sm:$0xff] %v10475_v62  ;;  %11600 = vst [vmem:[#allocation43_spill] sm:$0xff] %v10477_v2  ;;  %v555_v33 = vmul.f32 %v10335_v56, %v10475_v62  ;;  %v797_v36 = vmul.f32 %v10335_v56, %v10477_v2 }
 0x231   :  { %v526_v37 = vpop.f32.mrf.mxu0  ;;  %v774_v38 = vpop.f32.mrf.mxu1  ;;  %v906_v39 = vadd.f32 %v905_v24, %v894_v49  ;;  %v895_v40 = vmul.f32 %v10511_v59, %v10511_v59  ;;  %v821_v49 = vadd.f32 %v820_v27, %v10508_v54 }
 0x232   :  { %v10499_v47 = vadd.f32 %v526_v37, %v355_v18  ;;  %v10501_v48 = vadd.f32 %v774_v38, %v355_v18  ;;  %v839_v18 = vadd.f32 %v838_v30, %v10467_v44  ;;  %v10516_v37 = vadd.f32 %v10349_v6, %v555_v33 }
 0x233   :  { %v8961_v12 = vpop.f32.mrf.mxu0  ;;  %v9026_v17 = vpop.f32.mrf.mxu1  ;;  %v10519_v38 = vadd.f32 %v10349_v6, %v797_v36  ;;  %v873_v33 = vadd.f32 %v872_v19, %v861_v55  ;;  %v862_v36 = vmul.f32 %v10508_v54, %v10508_v54 }
 0x234   :  { %11601 = vst [vmem:[#allocation44_spill] sm:$0xff] %v10499_v47  ;;  %11602 = vst [vmem:[#allocation45_spill] sm:$0xff] %v10501_v48  ;;  %v556_v8 = vmul.f32 %v10335_v56, %v10499_v47  ;;  %v798_v11 = vmul.f32 %v10335_v56, %v10501_v48  ;;  %v840_v25 = vadd.f32 %v839_v18, %v10483_v7  ;;  %v365_v47 = vpop.permute.xlu0 %364 }
 0x235   :  { %v531_v12 = vpop.f32.mrf.mxu0  ;;  %v779_v17 = vpop.f32.mrf.mxu1  ;;  %v874_v27 = vadd.f32 %v873_v33, %v862_v36  ;;  %v822_v62 = vadd.f32 %v821_v49, %v10516_v37 }
 0x236   :  { %v10527_v30 = vadd.f32 %v531_v12, %v360_v60  ;;  %v10529_v26 = vadd.f32 %v779_v17, %v360_v60  ;;  %v10536_v2 = vadd.f32 %v10349_v6, %v556_v8  ;;  %v10539_v61 = vadd.f32 %v10349_v6, %v798_v11 }
 0x237   :  { %v8964_v1 = vpop.f32.mrf.mxu0  ;;  %v9029_v48 = vpop.f32.mrf.mxu1  ;;  %v841_v19 = vadd.f32 %v840_v25, %v10511_v59  ;;  %v907_v25 = vadd.f32 %v906_v39, %v895_v40 }
 0x238   :  { %11603 = vst [vmem:[#allocation46_spill] sm:$0xff] %v10527_v30  ;;  %11604 = vst [vmem:[#allocation47_spill] sm:$0xff] %v10529_v26  ;;  %v557_v60 = vmul.f32 %v10335_v56, %v10527_v30  ;;  %v799_v55 = vmul.f32 %v10335_v56, %v10529_v26  ;;  %v863_v1 = vmul.f32 %v10516_v37, %v10516_v37 }
 0x239   :  { %v896_v48 = vmul.f32 %v10519_v38, %v10519_v38  ;;  %v536_v18 = vpop.f32.mrf.mxu0  ;;  %v784_v24 = vpop.f32.mrf.mxu1  ;;  %v842_v35 = vadd.f32 %v841_v19, %v10519_v38  ;;  %v864_v34 = vmul.f32 %v10536_v2, %v10536_v2 }
 0x23a   :  { %v10552_v8 = vadd.f32 %v10349_v6, %v557_v60  ;;  %v10555_v11 = vadd.f32 %v10349_v6, %v799_v55  ;;  %v10557_v12 = vadd.f32 %v536_v18, %v365_v47  ;;  %v10559_v17 = vadd.f32 %v784_v24, %v365_v47 }
 0x23b   :  { %v8967_v26 = vpop.f32.mrf.mxu0  ;;  %v9032_v30 = vpop.f32.mrf.mxu1  ;;  %v897_v60 = vmul.f32 %v10539_v61, %v10539_v61  ;;  %v875_v55 = vadd.f32 %v874_v27, %v863_v1  ;;  %v908_v0 = vadd.f32 %v907_v25, %v896_v48 }
 0x23c   :  { %11605 = vst [vmem:[#allocation48_spill] sm:$0xff] %v10557_v12  ;;  %v558_v47 = vmul.f32 %v10335_v56, %v10557_v12  ;;  %v800_v33 = vmul.f32 %v10335_v56, %v10559_v17  ;;  %v823_v30 = vadd.f32 %v822_v62, %v10536_v2  ;;  %v843_v26 = vadd.f32 %v842_v35, %v10539_v61 }
 0x23d   :  { %v865_v39 = vmul.f32 %v10552_v8, %v10552_v8  ;;  %v898_v36 = vmul.f32 %v10555_v11, %v10555_v11  ;;  %v876_v19 = vadd.f32 %v875_v55, %v864_v34  ;;  %v909_v1 = vadd.f32 %v908_v0, %v897_v60 }
 0x23e   :  { %v10578_v40 = vadd.f32 %v10349_v6, %v558_v47  ;;  %v10581_v49 = vadd.f32 %v10349_v6, %v800_v33  ;;  %v824_v56 = vadd.f32 %v823_v30, %v10552_v8  ;;  %v844_v62 = vadd.f32 %v843_v26, %v10555_v11 }
 0x23f   :  { %v877_v6 = vadd.f32 %v876_v19, %v865_v39  ;;  %v910_v27 = vadd.f32 %v909_v1, %v898_v36 }
 0x240   :  { %v825_v35 = vsel %vm407_vm1, %v10578_v40, 0.0  ;;  %v866_v48 = vmul.f32 %v10578_v40, %v10578_v40  ;;  %v845_v18 = vsel %vm407_vm1, %v10581_v49, 0.0  ;;  %v899_v24 = vmul.f32 %v10581_v49, %v10581_v49 }
 0x241   :  { %v826_v34 = vadd.f32 %v825_v35, %v824_v56  ;;  %v846_v0 = vadd.f32 %v845_v18, %v844_v62 }
 0x242   :  { %v878_v25 = vsel %vm407_vm1, %v866_v48, 0.0  ;;  %v911_v60 = vsel %vm407_vm1, %v899_v24, 0.0 }
 0x243   :  { %v827_v55 = vrot.slane %v826_v34, 4  ;;  %v879_v47 = vadd.f32 %v878_v25, %v877_v6  ;;  %v847_v33 = vrot.slane %v846_v0, 4  ;;  %v912_v30 = vadd.f32 %v911_v60, %v910_v27 }
 0x245   :  { %v828_v26 = vadd.f32 %v827_v55, %v826_v34  ;;  %v880_v12 = vrot.slane %v879_v47, 4  ;;  %v848_v63 = vadd.f32 %v847_v33, %v846_v0  ;;  %v913_v42 = vrot.slane %v912_v30, 4 }
 0x247   :  { %v829_v41 = vrot.slane %v828_v26, 2  ;;  %v881_v32 = vadd.f32 %v880_v12, %v879_v47  ;;  %v849_v31 = vrot.slane %v848_v63, 2  ;;  %v914_v21 = vadd.f32 %v913_v42, %v912_v30 }
 0x249   :  { %v830_v39 = vadd.f32 %v829_v41, %v828_v26  ;;  %v882_v36 = vrot.slane %v881_v32, 2  ;;  %v850_v19 = vadd.f32 %v849_v31, %v848_v63  ;;  %v915_v1 = vrot.slane %v914_v21, 2 }
 0x24a   :  { %v949_v31 = vlaneseq }
 0x24b   :  { %v831_v56 = vrot.slane %v830_v39, 1  ;;  %v883_v62 = vadd.f32 %v882_v36, %v881_v32  ;;  %v851_v35 = vrot.slane %v850_v19, 1  ;;  %v916_v48 = vadd.f32 %v915_v1, %v914_v21  ;;  %v927_v32 = vld [vmem:[#allocation10] sm:$0x1] }
 0x24c   :  { %v10595_v63 = vshrl.u32 %v949_v31, 7 }
 0x24d   :  { %v832_v18 = vadd.f32 %v831_v56, %v830_v39  ;;  %v884_v24 = vrot.slane %v883_v62, 1  ;;  %v852_v6 = vadd.f32 %v851_v35, %v850_v19  ;;  %v917_v27 = vrot.slane %v916_v48, 1  ;;  %v929_v39 = vld [vmem:[#allocation12] sm:$0x1] }
 0x24e   :  { %11606 = vst [vmem:[#allocation49_spill] sm:$0xff] %v10595_v63  ;;  %v10598_v21 = vsub.s32 0, %v10595_v63 }
 0x24f   :  { %v885_v34 = vadd.f32 %v884_v24, %v883_v62  ;;  %v853_v25 = vadd.f32 %v852_v6, %v832_v18  ;;  %v918_v0 = vadd.f32 %v917_v27, %v916_v48  ;;  %v11607_v27 = vmov 0.0  }
 0x251   :  { %v919_v60 = vadd.f32 %v918_v0, %v885_v34  ;;  %v920_v55 = vmul.f32 0.005, %v853_v25 }
 0x253   :  { %v921_v12 = vmul.f32 0.005, %v919_v60  ;;  %v922_v47 = vmul.f32 %v920_v55, %v920_v55 }
 0x255   :  { %v923_v42 = vsub.f32 %v921_v12, %v922_v47 }
 0x257   :  { %v924_v41 = vmax.f32 %v923_v42, 0.0 }
 0x259   :  { %v925_v33 = vadd.f32 1e-05, %v924_v41 }
 0x25b   :  { %9643 = vrsqrt.f32 %v925_v33 }
 0x268   :  { %v9644_v30 = vpop.eup %9643 }
 0x269   :  { %v928_v26 = vmul.f32 %v9644_v30, %v927_v32 }
 0x26b   :  { %v930_v36 = vmul.f32 %v928_v26, %v920_v55  ;;  %v10601_v19 = vrot.slane %v928_v26, %v10598_v21 }
 0x26d   :  { %v931_v1 = vsub.f32 %v929_v39, %v930_v36  ;;  %v953_v62 = vmul.f32 %v10601_v19, %v10366_v15  ;;  %v1121_v35 = vmul.f32 %v10601_v19, %v10369_v16  ;;  %v954_v24 = vmul.f32 %v10601_v19, %v10360_v13 }
 0x26e   :  { %v1122_v6 = vmul.f32 %v10601_v19, %v10363_v14  ;;  %v955_v34 = vmul.f32 %v10601_v19, %v10376_v22  ;;  %v1123_v13 = vmul.f32 %v10601_v19, %v10379_v23  ;;  %v956_v0 = vmul.f32 %v10601_v19, %v10414_v45 }
 0x26f   :  { %v10604_v56 = vrot.slane %v931_v1, %v10598_v21  ;;  %v1124_v22 = vmul.f32 %v10601_v19, %v10417_v46  ;;  %v957_v55 = vmul.f32 %v10601_v19, %v10430_v4  ;;  %v1125_v45 = vmul.f32 %v10601_v19, %v10433_v5 }
 0x270   :  { %v958_v47 = vmul.f32 %v10601_v19, %v10446_v28  ;;  %v1126_v4 = vmul.f32 %v10601_v19, %v10449_v29  ;;  %v959_v41 = vmul.f32 %v10601_v19, %v10464_v43  ;;  %v1127_v28 = vmul.f32 %v10601_v19, %v10467_v44 }
 0x271   :  { %v972_v48 = vadd.f32 %v10604_v56, %v953_v62  ;;  %v1134_v18 = vadd.f32 %v1121_v35, %v10604_v56  ;;  %v973_v15 = vadd.f32 %v10604_v56, %v954_v24  ;;  %v1135_v16 = vadd.f32 %v1122_v6, %v10604_v56 }
 0x272   :  { %v974_v14 = vadd.f32 %v10604_v56, %v955_v34  ;;  %v1136_v25 = vadd.f32 %v1123_v13, %v10604_v56  ;;  %v975_v23 = vadd.f32 %v10604_v56, %v956_v0  ;;  %v1137_v60 = vadd.f32 %v1124_v22, %v10604_v56 }
 0x273   :  { %9066 = vmatmul.mubr.f32.vlgmr.msra.gmra.mxu0 %v972_v48  ;;  %9137 = vmatmul.mubr.f32.vlgmr.msra.gmra.mxu1 %v1134_v18  ;;  %v976_v46 = vadd.f32 %v10604_v56, %v957_v55  ;;  %v1138_v12 = vadd.f32 %v1125_v45, %v10604_v56  ;;  %v977_v5 = vadd.f32 %v10604_v56, %v958_v47 }
 0x274   :  { %9068 = vmatprep.mubr.msk.f32.mxu0 %vm9941_vm0, %v11607_v27  ;;  %9139 = vmatprep.mubr.msk.f32.mxu1 %vm9941_vm0, %v11607_v27  ;;  %v1139_v42 = vadd.f32 %v1126_v4, %v10604_v56  ;;  %v978_v29 = vadd.f32 %v10604_v56, %v959_v41  ;;  %v1140_v33 = vadd.f32 %v1127_v28, %v10604_v56  ;;  %v10732_v4 = vld [vmem:[#allocation15] ss:$0 sm:$0xff] }
 0x275   :  { %v960_v31 = vmul.f32 %v10601_v19, %v10480_v3  ;;  %v1128_v43 = vmul.f32 %v10601_v19, %v10483_v7  ;;  %v961_v30 = vmul.f32 %v10601_v19, %v10508_v54  ;;  %v1129_v3 = vmul.f32 %v10601_v19, %v10511_v59 }
 0x276   :  { %v962_v39 = vmul.f32 %v10601_v19, %v10516_v37  ;;  %v1130_v54 = vmul.f32 %v10601_v19, %v10519_v38  ;;  %v963_v1 = vmul.f32 %v10601_v19, %v10536_v2  ;;  %v1131_v37 = vmul.f32 %v10601_v19, %v10539_v61 }
 0x277   :  { %9069 = vmatmul.mubr.f32.gmra.mxu0 %v973_v15  ;;  %9140 = vmatmul.mubr.f32.gmra.mxu1 %v1135_v16  ;;  %v979_v44 = vadd.f32 %v10604_v56, %v960_v31  ;;  %v1141_v32 = vadd.f32 %v1128_v43, %v10604_v56  ;;  %v980_v7 = vadd.f32 %v10604_v56, %v961_v30 }
 0x278   :  { %9071 = vmatprep.mubr.msk.f32.mxu0 %vm9941_vm0, %v11607_v27  ;;  %9142 = vmatprep.mubr.msk.f32.mxu1 %vm9941_vm0, %v11607_v27  ;;  %v1142_v26 = vadd.f32 %v1129_v3, %v10604_v56  ;;  %v981_v59 = vadd.f32 %v10604_v56, %v962_v39  ;;  %v1143_v36 = vadd.f32 %v1130_v54, %v10604_v56 }
 0x279   :  { %v982_v38 = vadd.f32 %v10604_v56, %v963_v1  ;;  %v1144_v62 = vadd.f32 %v1131_v37, %v10604_v56  ;;  %v964_v35 = vmul.f32 %v10601_v19, %v10552_v8  ;;  %v1132_v2 = vmul.f32 %v10601_v19, %v10555_v11 }
 0x27a   :  { %v965_v18 = vmul.f32 %v10601_v19, %v10578_v40  ;;  %v1133_v8 = vmul.f32 %v10601_v19, %v10581_v49 }
 0x27b   :  { %9072 = vmatmul.mubr.f32.gmra.mxu0 %v974_v14  ;;  %9143 = vmatmul.mubr.f32.gmra.mxu1 %v1136_v25  ;;  %v983_v61 = vadd.f32 %v10604_v56, %v964_v35  ;;  %v1145_v48 = vadd.f32 %v1132_v2, %v10604_v56 }
 0x27c   :  { %9074 = vmatprep.mubr.msk.f32.mxu0 %vm9941_vm0, %v11607_v27  ;;  %9145 = vmatprep.mubr.msk.f32.mxu1 %vm9941_vm0, %v11607_v27  ;;  %v984_v11 = vadd.f32 %v10604_v56, %v965_v18  ;;  %v1146_v24 = vadd.f32 %v1133_v8, %v10604_v56 }
 0x27f   :  { %9075 = vmatmul.mubr.f32.gmra.mxu0 %v975_v23  ;;  %9146 = vmatmul.mubr.f32.gmra.mxu1 %v1137_v60 }
 0x280   :  { %9077 = vmatprep.mubr.msk.f32.mxu0 %vm9941_vm0, %v11607_v27  ;;  %9148 = vmatprep.mubr.msk.f32.mxu1 %vm9941_vm0, %v11607_v27 }
 0x283   :  { %9078 = vmatmul.mubr.f32.gmra.mxu0 %v976_v46  ;;  %9149 = vmatmul.mubr.f32.gmra.mxu1 %v1138_v12 }
 0x284   :  { %9080 = vmatprep.mubr.msk.f32.mxu0 %vm9941_vm0, %v11607_v27  ;;  %9151 = vmatprep.mubr.msk.f32.mxu1 %vm9941_vm0, %v11607_v27 }
 0x287   :  { %9081 = vmatmul.mubr.f32.gmra.mxu0 %v977_v5  ;;  %9152 = vmatmul.mubr.f32.gmra.mxu1 %v1139_v42 }
 0x288   :  { %9083 = vmatprep.mubr.msk.f32.mxu0 %vm9941_vm0, %v11607_v27  ;;  %9154 = vmatprep.mubr.msk.f32.mxu1 %vm9941_vm0, %v11607_v27 }
 0x28b   :  { %9084 = vmatmul.mubr.f32.gmra.mxu0 %v978_v29  ;;  %9155 = vmatmul.mubr.f32.gmra.mxu1 %v1140_v33 }
 0x28c   :  { %9086 = vmatprep.mubr.msk.f32.mxu0 %vm9941_vm0, %v11607_v27  ;;  %9157 = vmatprep.mubr.msk.f32.mxu1 %vm9941_vm0, %v11607_v27 }
 0x28f   :  { %9087 = vmatmul.mubr.f32.gmra.mxu0 %v979_v44  ;;  %9158 = vmatmul.mubr.f32.gmra.mxu1 %v1141_v32 }
 0x290   :  { %9089 = vmatprep.mubr.msk.f32.mxu0 %vm9941_vm0, %v11607_v27  ;;  %9160 = vmatprep.mubr.msk.f32.mxu1 %vm9941_vm0, %v11607_v27 }
 0x293   :  { %9090 = vmatmul.mubr.f32.gmra.mxu0 %v980_v7  ;;  %9161 = vmatmul.mubr.f32.gmra.mxu1 %v1142_v26 }
 0x294   :  { %9092 = vmatprep.mubr.msk.f32.mxu0 %vm9941_vm0, %v11607_v27  ;;  %9163 = vmatprep.mubr.msk.f32.mxu1 %vm9941_vm0, %v11607_v27 }
 0x297   :  { %9093 = vmatmul.mubr.f32.gmra.mxu0 %v981_v59  ;;  %9164 = vmatmul.mubr.f32.gmra.mxu1 %v1143_v36 }
 0x298   :  { %9095 = vmatprep.mubr.msk.f32.mxu0 %vm9941_vm0, %v11607_v27  ;;  %9166 = vmatprep.mubr.msk.f32.mxu1 %vm9941_vm0, %v11607_v27 }
 0x29b   :  { %9096 = vmatmul.mubr.f32.gmra.mxu0 %v982_v38  ;;  %9167 = vmatmul.mubr.f32.gmra.mxu1 %v1144_v62 }
 0x29c   :  { %9098 = vmatprep.mubr.msk.f32.mxu0 %vm9941_vm0, %v11607_v27  ;;  %9169 = vmatprep.mubr.msk.f32.mxu1 %vm9941_vm0, %v11607_v27 }
 0x29f   :  { %9099 = vmatmul.mubr.f32.gmra.mxu0 %v983_v61  ;;  %9170 = vmatmul.mubr.f32.gmra.mxu1 %v1145_v48 }
 0x2a0   :  { %9101 = vmatprep.mubr.msk.f32.mxu0 %vm9941_vm0, %v11607_v27  ;;  %9172 = vmatprep.mubr.msk.f32.mxu1 %vm9941_vm0, %v11607_v27 }
 0x2a3   :  { %9102 = vmatmul.mubr.f32.gmra.mxu0 %v984_v11  ;;  %9173 = vmatmul.mubr.f32.gmra.mxu1 %v1146_v24 }
 0x333   :  { %v1057_v6 = vpop.f32.mrf.mxu0  ;;  %v1213_v15 = vpop.f32.mrf.mxu1 }
 0x334   :  { %v10741_v31 = vadd.f32 %v10732_v4, %v1057_v6  ;;  %v10744_v43 = vadd.f32 %v10732_v4, %v1213_v15 }
 0x335   :  { %v9067_v16 = vpop.f32.mrf.mxu0  ;;  %v9138_v34 = vpop.f32.mrf.mxu1 }
 0x336   :  { %v1317_v1 = vmul.f32 %v10741_v31, %v10741_v31  ;;  %v1350_v37 = vmul.f32 %v10744_v43, %v10744_v43 }
 0x337   :  { %v1062_v40 = vpop.f32.mrf.mxu0  ;;  %v1218_v13 = vpop.f32.mrf.mxu1 }
 0x338   :  { %v10735_v41 = vadd.f32 %v10732_v4, %v1062_v40  ;;  %v10738_v28 = vadd.f32 %v10732_v4, %v1218_v13 }
 0x339   :  { %v9070_v14 = vpop.f32.mrf.mxu0  ;;  %v9141_v49 = vpop.f32.mrf.mxu1 }
 0x33a   :  { %v1318_v7 = vmul.f32 %v10735_v41, %v10735_v41  ;;  %v1351_v26 = vmul.f32 %v10738_v28, %v10738_v28  ;;  %v1277_v18 = vadd.f32 %v10735_v41, %v10741_v31  ;;  %v1297_v11 = vadd.f32 %v10738_v28, %v10744_v43 }
 0x33b   :  { %v1067_v19 = vpop.f32.mrf.mxu0  ;;  %v1223_v25 = vpop.f32.mrf.mxu1 }
 0x33c   :  { %v10747_v44 = vadd.f32 %v10732_v4, %v1067_v19  ;;  %v10750_v32 = vadd.f32 %v10732_v4, %v1223_v25  ;;  %v1330_v8 = vadd.f32 %v1318_v7, %v1317_v1  ;;  %v1363_v24 = vadd.f32 %v1351_v26, %v1350_v37 }
 0x33d   :  { %v9073_v0 = vpop.f32.mrf.mxu0  ;;  %v9144_v22 = vpop.f32.mrf.mxu1 }
 0x33e   :  { %v1319_v38 = vmul.f32 %v10747_v44, %v10747_v44  ;;  %v1352_v62 = vmul.f32 %v10750_v32, %v10750_v32  ;;  %v1278_v14 = vadd.f32 %v1277_v18, %v10747_v44  ;;  %v1298_v49 = vadd.f32 %v1297_v11, %v10750_v32 }
 0x33f   :  { %v1072_v23 = vpop.f32.mrf.mxu0  ;;  %v1228_v60 = vpop.f32.mrf.mxu1 }
 0x340   :  { %v10757_v39 = vadd.f32 %v10732_v4, %v1072_v23  ;;  %v10760_v54 = vadd.f32 %v10732_v4, %v1228_v60  ;;  %v1331_v19 = vadd.f32 %v1330_v8, %v1319_v38  ;;  %v1364_v25 = vadd.f32 %v1363_v24, %v1352_v62 }
 0x341   :  { %v9076_v55 = vpop.f32.mrf.mxu0  ;;  %v9147_v45 = vpop.f32.mrf.mxu1 }
 0x342   :  { %v1320_v6 = vmul.f32 %v10757_v39, %v10757_v39  ;;  %v1353_v15 = vmul.f32 %v10760_v54, %v10760_v54  ;;  %v1279_v55 = vadd.f32 %v1278_v14, %v10757_v39  ;;  %v1299_v45 = vadd.f32 %v1298_v49, %v10760_v54 }
 0x343   :  { %v1077_v46 = vpop.f32.mrf.mxu0  ;;  %v1233_v56 = vpop.f32.mrf.mxu1 }
 0x344   :  { %v10771_v35 = vadd.f32 %v10732_v4, %v1077_v46  ;;  %v10774_v2 = vadd.f32 %v10732_v4, %v1233_v56 }
 0x345   :  { %v9079_v12 = vpop.f32.mrf.mxu0  ;;  %v9150_v47 = vpop.f32.mrf.mxu1 }
 0x346   :  { %v1321_v0 = vmul.f32 %v10771_v35, %v10771_v35  ;;  %v1354_v22 = vmul.f32 %v10774_v2, %v10774_v2  ;;  %v1332_v12 = vadd.f32 %v1331_v19, %v1320_v6  ;;  %v1365_v47 = vadd.f32 %v1364_v25, %v1353_v15 }
 0x347   :  { %v1082_v5 = vpop.f32.mrf.mxu0  ;;  %v1238_v42 = vpop.f32.mrf.mxu1 }
 0x348   :  { %v10785_v16 = vadd.f32 %v10732_v4, %v1082_v5  ;;  %v10788_v34 = vadd.f32 %v10732_v4, %v1238_v42 }
 0x349   :  { %v9082_v29 = vpop.f32.mrf.mxu0  ;;  %v9153_v33 = vpop.f32.mrf.mxu1 }
 0x34a   :  { %v1322_v5 = vmul.f32 %v10785_v16, %v10785_v16  ;;  %v1355_v42 = vmul.f32 %v10788_v34, %v10788_v34 }
 0x34b   :  { %v1087_v30 = vpop.f32.mrf.mxu0  ;;  %v1243_v3 = vpop.f32.mrf.mxu1 }
 0x34c   :  { %v10799_v46 = vadd.f32 %v10732_v4, %v1087_v30  ;;  %v10802_v56 = vadd.f32 %v10732_v4, %v1243_v3  ;;  %v1280_v30 = vadd.f32 %v1279_v55, %v10771_v35  ;;  %v1333_v3 = vadd.f32 %v1332_v12, %v1321_v0 }
 0x34d   :  { %v9085_v59 = vpop.f32.mrf.mxu0  ;;  %v9156_v36 = vpop.f32.mrf.mxu1 }
 0x34e   :  { %v1300_v59 = vadd.f32 %v1299_v45, %v10774_v2  ;;  %v1366_v36 = vadd.f32 %v1365_v47, %v1354_v22  ;;  %v1323_v38 = vmul.f32 %v10799_v46, %v10799_v46  ;;  %v1356_v62 = vmul.f32 %v10802_v56, %v10802_v56 }
 0x34f   :  { %v1092_v61 = vpop.f32.mrf.mxu0  ;;  %v1248_v48 = vpop.f32.mrf.mxu1  ;;  %v1281_v18 = vadd.f32 %v1280_v30, %v10785_v16  ;;  %v1334_v8 = vadd.f32 %v1333_v3, %v1322_v5 }
 0x350   :  { %v10809_v7 = vadd.f32 %v10732_v4, %v1092_v61  ;;  %v10812_v26 = vadd.f32 %v10732_v4, %v1248_v48  ;;  %v1301_v11 = vadd.f32 %v1300_v59, %v10788_v34  ;;  %v1367_v24 = vadd.f32 %v1366_v36, %v1355_v42 }
 0x351   :  { %v9088_v40 = vpop.f32.mrf.mxu0  ;;  %v9159_v13 = vpop.f32.mrf.mxu1  ;;  %v1282_v19 = vadd.f32 %v1281_v18, %v10799_v46 }
 0x352   :  { %v1324_v40 = vmul.f32 %v10809_v7, %v10809_v7  ;;  %v1357_v13 = vmul.f32 %v10812_v26, %v10812_v26  ;;  %v1302_v25 = vadd.f32 %v1301_v11, %v10802_v56 }
 0x353   :  { %v1097_v23 = vpop.f32.mrf.mxu0  ;;  %v1253_v60 = vpop.f32.mrf.mxu1  ;;  %v1283_v12 = vadd.f32 %v1282_v19, %v10809_v7 }
 0x354   :  { %v10821_v61 = vadd.f32 %v10732_v4, %v1097_v23  ;;  %v10824_v48 = vadd.f32 %v10732_v4, %v1253_v60  ;;  %v1335_v23 = vadd.f32 %v1334_v8, %v1323_v38  ;;  %v1368_v60 = vadd.f32 %v1367_v24, %v1356_v62 }
 0x355   :  { %v9091_v29 = vpop.f32.mrf.mxu0  ;;  %v9162_v33 = vpop.f32.mrf.mxu1  ;;  %v1303_v47 = vadd.f32 %v1302_v25, %v10812_v26 }
 0x356   :  { %v1325_v55 = vmul.f32 %v10821_v61, %v10821_v61  ;;  %v1358_v45 = vmul.f32 %v10824_v48, %v10824_v48  ;;  %v1336_v30 = vadd.f32 %v1335_v23, %v1324_v40  ;;  %v1369_v3 = vadd.f32 %v1368_v60, %v1357_v13 }
 0x357   :  { %v1102_v1 = vpop.f32.mrf.mxu0  ;;  %v1258_v37 = vpop.f32.mrf.mxu1 }
 0x358   :  { %v10833_v14 = vadd.f32 %v10732_v4, %v1102_v1  ;;  %v10836_v49 = vadd.f32 %v10732_v4, %v1258_v37  ;;  %v1284_v1 = vadd.f32 %v1283_v12, %v10821_v61  ;;  %v1304_v37 = vadd.f32 %v1303_v47, %v10824_v48 }
 0x359   :  { %v9094_v6 = vpop.f32.mrf.mxu0  ;;  %v9165_v15 = vpop.f32.mrf.mxu1  ;;  %v1337_v18 = vadd.f32 %v1336_v30, %v1325_v55  ;;  %v1370_v8 = vadd.f32 %v1369_v3, %v1358_v45 }
 0x35a   :  { %v1326_v59 = vmul.f32 %v10833_v14, %v10833_v14  ;;  %v1359_v36 = vmul.f32 %v10836_v49, %v10836_v49  ;;  %v1285_v6 = vadd.f32 %v1284_v1, %v10833_v14  ;;  %v1305_v15 = vadd.f32 %v1304_v37, %v10836_v49 }
 0x35b   :  { %v1107_v0 = vpop.f32.mrf.mxu0  ;;  %v1263_v22 = vpop.f32.mrf.mxu1 }
 0x35c   :  { %v10847_v5 = vadd.f32 %v10732_v4, %v1107_v0  ;;  %v10850_v42 = vadd.f32 %v10732_v4, %v1263_v22  ;;  %v1338_v0 = vadd.f32 %v1337_v18, %v1326_v59  ;;  %v1371_v22 = vadd.f32 %v1370_v8, %v1359_v36 }
 0x35d   :  { %v9097_v29 = vpop.f32.mrf.mxu0  ;;  %v9168_v33 = vpop.f32.mrf.mxu1 }
 0x35e   :  { %v1327_v40 = vmul.f32 %v10847_v5, %v10847_v5  ;;  %v1360_v13 = vmul.f32 %v10850_v42, %v10850_v42  ;;  %v1286_v23 = vadd.f32 %v1285_v6, %v10847_v5  ;;  %v1306_v60 = vadd.f32 %v1305_v15, %v10850_v42 }
 0x35f   :  { %v1112_v38 = vpop.f32.mrf.mxu0  ;;  %v1268_v62 = vpop.f32.mrf.mxu1 }
 0x360   :  { %v10859_v11 = vadd.f32 %v10732_v4, %v1112_v38  ;;  %v10862_v24 = vadd.f32 %v10732_v4, %v1268_v62  ;;  %v1339_v30 = vadd.f32 %v1338_v0, %v1327_v40  ;;  %v1372_v3 = vadd.f32 %v1371_v22, %v1360_v13 }
 0x361   :  { %v9100_v19 = vpop.f32.mrf.mxu0  ;;  %v9171_v25 = vpop.f32.mrf.mxu1 }
 0x362   :  { %v1328_v55 = vmul.f32 %v10859_v11, %v10859_v11  ;;  %v1361_v45 = vmul.f32 %v10862_v24, %v10862_v24  ;;  %v1287_v59 = vadd.f32 %v1286_v23, %v10859_v11  ;;  %v1307_v36 = vadd.f32 %v1306_v60, %v10862_v24 }
 0x363   :  { %v1117_v12 = vpop.f32.mrf.mxu0  ;;  %v1273_v47 = vpop.f32.mrf.mxu1 }
 0x364   :  { %v10877_v29 = vadd.f32 %v10732_v4, %v1117_v12  ;;  %v10880_v33 = vadd.f32 %v10732_v4, %v1273_v47  ;;  %v1340_v8 = vadd.f32 %v1339_v30, %v1328_v55  ;;  %v1373_v6 = vadd.f32 %v1372_v3, %v1361_v45 }
 0x365   :  { %v9103_v1 = vpop.f32.mrf.mxu0  ;;  %v9174_v37 = vpop.f32.mrf.mxu1 }
 0x366   :  { %11608 = vst [vmem:[#allocation50_spill] sm:$0xff] %v10877_v29  ;;  %v1288_v38 = vsel %vm407_vm1, %v10877_v29, 0.0  ;;  %v1329_v62 = vmul.f32 %v10877_v29, %v10877_v29  ;;  %v1308_v18 = vsel %vm407_vm1, %v10880_v33, 0.0  ;;  %v1362_v4 = vmul.f32 %v10880_v33, %v10880_v33 }
 0x367   :  { %v1289_v15 = vadd.f32 %v1288_v38, %v1287_v59  ;;  %v1309_v40 = vadd.f32 %v1308_v18, %v1307_v36 }
 0x368   :  { %v1341_v13 = vsel %vm407_vm1, %v1329_v62, 0.0  ;;  %v1374_v19 = vsel %vm407_vm1, %v1362_v4, 0.0 }
 0x369   :  { %v1290_v25 = vrot.slane %v1289_v15, 4  ;;  %v1342_v0 = vadd.f32 %v1341_v13, %v1340_v8  ;;  %v1310_v22 = vrot.slane %v1309_v40, 4  ;;  %v1375_v23 = vadd.f32 %v1374_v19, %v1373_v6 }
 0x36b   :  { %v1291_v60 = vadd.f32 %v1290_v25, %v1289_v15  ;;  %v1343_v12 = vrot.slane %v1342_v0, 4  ;;  %v1311_v47 = vadd.f32 %v1310_v22, %v1309_v40  ;;  %v1376_v1 = vrot.slane %v1375_v23, 4 }
 0x36d   :  { %v1292_v37 = vrot.slane %v1291_v60, 2  ;;  %v1344_v27 = vadd.f32 %v1343_v12, %v1342_v0  ;;  %v1312_v63 = vrot.slane %v1311_v47, 2  ;;  %v1377_v29 = vadd.f32 %v1376_v1, %v1375_v23  ;;  %v9234_v12 = vld [vmem:[#allocation19 + $0x38] sm:$0xff]   ;;  %v9237_v1 = vld [vmem:[#allocation19 + $0x68] sm:$0xff]  }
 0x36f   :  { %v1293_v55 = vadd.f32 %v1292_v37, %v1291_v60  ;;  %v1345_v45 = vrot.slane %v1344_v27, 2  ;;  %v1313_v30 = vadd.f32 %v1312_v63, %v1311_v47  ;;  %v1378_v3 = vrot.slane %v1377_v29, 2  ;;  %v9233_v60 = vld [vmem:[#allocation19 + $0x78] sm:$0xff]   ;;  %v9238_v37 = vld [vmem:[#allocation19 + $0x28] sm:$0xff]  }
 0x370   :  { %8336 = vmatprep.subr.bf16.mxu0 %v9233_v60  ;;  %v9244_v60 = vld [vmem:[#allocation19 + $0xf0] sm:$0xff]  }
 0x371   :  { %v1294_v59 = vrot.slane %v1293_v55, 1  ;;  %v1346_v36 = vadd.f32 %v1345_v45, %v1344_v27  ;;  %v1314_v38 = vrot.slane %v1313_v30, 1  ;;  %v1379_v62 = vadd.f32 %v1378_v3, %v1377_v29  ;;  %8337 = vmatpush3.bf16.msra.mxu0 %v9234_v12  ;;  %v9235_v27 = vld [vmem:[#allocation19 + $0x70] sm:$0xff]   ;;  %v1392_v3 = vld [vmem:[#allocation18] sm:$0x1] }
 0x372   :  { %8338 = vmatprep.subr.bf16.mxu0 %v9235_v27  ;;  %v9236_v29 = vld [vmem:[#allocation19 + $0x30] sm:$0xff]  }
 0x373   :  { %v1295_v18 = vadd.f32 %v1294_v59, %v1293_v55  ;;  %v1347_v4 = vrot.slane %v1346_v36, 1  ;;  %v1315_v8 = vadd.f32 %v1314_v38, %v1313_v30  ;;  %v1380_v6 = vrot.slane %v1379_v62, 1  ;;  %v1390_v55 = vld [vmem:[#allocation16] sm:$0x1]  ;;  %v9239_v59 = vld [vmem:[#allocation19 + $0x60] sm:$0xff]  }
 0x374   :  { %v9241_v38 = vld [vmem:[#allocation19 + $0xf8] sm:$0xff]  }
 0x375   :  { %v1348_v15 = vadd.f32 %v1347_v4, %v1346_v36  ;;  %v1316_v13 = vadd.f32 %v1315_v8, %v1295_v18  ;;  %v1381_v40 = vadd.f32 %v1380_v6, %v1379_v62  ;;  %8339 = vmatpush3.bf16.msra.mxu0 %v9236_v29  ;;  %v9240_v36 = vld [vmem:[#allocation19 + $0x20] sm:$0xff]   ;;  %v9242_v4 = vld [vmem:[#allocation19 + $0xb8] sm:$0xff]   ;;  %8358 = vmatprep.subr.bf16.mxu1 %v9241_v38 }
 0x376   :  { %8340 = vmatprep.subr.bf16.mxu0 %v9237_v1  ;;  %8359 = vmatpush3.bf16.msra.mxu1 %v9242_v4  ;;  %v11609_v4 = vld [vmem:[#allocation33_spill] sm:$0xff] }
 0x377   :  { %v1382_v19 = vadd.f32 %v1381_v40, %v1348_v15  ;;  %v1383_v25 = vmul.f32 0.005, %v1316_v13  ;;  %8360 = vmatprep.subr.bf16.mxu1 %v9244_v60 }
 0x379   :  { %v1384_v0 = vmul.f32 0.005, %v1382_v19  ;;  %v1385_v22 = vmul.f32 %v1383_v25, %v1383_v25  ;;  %8341 = vmatpush3.bf16.msra.mxu0 %v9238_v37 }
 0x37a   :  { %8342 = vmatprep.subr.bf16.mxu0 %v9239_v59  ;;  %v9248_v59 = vld [vmem:[#allocation19 + $0xa8] sm:$0xff]  }
 0x37b   :  { %v1386_v23 = vsub.f32 %v1384_v0, %v1385_v22 }
 0x37d   :  { %v1387_v63 = vmax.f32 %v1386_v23, 0.0  ;;  %8343 = vmatpush3.bf16.msra.mxu0 %v9240_v36  ;;  %v9243_v23 = vld [vmem:[#allocation19 + $0x58] sm:$0xff]   ;;  %v9249_v36 = vld [vmem:[#allocation19 + $0x50] sm:$0xff]  }
 0x37e   :  { %8344 = vmatprep.subr.bf16.mxu0 %v9243_v23 }
 0x37f   :  { %v1388_v47 = vadd.f32 1e-05, %v1387_v63 }
 0x381   :  { %9645 = vrsqrt.f32 %v1388_v47 }
 0x38e   :  { %v9646_v45 = vpop.eup %9645 }
 0x38f   :  { %v1391_v30 = vmul.f32 %v9646_v45, %v1390_v55 }
 0x391   :  { %v1393_v62 = vmul.f32 %v1391_v30, %v1383_v25  ;;  %v10895_v18 = vrot.slane %v1391_v30, %v10598_v21 }
 0x393   :  { %v1394_v8 = vsub.f32 %v1392_v3, %v1393_v62  ;;  %v1469_v6 = vmul.f32 %v10895_v18, %v10880_v33  ;;  %v1399_v15 = vmul.f32 %v10895_v18, %v10741_v31  ;;  %v1457_v13 = vmul.f32 %v10895_v18, %v10744_v43 }
 0x394   :  { %v1400_v40 = vmul.f32 %v10895_v18, %v10735_v41  ;;  %v1458_v19 = vmul.f32 %v10895_v18, %v10738_v28  ;;  %v1401_v25 = vmul.f32 %v10895_v18, %v10747_v44  ;;  %v1459_v0 = vmul.f32 %v10895_v18, %v10750_v32 }
 0x395   :  { %v10912_v33 = vrot.slane %v1394_v8, %v10598_v21  ;;  %v1402_v31 = vmul.f32 %v10895_v18, %v10757_v39  ;;  %v1460_v43 = vmul.f32 %v10895_v18, %v10760_v54  ;;  %v1403_v41 = vmul.f32 %v10895_v18, %v10771_v35 }
 0x396   :  { %v1461_v28 = vmul.f32 %v10895_v18, %v10774_v2  ;;  %v1404_v44 = vmul.f32 %v10895_v18, %v10785_v16  ;;  %v1462_v32 = vmul.f32 %v10895_v18, %v10788_v34  ;;  %v1405_v21 = vmul.f32 %v10895_v18, %v10799_v46  ;;  %v9245_v2 = vld [vmem:[#allocation19 + $0x18] sm:$0xff]   ;;  %v9246_v46 = vld [vmem:[#allocation19 + $0xb0] sm:$0xff]  }
 0x397   :  { %v1482_v39 = vadd.f32 %v1469_v6, %v10912_v33  ;;  %v1418_v22 = vadd.f32 %v10912_v33, %v1399_v15  ;;  %v1470_v54 = vadd.f32 %v1457_v13, %v10912_v33  ;;  %v1419_v35 = vadd.f32 %v10912_v33, %v1400_v40  ;;  %8345 = vmatpush3.bf16.msra.mxu0 %v9245_v2  ;;  %v11610_v6 = vld [vmem:[#allocation34_spill] sm:$0xff]  ;;  %v11611_v13 = vld [vmem:[#allocation35_spill] sm:$0xff] }
 0x398   :  { %v1471_v12 = vadd.f32 %v1458_v19, %v10912_v33  ;;  %v1420_v16 = vadd.f32 %v10912_v33, %v1401_v25  ;;  %v1472_v34 = vadd.f32 %v1459_v0, %v10912_v33  ;;  %v1421_v63 = vadd.f32 %v10912_v33, %v1402_v31  ;;  %8361 = vmatpush3.bf16.msra.mxu1 %v9246_v46  ;;  %v11612_v19 = vld [vmem:[#allocation36_spill] sm:$0xff] }
 0x399   :  { %v1495_v47 = vadd.f32 %v1482_v39, %v10559_v17  ;;  %v1431_v27 = vadd.f32 %v1418_v22, %v10331_v52  ;;  %v1483_v29 = vadd.f32 %v1470_v54, %v10333_v53  ;;  %v1432_v1 = vadd.f32 %v1419_v35, %v10327_v50  ;;  %8346 = vmatprep.subr.bf16.mxu0 %v9249_v36  ;;  %v9251_v0 = vld [vmem:[#allocation19 + $0xe0] sm:$0xff]  }
 0x39a   :  { %v1484_v37 = vadd.f32 %v1471_v12, %v10329_v51  ;;  %v1433_v55 = vadd.f32 %v1420_v16, %v10337_v57  ;;  %v1485_v45 = vadd.f32 %v1472_v34, %v10339_v58  ;;  %v1434_v30 = vadd.f32 %v1421_v63, %v10355_v9  ;;  %v9247_v51 = vld [vmem:[#allocation19 + $0xe8] sm:$0xff]   ;;  %v11615_v16 = vld [vmem:[#allocation39_spill] sm:$0xff]  ;;  %v11616_v63 = vld [vmem:[#allocation40_spill] sm:$0xff] }
 0x39b   :  { %1509 = vst [vmem:[#allocation2 + $0xc8] sm:$0xf] %v1495_v47  ;;  %1444 = vst [vmem:[#allocation2] sm:$0xff] %v1431_v27  ;;  %v1473_v52 = vadd.f32 %v1460_v43, %v10912_v33  ;;  %v1422_v53 = vadd.f32 %v10912_v33, %v1403_v41  ;;  %v1474_v50 = vadd.f32 %v1461_v28, %v10912_v33  ;;  %8362 = vmatprep.subr.bf16.mxu1 %v9247_v51  ;;  %v11613_v41 = vld [vmem:[#allocation37_spill] sm:$0xff] }
 0x39c   :  { %1497 = vst [vmem:[#allocation2 + $0x68] sm:$0xff] %v1483_v29  ;;  %1445 = vst [vmem:[#allocation2 + $0x8] sm:$0xff] %v1432_v1  ;;  %v1423_v17 = vadd.f32 %v10912_v33, %v1404_v44  ;;  %v1475_v57 = vadd.f32 %v1462_v32, %v10912_v33  ;;  %v1424_v58 = vadd.f32 %v10912_v33, %v1405_v21  ;;  %v11614_v44 = vld [vmem:[#allocation38_spill] sm:$0xff]  ;;  %8363 = vmatpush3.bf16.msra.mxu1 %v9248_v59  ;;  %v9252_v21 = vld [vmem:[#allocation19 + $0xa0] sm:$0xff]  }
 0x39d   :  { %1498 = vst [vmem:[#allocation2 + $0x70] sm:$0xff] %v1484_v37  ;;  %1446 = vst [vmem:[#allocation2 + $0x10] sm:$0xff] %v1433_v55  ;;  %v1463_v9 = vmul.f32 %v10895_v18, %v10802_v56  ;;  %v1406_v3 = vmul.f32 %v10895_v18, %v10809_v7  ;;  %v1486_v38 = vadd.f32 %v1473_v52, %v10357_v10  ;;  %8364 = vmatprep.subr.bf16.mxu1 %v9251_v0  ;;  %v11617_v47 = vld [vmem:[#allocation41_spill] sm:$0xff]  ;;  %v11619_v37 = vld [vmem:[#allocation43_spill] sm:$0xff] }
 0x39e   :  { %1499 = vst [vmem:[#allocation2 + $0x78] sm:$0xff] %v1485_v45  ;;  %1447 = vst [vmem:[#allocation2 + $0x18] sm:$0xff] %v1434_v30  ;;  %v1435_v62 = vadd.f32 %v1422_v53, %v10371_v20  ;;  %v1487_v8 = vadd.f32 %v1474_v50, %v11609_v4  ;;  %v1436_v15 = vadd.f32 %v1423_v17, %v11610_v6  ;;  %v9250_v20 = vld [vmem:[#allocation19 + $0x10] sm:$0xff]   ;;  %v11622_v36 = vld [vmem:[#allocation45_spill] sm:$0xff] }
 0x39f   :  { %v1488_v40 = vadd.f32 %v1475_v57, %v11611_v13  ;;  %v1437_v25 = vadd.f32 %v1424_v58, %v11612_v19  ;;  %v1476_v56 = vadd.f32 %v1463_v9, %v10912_v33  ;;  %v1425_v7 = vadd.f32 %v10912_v33, %v1406_v3  ;;  %1500 = vst [vmem:[#allocation2 + $0x80] sm:$0xff] %v1486_v38  ;;  %v11620_v50 = vld [vmem:[#allocation50_spill] sm:$0xff]  ;;  %v11621_v58 = vld [vmem:[#allocation44_spill] sm:$0xff] }
 0x3a0   :  { %1448 = vst [vmem:[#allocation2 + $0x20] sm:$0xff] %v1435_v62  ;;  %1501 = vst [vmem:[#allocation2 + $0x88] sm:$0xff] %v1487_v8  ;;  %v1464_v10 = vmul.f32 %v10895_v18, %v10812_v26  ;;  %v1407_v31 = vmul.f32 %v10895_v18, %v10821_v61  ;;  %v1465_v43 = vmul.f32 %v10895_v18, %v10824_v48  ;;  %8347 = vmatpush3.bf16.msra.mxu0 %v9250_v20  ;;  %v9256_v20 = vld [vmem:[#allocation19 + $0x8] sm:$0xff]  }
 0x3a1   :  { %1449 = vst [vmem:[#allocation2 + $0x28] sm:$0xff] %v1436_v15  ;;  %1502 = vst [vmem:[#allocation2 + $0x90] sm:$0xff] %v1488_v40  ;;  %v1489_v28 = vadd.f32 %v1476_v56, %v11613_v41  ;;  %v1438_v32 = vadd.f32 %v1425_v7, %v11614_v44  ;;  %v1408_v39 = vmul.f32 %v10895_v18, %v10833_v14  ;;  %8365 = vmatpush3.bf16.msra.mxu1 %v9252_v21  ;;  %v11624_v15 = vld [vmem:[#allocation47_spill] sm:$0xff]  ;;  %v11625_v40 = vld [vmem:[#allocation48_spill] sm:$0xff] }
 0x3a2   :  { %1450 = vst [vmem:[#allocation2 + $0x30] sm:$0xff] %v1437_v25  ;;  %v1466_v26 = vmul.f32 %v10895_v18, %v10836_v49  ;;  %v1477_v22 = vadd.f32 %v1464_v10, %v10912_v33  ;;  %v1426_v61 = vadd.f32 %v10912_v33, %v1407_v31  ;;  %v1478_v48 = vadd.f32 %v1465_v43, %v10912_v33  ;;  %v7724_v54 = vld.sshfl [vmem:[#allocation2 + $0x3] sm:$0x1 pattern:$0x76325410]  ;;  %v9257_v41 = vld [vmem:[#allocation19 + $0xd0] sm:$0xff]  }
 0x3a3   :  { %1503 = vst [vmem:[#allocation2 + $0x98] sm:$0xff] %v1489_v28  ;;  %1451 = vst [vmem:[#allocation2 + $0x38] sm:$0xff] %v1438_v32  ;;  %v1527_v35 = vld [vmem:[#allocation2 + $0x2] sm:$0x1]  ;;  %v1427_v23 = vadd.f32 %v10912_v33, %v1408_v39  ;;  %v1409_v14 = vmul.f32 %v10895_v18, %v10847_v5  ;;  %v1467_v49 = vmul.f32 %v10895_v18, %v10850_v42  ;;  %1538 = vrot.lane.b32.xlu0 %v7724_v54, %s9930_s7  ;;  %v1510_v12 = vld [vmem:[#allocation2] sm:$0x1] }
 0x3a4   :  { %v1479_v60 = vadd.f32 %v1466_v26, %v10912_v33  ;;  %v7723_v2 = vld.sshfl [vmem:[#allocation2 + $0x1] sm:$0x1 pattern:$0x76325410]  ;;  %1528 = vst.msk [vmem:[#allocation3 + $0x2] sm:$0x1] %vm1511_vm3, %v1527_v35  ;;  %v1490_v34 = vadd.f32 %v1477_v22, %v11615_v16  ;;  %v1439_v46 = vadd.f32 %v1426_v61, %v11616_v63  ;;  %v1491_v27 = vadd.f32 %v1478_v48, %v11617_v47 }
 0x3a5   :  { %v1410_v29 = vmul.f32 %v10895_v18, %v10859_v11  ;;  %1522 = vrot.lane.b32.xlu1 %v7723_v2, %s9930_s7  ;;  %1512 = vst.msk [vmem:[#allocation3] sm:$0x1] %vm1511_vm3, %v1510_v12  ;;  %v1557_v5 = vld [vmem:[#allocation2 + $0x6] sm:$0x1]  ;;  %v11618_v42 = vld [vmem:[#allocation42_spill] sm:$0xff]  ;;  %v1428_v45 = vadd.f32 %v10912_v33, %v1409_v14  ;;  %v1480_v11 = vadd.f32 %v1467_v49, %v10912_v33  ;;  %v9259_v39 = vld [vmem:[#allocation19 + $0x40] sm:$0xff]  }
 0x3a6   :  { %v1440_v1 = vadd.f32 %v1427_v23, %v11618_v42  ;;  %v1492_v55 = vadd.f32 %v1479_v60, %v11619_v37  ;;  %1558 = vst.msk [vmem:[#allocation3 + $0x6] sm:$0x1] %vm1511_vm3, %v1557_v5  ;;  %v1542_v30 = vld [vmem:[#allocation2 + $0x4] sm:$0x1]  ;;  %1504 = vst [vmem:[#allocation2 + $0xa0] sm:$0xff] %v1490_v34  ;;  %v1468_v53 = vmul.f32 %v10895_v18, %v10862_v24  ;;  %v11623_v24 = vld [vmem:[#allocation46_spill] sm:$0xff] }
 0x3a7   :  { %1452 = vst [vmem:[#allocation2 + $0x40] sm:$0xff] %v1439_v46  ;;  %1505 = vst [vmem:[#allocation2 + $0xa8] sm:$0xff] %v1491_v27  ;;  %v1429_v52 = vadd.f32 %v10912_v33, %v1410_v29  ;;  %v1411_v17 = vmul.f32 %v10895_v18, %v11620_v50  ;;  %v7726_v51 = vld.sshfl [vmem:[#allocation2 + $0x7] sm:$0x1 pattern:$0x76325410]  ;;  %v1441_v9 = vadd.f32 %v1428_v45, %v11621_v58 }
 0x3a8   :  { %1543 = vst.msk [vmem:[#allocation3 + $0x4] sm:$0x1] %vm1511_vm3, %v1542_v30  ;;  %v2277_v57 = vld [vmem:[#allocation2 + $0x6a] sm:$0x1]  ;;  %1453 = vst [vmem:[#allocation2 + $0x48] sm:$0xff] %v1440_v1  ;;  %1568 = vrot.lane.b32.xlu0 %v7726_v51, %s9930_s7  ;;  %v1493_v38 = vadd.f32 %v1480_v11, %v11622_v36  ;;  %v1481_v18 = vadd.f32 %v1468_v53, %v10912_v33  ;;  %v9253_v56 = vld [vmem:[#allocation19 + $0xd8] sm:$0xff]  }
 0x3a9   :  { %1506 = vst [vmem:[#allocation2 + $0xb0] sm:$0xff] %v1492_v55  ;;  %v7725_v3 = vld.sshfl [vmem:[#allocation2 + $0x5] sm:$0x1 pattern:$0x76325410]  ;;  %v1442_v62 = vadd.f32 %v1429_v52, %v11623_v24  ;;  %v1430_v4 = vadd.f32 %v10912_v33, %v1411_v17  ;;  %1454 = vst [vmem:[#allocation2 + $0x50] sm:$0xff] %v1441_v9  ;;  %8366 = vmatprep.subr.bf16.mxu1 %v9253_v56 }
 0x3aa   :  { %2278 = vst.msk [vmem:[#allocation3 + $0x3] sm:$0x1] %vm1511_vm3, %v2277_v57  ;;  %v2262_v59 = vld [vmem:[#allocation2 + $0x68] sm:$0x1]  ;;  %1553 = vrot.lane.b32.xlu1 %v7725_v3, %s9930_s7  ;;  %v2307_v8 = vld [vmem:[#allocation2 + $0x6e] sm:$0x1]  ;;  %v1494_v13 = vadd.f32 %v1481_v18, %v11624_v15 }
 0x3ab   :  { %2263 = vst.msk [vmem:[#allocation3 + $0x1] sm:$0x1] %vm1511_vm3, %v2262_v59  ;;  %2308 = vst.msk [vmem:[#allocation3 + $0x7] sm:$0x1] %vm1511_vm3, %v2307_v8  ;;  %v2292_v6 = vld [vmem:[#allocation2 + $0x6c] sm:$0x1]  ;;  %v1443_v19 = vadd.f32 %v1430_v4, %v11625_v40 }
 0x3ac   :  { %1507 = vst [vmem:[#allocation2 + $0xb8] sm:$0xff] %v1493_v38  ;;  %1455 = vst [vmem:[#allocation2 + $0x58] sm:$0xff] %v1442_v62  ;;  %v7774_v25 = vld.sshfl [vmem:[#allocation2 + $0x6b] sm:$0x1 pattern:$0x76325410] }
 0x3ad   :  { %2293 = vst.msk [vmem:[#allocation3 + $0x5] sm:$0x1] %vm1511_vm3, %v2292_v6  ;;  %v9254_v33 = vld [vmem:[#allocation19 + $0x48] sm:$0xff]   ;;  %2288 = vrot.lane.b32.xlu0 %v7774_v25, %s9930_s7  ;;  %v9255_v10 = vld [vmem:[#allocation19 + $0x98] sm:$0xff]   ;;  %1508 = vst [vmem:[#allocation2 + $0xc0] sm:$0xff] %v1494_v13 }
 0x3ae   :  { %v7773_v7 = vld.sshfl [vmem:[#allocation2 + $0x69] sm:$0x1 pattern:$0x76325410]  ;;  %1456 = vst [vmem:[#allocation2 + $0x60] sm:$0xf] %v1443_v19  ;;  %8348 = vmatprep.subr.bf16.mxu0 %v9254_v33  ;;  %8367 = vmatpush3.bf16.msra.mxu1 %v9255_v10 }
 0x3af   :  { %2273 = vrot.lane.b32.xlu1 %v7773_v7, %s9930_s7  ;;  %v1587_v0 = vld [vmem:[#allocation2 + $0xa] sm:$0x1]  ;;  %v1572_v31 = vld [vmem:[#allocation2 + $0x8] sm:$0x1]  ;;  %8349 = vmatpush3.bf16.msra.mxu0 %v9256_v20  ;;  %v9258_v28 = vld [vmem:[#allocation19 + $0x90] sm:$0xff]  }
 0x3b0   :  { %1588 = vst.msk [vmem:[#allocation3 + $0xa] sm:$0x1] %vm1511_vm3, %v1587_v0  ;;  %v7776_v43 = vld.sshfl [vmem:[#allocation2 + $0x6f] sm:$0x1 pattern:$0x76325410]  ;;  %8368 = vmatprep.subr.bf16.mxu1 %v9257_v41  ;;  %8350 = vmatprep.subr.bf16.mxu0 %v9259_v39 }
 0x3b1   :  { %1573 = vst.msk [vmem:[#allocation3 + $0x8] sm:$0x1] %vm1511_vm3, %v1572_v31  ;;  %2318 = vrot.lane.b32.xlu0 %v7776_v43, %s9930_s7  ;;  %v7775_v44 = vld.sshfl [vmem:[#allocation2 + $0x6d] sm:$0x1 pattern:$0x76325410] }
 0x3b2   :  { %v1617_v32 = vld [vmem:[#allocation2 + $0xe] sm:$0x1]  ;;  %v1602_v21 = vld [vmem:[#allocation2 + $0xc] sm:$0x1]  ;;  %8369 = vmatpush3.bf16.msra.mxu1 %v9258_v28  ;;  %v9260_v26 = vld [vmem:[#allocation19 + $0xc8] sm:$0xff]  }
 0x3b3   :  { %2303 = vrot.lane.b32.xlu1 %v7775_v44, %s9930_s7  ;;  %1618 = vst.msk [vmem:[#allocation3 + $0xe] sm:$0x1] %vm1511_vm3, %v1617_v32  ;;  %1603 = vst.msk [vmem:[#allocation3 + $0xc] sm:$0x1] %vm1511_vm3, %v1602_v21  ;;  %v9261_v61 = vld [vmem:[#allocation19] sm:$0xff]   ;;  %v9262_v48 = vld [vmem:[#allocation19 + $0x88] sm:$0xff]   ;;  %8370 = vmatprep.subr.bf16.mxu1 %v9260_v26 }
 0x3b4   :  { %v7728_v22 = vld.sshfl [vmem:[#allocation2 + $0xb] sm:$0x1 pattern:$0x76325410]  ;;  %v2337_v35 = vld [vmem:[#allocation2 + $0x72] sm:$0x1]  ;;  %8351 = vmatpush3.bf16.msra.mxu0 %v9261_v61 }
 0x3b5   :  { %1598 = vrot.lane.b32.xlu0 %v7728_v22, %s9930_s7  ;;  %v7727_v54 = vld.sshfl [vmem:[#allocation2 + $0x9] sm:$0x1 pattern:$0x76325410]  ;;  %2338 = vst.msk [vmem:[#allocation3 + $0xb] sm:$0x1] %vm1511_vm3, %v2337_v35 }
 0x3b6   :  { %v2322_v23 = vld [vmem:[#allocation2 + $0x70] sm:$0x1]  ;;  %8371 = vmatpush3.bf16.msra.mxu1 %v9262_v48  ;;  %v7730_v49 = vld.sshfl [vmem:[#allocation2 + $0xf] sm:$0x1 pattern:$0x76325410] }
 0x3b7   :  { %1583 = vrot.lane.b32.xlu1 %v7727_v54, %s9930_s7  ;;  %2323 = vst.msk [vmem:[#allocation3 + $0x9] sm:$0x1] %vm1511_vm3, %v2322_v23  ;;  %v9263_v60 = vld [vmem:[#allocation19 + $0xc0] sm:$0xff]   ;;  %v9265_v2 = vld [vmem:[#allocation19 + $0x178] sm:$0xff]   ;;  %v2367_v16 = vld [vmem:[#allocation2 + $0x76] sm:$0x1] }
 0x3b8   :  { %v9264_v14 = vld [vmem:[#allocation19 + $0x80] sm:$0xff]   ;;  %8372 = vmatprep.subr.bf16.mxu1 %v9263_v60  ;;  %8380 = vmatprep.subr.bf16.mxu0 %v9265_v2  ;;  %2368 = vst.msk [vmem:[#allocation3 + $0xf] sm:$0x1] %vm1511_vm3, %v2367_v16  ;;  %v2352_v34 = vld [vmem:[#allocation2 + $0x74] sm:$0x1]  ;;  %v9267_v63 = vld [vmem:[#allocation19 + $0x1f8] sm:$0xff]  }
 0x3b9   :  { %1628 = vrot.lane.b32.xlu0 %v7730_v49, %s9930_s7  ;;  %v7729_v12 = vld.sshfl [vmem:[#allocation2 + $0xd] sm:$0x1 pattern:$0x76325410]  ;;  %2353 = vst.msk [vmem:[#allocation3 + $0xd] sm:$0x1] %vm1511_vm3, %v2352_v34 }
 0x3ba   :  { %8373 = vmatpush3.bf16.msra.mxu1 %v9264_v14  ;;  %v7778_v46 = vld.sshfl [vmem:[#allocation2 + $0x73] sm:$0x1 pattern:$0x76325410]  ;;  %v1647_v27 = vld [vmem:[#allocation2 + $0x12] sm:$0x1] }
 0x3bb   :  { %1613 = vrot.lane.b32.xlu1 %v7729_v12, %s9930_s7  ;;  %v7777_v47 = vld.sshfl [vmem:[#allocation2 + $0x71] sm:$0x1 pattern:$0x76325410]  ;;  %8402 = vmatprep.subr.bf16.mxu1 %v9267_v63  ;;  %1648 = vst.msk [vmem:[#allocation3 + $0x12] sm:$0x1] %vm1511_vm3, %v1647_v27 }
 0x3bc   :  { %v1632_v29 = vld [vmem:[#allocation2 + $0x10] sm:$0x1]  ;;  %v7780_v5 = vld.sshfl [vmem:[#allocation2 + $0x77] sm:$0x1 pattern:$0x76325410] }
 0x3bd   :  { %2348 = vrot.lane.b32.xlu0 %v7778_v46, %s9930_s7  ;;  %1633 = vst.msk [vmem:[#allocation3 + $0x10] sm:$0x1] %vm1511_vm3, %v1632_v29  ;;  %v7779_v42 = vld.sshfl [vmem:[#allocation2 + $0x75] sm:$0x1 pattern:$0x76325410] }
 0x3be   :  { %v1677_v1 = vld [vmem:[#allocation2 + $0x16] sm:$0x1]  ;;  %v1662_v37 = vld [vmem:[#allocation2 + $0x14] sm:$0x1]  ;;  %v2397_v30 = vld [vmem:[#allocation2 + $0x7a] sm:$0x1] }
 0x3bf   :  { %2333 = vrot.lane.b32.xlu1 %v7777_v47, %s9930_s7  ;;  %1678 = vst.msk [vmem:[#allocation3 + $0x16] sm:$0x1] %vm1511_vm3, %v1677_v1  ;;  %1663 = vst.msk [vmem:[#allocation3 + $0x14] sm:$0x1] %vm1511_vm3, %v1662_v37  ;;  %v2382_v11 = vld [vmem:[#allocation2 + $0x78] sm:$0x1] }
 0x3c0   :  { %v7732_v55 = vld.sshfl [vmem:[#allocation2 + $0x13] sm:$0x1 pattern:$0x76325410]  ;;  %2398 = vst.msk [vmem:[#allocation3 + $0x13] sm:$0x1] %vm1511_vm3, %v2397_v30 }
 0x3c1   :  { %2378 = vrot.lane.b32.xlu0 %v7780_v5, %s9930_s7  ;;  %v7731_v45 = vld.sshfl [vmem:[#allocation2 + $0x11] sm:$0x1 pattern:$0x76325410]  ;;  %2383 = vst.msk [vmem:[#allocation3 + $0x11] sm:$0x1] %vm1511_vm3, %v2382_v11 }
 0x3c2   :  { %v7734_v52 = vld.sshfl [vmem:[#allocation2 + $0x17] sm:$0x1 pattern:$0x76325410]  ;;  %v2427_v50 = vld [vmem:[#allocation2 + $0x7e] sm:$0x1] }
 0x3c3   :  { %2363 = vrot.lane.b32.xlu1 %v7779_v42, %s9930_s7  ;;  %v7733_v53 = vld.sshfl [vmem:[#allocation2 + $0x15] sm:$0x1 pattern:$0x76325410]  ;;  %2428 = vst.msk [vmem:[#allocation3 + $0x17] sm:$0x1] %vm1511_vm3, %v2427_v50 }
 0x3c4   :  { %v2412_v17 = vld [vmem:[#allocation2 + $0x7c] sm:$0x1]  ;;  %v7782_v51 = vld.sshfl [vmem:[#allocation2 + $0x7b] sm:$0x1 pattern:$0x76325410] }
 0x3c5   :  { %1658 = vrot.lane.b32.xlu0 %v7732_v55, %s9930_s7  ;;  %2413 = vst.msk [vmem:[#allocation3 + $0x15] sm:$0x1] %vm1511_vm3, %v2412_v17  ;;  %v7781_v57 = vld.sshfl [vmem:[#allocation2 + $0x79] sm:$0x1 pattern:$0x76325410] }
 0x3c6   :  { %v1707_v58 = vld [vmem:[#allocation2 + $0x1a] sm:$0x1]  ;;  %v1692_v9 = vld [vmem:[#allocation2 + $0x18] sm:$0x1]  ;;  %v1737_v36 = vld [vmem:[#allocation2 + $0x1e] sm:$0x1] }
 0x3c7   :  { %1643 = vrot.lane.b32.xlu1 %v7731_v45, %s9930_s7  ;;  %1708 = vst.msk [vmem:[#allocation3 + $0x1a] sm:$0x1] %vm1511_vm3, %v1707_v58  ;;  %1693 = vst.msk [vmem:[#allocation3 + $0x18] sm:$0x1] %vm1511_vm3, %v1692_v9  ;;  %v1722_v38 = vld [vmem:[#allocation2 + $0x1c] sm:$0x1] }
 0x3c8   :  { %v7784_v3 = vld.sshfl [vmem:[#allocation2 + $0x7f] sm:$0x1 pattern:$0x76325410]  ;;  %1738 = vst.msk [vmem:[#allocation3 + $0x1e] sm:$0x1] %vm1511_vm3, %v1737_v36 }
 0x3c9   :  { %1688 = vrot.lane.b32.xlu0 %v7734_v52, %s9930_s7  ;;  %v7783_v59 = vld.sshfl [vmem:[#allocation2 + $0x7d] sm:$0x1 pattern:$0x76325410]  ;;  %1723 = vst.msk [vmem:[#allocation3 + $0x1c] sm:$0x1] %vm1511_vm3, %v1722_v38 }
 0x3ca   :  { %v7736_v24 = vld.sshfl [vmem:[#allocation2 + $0x1b] sm:$0x1 pattern:$0x76325410]  ;;  %v2457_v18 = vld [vmem:[#allocation2 + $0x82] sm:$0x1] }
 0x3cb   :  { %1673 = vrot.lane.b32.xlu1 %v7733_v53, %s9930_s7  ;;  %v7735_v62 = vld.sshfl [vmem:[#allocation2 + $0x19] sm:$0x1 pattern:$0x76325410]  ;;  %2458 = vst.msk [vmem:[#allocation3 + $0x1b] sm:$0x1] %vm1511_vm3, %v2457_v18 }
 0x3cc   :  { %v2442_v4 = vld [vmem:[#allocation2 + $0x80] sm:$0x1]  ;;  %v7738_v8 = vld.sshfl [vmem:[#allocation2 + $0x1f] sm:$0x1 pattern:$0x76325410] }
 0x3cd   :  { %2408 = vrot.lane.b32.xlu0 %v7782_v51, %s9930_s7  ;;  %2443 = vst.msk [vmem:[#allocation3 + $0x19] sm:$0x1] %vm1511_vm3, %v2442_v4  ;;  %v7737_v6 = vld.sshfl [vmem:[#allocation2 + $0x1d] sm:$0x1 pattern:$0x76325410] }
 0x3ce   :  { %v2487_v15 = vld [vmem:[#allocation2 + $0x86] sm:$0x1]  ;;  %v2472_v13 = vld [vmem:[#allocation2 + $0x84] sm:$0x1]  ;;  %v1767_v25 = vld [vmem:[#allocation2 + $0x22] sm:$0x1] }
 0x3cf   :  { %2393 = vrot.lane.b32.xlu1 %v7781_v57, %s9930_s7  ;;  %2488 = vst.msk [vmem:[#allocation3 + $0x1f] sm:$0x1] %vm1511_vm3, %v2487_v15  ;;  %2473 = vst.msk [vmem:[#allocation3 + $0x1d] sm:$0x1] %vm1511_vm3, %v2472_v13  ;;  %v1752_v56 = vld [vmem:[#allocation2 + $0x20] sm:$0x1] }
 0x3d0   :  { %v7786_v40 = vld.sshfl [vmem:[#allocation2 + $0x83] sm:$0x1 pattern:$0x76325410]  ;;  %1768 = vst.msk [vmem:[#allocation3 + $0x22] sm:$0x1] %vm1511_vm3, %v1767_v25 }
 0x3d1   :  { %2438 = vrot.lane.b32.xlu0 %v7784_v3, %s9930_s7  ;;  %v7785_v19 = vld.sshfl [vmem:[#allocation2 + $0x81] sm:$0x1 pattern:$0x76325410]  ;;  %1753 = vst.msk [vmem:[#allocation3 + $0x20] sm:$0x1] %vm1511_vm3, %v1752_v56 }
 0x3d2   :  { %v7788_v33 = vld.sshfl [vmem:[#allocation2 + $0x87] sm:$0x1 pattern:$0x76325410]  ;;  %v1797_v10 = vld [vmem:[#allocation2 + $0x26] sm:$0x1] }
 0x3d3   :  { %2423 = vrot.lane.b32.xlu1 %v7783_v59, %s9930_s7  ;;  %v7787_v7 = vld.sshfl [vmem:[#allocation2 + $0x85] sm:$0x1 pattern:$0x76325410]  ;;  %1798 = vst.msk [vmem:[#allocation3 + $0x26] sm:$0x1] %vm1511_vm3, %v1797_v10 }
 0x3d4   :  { %v1782_v20 = vld [vmem:[#allocation2 + $0x24] sm:$0x1]  ;;  %v7740_v0 = vld.sshfl [vmem:[#allocation2 + $0x23] sm:$0x1 pattern:$0x76325410] }
 0x3d5   :  { %1718 = vrot.lane.b32.xlu0 %v7736_v24, %s9930_s7  ;;  %1783 = vst.msk [vmem:[#allocation3 + $0x24] sm:$0x1] %vm1511_vm3, %v1782_v20  ;;  %v7739_v31 = vld.sshfl [vmem:[#allocation2 + $0x21] sm:$0x1 pattern:$0x76325410] }
 0x3d6   :  { %v2517_v43 = vld [vmem:[#allocation2 + $0x8a] sm:$0x1]  ;;  %v2502_v41 = vld [vmem:[#allocation2 + $0x88] sm:$0x1]  ;;  %v2547_v32 = vld [vmem:[#allocation2 + $0x8e] sm:$0x1] }
 0x3d7   :  { %1703 = vrot.lane.b32.xlu1 %v7735_v62, %s9930_s7  ;;  %2518 = vst.msk [vmem:[#allocation3 + $0x23] sm:$0x1] %vm1511_vm3, %v2517_v43  ;;  %2503 = vst.msk [vmem:[#allocation3 + $0x21] sm:$0x1] %vm1511_vm3, %v2502_v41  ;;  %v2532_v21 = vld [vmem:[#allocation2 + $0x8c] sm:$0x1] }
 0x3d8   :  { %v7742_v28 = vld.sshfl [vmem:[#allocation2 + $0x27] sm:$0x1 pattern:$0x76325410]  ;;  %2548 = vst.msk [vmem:[#allocation3 + $0x27] sm:$0x1] %vm1511_vm3, %v2547_v32 }
 0x3d9   :  { %1748 = vrot.lane.b32.xlu0 %v7738_v8, %s9930_s7  ;;  %v7741_v44 = vld.sshfl [vmem:[#allocation2 + $0x25] sm:$0x1 pattern:$0x76325410]  ;;  %2533 = vst.msk [vmem:[#allocation3 + $0x25] sm:$0x1] %vm1511_vm3, %v2532_v21 }
 0x3da   :  { %v7790_v39 = vld.sshfl [vmem:[#allocation2 + $0x8b] sm:$0x1 pattern:$0x76325410]  ;;  %v1827_v22 = vld [vmem:[#allocation2 + $0x2a] sm:$0x1] }
 0x3db   :  { %1733 = vrot.lane.b32.xlu1 %v7737_v6, %s9930_s7  ;;  %v7789_v26 = vld.sshfl [vmem:[#allocation2 + $0x89] sm:$0x1 pattern:$0x76325410]  ;;  %1828 = vst.msk [vmem:[#allocation3 + $0x2a] sm:$0x1] %vm1511_vm3, %v1827_v22 }
 0x3dc   :  { %v1812_v61 = vld [vmem:[#allocation2 + $0x28] sm:$0x1]  ;;  %v7792_v48 = vld.sshfl [vmem:[#allocation2 + $0x8f] sm:$0x1 pattern:$0x76325410] }
 0x3dd   :  { %2468 = vrot.lane.b32.xlu0 %v7786_v40, %s9930_s7  ;;  %1813 = vst.msk [vmem:[#allocation3 + $0x28] sm:$0x1] %vm1511_vm3, %v1812_v61  ;;  %v7791_v54 = vld.sshfl [vmem:[#allocation2 + $0x8d] sm:$0x1 pattern:$0x76325410] }
 0x3de   :  { %v1857_v35 = vld [vmem:[#allocation2 + $0x2e] sm:$0x1]  ;;  %v1842_v23 = vld [vmem:[#allocation2 + $0x2c] sm:$0x1]  ;;  %v2577_v49 = vld [vmem:[#allocation2 + $0x92] sm:$0x1] }
 0x3df   :  { %2453 = vrot.lane.b32.xlu1 %v7785_v19, %s9930_s7  ;;  %1858 = vst.msk [vmem:[#allocation3 + $0x2e] sm:$0x1] %vm1511_vm3, %v1857_v35  ;;  %1843 = vst.msk [vmem:[#allocation3 + $0x2c] sm:$0x1] %vm1511_vm3, %v1842_v23  ;;  %v2562_v2 = vld [vmem:[#allocation2 + $0x90] sm:$0x1] }
 0x3e0   :  { %v7744_v60 = vld.sshfl [vmem:[#allocation2 + $0x2b] sm:$0x1 pattern:$0x76325410]  ;;  %2578 = vst.msk [vmem:[#allocation3 + $0x2b] sm:$0x1] %vm1511_vm3, %v2577_v49 }
 0x3e1   :  { %2498 = vrot.lane.b32.xlu0 %v7788_v33, %s9930_s7  ;;  %v7743_v14 = vld.sshfl [vmem:[#allocation2 + $0x29] sm:$0x1 pattern:$0x76325410]  ;;  %2563 = vst.msk [vmem:[#allocation3 + $0x29] sm:$0x1] %vm1511_vm3, %v2562_v2 }
 0x3e2   :  { %v7746_v12 = vld.sshfl [vmem:[#allocation2 + $0x2f] sm:$0x1 pattern:$0x76325410]  ;;  %v2607_v34 = vld [vmem:[#allocation2 + $0x96] sm:$0x1] }
 0x3e3   :  { %2483 = vrot.lane.b32.xlu1 %v7787_v7, %s9930_s7  ;;  %v7745_v16 = vld.sshfl [vmem:[#allocation2 + $0x2d] sm:$0x1 pattern:$0x76325410]  ;;  %2608 = vst.msk [vmem:[#allocation3 + $0x2f] sm:$0x1] %vm1511_vm3, %v2607_v34 }
 0x3e4   :  { %v2592_v63 = vld [vmem:[#allocation2 + $0x94] sm:$0x1]  ;;  %v7794_v46 = vld.sshfl [vmem:[#allocation2 + $0x93] sm:$0x1 pattern:$0x76325410] }
 0x3e5   :  { %1778 = vrot.lane.b32.xlu0 %v7740_v0, %s9930_s7  ;;  %2593 = vst.msk [vmem:[#allocation3 + $0x2d] sm:$0x1] %vm1511_vm3, %v2592_v63  ;;  %v7793_v47 = vld.sshfl [vmem:[#allocation2 + $0x91] sm:$0x1 pattern:$0x76325410] }
 0x3e6   :  { %v1887_v27 = vld [vmem:[#allocation2 + $0x32] sm:$0x1]  ;;  %v1872_v29 = vld [vmem:[#allocation2 + $0x30] sm:$0x1]  ;;  %v1917_v1 = vld [vmem:[#allocation2 + $0x36] sm:$0x1] }
 0x3e7   :  { %1763 = vrot.lane.b32.xlu1 %v7739_v31, %s9930_s7  ;;  %1888 = vst.msk [vmem:[#allocation3 + $0x32] sm:$0x1] %vm1511_vm3, %v1887_v27  ;;  %1873 = vst.msk [vmem:[#allocation3 + $0x30] sm:$0x1] %vm1511_vm3, %v1872_v29  ;;  %v1902_v37 = vld [vmem:[#allocation2 + $0x34] sm:$0x1] }
 0x3e8   :  { %v7796_v5 = vld.sshfl [vmem:[#allocation2 + $0x97] sm:$0x1 pattern:$0x76325410]  ;;  %1918 = vst.msk [vmem:[#allocation3 + $0x36] sm:$0x1] %vm1511_vm3, %v1917_v1 }
 0x3e9   :  { %1808 = vrot.lane.b32.xlu0 %v7742_v28, %s9930_s7  ;;  %v7795_v42 = vld.sshfl [vmem:[#allocation2 + $0x95] sm:$0x1 pattern:$0x76325410]  ;;  %1903 = vst.msk [vmem:[#allocation3 + $0x34] sm:$0x1] %vm1511_vm3, %v1902_v37 }
 0x3ea   :  { %v7748_v55 = vld.sshfl [vmem:[#allocation2 + $0x33] sm:$0x1 pattern:$0x76325410]  ;;  %v2637_v30 = vld [vmem:[#allocation2 + $0x9a] sm:$0x1] }
 0x3eb   :  { %1793 = vrot.lane.b32.xlu1 %v7741_v44, %s9930_s7  ;;  %v7747_v45 = vld.sshfl [vmem:[#allocation2 + $0x31] sm:$0x1 pattern:$0x76325410]  ;;  %2638 = vst.msk [vmem:[#allocation3 + $0x33] sm:$0x1] %vm1511_vm3, %v2637_v30 }
 0x3ec   :  { %v2622_v11 = vld [vmem:[#allocation2 + $0x98] sm:$0x1]  ;;  %v7750_v52 = vld.sshfl [vmem:[#allocation2 + $0x37] sm:$0x1 pattern:$0x76325410] }
 0x3ed   :  { %2528 = vrot.lane.b32.xlu0 %v7790_v39, %s9930_s7  ;;  %2623 = vst.msk [vmem:[#allocation3 + $0x31] sm:$0x1] %vm1511_vm3, %v2622_v11  ;;  %v2667_v53 = vld [vmem:[#allocation2 + $0x9e] sm:$0x1]  ;;  %v2652_v50 = vld [vmem:[#allocation2 + $0x9c] sm:$0x1] }
 0x3ee   :  { %v7749_v17 = vld.sshfl [vmem:[#allocation2 + $0x35] sm:$0x1 pattern:$0x76325410]  ;;  %2668 = vst.msk [vmem:[#allocation3 + $0x37] sm:$0x1] %vm1511_vm3, %v2667_v53 }
 0x3ef   :  { %2513 = vrot.lane.b32.xlu1 %v7789_v26, %s9930_s7  ;;  %2653 = vst.msk [vmem:[#allocation3 + $0x35] sm:$0x1] %vm1511_vm3, %v2652_v50  ;;  %v7798_v51 = vld.sshfl [vmem:[#allocation2 + $0x9b] sm:$0x1 pattern:$0x76325410] }
 0x3f0   :  { %v1947_v57 = vld [vmem:[#allocation2 + $0x3a] sm:$0x1]  ;;  %v1932_v58 = vld [vmem:[#allocation2 + $0x38] sm:$0x1]  ;;  %v1977_v3 = vld [vmem:[#allocation2 + $0x3e] sm:$0x1] }
 0x3f1   :  { %2558 = vrot.lane.b32.xlu0 %v7792_v48, %s9930_s7  ;;  %v7797_v9 = vld.sshfl [vmem:[#allocation2 + $0x99] sm:$0x1 pattern:$0x76325410]  ;;  %1948 = vst.msk [vmem:[#allocation3 + $0x3a] sm:$0x1] %vm1511_vm3, %v1947_v57 }
 0x3f2   :  { %1933 = vst.msk [vmem:[#allocation3 + $0x38] sm:$0x1] %vm1511_vm3, %v1932_v58  ;;  %v1962_v59 = vld [vmem:[#allocation2 + $0x3c] sm:$0x1]  ;;  %1978 = vst.msk [vmem:[#allocation3 + $0x3e] sm:$0x1] %vm1511_vm3, %v1977_v3 }
 0x3f3   :  { %2543 = vrot.lane.b32.xlu1 %v7791_v54, %s9930_s7  ;;  %1963 = vst.msk [vmem:[#allocation3 + $0x3c] sm:$0x1] %vm1511_vm3, %v1962_v59  ;;  %v2697_v36 = vld [vmem:[#allocation2 + $0xa2] sm:$0x1]  ;;  %v2682_v38 = vld [vmem:[#allocation2 + $0xa0] sm:$0x1] }
 0x3f4   :  { %v7800_v24 = vld.sshfl [vmem:[#allocation2 + $0x9f] sm:$0x1 pattern:$0x76325410]  ;;  %2698 = vst.msk [vmem:[#allocation3 + $0x3b] sm:$0x1] %vm1511_vm3, %v2697_v36 }
 0x3f5   :  { %1838 = vrot.lane.b32.xlu0 %v7744_v60, %s9930_s7  ;;  %2683 = vst.msk [vmem:[#allocation3 + $0x39] sm:$0x1] %vm1511_vm3, %v2682_v38  ;;  %v2727_v62 = vld [vmem:[#allocation2 + $0xa6] sm:$0x1]  ;;  %v2712_v4 = vld [vmem:[#allocation2 + $0xa4] sm:$0x1] }
 0x3f6   :  { %v7799_v18 = vld.sshfl [vmem:[#allocation2 + $0x9d] sm:$0x1 pattern:$0x76325410]  ;;  %2728 = vst.msk [vmem:[#allocation3 + $0x3f] sm:$0x1] %vm1511_vm3, %v2727_v62 }
 0x3f7   :  { %1823 = vrot.lane.b32.xlu1 %v7743_v14, %s9930_s7  ;;  %v2007_v8 = vld [vmem:[#allocation2 + $0x42] sm:$0x1]  ;;  %v1992_v6 = vld [vmem:[#allocation2 + $0x40] sm:$0x1]  ;;  %2713 = vst.msk [vmem:[#allocation3 + $0x3d] sm:$0x1] %vm1511_vm3, %v2712_v4 }
 0x3f8   :  { %2008 = vst.msk [vmem:[#allocation3 + $0x42] sm:$0x1] %vm1511_vm3, %v2007_v8  ;;  %1993 = vst.msk [vmem:[#allocation3 + $0x40] sm:$0x1] %vm1511_vm3, %v1992_v6  ;;  %v2037_v15 = vld [vmem:[#allocation2 + $0x46] sm:$0x1] }
 0x3f9   :  { %1868 = vrot.lane.b32.xlu0 %v7746_v12, %s9930_s7  ;;  %v2022_v13 = vld [vmem:[#allocation2 + $0x44] sm:$0x1]  ;;  %2038 = vst.msk [vmem:[#allocation3 + $0x46] sm:$0x1] %vm1511_vm3, %v2037_v15  ;;  %v2757_v40 = vld [vmem:[#allocation2 + $0xaa] sm:$0x1] }
 0x3fa   :  { %2023 = vst.msk [vmem:[#allocation3 + $0x44] sm:$0x1] %vm1511_vm3, %v2022_v13  ;;  %v2742_v19 = vld [vmem:[#allocation2 + $0xa8] sm:$0x1]  ;;  %2758 = vst.msk [vmem:[#allocation3 + $0x43] sm:$0x1] %vm1511_vm3, %v2757_v40 }
 0x3fb   :  { %1853 = vrot.lane.b32.xlu1 %v7745_v16, %s9930_s7  ;;  %v7752_v25 = vld.sshfl [vmem:[#allocation2 + $0x3b] sm:$0x1 pattern:$0x76325410]  ;;  %2743 = vst.msk [vmem:[#allocation3 + $0x41] sm:$0x1] %vm1511_vm3, %v2742_v19 }
 0x3fc   :  { %v2787_v56 = vld [vmem:[#allocation2 + $0xae] sm:$0x1]  ;;  %v2772_v33 = vld [vmem:[#allocation2 + $0xac] sm:$0x1]  ;;  %v2067_v7 = vld [vmem:[#allocation2 + $0x4a] sm:$0x1] }
 0x3fd   :  { %2588 = vrot.lane.b32.xlu0 %v7794_v46, %s9930_s7  ;;  %2788 = vst.msk [vmem:[#allocation3 + $0x47] sm:$0x1] %vm1511_vm3, %v2787_v56  ;;  %v2052_v10 = vld [vmem:[#allocation2 + $0x48] sm:$0x1]  ;;  %2773 = vst.msk [vmem:[#allocation3 + $0x45] sm:$0x1] %vm1511_vm3, %v2772_v33 }
 0x3fe   :  { %2068 = vst.msk [vmem:[#allocation3 + $0x4a] sm:$0x1] %vm1511_vm3, %v2067_v7  ;;  %2053 = vst.msk [vmem:[#allocation3 + $0x48] sm:$0x1] %vm1511_vm3, %v2052_v10  ;;  %v2097_v20 = vld [vmem:[#allocation2 + $0x4e] sm:$0x1] }
 0x3ff   :  { %2573 = vrot.lane.b32.xlu1 %v7793_v47, %s9930_s7  ;;  %v2082_v0 = vld [vmem:[#allocation2 + $0x4c] sm:$0x1]  ;;  %v2817_v31 = vld [vmem:[#allocation2 + $0xb2] sm:$0x1]  ;;  %2098 = vst.msk [vmem:[#allocation3 + $0x4e] sm:$0x1] %vm1511_vm3, %v2097_v20 }
 0x400   :  { %v7751_v43 = vld.sshfl [vmem:[#allocation2 + $0x39] sm:$0x1 pattern:$0x76325410]  ;;  %2083 = vst.msk [vmem:[#allocation3 + $0x4c] sm:$0x1] %vm1511_vm3, %v2082_v0 }
 0x401   :  { %2618 = vrot.lane.b32.xlu0 %v7796_v5, %s9930_s7  ;;  %2818 = vst.msk [vmem:[#allocation3 + $0x4b] sm:$0x1] %vm1511_vm3, %v2817_v31  ;;  %v2802_v41 = vld [vmem:[#allocation2 + $0xb0] sm:$0x1]  ;;  %v2847_v44 = vld [vmem:[#allocation2 + $0xb6] sm:$0x1] }
 0x402   :  { %v7754_v28 = vld.sshfl [vmem:[#allocation2 + $0x3f] sm:$0x1 pattern:$0x76325410]  ;;  %2803 = vst.msk [vmem:[#allocation3 + $0x49] sm:$0x1] %vm1511_vm3, %v2802_v41 }
 0x403   :  { %2603 = vrot.lane.b32.xlu1 %v7795_v42, %s9930_s7  ;;  %v2832_v32 = vld [vmem:[#allocation2 + $0xb4] sm:$0x1]  ;;  %v2127_v21 = vld [vmem:[#allocation2 + $0x52] sm:$0x1]  ;;  %2848 = vst.msk [vmem:[#allocation3 + $0x4f] sm:$0x1] %vm1511_vm3, %v2847_v44 }
 0x404   :  { %v7753_v26 = vld.sshfl [vmem:[#allocation2 + $0x3d] sm:$0x1 pattern:$0x76325410]  ;;  %2833 = vst.msk [vmem:[#allocation3 + $0x4d] sm:$0x1] %vm1511_vm3, %v2832_v32 }
 0x405   :  { %1898 = vrot.lane.b32.xlu0 %v7748_v55, %s9930_s7  ;;  %2128 = vst.msk [vmem:[#allocation3 + $0x52] sm:$0x1] %vm1511_vm3, %v2127_v21  ;;  %v2112_v22 = vld [vmem:[#allocation2 + $0x50] sm:$0x1]  ;;  %v2157_v48 = vld [vmem:[#allocation2 + $0x56] sm:$0x1] }
 0x406   :  { %2113 = vst.msk [vmem:[#allocation3 + $0x50] sm:$0x1] %vm1511_vm3, %v2112_v22  ;;  %v2142_v54 = vld [vmem:[#allocation2 + $0x54] sm:$0x1]  ;;  %2158 = vst.msk [vmem:[#allocation3 + $0x56] sm:$0x1] %vm1511_vm3, %v2157_v48 }
 0x407   :  { %1883 = vrot.lane.b32.xlu1 %v7747_v45, %s9930_s7  ;;  %2143 = vst.msk [vmem:[#allocation3 + $0x54] sm:$0x1] %vm1511_vm3, %v2142_v54  ;;  %v2877_v35 = vld [vmem:[#allocation2 + $0xba] sm:$0x1]  ;;  %v2862_v23 = vld [vmem:[#allocation2 + $0xb8] sm:$0x1] }
 0x408   :  { %v7802_v60 = vld.sshfl [vmem:[#allocation2 + $0xa3] sm:$0x1 pattern:$0x76325410]  ;;  %2878 = vst.msk [vmem:[#allocation3 + $0x53] sm:$0x1] %vm1511_vm3, %v2877_v35 }
 0x409   :  { %1928 = vrot.lane.b32.xlu0 %v7750_v52, %s9930_s7  ;;  %2863 = vst.msk [vmem:[#allocation3 + $0x51] sm:$0x1] %vm1511_vm3, %v2862_v23  ;;  %v2907_v14 = vld [vmem:[#allocation2 + $0xbe] sm:$0x1]  ;;  %v2892_v12 = vld [vmem:[#allocation2 + $0xbc] sm:$0x1] }
 0x40a   :  { %v7801_v2 = vld.sshfl [vmem:[#allocation2 + $0xa1] sm:$0x1 pattern:$0x76325410]  ;;  %2908 = vst.msk [vmem:[#allocation3 + $0x57] sm:$0x1] %vm1511_vm3, %v2907_v14 }
 0x40b   :  { %1913 = vrot.lane.b32.xlu1 %v7749_v17, %s9930_s7  ;;  %v2187_v16 = vld [vmem:[#allocation2 + $0x5a] sm:$0x1]  ;;  %v2172_v34 = vld [vmem:[#allocation2 + $0x58] sm:$0x1]  ;;  %2893 = vst.msk [vmem:[#allocation3 + $0x55] sm:$0x1] %vm1511_vm3, %v2892_v12 }
 0x40c   :  { %2188 = vst.msk [vmem:[#allocation3 + $0x5a] sm:$0x1] %vm1511_vm3, %v2187_v16  ;;  %2173 = vst.msk [vmem:[#allocation3 + $0x58] sm:$0x1] %vm1511_vm3, %v2172_v34  ;;  %v2217_v46 = vld [vmem:[#allocation2 + $0x5e] sm:$0x1] }
 0x40d   :  { %2648 = vrot.lane.b32.xlu0 %v7798_v51, %s9930_s7  ;;  %v2202_v47 = vld [vmem:[#allocation2 + $0x5c] sm:$0x1]  ;;  %2218 = vst.msk [vmem:[#allocation3 + $0x5e] sm:$0x1] %vm1511_vm3, %v2217_v46  ;;  %v2937_v27 = vld [vmem:[#allocation2 + $0xc2] sm:$0x1] }
 0x40e   :  { %2203 = vst.msk [vmem:[#allocation3 + $0x5c] sm:$0x1] %vm1511_vm3, %v2202_v47  ;;  %v2922_v29 = vld [vmem:[#allocation2 + $0xc0] sm:$0x1]  ;;  %2938 = vst.msk [vmem:[#allocation3 + $0x5b] sm:$0x1] %vm1511_vm3, %v2937_v27 }
 0x40f   :  { %2633 = vrot.lane.b32.xlu1 %v7797_v9, %s9930_s7  ;;  %v7804_v5 = vld.sshfl [vmem:[#allocation2 + $0xa7] sm:$0x1 pattern:$0x76325410]  ;;  %2923 = vst.msk [vmem:[#allocation3 + $0x59] sm:$0x1] %vm1511_vm3, %v2922_v29 }
 0x410   :  { %v2967_v42 = vld [vmem:[#allocation2 + $0xc6] sm:$0x1]  ;;  %v2952_v37 = vld [vmem:[#allocation2 + $0xc4] sm:$0x1]  ;;  %v2247_v55 = vld [vmem:[#allocation2 + $0x62] sm:$0x1] }
 0x411   :  { %2678 = vrot.lane.b32.xlu0 %v7800_v24, %s9930_s7  ;;  %2968 = vst.msk [vmem:[#allocation3 + $0x5f] sm:$0x1] %vm1511_vm3, %v2967_v42  ;;  %v2232_v45 = vld [vmem:[#allocation2 + $0x60] sm:$0x1]  ;;  %2953 = vst.msk [vmem:[#allocation3 + $0x5d] sm:$0x1] %vm1511_vm3, %v2952_v37 }
 0x412   :  { %2248 = vst.msk [vmem:[#allocation3 + $0x62] sm:$0x1] %vm1511_vm3, %v2247_v55  ;;  %2233 = vst.msk [vmem:[#allocation3 + $0x60] sm:$0x1] %vm1511_vm3, %v2232_v45  ;;  %v2997_v11 = vld [vmem:[#allocation2 + $0xca] sm:$0x1] }
 0x413   :  { %2663 = vrot.lane.b32.xlu1 %v7799_v18, %s9930_s7  ;;  %v2982_v52 = vld [vmem:[#allocation2 + $0xc8] sm:$0x1]  ;;  %v9942_v53 = vmov 1983009808   ;;  %2998 = vst.msk [vmem:[#allocation3 + $0x63] sm:$0x1] %vm1511_vm3, %v2997_v11 }
 0x414   :  { %v3040_v50 = vunpack.c.l.s4 %v9942_v53  ;;  %v7803_v17 = vld.sshfl [vmem:[#allocation2 + $0xa5] sm:$0x1 pattern:$0x76325410]  ;;  %2983 = vst.msk [vmem:[#allocation3 + $0x61] sm:$0x1] %vm1511_vm3, %v2982_v52 }
 0x415   :  { %1958 = vrot.lane.b32.xlu0 %v7752_v25, %s9930_s7  ;;  %v1539_v39 = vpop.permute.xlu0 %1538  ;;  %v7756_v58 = vld.sshfl [vmem:[#allocation2 + $0x43] sm:$0x1 pattern:$0x76325410]  ;;  %v11626_v24 = vld [vmem:[#allocation49_spill] sm:$0xff]  ;;  %v9269_v32 = vld [vmem:[#allocation19 + $0x170] sm:$0xff]  }
 0x416   :  { %1541 = vst.msk [vmem:[#allocation3 + $0x2] sm:$0x1] %vm1525_vm4, %v1539_v39  ;;  %v3041_v9 = vunpack.c.0.s8 %v3040_v50  ;;  %v7755_v3 = vld.sshfl [vmem:[#allocation2 + $0x41] sm:$0x1 pattern:$0x76325410] }
 0x417   :  { %1943 = vrot.lane.b32.xlu1 %v7751_v43, %s9930_s7  ;;  %v1523_v61 = vpop.permute.xlu1 %1522  ;;  %v7758_v38 = vld.sshfl [vmem:[#allocation2 + $0x47] sm:$0x1 pattern:$0x76325410]  ;;  %v9270_v48 = vld [vmem:[#allocation19 + $0x130] sm:$0xff]   ;;  %v9273_v23 = vld [vmem:[#allocation19 + $0x168] sm:$0xff]  }
 0x418   :  { %1526 = vst.msk [vmem:[#allocation3] sm:$0x1] %vm1525_vm4, %v1523_v61  ;;  %v11180_v62 = vsub.s32 %v3041_v9, %v11626_v24  ;;  %v7757_v18 = vld.sshfl [vmem:[#allocation2 + $0x45] sm:$0x1 pattern:$0x76325410] }
 0x419   :  { %1988 = vrot.lane.b32.xlu0 %v7754_v28, %s9930_s7  ;;  %v7806_v6 = vld.sshfl [vmem:[#allocation2 + $0xab] sm:$0x1 pattern:$0x76325410]  ;;  %v9266_v31 = vld [vmem:[#allocation19 + $0x138] sm:$0xff]   ;;  %v9271_v54 = vld [vmem:[#allocation19 + $0x1f0] sm:$0xff]  }
 0x41a   :  { %v1569_v49 = vpop.permute.xlu0 %1568  ;;  %v7805_v13 = vld.sshfl [vmem:[#allocation2 + $0xa9] sm:$0x1 pattern:$0x76325410]  ;;  %v9274_v12 = vld [vmem:[#allocation19 + $0x128] sm:$0xff]   ;;  %v9278_v42 = vld [vmem:[#allocation19 + $0x120] sm:$0xff]  }
 0x41b   :  { %1973 = vrot.lane.b32.xlu1 %v7753_v26, %s9930_s7  ;;  %1571 = vst.msk [vmem:[#allocation3 + $0x6] sm:$0x1] %vm1525_vm4, %v1569_v49  ;;  %v7808_v10 = vld.sshfl [vmem:[#allocation2 + $0xaf] sm:$0x1 pattern:$0x76325410] }
 0x41c   :  { %v1554_v63 = vpop.permute.xlu1 %1553  ;;  %v7807_v20 = vld.sshfl [vmem:[#allocation2 + $0xad] sm:$0x1 pattern:$0x76325410]  ;;  %v9268_v26 = vld [vmem:[#allocation19 + $0x1b8] sm:$0xff]   ;;  %v9272_v49 = vld [vmem:[#allocation19 + $0x1b0] sm:$0xff]  }
 0x41d   :  { %1556 = vst.msk [vmem:[#allocation3 + $0x4] sm:$0x1] %vm1525_vm4, %v1554_v63  ;;  %2708 = vrot.lane.b32.xlu0 %v7802_v60, %s9930_s7  ;;  %v7760_v39 = vld.sshfl [vmem:[#allocation2 + $0x4b] sm:$0x1 pattern:$0x76325410] }
 0x41e   :  { %v7759_v61 = vld.sshfl [vmem:[#allocation2 + $0x49] sm:$0x1 pattern:$0x76325410]  ;;  %v9275_v16 = vld [vmem:[#allocation19 + $0x1e8] sm:$0xff]   ;;  %v9277_v63 = vld [vmem:[#allocation19 + $0x160] sm:$0xff]  }
 0x41f   :  { %2693 = vrot.lane.b32.xlu1 %v7801_v2, %s9930_s7  ;;  %v2289_v1 = vpop.permute.xlu0 %2288  ;;  %v7762_v14 = vld.sshfl [vmem:[#allocation2 + $0x4f] sm:$0x1 pattern:$0x76325410]  ;;  %v9276_v27 = vld [vmem:[#allocation19 + $0x1a8] sm:$0xff]   ;;  %v9283_v9 = vld [vmem:[#allocation19 + $0x1d8] sm:$0xff]  }
 0x420   :  { %2291 = vst.msk [vmem:[#allocation3 + $0x3] sm:$0x1] %vm1525_vm4, %v2289_v1  ;;  %v7761_v2 = vld.sshfl [vmem:[#allocation2 + $0x4d] sm:$0x1 pattern:$0x76325410] }
 0x421   :  { %v2274_v30 = vpop.permute.xlu1 %2273  ;;  %2738 = vrot.lane.b32.xlu0 %v7804_v5, %s9930_s7  ;;  %v7810_v47 = vld.sshfl [vmem:[#allocation2 + $0xb3] sm:$0x1 pattern:$0x76325410]  ;;  %v9279_v1 = vld [vmem:[#allocation19 + $0x1e0] sm:$0xff]  }
 0x422   :  { %2276 = vst.msk [vmem:[#allocation3 + $0x1] sm:$0x1] %vm1525_vm4, %v2274_v30  ;;  %v7809_v5 = vld.sshfl [vmem:[#allocation2 + $0xb1] sm:$0x1 pattern:$0x76325410] }
 0x423   :  { %2723 = vrot.lane.b32.xlu1 %v7803_v17, %s9930_s7  ;;  %v2319_v51 = vpop.permute.xlu0 %2318  ;;  %v9281_v30 = vld [vmem:[#allocation19 + $0x158] sm:$0xff]   ;;  %v7812_v50 = vld.sshfl [vmem:[#allocation2 + $0xb7] sm:$0x1 pattern:$0x76325410]  ;;  %v9280_v17 = vld [vmem:[#allocation19 + $0x1a0] sm:$0xff]  }
 0x424   :  { %2321 = vst.msk [vmem:[#allocation3 + $0x7] sm:$0x1] %vm1525_vm4, %v2319_v51  ;;  %v7811_v51 = vld.sshfl [vmem:[#allocation2 + $0xb5] sm:$0x1 pattern:$0x76325410] }
 0x425   :  { %v2304_v57 = vpop.permute.xlu1 %2303  ;;  %2018 = vrot.lane.b32.xlu0 %v7756_v58, %s9930_s7  ;;  %v9282_v58 = vld [vmem:[#allocation19 + $0x118] sm:$0xff]  }
 0x426   :  { %2306 = vst.msk [vmem:[#allocation3 + $0x5] sm:$0x1] %vm1525_vm4, %v2304_v57 }
 0x427   :  { %2003 = vrot.lane.b32.xlu1 %v7755_v3, %s9930_s7  ;;  %v1599_v59 = vpop.permute.xlu0 %1598 }
 0x428   :  { %1601 = vst.msk [vmem:[#allocation3 + $0xa] sm:$0x1] %vm1525_vm4, %v1599_v59 }
 0x429   :  { %v1584_v36 = vpop.permute.xlu1 %1583  ;;  %2048 = vrot.lane.b32.xlu0 %v7758_v38, %s9930_s7  ;;  %v9285_v38 = vld [vmem:[#allocation19 + $0x150] sm:$0xff]  }
 0x42a   :  { %1586 = vst.msk [vmem:[#allocation3 + $0x8] sm:$0x1] %vm1525_vm4, %v1584_v36 }
 0x42b   :  { %2033 = vrot.lane.b32.xlu1 %v7757_v18, %s9930_s7  ;;  %v1629_v4 = vpop.permute.xlu0 %1628  ;;  %v9284_v18 = vld [vmem:[#allocation19 + $0x198] sm:$0xff]  }
 0x42c   :  { %1631 = vst.msk [vmem:[#allocation3 + $0xe] sm:$0x1] %vm1525_vm4, %v1629_v4  ;;  %v7764_v4 = vld.sshfl [vmem:[#allocation2 + $0x53] sm:$0x1 pattern:$0x76325410] }
 0x42d   :  { %v1614_v8 = vpop.permute.xlu1 %1613  ;;  %v3012_v15 = vld [vmem:[#allocation3] sm:$0xff]  ;;  %2768 = vrot.lane.b32.xlu0 %v7806_v6, %s9930_s7  ;;  %v9287_v6 = vld [vmem:[#allocation19 + $0x1d0] sm:$0xff]  }
 0x42e   :  { %1616 = vst.msk [vmem:[#allocation3 + $0xc] sm:$0x1] %vm1525_vm4, %v1614_v8  ;;  %v3045_v40 = vrot.slane %v3012_v15, %v11180_v62  ;;  %v3038_v19 = vcombine.high %v3012_v15, %v3012_v15  ;;  %v9286_v8 = vld [vmem:[#allocation19 + $0x110] sm:$0xff]  }
 0x42f   :  { %2753 = vrot.lane.b32.xlu1 %v7805_v13, %s9930_s7  ;;  %v2349_v25 = vpop.permute.xlu0 %2348  ;;  %v7763_v15 = vld.sshfl [vmem:[#allocation2 + $0x51] sm:$0x1 pattern:$0x76325410]  ;;  %v9289_v13 = vld [vmem:[#allocation19 + $0x148] sm:$0xff]  }
 0x430   :  { %v3053_v56 = vcombine.high %v3045_v40, %v3045_v40  ;;  %v3052_v33 = vrot.slane %v3038_v19, %v11180_v62  ;;  %2351 = vst.msk [vmem:[#allocation3 + $0xb] sm:$0x1] %vm1525_vm4, %v2349_v25  ;;  %v3300_v41 = vpack.c.bf16 %v3045_v40, %v3045_v40  ;;  %v9288_v25 = vld [vmem:[#allocation19 + $0x190] sm:$0xff]  }
 0x431   :  { %v2334_v7 = vpop.permute.xlu1 %2333  ;;  %2798 = vrot.lane.b32.xlu0 %v7808_v10, %s9930_s7  ;;  %v7765_v10 = vld.sshfl [vmem:[#allocation2 + $0x55] sm:$0x1 pattern:$0x76325410] }
 0x432   :  { %2336 = vst.msk [vmem:[#allocation3 + $0x9] sm:$0x1] %vm1525_vm4, %v2334_v7  ;;  %v3301_v0 = vpack.c.bf16 %v3053_v56, %v3053_v56  ;;  %v3054_v43 = vcombine.high %v3052_v33, %v3052_v33  ;;  %v3302_v22 = vpack.c.bf16 %v3052_v33, %v3052_v33  ;;  %v7766_v56 = vld.sshfl [vmem:[#allocation2 + $0x57] sm:$0x1 pattern:$0x76325410] }
 0x433   :  { %2783 = vrot.lane.b32.xlu1 %v7807_v20, %s9930_s7  ;;  %v2379_v28 = vpop.permute.xlu0 %2378  ;;  %v9290_v33 = vld [vmem:[#allocation19 + $0x108] sm:$0xff]   ;;  %v9293_v20 = vld [vmem:[#allocation19 + $0x140] sm:$0xff]  }
 0x434   :  { %6589 = vmatprep.mubr.bf16.mxu0 %v3301_v0  ;;  %v3303_v44 = vpack.c.bf16 %v3054_v43, %v3054_v43  ;;  %2381 = vst.msk [vmem:[#allocation3 + $0xf] sm:$0x1] %vm1525_vm4, %v2379_v28  ;;  %v9291_v7 = vld [vmem:[#allocation19 + $0x1c8] sm:$0xff]  }
 0x435   :  { %v2364_v21 = vpop.permute.xlu1 %2363  ;;  %6590 = vmatmul.mubr.bf16.vlgmr.msra.gmra.mxu0 %v3300_v41  ;;  %2078 = vrot.lane.b32.xlu0 %v7760_v39, %s9930_s7  ;;  %v9292_v43 = vld [vmem:[#allocation19 + $0x188] sm:$0xff]   ;;  %v7814_v28 = vld.sshfl [vmem:[#allocation2 + $0xbb] sm:$0x1 pattern:$0x76325410] }
 0x436   :  { %2366 = vst.msk [vmem:[#allocation3 + $0xd] sm:$0x1] %vm1525_vm4, %v2364_v21  ;;  %8381 = vmatpush3.bf16.msra.mxu0 %v9266_v31  ;;  %6629 = vmatprep.mubr.bf16.mxu1 %v3303_v44  ;;  %v9294_v44 = vld [vmem:[#allocation19 + $0x100] sm:$0xff]  }
 0x437   :  { %2063 = vrot.lane.b32.xlu1 %v7759_v61, %s9930_s7  ;;  %6630 = vmatmul.mubr.bf16.vlgmr.msra.gmra.mxu1 %v3302_v22  ;;  %v1659_v35 = vpop.permute.xlu0 %1658  ;;  %v9297_v22 = vld [vmem:[#allocation19 + $0x278] sm:$0xff]  }
 0x438   :  { %8382 = vmatprep.subr.bf16.mxu0 %v9269_v32  ;;  %8403 = vmatpush3.bf16.msra.mxu1 %v9268_v26  ;;  %1661 = vst.msk [vmem:[#allocation3 + $0x12] sm:$0x1] %vm1525_vm4, %v1659_v35  ;;  %v9295_v32 = vld [vmem:[#allocation19 + $0x1c0] sm:$0xff]  }
 0x439   :  { %v1644_v60 = vpop.permute.xlu1 %1643  ;;  %8404 = vmatprep.subr.bf16.mxu1 %v9271_v54  ;;  %2108 = vrot.lane.b32.xlu0 %v7762_v14, %s9930_s7  ;;  %v7813_v26 = vld.sshfl [vmem:[#allocation2 + $0xb9] sm:$0x1 pattern:$0x76325410]  ;;  %v9298_v14 = vld [vmem:[#allocation19 + $0x238] sm:$0xff]  }
 0x43a   :  { %1646 = vst.msk [vmem:[#allocation3 + $0x10] sm:$0x1] %vm1525_vm4, %v1644_v60  ;;  %8383 = vmatpush3.bf16.msra.mxu0 %v9270_v48  ;;  %v7816_v60 = vld.sshfl [vmem:[#allocation2 + $0xbf] sm:$0x1 pattern:$0x76325410] }
 0x43b   :  { %2093 = vrot.lane.b32.xlu1 %v7761_v2, %s9930_s7  ;;  %8384 = vmatprep.subr.bf16.mxu0 %v9273_v23  ;;  %v1689_v34 = vpop.permute.xlu0 %1688  ;;  %v9296_v23 = vld [vmem:[#allocation19 + $0x180] sm:$0xff]  }
 0x43c   :  { %8405 = vmatpush3.bf16.msra.mxu1 %v9272_v49  ;;  %1691 = vst.msk [vmem:[#allocation3 + $0x16] sm:$0x1] %vm1525_vm4, %v1689_v34  ;;  %v9299_v34 = vld [vmem:[#allocation19 + $0x2f8] sm:$0xff]  }
 0x43d   :  { %v1674_v46 = vpop.permute.xlu1 %1673  ;;  %v3013_v29 = vld [vmem:[#allocation3 + $0x8] sm:$0xff]  ;;  %8406 = vmatprep.subr.bf16.mxu1 %v9275_v16  ;;  %2828 = vrot.lane.b32.xlu0 %v7810_v47, %s9930_s7  ;;  %v9300_v47 = vld [vmem:[#allocation19 + $0x2b8] sm:$0xff]  }
 0x43e   :  { %1676 = vst.msk [vmem:[#allocation3 + $0x14] sm:$0x1] %vm1525_vm4, %v1674_v46  ;;  %8385 = vmatpush3.bf16.msra.mxu0 %v9274_v12  ;;  %v11206_v37 = vrot.slane %v3013_v29, %v11180_v62  ;;  %v3055_v55 = vcombine.high %v3013_v29, %v3013_v29  ;;  %v7815_v12 = vld.sshfl [vmem:[#allocation2 + $0xbd] sm:$0x1 pattern:$0x76325410] }
 0x43f   :  { %2813 = vrot.lane.b32.xlu1 %v7809_v5, %s9930_s7  ;;  %8386 = vmatprep.subr.bf16.mxu0 %v9277_v63  ;;  %v2409_v45 = vpop.permute.xlu0 %2408  ;;  %v7768_v5 = vld.sshfl [vmem:[#allocation2 + $0x5b] sm:$0x1 pattern:$0x76325410] }
 0x440   :  { %v3070_v11 = vcombine.high %v11206_v37, %v11206_v37  ;;  %v11213_v52 = vrot.slane %v3055_v55, %v11180_v62  ;;  %8407 = vmatpush3.bf16.msra.mxu1 %v9276_v27  ;;  %2411 = vst.msk [vmem:[#allocation3 + $0x13] sm:$0x1] %vm1525_vm4, %v2409_v45  ;;  %v3304_v16 = vpack.c.bf16 %v11206_v37, %v11206_v37  ;;  %v7767_v37 = vld.sshfl [vmem:[#allocation2 + $0x59] sm:$0x1 pattern:$0x76325410] }
 0x441   :  { %v2394_v53 = vpop.permute.xlu1 %2393  ;;  %8408 = vmatprep.subr.bf16.mxu1 %v9279_v1  ;;  %2858 = vrot.lane.b32.xlu0 %v7812_v50, %s9930_s7  ;;  %v9304_v1 = vld [vmem:[#allocation19 + $0x2f0] sm:$0xff]   ;;  %v9308_v50 = vld [vmem:[#allocation19 + $0x2e8] sm:$0xff]  }
 0x442   :  { %2396 = vst.msk [vmem:[#allocation3 + $0x11] sm:$0x1] %vm1525_vm4, %v2394_v53  ;;  %8387 = vmatpush3.bf16.msra.mxu0 %v9278_v42  ;;  %v3305_v57 = vpack.c.bf16 %v3070_v11, %v3070_v11  ;;  %v3071_v3 = vcombine.high %v11213_v52, %v11213_v52  ;;  %v3306_v29 = vpack.c.bf16 %v11213_v52, %v11213_v52  ;;  %v9302_v42 = vld [vmem:[#allocation19 + $0x270] sm:$0xff]  }
 0x443   :  { %2843 = vrot.lane.b32.xlu1 %v7811_v51, %s9930_s7  ;;  %8388 = vmatprep.subr.bf16.mxu0 %v9281_v30  ;;  %v2439_v59 = vpop.permute.xlu0 %2438  ;;  %v9303_v55 = vld [vmem:[#allocation19 + $0x230] sm:$0xff]   ;;  %v9306_v30 = vld [vmem:[#allocation19 + $0x268] sm:$0xff]  }
 0x444   :  { %6669 = vmatprep.mubr.bf16.mxu0 %v3305_v57  ;;  %v3307_v36 = vpack.c.bf16 %v3071_v3, %v3071_v3  ;;  %8409 = vmatpush3.bf16.msra.mxu1 %v9280_v17  ;;  %2441 = vst.msk [vmem:[#allocation3 + $0x17] sm:$0x1] %vm1525_vm4, %v2439_v59  ;;  %v9305_v53 = vld [vmem:[#allocation19 + $0x2b0] sm:$0xff]   ;;  %v9307_v51 = vld [vmem:[#allocation19 + $0x228] sm:$0xff]  }
 0x445   :  { %v2424_v24 = vpop.permute.xlu1 %2423  ;;  %8410 = vmatprep.subr.bf16.mxu1 %v9283_v9  ;;  %2138 = vrot.lane.b32.xlu0 %v7764_v4, %s9930_s7  ;;  %v7770_v52 = vld.sshfl [vmem:[#allocation2 + $0x5f] sm:$0x1 pattern:$0x76325410]  ;;  %v9309_v3 = vld [vmem:[#allocation19 + $0x2a8] sm:$0xff]   ;;  %v9314_v4 = vld [vmem:[#allocation19 + $0x258] sm:$0xff]  }
 0x446   :  { %2426 = vst.msk [vmem:[#allocation3 + $0x15] sm:$0x1] %vm1525_vm4, %v2424_v24  ;;  %8389 = vmatpush3.bf16.msra.mxu0 %v9282_v58  ;;  %6709 = vmatprep.mubr.bf16.mxu1 %v3307_v36  ;;  %v7769_v17 = vld.sshfl [vmem:[#allocation2 + $0x5d] sm:$0x1 pattern:$0x76325410] }
 0x447   :  { %2123 = vrot.lane.b32.xlu1 %v7763_v15, %s9930_s7  ;;  %8390 = vmatprep.subr.bf16.mxu0 %v9285_v38  ;;  %v1719_v40 = vpop.permute.xlu0 %1718  ;;  %v9310_v58 = vld [vmem:[#allocation19 + $0x260] sm:$0xff]   ;;  %v7818_v59 = vld.sshfl [vmem:[#allocation2 + $0xc3] sm:$0x1 pattern:$0x76325410] }
 0x448   :  { %8411 = vmatpush3.bf16.msra.mxu1 %v9284_v18  ;;  %1721 = vst.msk [vmem:[#allocation3 + $0x1a] sm:$0x1] %vm1525_vm4, %v1719_v40  ;;  %v9312_v36 = vld [vmem:[#allocation19 + $0x2e0] sm:$0xff]  }
 0x449   :  { %v1704_v19 = vpop.permute.xlu1 %1703  ;;  %8412 = vmatprep.subr.bf16.mxu1 %v9287_v6  ;;  %2168 = vrot.lane.b32.xlu0 %v7766_v56, %s9930_s7  ;;  %v7817_v38 = vld.sshfl [vmem:[#allocation2 + $0xc1] sm:$0x1 pattern:$0x76325410]  ;;  %v9311_v24 = vld [vmem:[#allocation19 + $0x220] sm:$0xff]  }
 0x44a   :  { %1706 = vst.msk [vmem:[#allocation3 + $0x18] sm:$0x1] %vm1525_vm4, %v1704_v19  ;;  %8391 = vmatpush3.bf16.msra.mxu0 %v9286_v8  ;;  %v9313_v6 = vld [vmem:[#allocation19 + $0x2a0] sm:$0xff]   ;;  %v9315_v19 = vld [vmem:[#allocation19 + $0x218] sm:$0xff]   ;;  %v9318_v56 = vld [vmem:[#allocation19 + $0x250] sm:$0xff]  }
 0x44b   :  { %8392 = vmatprep.subr.bf16.mxu0 %v9289_v13  ;;  %2153 = vrot.lane.b32.xlu1 %v7765_v10, %s9930_s7  ;;  %v1749_v0 = vpop.permute.xlu0 %1748  ;;  %v7820_v15 = vld.sshfl [vmem:[#allocation2 + $0xc7] sm:$0x1 pattern:$0x76325410] }
 0x44c   :  { %8413 = vmatpush3.bf16.msra.mxu1 %v9288_v25  ;;  %1751 = vst.msk [vmem:[#allocation3 + $0x1e] sm:$0x1] %vm1525_vm4, %v1749_v0  ;;  %v9316_v13 = vld [vmem:[#allocation19 + $0x2d8] sm:$0xff]  }
 0x44d   :  { %v1734_v31 = vpop.permute.xlu1 %1733  ;;  %v3014_v41 = vld [vmem:[#allocation3 + $0x10] sm:$0xff]  ;;  %8414 = vmatprep.subr.bf16.mxu1 %v9291_v7  ;;  %2888 = vrot.lane.b32.xlu0 %v7814_v28, %s9930_s7 }
 0x44e   :  { %1736 = vst.msk [vmem:[#allocation3 + $0x1c] sm:$0x1] %vm1525_vm4, %v1734_v31  ;;  %8393 = vmatpush3.bf16.msra.mxu0 %v9290_v33  ;;  %v11232_v21 = vrot.slane %v3014_v41, %v11180_v62  ;;  %v3072_v39 = vcombine.high %v3014_v41, %v3014_v41  ;;  %v7819_v40 = vld.sshfl [vmem:[#allocation2 + $0xc5] sm:$0x1 pattern:$0x76325410] }
 0x44f   :  { %8394 = vmatprep.subr.bf16.mxu0 %v9293_v20  ;;  %2873 = vrot.lane.b32.xlu1 %v7813_v26, %s9930_s7  ;;  %v2469_v61 = vpop.permute.xlu0 %2468  ;;  %v9317_v7 = vld [vmem:[#allocation19 + $0x298] sm:$0xff]   ;;  %v9320_v20 = vld [vmem:[#allocation19 + $0x2d0] sm:$0xff]   ;;  %v9322_v41 = vld [vmem:[#allocation19 + $0x248] sm:$0xff]  }
 0x450   :  { %v3087_v48 = vcombine.high %v11232_v21, %v11232_v21  ;;  %v11239_v54 = vrot.slane %v3072_v39, %v11180_v62  ;;  %8415 = vmatpush3.bf16.msra.mxu1 %v9292_v43  ;;  %2471 = vst.msk [vmem:[#allocation3 + $0x1b] sm:$0x1] %vm1525_vm4, %v2469_v61  ;;  %v7772_v10 = vld.sshfl [vmem:[#allocation2 + $0x63] sm:$0x1 pattern:$0x76325410] }
 0x451   :  { %v2454_v35 = vpop.permute.xlu1 %2453  ;;  %8416 = vmatprep.subr.bf16.mxu1 %v9295_v32  ;;  %2918 = vrot.lane.b32.xlu0 %v7816_v60, %s9930_s7  ;;  %v7771_v0 = vld.sshfl [vmem:[#allocation2 + $0x61] sm:$0x1 pattern:$0x76325410]  ;;  %v9324_v26 = vld [vmem:[#allocation19 + $0x2c8] sm:$0xff]  }
 0x452   :  { %2456 = vst.msk [vmem:[#allocation3 + $0x19] sm:$0x1] %vm1525_vm4, %v2454_v35  ;;  %8395 = vmatpush3.bf16.msra.mxu0 %v9294_v44  ;;  %v3309_v49 = vpack.c.bf16 %v3087_v48, %v3087_v48  ;;  %v3088_v2 = vcombine.high %v11239_v54, %v11239_v54  ;;  %v9319_v31 = vld [vmem:[#allocation19 + $0x210] sm:$0xff]   ;;  %v9323_v61 = vld [vmem:[#allocation19 + $0x208] sm:$0xff]  }
 0x453   :  { %8424 = vmatprep.subr.bf16.mxu0 %v9297_v22  ;;  %2903 = vrot.lane.b32.xlu1 %v7815_v12, %s9930_s7  ;;  %v2499_v63 = vpop.permute.xlu0 %2498  ;;  %v9321_v32 = vld [vmem:[#allocation19 + $0x290] sm:$0xff]   ;;  %v7822_v39 = vld.sshfl [vmem:[#allocation2 + $0xcb] sm:$0x1 pattern:$0x76325410] }
 0x454   :  { %8417 = vmatpush3.bf16.msra.mxu1 %v9296_v23  ;;  %2501 = vst.msk [vmem:[#allocation3 + $0x1f] sm:$0x1] %vm1525_vm4, %v2499_v63  ;;  %v3311_v27 = vpack.c.bf16 %v3088_v2, %v3088_v2  ;;  %v7821_v22 = vld.sshfl [vmem:[#allocation2 + $0xc9] sm:$0x1 pattern:$0x76325410] }
 0x455   :  { %6670 = vmatmul.mubr.bf16.vlgmr.msra.gmra.mxu0 %v3304_v16  ;;  %v2484_v46 = vpop.permute.xlu1 %2483  ;;  %8446 = vmatprep.subr.bf16.mxu1 %v9299_v34  ;;  %v9326_v23 = vld [vmem:[#allocation19 + $0x240] sm:$0xff]   ;;  %v9330_v63 = vld [vmem:[#allocation19 + $0x378] sm:$0xff]  }
 0x456   :  { %2486 = vst.msk [vmem:[#allocation3 + $0x1d] sm:$0x1] %vm1525_vm4, %v2484_v46  ;;  %8425 = vmatpush3.bf16.msra.mxu0 %v9298_v14  ;;  %6749 = vmatprep.mubr.bf16.mxu0 %v3309_v49  ;;  %v9325_v14 = vld [vmem:[#allocation19 + $0x288] sm:$0xff]   ;;  %v9328_v2 = vld [vmem:[#allocation19 + $0x2c0] sm:$0xff]  }
 0x457   :  { %2198 = vrot.lane.b32.xlu0 %v7768_v5, %s9930_s7  ;;  %6710 = vmatmul.mubr.bf16.vlgmr.msra.gmra.mxu1 %v3306_v29  ;;  %v1779_v45 = vpop.permute.xlu0 %1778  ;;  %v9327_v12 = vld [vmem:[#allocation19 + $0x200] sm:$0xff]   ;;  %v9332_v29 = vld [vmem:[#allocation19 + $0x3f8] sm:$0xff]  }
 0x458   :  { %2183 = vrot.lane.b32.xlu1 %v7767_v37, %s9930_s7  ;;  %8447 = vmatpush3.bf16.msra.mxu1 %v9300_v47  ;;  %1781 = vst.msk [vmem:[#allocation3 + $0x22] sm:$0x1] %vm1525_vm4, %v1779_v45  ;;  %v9329_v47 = vld [vmem:[#allocation19 + $0x280] sm:$0xff]   ;;  %v9331_v5 = vld [vmem:[#allocation19 + $0x338] sm:$0xff]  }
 0x459   :  { %6789 = vmatprep.mubr.bf16.mxu1 %v3311_v27  ;;  %v1764_v11 = vpop.permute.xlu1 %1763  ;;  %8426 = vmatprep.subr.bf16.mxu0 %v9302_v42 }
 0x45a   :  { %1766 = vst.msk [vmem:[#allocation3 + $0x20] sm:$0x1] %vm1525_vm4, %v1764_v11  ;;  %8448 = vmatprep.subr.bf16.mxu1 %v9304_v1  ;;  %8427 = vmatpush3.bf16.msra.mxu0 %v9303_v55  ;;  %v3308_v1 = vpack.c.bf16 %v11232_v21, %v11232_v21  ;;  %v9335_v55 = vld [vmem:[#allocation19 + $0x370] sm:$0xff]   ;;  %v9333_v11 = vld [vmem:[#allocation19 + $0x3b8] sm:$0xff]  }
 0x45b   :  { %2228 = vrot.lane.b32.xlu0 %v7770_v52, %s9930_s7  ;;  %8428 = vmatprep.subr.bf16.mxu0 %v9306_v30  ;;  %v1809_v57 = vpop.permute.xlu0 %1808  ;;  %v9337_v52 = vld [vmem:[#allocation19 + $0x3f0] sm:$0xff]  }
 0x45c   :  { %2213 = vrot.lane.b32.xlu1 %v7769_v17, %s9930_s7  ;;  %8449 = vmatpush3.bf16.msra.mxu1 %v9305_v53  ;;  %1811 = vst.msk [vmem:[#allocation3 + $0x26] sm:$0x1] %vm1525_vm4, %v1809_v57  ;;  %v3310_v53 = vpack.c.bf16 %v11239_v54, %v11239_v54  ;;  %v9341_v54 = vld [vmem:[#allocation19 + $0x3e8] sm:$0xff]  }
 0x45d   :  { %v1794_v9 = vpop.permute.xlu1 %1793  ;;  %8450 = vmatprep.subr.bf16.mxu1 %v9308_v50  ;;  %v3015_v28 = vld [vmem:[#allocation3 + $0x18] sm:$0xff]  ;;  %v9336_v50 = vld [vmem:[#allocation19 + $0x330] sm:$0xff]  }
 0x45e   :  { %1796 = vst.msk [vmem:[#allocation3 + $0x24] sm:$0x1] %vm1525_vm4, %v1794_v9  ;;  %8429 = vmatpush3.bf16.msra.mxu0 %v9307_v51  ;;  %v3089_v48 = vcombine.high %v3015_v28, %v3015_v28  ;;  %v11277_v49 = vrot.slane %v3015_v28, %v11180_v62  ;;  %v9339_v51 = vld [vmem:[#allocation19 + $0x368] sm:$0xff]  }
 0x45f   :  { %2948 = vrot.lane.b32.xlu0 %v7818_v59, %s9930_s7  ;;  %8430 = vmatprep.subr.bf16.mxu0 %v9310_v58  ;;  %v2529_v18 = vpop.permute.xlu0 %2528  ;;  %v9338_v58 = vld [vmem:[#allocation19 + $0x3b0] sm:$0xff]   ;;  %v9340_v9 = vld [vmem:[#allocation19 + $0x328] sm:$0xff]   ;;  %v9343_v59 = vld [vmem:[#allocation19 + $0x360] sm:$0xff]  }
 0x460   :  { %2933 = vrot.lane.b32.xlu1 %v7817_v38, %s9930_s7  ;;  %8451 = vmatpush3.bf16.msra.mxu1 %v9309_v3  ;;  %2531 = vst.msk [vmem:[#allocation3 + $0x23] sm:$0x1] %vm1525_vm4, %v2529_v18  ;;  %v11281_v16 = vrot.slane %v3089_v48, %v11180_v62  ;;  %v3104_v27 = vcombine.high %v11277_v49, %v11277_v49  ;;  %v9342_v38 = vld [vmem:[#allocation19 + $0x3a8] sm:$0xff]   ;;  %v9344_v18 = vld [vmem:[#allocation19 + $0x320] sm:$0xff]  }
 0x461   :  { %v2514_v8 = vpop.permute.xlu1 %2513  ;;  %8452 = vmatprep.subr.bf16.mxu1 %v9312_v36  ;;  %v9357_v28 = vld [vmem:[#allocation19 + $0x3c8] sm:$0xff]  }
 0x462   :  { %2516 = vst.msk [vmem:[#allocation3 + $0x21] sm:$0x1] %vm1525_vm4, %v2514_v8  ;;  %8431 = vmatpush3.bf16.msra.mxu0 %v9311_v24  ;;  %v3105_v42 = vcombine.high %v11281_v16, %v11281_v16  ;;  %v3313_v30 = vpack.c.bf16 %v3104_v27, %v3104_v27  ;;  %v9345_v24 = vld [vmem:[#allocation19 + $0x3e0] sm:$0xff]   ;;  %v9347_v8 = vld [vmem:[#allocation19 + $0x358] sm:$0xff]  }
 0x463   :  { %2978 = vrot.lane.b32.xlu0 %v7820_v15, %s9930_s7  ;;  %8432 = vmatprep.subr.bf16.mxu0 %v9314_v4  ;;  %v2559_v25 = vpop.permute.xlu0 %2558  ;;  %v9346_v15 = vld [vmem:[#allocation19 + $0x3a0] sm:$0xff]  }
 0x464   :  { %2963 = vrot.lane.b32.xlu1 %v7819_v40, %s9930_s7  ;;  %8453 = vmatpush3.bf16.msra.mxu1 %v9313_v6  ;;  %2561 = vst.msk [vmem:[#allocation3 + $0x27] sm:$0x1] %vm1525_vm4, %v2559_v25  ;;  %v3315_v21 = vpack.c.bf16 %v3105_v42, %v3105_v42  ;;  %v9348_v40 = vld [vmem:[#allocation19 + $0x318] sm:$0xff]   ;;  %v9351_v25 = vld [vmem:[#allocation19 + $0x350] sm:$0xff]  }
 0x465   :  { %v2544_v33 = vpop.permute.xlu1 %2543  ;;  %8454 = vmatprep.subr.bf16.mxu1 %v9316_v13  ;;  %v9349_v13 = vld [vmem:[#allocation19 + $0x3d8] sm:$0xff]   ;;  %v9368_v42 = vld [vmem:[#allocation19 + $0x470] sm:$0xff]  }
 0x466   :  { %2546 = vst.msk [vmem:[#allocation3 + $0x25] sm:$0x1] %vm1525_vm4, %v2544_v33  ;;  %8433 = vmatpush3.bf16.msra.mxu0 %v9315_v19  ;;  %v9350_v33 = vld [vmem:[#allocation19 + $0x398] sm:$0xff]  }
 0x467   :  { %2258 = vrot.lane.b32.xlu0 %v7772_v10, %s9930_s7  ;;  %8434 = vmatprep.subr.bf16.mxu0 %v9318_v56  ;;  %v1839_v43 = vpop.permute.xlu0 %1838  ;;  %v9352_v10 = vld [vmem:[#allocation19 + $0x310] sm:$0xff]  }
 0x468   :  { %2243 = vrot.lane.b32.xlu1 %v7771_v0, %s9930_s7  ;;  %8455 = vmatpush3.bf16.msra.mxu1 %v9317_v7  ;;  %1841 = vst.msk [vmem:[#allocation3 + $0x2a] sm:$0x1] %vm1525_vm4, %v1839_v43  ;;  %v9353_v7 = vld [vmem:[#allocation19 + $0x3d0] sm:$0xff]   ;;  %v9355_v0 = vld [vmem:[#allocation19 + $0x348] sm:$0xff]  }
 0x469   :  { %v1824_v44 = vpop.permute.xlu1 %1823  ;;  %8456 = vmatprep.subr.bf16.mxu1 %v9320_v20 }
 0x46a   :  { %1826 = vst.msk [vmem:[#allocation3 + $0x28] sm:$0x1] %vm1525_vm4, %v1824_v44  ;;  %8435 = vmatpush3.bf16.msra.mxu0 %v9319_v31  ;;  %v9356_v44 = vld [vmem:[#allocation19 + $0x308] sm:$0xff]  }
 0x46b   :  { %3008 = vrot.lane.b32.xlu0 %v7822_v39, %s9930_s7  ;;  %8436 = vmatprep.subr.bf16.mxu0 %v9322_v41  ;;  %v1869_v35 = vpop.permute.xlu0 %1868  ;;  %v9354_v41 = vld [vmem:[#allocation19 + $0x390] sm:$0xff]  }
 0x46c   :  { %2993 = vrot.lane.b32.xlu1 %v7821_v22, %s9930_s7  ;;  %8457 = vmatpush3.bf16.msra.mxu1 %v9321_v32  ;;  %1871 = vst.msk [vmem:[#allocation3 + $0x2e] sm:$0x1] %vm1525_vm4, %v1869_v35  ;;  %v9361_v35 = vld [vmem:[#allocation19 + $0x3c0] sm:$0xff]  }
 0x46d   :  { %v1854_v60 = vpop.permute.xlu1 %1853  ;;  %8458 = vmatprep.subr.bf16.mxu1 %v9324_v26  ;;  %v3016_v31 = vld [vmem:[#allocation3 + $0x20] sm:$0xff] }
 0x46e   :  { %1856 = vst.msk [vmem:[#allocation3 + $0x2c] sm:$0x1] %vm1525_vm4, %v1854_v60  ;;  %8437 = vmatpush3.bf16.msra.mxu0 %v9323_v61  ;;  %v3106_v32 = vcombine.high %v3016_v31, %v3016_v31  ;;  %v9359_v26 = vld [vmem:[#allocation19 + $0x340] sm:$0xff]   ;;  %v9358_v61 = vld [vmem:[#allocation19 + $0x388] sm:$0xff]   ;;  %v11307_v48 = vrot.slane %v3016_v31, %v11180_v62 }
 0x46f   :  { %8438 = vmatprep.subr.bf16.mxu0 %v9326_v23  ;;  %v2589_v34 = vpop.permute.xlu0 %2588  ;;  %v9360_v23 = vld [vmem:[#allocation19 + $0x300] sm:$0xff]  }
 0x470   :  { %8459 = vmatpush3.bf16.msra.mxu1 %v9325_v14  ;;  %2591 = vst.msk [vmem:[#allocation3 + $0x2b] sm:$0x1] %vm1525_vm4, %v2589_v34  ;;  %v11311_v60 = vrot.slane %v3106_v32, %v11180_v62  ;;  %v9362_v34 = vld [vmem:[#allocation19 + $0x380] sm:$0xff]  }
 0x471   :  { %v2574_v46 = vpop.permute.xlu1 %2573  ;;  %8460 = vmatprep.subr.bf16.mxu1 %v9328_v2  ;;  %v9363_v2 = vld [vmem:[#allocation19 + $0x478] sm:$0xff]  }
 0x472   :  { %2576 = vst.msk [vmem:[#allocation3 + $0x29] sm:$0x1] %vm1525_vm4, %v2574_v46  ;;  %8439 = vmatpush3.bf16.msra.mxu0 %v9327_v12  ;;  %v9365_v46 = vld [vmem:[#allocation19 + $0x4f8] sm:$0xff]   ;;  %v3122_v27 = vcombine.high %v11311_v60, %v11311_v60 }
 0x473   :  { %8468 = vmatprep.subr.bf16.mxu0 %v9330_v63  ;;  %v2619_v37 = vpop.permute.xlu0 %2618  ;;  %v3121_v63 = vcombine.high %v11307_v48, %v11307_v48 }
 0x474   :  { %8461 = vmatpush3.bf16.msra.mxu1 %v9329_v47  ;;  %2621 = vst.msk [vmem:[#allocation3 + $0x2f] sm:$0x1] %vm1525_vm4, %v2619_v37  ;;  %v9364_v47 = vld [vmem:[#allocation19 + $0x438] sm:$0xff]  }
 0x475   :  { %v2604_v45 = vpop.permute.xlu1 %2603  ;;  %6750 = vmatmul.mubr.bf16.vlgmr.msra.gmra.mxu0 %v3308_v1  ;;  %8490 = vmatprep.subr.bf16.mxu1 %v9332_v29  ;;  %v3312_v29 = vpack.c.bf16 %v11277_v49, %v11277_v49  ;;  %v3317_v37 = vpack.c.bf16 %v3121_v63, %v3121_v63  ;;  %v3319_v49 = vpack.c.bf16 %v3122_v27, %v3122_v27 }
 0x476   :  { %2606 = vst.msk [vmem:[#allocation3 + $0x2d] sm:$0x1] %vm1525_vm4, %v2604_v45  ;;  %8469 = vmatpush3.bf16.msra.mxu0 %v9331_v5  ;;  %6829 = vmatprep.mubr.bf16.mxu0 %v3313_v30  ;;  %v3314_v45 = vpack.c.bf16 %v11281_v16, %v11281_v16  ;;  %v9370_v30 = vld [vmem:[#allocation19 + $0x4f0] sm:$0xff]   ;;  %v9374_v16 = vld [vmem:[#allocation19 + $0x4e8] sm:$0xff]  }
 0x477   :  { %6790 = vmatmul.mubr.bf16.vlgmr.msra.gmra.mxu1 %v3310_v53  ;;  %8470 = vmatprep.subr.bf16.mxu0 %v9335_v55  ;;  %v1899_v17 = vpop.permute.xlu0 %1898  ;;  %v9366_v55 = vld [vmem:[#allocation19 + $0x4b8] sm:$0xff]  }
 0x478   :  { %8491 = vmatpush3.bf16.msra.mxu1 %v9333_v11  ;;  %6869 = vmatprep.mubr.bf16.mxu1 %v3315_v21  ;;  %1901 = vst.msk [vmem:[#allocation3 + $0x32] sm:$0x1] %vm1525_vm4, %v1899_v17  ;;  %v9369_v11 = vld [vmem:[#allocation19 + $0x430] sm:$0xff]   ;;  %v9373_v17 = vld [vmem:[#allocation19 + $0x428] sm:$0xff]  }
 0x479   :  { %v1884_v57 = vpop.permute.xlu1 %1883  ;;  %8492 = vmatprep.subr.bf16.mxu1 %v9337_v52  ;;  %v9372_v52 = vld [vmem:[#allocation19 + $0x468] sm:$0xff]  }
 0x47a   :  { %1886 = vst.msk [vmem:[#allocation3 + $0x30] sm:$0x1] %vm1525_vm4, %v1884_v57  ;;  %8471 = vmatpush3.bf16.msra.mxu0 %v9336_v50  ;;  %v9371_v50 = vld [vmem:[#allocation19 + $0x4b0] sm:$0xff]   ;;  %v9376_v57 = vld [vmem:[#allocation19 + $0x460] sm:$0xff]  }
 0x47b   :  { %8472 = vmatprep.subr.bf16.mxu0 %v9339_v51  ;;  %v1929_v3 = vpop.permute.xlu0 %1928 }
 0x47c   :  { %8493 = vmatpush3.bf16.msra.mxu1 %v9338_v58  ;;  %1931 = vst.msk [vmem:[#allocation3 + $0x36] sm:$0x1] %vm1525_vm4, %v1929_v3  ;;  %v9377_v3 = vld [vmem:[#allocation19 + $0x420] sm:$0xff]  }
 0x47d   :  { %v1914_v36 = vpop.permute.xlu1 %1913  ;;  %8494 = vmatprep.subr.bf16.mxu1 %v9341_v54  ;;  %v9375_v54 = vld [vmem:[#allocation19 + $0x4a8] sm:$0xff]  }
 0x47e   :  { %1916 = vst.msk [vmem:[#allocation3 + $0x34] sm:$0x1] %vm1525_vm4, %v1914_v36  ;;  %8473 = vmatpush3.bf16.msra.mxu0 %v9340_v9  ;;  %v9378_v9 = vld [vmem:[#allocation19 + $0x4e0] sm:$0xff]   ;;  %v9380_v36 = vld [vmem:[#allocation19 + $0x458] sm:$0xff]  }
 0x47f   :  { %8474 = vmatprep.subr.bf16.mxu0 %v9343_v59  ;;  %v2649_v4 = vpop.permute.xlu0 %2648 }
 0x480   :  { %8495 = vmatpush3.bf16.msra.mxu1 %v9342_v38  ;;  %2651 = vst.msk [vmem:[#allocation3 + $0x33] sm:$0x1] %vm1525_vm4, %v2649_v4  ;;  %v9381_v4 = vld [vmem:[#allocation19 + $0x418] sm:$0xff]  }
 0x481   :  { %v2634_v6 = vpop.permute.xlu1 %2633  ;;  %8496 = vmatprep.subr.bf16.mxu1 %v9345_v24  ;;  %v9379_v24 = vld [vmem:[#allocation19 + $0x4a0] sm:$0xff]  }
 0x482   :  { %2636 = vst.msk [vmem:[#allocation3 + $0x31] sm:$0x1] %vm1525_vm4, %v2634_v6  ;;  %8475 = vmatpush3.bf16.msra.mxu0 %v9344_v18  ;;  %v9382_v18 = vld [vmem:[#allocation19 + $0x4d8] sm:$0xff]   ;;  %v9384_v6 = vld [vmem:[#allocation19 + $0x450] sm:$0xff]  }
 0x483   :  { %8476 = vmatprep.subr.bf16.mxu0 %v9347_v8  ;;  %v2679_v19 = vpop.permute.xlu0 %2678 }
 0x484   :  { %8497 = vmatpush3.bf16.msra.mxu1 %v9346_v15  ;;  %2681 = vst.msk [vmem:[#allocation3 + $0x37] sm:$0x1] %vm1525_vm4, %v2679_v19  ;;  %v9385_v19 = vld [vmem:[#allocation19 + $0x410] sm:$0xff]  }
 0x485   :  { %v2664_v56 = vpop.permute.xlu1 %2663  ;;  %8498 = vmatprep.subr.bf16.mxu1 %v9349_v13  ;;  %v9383_v13 = vld [vmem:[#allocation19 + $0x498] sm:$0xff]  }
 0x486   :  { %2666 = vst.msk [vmem:[#allocation3 + $0x35] sm:$0x1] %vm1525_vm4, %v2664_v56  ;;  %8477 = vmatpush3.bf16.msra.mxu0 %v9348_v40  ;;  %v9386_v40 = vld [vmem:[#allocation19 + $0x4d0] sm:$0xff]  }
 0x487   :  { %8478 = vmatprep.subr.bf16.mxu0 %v9351_v25  ;;  %v1959_v20 = vpop.permute.xlu0 %1958  ;;  %v9388_v25 = vld [vmem:[#allocation19 + $0x448] sm:$0xff]  }
 0x488   :  { %8499 = vmatpush3.bf16.msra.mxu1 %v9350_v33  ;;  %1961 = vst.msk [vmem:[#allocation3 + $0x3a] sm:$0x1] %vm1525_vm4, %v1959_v20  ;;  %v3017_v56 = vld [vmem:[#allocation3 + $0x28] sm:$0xff] }
 0x489   :  { %v1944_v43 = vpop.permute.xlu1 %1943  ;;  %8500 = vmatprep.subr.bf16.mxu1 %v9353_v7  ;;  %v9390_v20 = vld [vmem:[#allocation19 + $0x4c8] sm:$0xff]   ;;  %v3123_v31 = vcombine.high %v3017_v56, %v3017_v56  ;;  %v11336_v32 = vrot.slane %v3017_v56, %v11180_v62 }
 0x48a   :  { %1946 = vst.msk [vmem:[#allocation3 + $0x38] sm:$0x1] %vm1525_vm4, %v1944_v43  ;;  %8479 = vmatpush3.bf16.msra.mxu0 %v9352_v10  ;;  %v9387_v10 = vld [vmem:[#allocation19 + $0x490] sm:$0xff]   ;;  %v9392_v43 = vld [vmem:[#allocation19 + $0x440] sm:$0xff]   ;;  %v9422_v56 = vld [vmem:[#allocation19 + $0x508] sm:$0xff]  }
 0x48b   :  { %8480 = vmatprep.subr.bf16.mxu0 %v9355_v0  ;;  %v1989_v39 = vpop.permute.xlu0 %1988  ;;  %v9389_v0 = vld [vmem:[#allocation19 + $0x408] sm:$0xff]  }
 0x48c   :  { %8501 = vmatpush3.bf16.msra.mxu1 %v9354_v41  ;;  %1991 = vst.msk [vmem:[#allocation3 + $0x3e] sm:$0x1] %vm1525_vm4, %v1989_v39  ;;  %v9394_v39 = vld [vmem:[#allocation19 + $0x4c0] sm:$0xff]  }
 0x48d   :  { %v1974_v22 = vpop.permute.xlu1 %1973  ;;  %8502 = vmatprep.subr.bf16.mxu1 %v9357_v28 }
 0x48e   :  { %1976 = vst.msk [vmem:[#allocation3 + $0x3c] sm:$0x1] %vm1525_vm4, %v1974_v22  ;;  %8481 = vmatpush3.bf16.msra.mxu0 %v9356_v44  ;;  %v9391_v44 = vld [vmem:[#allocation19 + $0x488] sm:$0xff]   ;;  %v11341_v22 = vrot.slane %v3123_v31, %v11180_v62 }
 0x48f   :  { %8482 = vmatprep.subr.bf16.mxu0 %v9359_v26  ;;  %v2709_v14 = vpop.permute.xlu0 %2708  ;;  %v9393_v26 = vld [vmem:[#allocation19 + $0x400] sm:$0xff]  }
 0x490   :  { %8503 = vmatpush3.bf16.msra.mxu1 %v9358_v61  ;;  %2711 = vst.msk [vmem:[#allocation3 + $0x3b] sm:$0x1] %vm1525_vm4, %v2709_v14  ;;  %v9396_v61 = vld [vmem:[#allocation19 + $0x578] sm:$0xff]   ;;  %v9395_v14 = vld [vmem:[#allocation19 + $0x480] sm:$0xff]   ;;  %v3139_v63 = vcombine.high %v11341_v22, %v11341_v22 }
 0x491   :  { %v2694_v12 = vpop.permute.xlu1 %2693  ;;  %8504 = vmatprep.subr.bf16.mxu1 %v9361_v35 }
 0x492   :  { %2696 = vst.msk [vmem:[#allocation3 + $0x39] sm:$0x1] %vm1525_vm4, %v2694_v12  ;;  %8483 = vmatpush3.bf16.msra.mxu0 %v9360_v23  ;;  %v9398_v12 = vld [vmem:[#allocation19 + $0x5f8] sm:$0xff]  }
 0x493   :  { %8512 = vmatprep.subr.bf16.mxu0 %v9363_v2  ;;  %v2739_v5 = vpop.permute.xlu0 %2738  ;;  %v3138_v2 = vcombine.high %v11336_v32, %v11336_v32 }
 0x494   :  { %8505 = vmatpush3.bf16.msra.mxu1 %v9362_v34  ;;  %2741 = vst.msk [vmem:[#allocation3 + $0x3f] sm:$0x1] %vm1525_vm4, %v2739_v5  ;;  %v9397_v34 = vld [vmem:[#allocation19 + $0x538] sm:$0xff]  }
 0x495   :  { %v2724_v1 = vpop.permute.xlu1 %2723  ;;  %6830 = vmatmul.mubr.bf16.vlgmr.msra.gmra.mxu0 %v3312_v29  ;;  %8534 = vmatprep.subr.bf16.mxu1 %v9365_v46  ;;  %v3316_v46 = vpack.c.bf16 %v11307_v48, %v11307_v48  ;;  %v3321_v5 = vpack.c.bf16 %v3138_v2, %v3138_v2  ;;  %v3323_v48 = vpack.c.bf16 %v3139_v63, %v3139_v63 }
 0x496   :  { %2726 = vst.msk [vmem:[#allocation3 + $0x3d] sm:$0x1] %vm1525_vm4, %v2724_v1  ;;  %8513 = vmatpush3.bf16.msra.mxu0 %v9364_v47  ;;  %6909 = vmatprep.mubr.bf16.mxu0 %v3317_v37  ;;  %v9401_v47 = vld [vmem:[#allocation19 + $0x570] sm:$0xff]   ;;  %v3318_v1 = vpack.c.bf16 %v11311_v60, %v11311_v60  ;;  %v9406_v60 = vld [vmem:[#allocation19 + $0x528] sm:$0xff]  }
 0x497   :  { %6870 = vmatmul.mubr.bf16.vlgmr.msra.gmra.mxu1 %v3314_v45  ;;  %8514 = vmatprep.subr.bf16.mxu0 %v9368_v42  ;;  %v2019_v53 = vpop.permute.xlu0 %2018  ;;  %v9399_v42 = vld [vmem:[#allocation19 + $0x5b8] sm:$0xff]   ;;  %v9403_v37 = vld [vmem:[#allocation19 + $0x5f0] sm:$0xff]   ;;  %v9405_v45 = vld [vmem:[#allocation19 + $0x568] sm:$0xff]  }
 0x498   :  { %8535 = vmatpush3.bf16.msra.mxu1 %v9366_v55  ;;  %6949 = vmatprep.mubr.bf16.mxu1 %v3319_v49  ;;  %2021 = vst.msk [vmem:[#allocation3 + $0x42] sm:$0x1] %vm1525_vm4, %v2019_v53  ;;  %v9402_v55 = vld [vmem:[#allocation19 + $0x530] sm:$0xff]   ;;  %v9407_v53 = vld [vmem:[#allocation19 + $0x5e8] sm:$0xff]  }
 0x499   :  { %v2004_v21 = vpop.permute.xlu1 %2003  ;;  %8536 = vmatprep.subr.bf16.mxu1 %v9370_v30  ;;  %v9404_v49 = vld [vmem:[#allocation19 + $0x5b0] sm:$0xff]  }
 0x49a   :  { %2006 = vst.msk [vmem:[#allocation3 + $0x40] sm:$0x1] %vm1525_vm4, %v2004_v21  ;;  %8515 = vmatpush3.bf16.msra.mxu0 %v9369_v11 }
 0x49b   :  { %8516 = vmatprep.subr.bf16.mxu0 %v9372_v52  ;;  %v2049_v51 = vpop.permute.xlu0 %2048  ;;  %v9409_v52 = vld [vmem:[#allocation19 + $0x560] sm:$0xff]  }
 0x49c   :  { %8537 = vmatpush3.bf16.msra.mxu1 %v9371_v50  ;;  %2051 = vst.msk [vmem:[#allocation3 + $0x46] sm:$0x1] %vm1525_vm4, %v2049_v51  ;;  %v9408_v50 = vld [vmem:[#allocation19 + $0x5a8] sm:$0xff]   ;;  %v9410_v51 = vld [vmem:[#allocation19 + $0x520] sm:$0xff]  }
 0x49d   :  { %v2034_v58 = vpop.permute.xlu1 %2033  ;;  %8538 = vmatprep.subr.bf16.mxu1 %v9374_v16 }
 0x49e   :  { %2036 = vst.msk [vmem:[#allocation3 + $0x44] sm:$0x1] %vm1525_vm4, %v2034_v58  ;;  %8517 = vmatpush3.bf16.msra.mxu0 %v9373_v17  ;;  %v9411_v17 = vld [vmem:[#allocation19 + $0x5e0] sm:$0xff]  }
 0x49f   :  { %8518 = vmatprep.subr.bf16.mxu0 %v9376_v57  ;;  %v2769_v59 = vpop.permute.xlu0 %2768  ;;  %v9413_v57 = vld [vmem:[#allocation19 + $0x558] sm:$0xff]  }
 0x4a0   :  { %8539 = vmatpush3.bf16.msra.mxu1 %v9375_v54  ;;  %2771 = vst.msk [vmem:[#allocation3 + $0x43] sm:$0x1] %vm1525_vm4, %v2769_v59  ;;  %v9412_v54 = vld [vmem:[#allocation19 + $0x5a0] sm:$0xff]   ;;  %v9414_v59 = vld [vmem:[#allocation19 + $0x518] sm:$0xff]  }
 0x4a1   :  { %v2754_v38 = vpop.permute.xlu1 %2753  ;;  %8540 = vmatprep.subr.bf16.mxu1 %v9378_v9 }
 0x4a2   :  { %2756 = vst.msk [vmem:[#allocation3 + $0x41] sm:$0x1] %vm1525_vm4, %v2754_v38  ;;  %8519 = vmatpush3.bf16.msra.mxu0 %v9377_v3  ;;  %v9415_v3 = vld [vmem:[#allocation19 + $0x5d8] sm:$0xff]  }
 0x4a3   :  { %8520 = vmatprep.subr.bf16.mxu0 %v9380_v36  ;;  %v2799_v8 = vpop.permute.xlu0 %2798  ;;  %v9417_v36 = vld [vmem:[#allocation19 + $0x550] sm:$0xff]  }
 0x4a4   :  { %8541 = vmatpush3.bf16.msra.mxu1 %v9379_v24  ;;  %2801 = vst.msk [vmem:[#allocation3 + $0x47] sm:$0x1] %vm1525_vm4, %v2799_v8  ;;  %v9416_v24 = vld [vmem:[#allocation19 + $0x598] sm:$0xff]   ;;  %v9418_v8 = vld [vmem:[#allocation19 + $0x510] sm:$0xff]  }
 0x4a5   :  { %v2784_v15 = vpop.permute.xlu1 %2783  ;;  %8542 = vmatprep.subr.bf16.mxu1 %v9382_v18 }
 0x4a6   :  { %2786 = vst.msk [vmem:[#allocation3 + $0x45] sm:$0x1] %vm1525_vm4, %v2784_v15  ;;  %8521 = vmatpush3.bf16.msra.mxu0 %v9381_v4  ;;  %v9419_v4 = vld [vmem:[#allocation19 + $0x5d0] sm:$0xff]  }
 0x4a7   :  { %8522 = vmatprep.subr.bf16.mxu0 %v9384_v6  ;;  %v2079_v33 = vpop.permute.xlu0 %2078  ;;  %v9421_v6 = vld [vmem:[#allocation19 + $0x548] sm:$0xff]   ;;  %v3018_v15 = vld [vmem:[#allocation3 + $0x30] sm:$0xff] }
 0x4a8   :  { %8543 = vmatpush3.bf16.msra.mxu1 %v9383_v13  ;;  %2081 = vst.msk [vmem:[#allocation3 + $0x4a] sm:$0x1] %vm1525_vm4, %v2079_v33  ;;  %v3140_v33 = vcombine.high %v3018_v15, %v3018_v15 }
 0x4a9   :  { %v2064_v7 = vpop.permute.xlu1 %2063  ;;  %8544 = vmatprep.subr.bf16.mxu1 %v9386_v40  ;;  %v9420_v40 = vld [vmem:[#allocation19 + $0x590] sm:$0xff]  }
 0x4aa   :  { %2066 = vst.msk [vmem:[#allocation3 + $0x48] sm:$0x1] %vm1525_vm4, %v2064_v7  ;;  %8523 = vmatpush3.bf16.msra.mxu0 %v9385_v19  ;;  %v9425_v7 = vld [vmem:[#allocation19 + $0x540] sm:$0xff]  }
 0x4ab   :  { %8524 = vmatprep.subr.bf16.mxu0 %v9388_v25  ;;  %v2109_v41 = vpop.permute.xlu0 %2108  ;;  %v9423_v25 = vld [vmem:[#allocation19 + $0x5c8] sm:$0xff]  }
 0x4ac   :  { %8545 = vmatpush3.bf16.msra.mxu1 %v9387_v10  ;;  %2111 = vst.msk [vmem:[#allocation3 + $0x4e] sm:$0x1] %vm1525_vm4, %v2109_v41  ;;  %v9426_v41 = vld [vmem:[#allocation19 + $0x500] sm:$0xff]  }
 0x4ad   :  { %v2094_v28 = vpop.permute.xlu1 %2093  ;;  %8546 = vmatprep.subr.bf16.mxu1 %v9390_v20  ;;  %v9424_v20 = vld [vmem:[#allocation19 + $0x588] sm:$0xff]  }
 0x4ae   :  { %2096 = vst.msk [vmem:[#allocation3 + $0x4c] sm:$0x1] %vm1525_vm4, %v2094_v28  ;;  %8525 = vmatpush3.bf16.msra.mxu0 %v9389_v0  ;;  %v11366_v0 = vrot.slane %v3018_v15, %v11180_v62  ;;  %v11371_v28 = vrot.slane %v3140_v33, %v11180_v62  ;;  %v9459_v15 = vld [vmem:[#allocation19 + $0x600] sm:$0xff]   ;;  %v9463_v33 = vld [vmem:[#allocation19 + $0x738] sm:$0xff]  }
 0x4af   :  { %8526 = vmatprep.subr.bf16.mxu0 %v9392_v43  ;;  %v2829_v35 = vpop.permute.xlu0 %2828  ;;  %v9427_v43 = vld [vmem:[#allocation19 + $0x5c0] sm:$0xff]  }
 0x4b0   :  { %8547 = vmatpush3.bf16.msra.mxu1 %v9391_v44  ;;  %2831 = vst.msk [vmem:[#allocation3 + $0x4b] sm:$0x1] %vm1525_vm4, %v2829_v35  ;;  %v9429_v44 = vld [vmem:[#allocation19 + $0x678] sm:$0xff]   ;;  %v3156_v2 = vcombine.high %v11371_v28, %v11371_v28 }
 0x4b1   :  { %v2814_v23 = vpop.permute.xlu1 %2813  ;;  %8548 = vmatprep.subr.bf16.mxu1 %v9394_v39 }
 0x4b2   :  { %2816 = vst.msk [vmem:[#allocation3 + $0x49] sm:$0x1] %vm1525_vm4, %v2814_v23  ;;  %8527 = vmatpush3.bf16.msra.mxu0 %v9393_v26  ;;  %v9428_v26 = vld [vmem:[#allocation19 + $0x580] sm:$0xff]   ;;  %v9431_v23 = vld [vmem:[#allocation19 + $0x6f8] sm:$0xff]  }
 0x4b3   :  { %8556 = vmatprep.subr.bf16.mxu0 %v9396_v61  ;;  %v2859_v27 = vpop.permute.xlu0 %2858  ;;  %v3155_v61 = vcombine.high %v11366_v0, %v11366_v0 }
 0x4b4   :  { %8549 = vmatpush3.bf16.msra.mxu1 %v9395_v14  ;;  %2861 = vst.msk [vmem:[#allocation3 + $0x4f] sm:$0x1] %vm1525_vm4, %v2859_v27  ;;  %v9430_v14 = vld [vmem:[#allocation19 + $0x638] sm:$0xff]  }
 0x4b5   :  { %v2844_v29 = vpop.permute.xlu1 %2843  ;;  %6910 = vmatmul.mubr.bf16.vlgmr.msra.gmra.mxu0 %v3316_v46  ;;  %8578 = vmatprep.subr.bf16.mxu1 %v9398_v12  ;;  %v3320_v12 = vpack.c.bf16 %v11336_v32, %v11336_v32  ;;  %v3325_v46 = vpack.c.bf16 %v3155_v61, %v3155_v61  ;;  %v3327_v32 = vpack.c.bf16 %v3156_v2, %v3156_v2  ;;  %v9471_v2 = vld [vmem:[#allocation19 + $0x768] sm:$0xff]  }
 0x4b6   :  { %2846 = vst.msk [vmem:[#allocation3 + $0x4d] sm:$0x1] %vm1525_vm4, %v2844_v29  ;;  %8557 = vmatpush3.bf16.msra.mxu0 %v9397_v34  ;;  %6989 = vmatprep.mubr.bf16.mxu0 %v3321_v5  ;;  %v9434_v34 = vld [vmem:[#allocation19 + $0x670] sm:$0xff]   ;;  %v3322_v29 = vpack.c.bf16 %v11341_v22, %v11341_v22  ;;  %v9440_v22 = vld [vmem:[#allocation19 + $0x6e8] sm:$0xff]  }
 0x4b7   :  { %6950 = vmatmul.mubr.bf16.vlgmr.msra.gmra.mxu1 %v3318_v1  ;;  %8558 = vmatprep.subr.bf16.mxu0 %v9401_v47  ;;  %v2139_v30 = vpop.permute.xlu0 %2138  ;;  %v9432_v47 = vld [vmem:[#allocation19 + $0x6b8] sm:$0xff]   ;;  %v9436_v5 = vld [vmem:[#allocation19 + $0x6f0] sm:$0xff]   ;;  %v9438_v1 = vld [vmem:[#allocation19 + $0x668] sm:$0xff]  }
 0x4b8   :  { %8579 = vmatpush3.bf16.msra.mxu1 %v9399_v42  ;;  %7029 = vmatprep.mubr.bf16.mxu1 %v3323_v48  ;;  %2141 = vst.msk [vmem:[#allocation3 + $0x52] sm:$0x1] %vm1525_vm4, %v2139_v30  ;;  %v9435_v42 = vld [vmem:[#allocation19 + $0x630] sm:$0xff]   ;;  %v9442_v30 = vld [vmem:[#allocation19 + $0x660] sm:$0xff]  }
 0x4b9   :  { %v2124_v11 = vpop.permute.xlu1 %2123  ;;  %8580 = vmatprep.subr.bf16.mxu1 %v9403_v37  ;;  %v9437_v48 = vld [vmem:[#allocation19 + $0x6b0] sm:$0xff]  }
 0x4ba   :  { %2126 = vst.msk [vmem:[#allocation3 + $0x50] sm:$0x1] %vm1525_vm4, %v2124_v11  ;;  %8559 = vmatpush3.bf16.msra.mxu0 %v9402_v55  ;;  %v9441_v11 = vld [vmem:[#allocation19 + $0x6a8] sm:$0xff]  }
 0x4bb   :  { %8560 = vmatprep.subr.bf16.mxu0 %v9405_v45  ;;  %v2169_v21 = vpop.permute.xlu0 %2168  ;;  %v9439_v45 = vld [vmem:[#allocation19 + $0x628] sm:$0xff]  }
 0x4bc   :  { %8581 = vmatpush3.bf16.msra.mxu1 %v9404_v49  ;;  %2171 = vst.msk [vmem:[#allocation3 + $0x56] sm:$0x1] %vm1525_vm4, %v2169_v21  ;;  %v9446_v21 = vld [vmem:[#allocation19 + $0x658] sm:$0xff]  }
 0x4bd   :  { %v2154_v16 = vpop.permute.xlu1 %2153  ;;  %8582 = vmatprep.subr.bf16.mxu1 %v9407_v53 }
 0x4be   :  { %2156 = vst.msk [vmem:[#allocation3 + $0x54] sm:$0x1] %vm1525_vm4, %v2154_v16  ;;  %8561 = vmatpush3.bf16.msra.mxu0 %v9406_v60  ;;  %v9444_v60 = vld [vmem:[#allocation19 + $0x6e0] sm:$0xff]   ;;  %v9448_v16 = vld [vmem:[#allocation19 + $0x6d8] sm:$0xff]  }
 0x4bf   :  { %8562 = vmatprep.subr.bf16.mxu0 %v9409_v52  ;;  %v2889_v58 = vpop.permute.xlu0 %2888  ;;  %v9443_v52 = vld [vmem:[#allocation19 + $0x620] sm:$0xff]  }
 0x4c0   :  { %8583 = vmatpush3.bf16.msra.mxu1 %v9408_v50  ;;  %2891 = vst.msk [vmem:[#allocation3 + $0x53] sm:$0x1] %vm1525_vm4, %v2889_v58  ;;  %v9445_v50 = vld [vmem:[#allocation19 + $0x6a0] sm:$0xff]   ;;  %v9452_v58 = vld [vmem:[#allocation19 + $0x6d0] sm:$0xff]  }
 0x4c1   :  { %v2874_v9 = vpop.permute.xlu1 %2873  ;;  %8584 = vmatprep.subr.bf16.mxu1 %v9411_v17  ;;  %v9447_v17 = vld [vmem:[#allocation19 + $0x618] sm:$0xff]  }
 0x4c2   :  { %2876 = vst.msk [vmem:[#allocation3 + $0x51] sm:$0x1] %vm1525_vm4, %v2874_v9  ;;  %8563 = vmatpush3.bf16.msra.mxu0 %v9410_v51  ;;  %v9450_v51 = vld [vmem:[#allocation19 + $0x650] sm:$0xff]   ;;  %v9454_v9 = vld [vmem:[#allocation19 + $0x648] sm:$0xff]  }
 0x4c3   :  { %8564 = vmatprep.subr.bf16.mxu0 %v9413_v57  ;;  %v2919_v38 = vpop.permute.xlu0 %2918  ;;  %v9449_v57 = vld [vmem:[#allocation19 + $0x698] sm:$0xff]  }
 0x4c4   :  { %8585 = vmatpush3.bf16.msra.mxu1 %v9412_v54  ;;  %2921 = vst.msk [vmem:[#allocation3 + $0x57] sm:$0x1] %vm1525_vm4, %v2919_v38  ;;  %v9451_v54 = vld [vmem:[#allocation19 + $0x610] sm:$0xff]   ;;  %v9455_v38 = vld [vmem:[#allocation19 + $0x608] sm:$0xff]  }
 0x4c5   :  { %v2904_v18 = vpop.permute.xlu1 %2903  ;;  %8586 = vmatprep.subr.bf16.mxu1 %v9415_v3  ;;  %v3019_v3 = vld [vmem:[#allocation3 + $0x38] sm:$0xff] }
 0x4c6   :  { %2906 = vst.msk [vmem:[#allocation3 + $0x55] sm:$0x1] %vm1525_vm4, %v2904_v18  ;;  %8565 = vmatpush3.bf16.msra.mxu0 %v9414_v59  ;;  %v9453_v59 = vld [vmem:[#allocation19 + $0x690] sm:$0xff]   ;;  %v9458_v18 = vld [vmem:[#allocation19 + $0x640] sm:$0xff]  }
 0x4c7   :  { %8566 = vmatprep.subr.bf16.mxu0 %v9417_v36  ;;  %v9456_v36 = vld [vmem:[#allocation19 + $0x6c8] sm:$0xff]  }
 0x4c8   :  { %8587 = vmatpush3.bf16.msra.mxu1 %v9416_v24  ;;  %v3157_v24 = vcombine.high %v3019_v3, %v3019_v3 }
 0x4c9   :  { %v2199_v13 = vpop.permute.xlu0 %2198  ;;  %8588 = vmatprep.subr.bf16.mxu1 %v9419_v4  ;;  %v9457_v4 = vld [vmem:[#allocation19 + $0x688] sm:$0xff]  }
 0x4ca   :  { %2201 = vst.msk [vmem:[#allocation3 + $0x5a] sm:$0x1] %vm1525_vm4, %v2199_v13  ;;  %v2184_v19 = vpop.permute.xlu1 %2183  ;;  %8567 = vmatpush3.bf16.msra.mxu0 %v9418_v8  ;;  %v11390_v8 = vrot.slane %v3019_v3, %v11180_v62  ;;  %v11393_v13 = vrot.slane %v3157_v24, %v11180_v62  ;;  %v9493_v3 = vld [vmem:[#allocation19 + $0x7c0] sm:$0xff]  }
 0x4cb   :  { %2186 = vst.msk [vmem:[#allocation3 + $0x58] sm:$0x1] %vm1525_vm4, %v2184_v19  ;;  %8568 = vmatprep.subr.bf16.mxu0 %v9421_v6  ;;  %v9460_v6 = vld [vmem:[#allocation19 + $0x6c0] sm:$0xff]  }
 0x4cc   :  { %8589 = vmatpush3.bf16.msra.mxu1 %v9420_v40  ;;  %v9462_v40 = vld [vmem:[#allocation19 + $0x778] sm:$0xff]   ;;  %v9461_v19 = vld [vmem:[#allocation19 + $0x680] sm:$0xff]  }
 0x4cd   :  { %v2229_v10 = vpop.permute.xlu0 %2228  ;;  %8590 = vmatprep.subr.bf16.mxu1 %v9423_v25  ;;  %v3172_v25 = vcombine.high %v11390_v8, %v11390_v8  ;;  %v9494_v24 = vld [vmem:[#allocation19 + $0x780] sm:$0xff]  }
 0x4ce   :  { %2231 = vst.msk [vmem:[#allocation3 + $0x5e] sm:$0x1] %vm1525_vm4, %v2229_v10  ;;  %v2214_v31 = vpop.permute.xlu1 %2213  ;;  %8569 = vmatpush3.bf16.msra.mxu0 %v9422_v56  ;;  %v9464_v56 = vld [vmem:[#allocation19 + $0x7f8] sm:$0xff]   ;;  %v3324_v10 = vpack.c.bf16 %v11366_v0, %v11366_v0 }
 0x4cf   :  { %2216 = vst.msk [vmem:[#allocation3 + $0x5c] sm:$0x1] %vm1525_vm4, %v2214_v31  ;;  %8570 = vmatprep.subr.bf16.mxu0 %v9425_v7  ;;  %v3173_v7 = vcombine.high %v11393_v13, %v11393_v13 }
 0x4d0   :  { %8591 = vmatpush3.bf16.msra.mxu1 %v9424_v20  ;;  %v9467_v20 = vld [vmem:[#allocation19 + $0x770] sm:$0xff]  }
 0x4d1   :  { %v2949_v39 = vpop.permute.xlu0 %2948  ;;  %8592 = vmatprep.subr.bf16.mxu1 %v9427_v43  ;;  %v3329_v43 = vpack.c.bf16 %v3172_v25, %v3172_v25 }
 0x4d2   :  { %2951 = vst.msk [vmem:[#allocation3 + $0x5b] sm:$0x1] %vm1525_vm4, %v2949_v39  ;;  %v2934_v35 = vpop.permute.xlu1 %2933  ;;  %8571 = vmatpush3.bf16.msra.mxu0 %v9426_v41  ;;  %v9465_v41 = vld [vmem:[#allocation19 + $0x7b8] sm:$0xff]   ;;  %v9469_v39 = vld [vmem:[#allocation19 + $0x7f0] sm:$0xff]  }
 0x4d3   :  { %2936 = vst.msk [vmem:[#allocation3 + $0x59] sm:$0x1] %vm1525_vm4, %v2934_v35  ;;  %8600 = vmatprep.subr.bf16.mxu0 %v9429_v44  ;;  %v3326_v44 = vpack.c.bf16 %v11371_v28, %v11371_v28  ;;  %v3331_v35 = vpack.c.bf16 %v3173_v7, %v3173_v7  ;;  %v9473_v28 = vld [vmem:[#allocation19 + $0x7e8] sm:$0xff]   ;;  %v3330_v7 = vpack.c.bf16 %v11393_v13, %v11393_v13 }
 0x4d4   :  { %8593 = vmatpush3.bf16.msra.mxu1 %v9428_v26  ;;  %v7824_v26 = vld [vmem:[#allocation21] ss:$0 sm:$0xff]  ;;  %v9506_v13 = vld [vmem:[#allocation19 + $0x8e8] sm:$0xff]  }
 0x4d5   :  { %v2979_v63 = vpop.permute.xlu0 %2978  ;;  %6990 = vmatmul.mubr.bf16.vlgmr.msra.gmra.mxu0 %v3320_v12  ;;  %8622 = vmatprep.subr.bf16.mxu1 %v9431_v23  ;;  %v9468_v23 = vld [vmem:[#allocation19 + $0x730] sm:$0xff]  }
 0x4d6   :  { %2981 = vst.msk [vmem:[#allocation3 + $0x5f] sm:$0x1] %vm1525_vm4, %v2979_v63  ;;  %v2964_v27 = vpop.permute.xlu1 %2963  ;;  %8601 = vmatpush3.bf16.msra.mxu0 %v9430_v14  ;;  %7069 = vmatprep.mubr.bf16.mxu0 %v3325_v46 }
 0x4d7   :  { %2966 = vst.msk [vmem:[#allocation3 + $0x5d] sm:$0x1] %vm1525_vm4, %v2964_v27  ;;  %7030 = vmatmul.mubr.bf16.vlgmr.msra.gmra.mxu1 %v3322_v29  ;;  %8602 = vmatprep.subr.bf16.mxu0 %v9434_v34  ;;  %v9470_v34 = vld [vmem:[#allocation19 + $0x7b0] sm:$0xff]   ;;  %v9472_v29 = vld [vmem:[#allocation19 + $0x728] sm:$0xff]  }
 0x4d8   :  { %8623 = vmatpush3.bf16.msra.mxu1 %v9432_v47  ;;  %7109 = vmatprep.mubr.bf16.mxu1 %v3327_v32  ;;  %v9475_v32 = vld [vmem:[#allocation19 + $0x760] sm:$0xff]  }
 0x4d9   :  { %v2259_v37 = vpop.permute.xlu0 %2258  ;;  %8624 = vmatprep.subr.bf16.mxu1 %v9436_v5 }
 0x4da   :  { %2261 = vst.msk [vmem:[#allocation3 + $0x62] sm:$0x1] %vm1525_vm4, %v2259_v37  ;;  %v2244_v55 = vpop.permute.xlu1 %2243  ;;  %8603 = vmatpush3.bf16.msra.mxu0 %v9435_v42 }
 0x4db   :  { %2246 = vst.msk [vmem:[#allocation3 + $0x60] sm:$0x1] %vm1525_vm4, %v2244_v55  ;;  %8604 = vmatprep.subr.bf16.mxu0 %v9438_v1  ;;  %v9474_v1 = vld [vmem:[#allocation19 + $0x7a8] sm:$0xff]   ;;  %v9476_v55 = vld [vmem:[#allocation19 + $0x720] sm:$0xff]  }
 0x4dc   :  { %8625 = vmatpush3.bf16.msra.mxu1 %v9437_v48  ;;  %v9477_v48 = vld [vmem:[#allocation19 + $0x7e0] sm:$0xff]  }
 0x4dd   :  { %v3009_v49 = vpop.permute.xlu0 %3008  ;;  %8626 = vmatprep.subr.bf16.mxu1 %v9440_v22  ;;  %v9479_v22 = vld [vmem:[#allocation19 + $0x758] sm:$0xff]  }
 0x4de   :  { %3011 = vst.msk [vmem:[#allocation3 + $0x63] sm:$0x1] %vm1525_vm4, %v3009_v49  ;;  %v2994_v53 = vpop.permute.xlu1 %2993  ;;  %8605 = vmatpush3.bf16.msra.mxu0 %v9439_v45  ;;  %v9478_v45 = vld [vmem:[#allocation19 + $0x7a0] sm:$0xff]   ;;  %v9480_v49 = vld [vmem:[#allocation19 + $0x718] sm:$0xff]  }
 0x4df   :  { %2996 = vst.msk [vmem:[#allocation3 + $0x61] sm:$0x1] %vm1525_vm4, %v2994_v53  ;;  %8606 = vmatprep.subr.bf16.mxu0 %v9442_v30  ;;  %v9481_v30 = vld [vmem:[#allocation19 + $0x7d8] sm:$0xff]  }
 0x4e0   :  { %8627 = vmatpush3.bf16.msra.mxu1 %v9441_v11  ;;  %v9483_v11 = vld [vmem:[#allocation19 + $0x750] sm:$0xff]   ;;  %v9482_v53 = vld [vmem:[#allocation19 + $0x798] sm:$0xff]  }
 0x4e1   :  { %8628 = vmatprep.subr.bf16.mxu1 %v9444_v60  ;;  %v9485_v60 = vld [vmem:[#allocation19 + $0x7d0] sm:$0xff]  }
 0x4e2   :  { %8607 = vmatpush3.bf16.msra.mxu0 %v9443_v52  ;;  %v9484_v52 = vld [vmem:[#allocation19 + $0x710] sm:$0xff]  }
 0x4e3   :  { %8608 = vmatprep.subr.bf16.mxu0 %v9446_v21  ;;  %v9487_v21 = vld [vmem:[#allocation19 + $0x748] sm:$0xff]  }
 0x4e4   :  { %8629 = vmatpush3.bf16.msra.mxu1 %v9445_v50  ;;  %v3020_v50 = vld [vmem:[#allocation3 + $0x40] sm:$0xff] }
 0x4e5   :  { %8630 = vmatprep.subr.bf16.mxu1 %v9448_v16  ;;  %v9486_v16 = vld [vmem:[#allocation19 + $0x790] sm:$0xff]  }
 0x4e6   :  { %8609 = vmatpush3.bf16.msra.mxu0 %v9447_v17  ;;  %v9489_v17 = vld [vmem:[#allocation19 + $0x7c8] sm:$0xff]  }
 0x4e7   :  { %8610 = vmatprep.subr.bf16.mxu0 %v9450_v51  ;;  %v9488_v51 = vld [vmem:[#allocation19 + $0x708] sm:$0xff]  }
 0x4e8   :  { %8631 = vmatpush3.bf16.msra.mxu1 %v9449_v57  ;;  %v3174_v57 = vcombine.high %v3020_v50, %v3020_v50 }
 0x4e9   :  { %8632 = vmatprep.subr.bf16.mxu1 %v9452_v58  ;;  %v9491_v58 = vld [vmem:[#allocation19 + $0x740] sm:$0xff]  }
 0x4ea   :  { %8611 = vmatpush3.bf16.msra.mxu0 %v9451_v54  ;;  %v9490_v54 = vld [vmem:[#allocation19 + $0x788] sm:$0xff]  }
 0x4eb   :  { %8612 = vmatprep.subr.bf16.mxu0 %v9454_v9  ;;  %v11406_v9 = vrot.slane %v3020_v50, %v11180_v62  ;;  %v9525_v50 = vld [vmem:[#allocation19 + $0x800] sm:$0xff]  }
 0x4ec   :  { %8633 = vmatpush3.bf16.msra.mxu1 %v9453_v59  ;;  %v9492_v59 = vld [vmem:[#allocation19 + $0x700] sm:$0xff]  }
 0x4ed   :  { %8634 = vmatprep.subr.bf16.mxu1 %v9456_v36  ;;  %v11409_v36 = vrot.slane %v3174_v57, %v11180_v62 }
 0x4ee   :  { %8613 = vmatpush3.bf16.msra.mxu0 %v9455_v38  ;;  %v9495_v38 = vld [vmem:[#allocation19 + $0x878] sm:$0xff]  }
 0x4ef   :  { %8614 = vmatprep.subr.bf16.mxu0 %v9458_v18  ;;  %v3189_v18 = vcombine.high %v11406_v9, %v11406_v9 }
 0x4f0   :  { %8635 = vmatpush3.bf16.msra.mxu1 %v9457_v4  ;;  %v9497_v4 = vld [vmem:[#allocation19 + $0x8f8] sm:$0xff]  }
 0x4f1   :  { %8636 = vmatprep.subr.bf16.mxu1 %v9460_v6  ;;  %v9496_v6 = vld [vmem:[#allocation19 + $0x838] sm:$0xff]  }
 0x4f2   :  { %8615 = vmatpush3.bf16.msra.mxu0 %v9459_v15  ;;  %v3190_v15 = vcombine.high %v11409_v36, %v11409_v36 }
 0x4f3   :  { %8644 = vmatprep.subr.bf16.mxu0 %v9462_v40  ;;  %v3328_v40 = vpack.c.bf16 %v11390_v8, %v11390_v8  ;;  %v9504_v8 = vld [vmem:[#allocation19 + $0x868] sm:$0xff]  }
 0x4f4   :  { %8637 = vmatpush3.bf16.msra.mxu1 %v9461_v19  ;;  %v9500_v19 = vld [vmem:[#allocation19 + $0x870] sm:$0xff]  }
 0x4f5   :  { %v8352_v31 = vpop.f32.mrf.mxu0  ;;  %7070 = vmatmul.mubr.bf16.vlgmr.msra.gmra.mxu0 %v3324_v10  ;;  %8666 = vmatprep.subr.bf16.mxu1 %v9464_v56  ;;  %v3333_v56 = vpack.c.bf16 %v3189_v18, %v3189_v18  ;;  %v9502_v10 = vld [vmem:[#allocation19 + $0x8f0] sm:$0xff]   ;;  %v9531_v18 = vld [vmem:[#allocation19 + $0x9b8] sm:$0xff]  }
 0x4f6   :  { %8645 = vmatpush3.bf16.msra.mxu0 %v9463_v33  ;;  %7149 = vmatprep.mubr.bf16.mxu0 %v3329_v43  ;;  %v9498_v33 = vld [vmem:[#allocation19 + $0x8b8] sm:$0xff]   ;;  %v9501_v43 = vld [vmem:[#allocation19 + $0x830] sm:$0xff]  }
 0x4f7   :  { %v8353_v61 = vpop.f32.mrf.mxu0  ;;  %7110 = vmatmul.mubr.bf16.vlgmr.msra.gmra.mxu1 %v3326_v44  ;;  %v8374_v14 = vpop.f32.mrf.mxu1  ;;  %8646 = vmatprep.subr.bf16.mxu0 %v9467_v20 }
 0x4f8   :  { %v8354_v0 = vadd.f32 %v8353_v61, %v8352_v31  ;;  %8667 = vmatpush3.bf16.msra.mxu1 %v9465_v41  ;;  %7189 = vmatprep.mubr.bf16.mxu1 %v3331_v35  ;;  %v3335_v31 = vpack.c.bf16 %v3190_v15, %v3190_v15  ;;  %v9535_v15 = vld [vmem:[#allocation19 + $0x9f0] sm:$0xff]  }
 0x4f9   :  { %v8355_v12 = vpop.f32.mrf.mxu0  ;;  %v8375_v46 = vpop.f32.mrf.mxu1  ;;  %8668 = vmatprep.subr.bf16.mxu1 %v9469_v39 }
 0x4fa   :  { %v6592_v63 = vadd.f32 %v8354_v0, %v7824_v26  ;;  %v8376_v47 = vadd.f32 %v8375_v46, %v8374_v14  ;;  %8647 = vmatpush3.bf16.msra.mxu0 %v9468_v23  ;;  %v9503_v26 = vld [vmem:[#allocation19 + $0x8b0] sm:$0xff]   ;;  %v9505_v14 = vld [vmem:[#allocation19 + $0x828] sm:$0xff]   ;;  %v9508_v12 = vld [vmem:[#allocation19 + $0x860] sm:$0xff]  }
 0x4fb   :  { %v8356_v27 = vpop.f32.mrf.mxu0  ;;  %v8377_v5 = vpop.f32.mrf.mxu1  ;;  %8648 = vmatprep.subr.bf16.mxu0 %v9471_v2 }
 0x4fc   :  { %v11403_v42 = vadd.f32 %v8376_v47, %v6592_v63  ;;  %8669 = vmatpush3.bf16.msra.mxu1 %v9470_v34  ;;  %v9507_v63 = vld [vmem:[#allocation19 + $0x8a8] sm:$0xff]   ;;  %v9509_v47 = vld [vmem:[#allocation19 + $0x820] sm:$0xff]   ;;  %v9512_v27 = vld [vmem:[#allocation19 + $0x858] sm:$0xff]  }
 0x4fd   :  { %v8378_v37 = vpop.f32.mrf.mxu1  ;;  %8670 = vmatprep.subr.bf16.mxu1 %v9473_v28  ;;  %v9510_v28 = vld [vmem:[#allocation19 + $0x8e0] sm:$0xff]   ;;  %v9514_v5 = vld [vmem:[#allocation19 + $0x8d8] sm:$0xff]  }
 0x4fe   :  { %8649 = vmatpush3.bf16.msra.mxu0 %v9472_v29  ;;  %v9511_v29 = vld [vmem:[#allocation19 + $0x8a0] sm:$0xff]   ;;  %v9518_v37 = vld [vmem:[#allocation19 + $0x8d0] sm:$0xff]  }
 0x4ff   :  { %8650 = vmatprep.subr.bf16.mxu0 %v9475_v32  ;;  %v9513_v32 = vld [vmem:[#allocation19 + $0x818] sm:$0xff]  }
 0x500   :  { %8671 = vmatpush3.bf16.msra.mxu1 %v9474_v1  ;;  %v9515_v1 = vld [vmem:[#allocation19 + $0x898] sm:$0xff]  }
 0x501   :  { %8672 = vmatprep.subr.bf16.mxu1 %v9477_v48  ;;  %v9517_v48 = vld [vmem:[#allocation19 + $0x810] sm:$0xff]  }
 0x502   :  { %8651 = vmatpush3.bf16.msra.mxu0 %v9476_v55  ;;  %v9520_v55 = vld [vmem:[#allocation19 + $0x848] sm:$0xff]  }
 0x503   :  { %8652 = vmatprep.subr.bf16.mxu0 %v9479_v22  ;;  %v3021_v22 = vld [vmem:[#allocation3 + $0x48] sm:$0xff] }
 0x504   :  { %8673 = vmatpush3.bf16.msra.mxu1 %v9478_v45  ;;  %v9519_v45 = vld [vmem:[#allocation19 + $0x890] sm:$0xff]  }
 0x505   :  { %8674 = vmatprep.subr.bf16.mxu1 %v9481_v30  ;;  %v9522_v30 = vld [vmem:[#allocation19 + $0x8c8] sm:$0xff]  }
 0x506   :  { %8653 = vmatpush3.bf16.msra.mxu0 %v9480_v49  ;;  %v9521_v49 = vld [vmem:[#allocation19 + $0x808] sm:$0xff]  }
 0x507   :  { %8654 = vmatprep.subr.bf16.mxu0 %v9483_v11  ;;  %v3191_v11 = vcombine.high %v3021_v22, %v3021_v22 }
 0x508   :  { %8675 = vmatpush3.bf16.msra.mxu1 %v9482_v53  ;;  %v9524_v53 = vld [vmem:[#allocation19 + $0x840] sm:$0xff]  }
 0x509   :  { %8676 = vmatprep.subr.bf16.mxu1 %v9485_v60  ;;  %v9523_v60 = vld [vmem:[#allocation19 + $0x888] sm:$0xff]  }
 0x50a   :  { %8655 = vmatpush3.bf16.msra.mxu0 %v9484_v52  ;;  %v11423_v52 = vrot.slane %v3021_v22, %v11180_v62  ;;  %v9558_v22 = vld [vmem:[#allocation19 + $0x900] sm:$0xff]  }
 0x50b   :  { %8656 = vmatprep.subr.bf16.mxu0 %v9487_v21  ;;  %v9526_v21 = vld [vmem:[#allocation19 + $0x8c0] sm:$0xff]  }
 0x50c   :  { %8677 = vmatpush3.bf16.msra.mxu1 %v9486_v16  ;;  %v11426_v16 = vrot.slane %v3191_v11, %v11180_v62  ;;  %v3206_v57 = vcombine.high %v11423_v52, %v11423_v52 }
 0x50d   :  { %8678 = vmatprep.subr.bf16.mxu1 %v9489_v17  ;;  %v9528_v17 = vld [vmem:[#allocation19 + $0x978] sm:$0xff]  }
 0x50e   :  { %8657 = vmatpush3.bf16.msra.mxu0 %v9488_v51  ;;  %v9527_v51 = vld [vmem:[#allocation19 + $0x880] sm:$0xff]  }
 0x50f   :  { %8658 = vmatprep.subr.bf16.mxu0 %v9491_v58  ;;  %v9530_v58 = vld [vmem:[#allocation19 + $0x9f8] sm:$0xff]  }
 0x510   :  { %8679 = vmatpush3.bf16.msra.mxu1 %v9490_v54  ;;  %v9529_v54 = vld [vmem:[#allocation19 + $0x938] sm:$0xff]  }
 0x511   :  { %8680 = vmatprep.subr.bf16.mxu1 %v9493_v3  ;;  %v3207_v3 = vcombine.high %v11426_v16, %v11426_v16 }
 0x512   :  { %8659 = vmatpush3.bf16.msra.mxu0 %v9492_v59  ;;  %v3332_v59 = vpack.c.bf16 %v11406_v9, %v11406_v9  ;;  %v9537_v9 = vld [vmem:[#allocation19 + $0x968] sm:$0xff]  }
 0x513   :  { %8688 = vmatprep.subr.bf16.mxu0 %v9495_v38  ;;  %v9533_v38 = vld [vmem:[#allocation19 + $0x970] sm:$0xff]  }
 0x514   :  { %8681 = vmatpush3.bf16.msra.mxu1 %v9494_v24  ;;  %v3337_v24 = vpack.c.bf16 %v3206_v57, %v3206_v57  ;;  %v9564_v57 = vld [vmem:[#allocation19 + $0xab8] sm:$0xff]  }
 0x515   :  { %v8396_v25 = vpop.f32.mrf.mxu0  ;;  %7150 = vmatmul.mubr.bf16.vlgmr.msra.gmra.mxu0 %v3328_v40  ;;  %8710 = vmatprep.subr.bf16.mxu1 %v9497_v4  ;;  %v3339_v40 = vpack.c.bf16 %v3207_v3, %v3207_v3  ;;  %v9568_v3 = vld [vmem:[#allocation19 + $0xaf0] sm:$0xff]  }
 0x516   :  { %8689 = vmatpush3.bf16.msra.mxu0 %v9496_v6  ;;  %7229 = vmatprep.mubr.bf16.mxu0 %v3333_v56  ;;  %v3334_v6 = vpack.c.bf16 %v11409_v36, %v11409_v36 }
 0x517   :  { %v8397_v20 = vpop.f32.mrf.mxu0  ;;  %v8418_v44 = vpop.f32.mrf.mxu1  ;;  %7190 = vmatmul.mubr.bf16.vlgmr.msra.gmra.mxu1 %v3330_v7  ;;  %8690 = vmatprep.subr.bf16.mxu0 %v9500_v19  ;;  %v9534_v19 = vld [vmem:[#allocation19 + $0x930] sm:$0xff]  }
 0x518   :  { %v8398_v41 = vadd.f32 %v8397_v20, %v8396_v25  ;;  %8711 = vmatpush3.bf16.msra.mxu1 %v9498_v33  ;;  %7269 = vmatprep.mubr.bf16.mxu1 %v3335_v31  ;;  %v9536_v7 = vld [vmem:[#allocation19 + $0x9b0] sm:$0xff]   ;;  %v9539_v31 = vld [vmem:[#allocation19 + $0x9e8] sm:$0xff]  }
 0x519   :  { %v8399_v39 = vpop.f32.mrf.mxu0  ;;  %v8419_v35 = vpop.f32.mrf.mxu1  ;;  %8712 = vmatprep.subr.bf16.mxu1 %v9502_v10 }
 0x51a   :  { %v6672_v61 = vadd.f32 %v8398_v41, %v11403_v42  ;;  %v8420_v23 = vadd.f32 %v8419_v35, %v8418_v44  ;;  %8691 = vmatpush3.bf16.msra.mxu0 %v9501_v43  ;;  %v9516_v42 = vld [vmem:[#allocation19 + $0x850] sm:$0xff]   ;;  %v9538_v41 = vld [vmem:[#allocation19 + $0x928] sm:$0xff]   ;;  %v9541_v39 = vld [vmem:[#allocation19 + $0x960] sm:$0xff]  }
 0x51b   :  { %v8400_v0 = vpop.f32.mrf.mxu0  ;;  %v8421_v2 = vpop.f32.mrf.mxu1  ;;  %8692 = vmatprep.subr.bf16.mxu0 %v9504_v8 }
 0x51c   :  { %v11420_v34 = vadd.f32 %v8420_v23, %v6672_v61  ;;  %8713 = vmatpush3.bf16.msra.mxu1 %v9503_v26  ;;  %v9540_v61 = vld [vmem:[#allocation19 + $0x9a8] sm:$0xff]   ;;  %v9542_v23 = vld [vmem:[#allocation19 + $0x920] sm:$0xff]   ;;  %v9545_v0 = vld [vmem:[#allocation19 + $0x958] sm:$0xff]  }
 0x51d   :  { %v8422_v46 = vpop.f32.mrf.mxu1  ;;  %8714 = vmatprep.subr.bf16.mxu1 %v9506_v13  ;;  %v9543_v13 = vld [vmem:[#allocation19 + $0x9e0] sm:$0xff]   ;;  %v9547_v2 = vld [vmem:[#allocation19 + $0x9d8] sm:$0xff]  }
 0x51e   :  { %8693 = vmatpush3.bf16.msra.mxu0 %v9505_v14  ;;  %v9544_v14 = vld [vmem:[#allocation19 + $0x9a0] sm:$0xff]   ;;  %v9551_v46 = vld [vmem:[#allocation19 + $0x9d0] sm:$0xff]  }
 0x51f   :  { %8694 = vmatprep.subr.bf16.mxu0 %v9508_v12  ;;  %v9546_v12 = vld [vmem:[#allocation19 + $0x918] sm:$0xff]  }
 0x520   :  { %8715 = vmatpush3.bf16.msra.mxu1 %v9507_v63  ;;  %v9548_v63 = vld [vmem:[#allocation19 + $0x998] sm:$0xff]  }
 0x521   :  { %8716 = vmatprep.subr.bf16.mxu1 %v9510_v28  ;;  %v9550_v28 = vld [vmem:[#allocation19 + $0x910] sm:$0xff]  }
 0x522   :  { %8695 = vmatpush3.bf16.msra.mxu0 %v9509_v47  ;;  %v9553_v47 = vld [vmem:[#allocation19 + $0x948] sm:$0xff]  }
 0x523   :  { %8696 = vmatprep.subr.bf16.mxu0 %v9512_v27  ;;  %v3022_v27 = vld [vmem:[#allocation3 + $0x50] sm:$0xff] }
 0x524   :  { %8717 = vmatpush3.bf16.msra.mxu1 %v9511_v29  ;;  %v9552_v29 = vld [vmem:[#allocation19 + $0x990] sm:$0xff]  }
 0x525   :  { %8718 = vmatprep.subr.bf16.mxu1 %v9514_v5  ;;  %v9555_v5 = vld [vmem:[#allocation19 + $0x9c8] sm:$0xff]  }
 0x526   :  { %8697 = vmatpush3.bf16.msra.mxu0 %v9513_v32  ;;  %v9554_v32 = vld [vmem:[#allocation19 + $0x908] sm:$0xff]  }
 0x527   :  { %8698 = vmatprep.subr.bf16.mxu0 %v9516_v42  ;;  %v3208_v42 = vcombine.high %v3022_v27, %v3022_v27 }
 0x528   :  { %8719 = vmatpush3.bf16.msra.mxu1 %v9515_v1  ;;  %v9557_v1 = vld [vmem:[#allocation19 + $0x940] sm:$0xff]  }
 0x529   :  { %8720 = vmatprep.subr.bf16.mxu1 %v9518_v37  ;;  %v9556_v37 = vld [vmem:[#allocation19 + $0x988] sm:$0xff]  }
 0x52a   :  { %8699 = vmatpush3.bf16.msra.mxu0 %v9517_v48  ;;  %v11440_v48 = vrot.slane %v3022_v27, %v11180_v62  ;;  %v9591_v27 = vld [vmem:[#allocation19 + $0xa00] sm:$0xff]  }
 0x52b   :  { %8700 = vmatprep.subr.bf16.mxu0 %v9520_v55  ;;  %v9559_v55 = vld [vmem:[#allocation19 + $0x9c0] sm:$0xff]  }
 0x52c   :  { %8721 = vmatpush3.bf16.msra.mxu1 %v9519_v45  ;;  %v11443_v45 = vrot.slane %v3208_v42, %v11180_v62  ;;  %v3223_v11 = vcombine.high %v11440_v48, %v11440_v48 }
 0x52d   :  { %8722 = vmatprep.subr.bf16.mxu1 %v9522_v30  ;;  %v9561_v30 = vld [vmem:[#allocation19 + $0xa78] sm:$0xff]  }
 0x52e   :  { %8701 = vmatpush3.bf16.msra.mxu0 %v9521_v49  ;;  %v9560_v49 = vld [vmem:[#allocation19 + $0x980] sm:$0xff]  }
 0x52f   :  { %8702 = vmatprep.subr.bf16.mxu0 %v9524_v53  ;;  %v9563_v53 = vld [vmem:[#allocation19 + $0xaf8] sm:$0xff]  }
 0x530   :  { %8723 = vmatpush3.bf16.msra.mxu1 %v9523_v60  ;;  %v9562_v60 = vld [vmem:[#allocation19 + $0xa38] sm:$0xff]  }
 0x531   :  { %8724 = vmatprep.subr.bf16.mxu1 %v9526_v21  ;;  %v3224_v21 = vcombine.high %v11443_v45, %v11443_v45 }
 0x532   :  { %8703 = vmatpush3.bf16.msra.mxu0 %v9525_v50  ;;  %v3336_v50 = vpack.c.bf16 %v11423_v52, %v11423_v52  ;;  %v9570_v52 = vld [vmem:[#allocation19 + $0xa68] sm:$0xff]  }
 0x533   :  { %8732 = vmatprep.subr.bf16.mxu0 %v9528_v17  ;;  %v9566_v17 = vld [vmem:[#allocation19 + $0xa70] sm:$0xff]  }
 0x534   :  { %8725 = vmatpush3.bf16.msra.mxu1 %v9527_v51  ;;  %v3341_v51 = vpack.c.bf16 %v3223_v11, %v3223_v11 }
 0x535   :  { %v8440_v4 = vpop.f32.mrf.mxu0  ;;  %7230 = vmatmul.mubr.bf16.vlgmr.msra.gmra.mxu0 %v3332_v59  ;;  %8754 = vmatprep.subr.bf16.mxu1 %v9530_v58  ;;  %v3343_v59 = vpack.c.bf16 %v3224_v21, %v3224_v21 }
 0x536   :  { %8733 = vmatpush3.bf16.msra.mxu0 %v9529_v54  ;;  %7309 = vmatprep.mubr.bf16.mxu0 %v3337_v24  ;;  %v3338_v54 = vpack.c.bf16 %v11426_v16, %v11426_v16 }
 0x537   :  { %v8441_v25 = vpop.f32.mrf.mxu0  ;;  %v8462_v56 = vpop.f32.mrf.mxu1  ;;  %7270 = vmatmul.mubr.bf16.vlgmr.msra.gmra.mxu1 %v3334_v6  ;;  %8734 = vmatprep.subr.bf16.mxu0 %v9533_v38  ;;  %v9567_v38 = vld [vmem:[#allocation19 + $0xa30] sm:$0xff]  }
 0x538   :  { %v8442_v33 = vadd.f32 %v8441_v25, %v8440_v4  ;;  %8755 = vmatpush3.bf16.msra.mxu1 %v9531_v18  ;;  %7349 = vmatprep.mubr.bf16.mxu1 %v3339_v40  ;;  %v9569_v6 = vld [vmem:[#allocation19 + $0xab0] sm:$0xff]  }
 0x539   :  { %v8443_v10 = vpop.f32.mrf.mxu0  ;;  %v8463_v20 = vpop.f32.mrf.mxu1  ;;  %8756 = vmatprep.subr.bf16.mxu1 %v9535_v15 }
 0x53a   :  { %v6752_v36 = vadd.f32 %v8442_v33, %v11420_v34  ;;  %v8464_v43 = vadd.f32 %v8463_v20, %v8462_v56  ;;  %8735 = vmatpush3.bf16.msra.mxu0 %v9534_v19  ;;  %v9549_v34 = vld [vmem:[#allocation19 + $0x950] sm:$0xff]   ;;  %v9572_v19 = vld [vmem:[#allocation19 + $0xae8] sm:$0xff]  }
 0x53b   :  { %v8444_v44 = vpop.f32.mrf.mxu0  ;;  %v8465_v8 = vpop.f32.mrf.mxu1  ;;  %8736 = vmatprep.subr.bf16.mxu0 %v9537_v9  ;;  %v9571_v56 = vld [vmem:[#allocation19 + $0xa28] sm:$0xff]  }
 0x53c   :  { %v11437_v26 = vadd.f32 %v8464_v43, %v6752_v36  ;;  %8757 = vmatpush3.bf16.msra.mxu1 %v9536_v7  ;;  %v9574_v7 = vld [vmem:[#allocation19 + $0xa60] sm:$0xff]   ;;  %v9573_v20 = vld [vmem:[#allocation19 + $0xaa8] sm:$0xff]   ;;  %v9580_v8 = vld [vmem:[#allocation19 + $0xad8] sm:$0xff]  }
 0x53d   :  { %v8466_v35 = vpop.f32.mrf.mxu1  ;;  %8758 = vmatprep.subr.bf16.mxu1 %v9539_v31  ;;  %v9576_v36 = vld [vmem:[#allocation19 + $0xae0] sm:$0xff]  }
 0x53e   :  { %8737 = vmatpush3.bf16.msra.mxu0 %v9538_v41  ;;  %v9575_v43 = vld [vmem:[#allocation19 + $0xa20] sm:$0xff]   ;;  %v9578_v41 = vld [vmem:[#allocation19 + $0xa58] sm:$0xff]   ;;  %v9584_v35 = vld [vmem:[#allocation19 + $0xad0] sm:$0xff]  }
 0x53f   :  { %8738 = vmatprep.subr.bf16.mxu0 %v9541_v39  ;;  %v9577_v44 = vld [vmem:[#allocation19 + $0xaa0] sm:$0xff]   ;;  %v9579_v39 = vld [vmem:[#allocation19 + $0xa18] sm:$0xff]  }
 0x540   :  { %8759 = vmatpush3.bf16.msra.mxu1 %v9540_v61  ;;  %v9581_v61 = vld [vmem:[#allocation19 + $0xa98] sm:$0xff]  }
 0x541   :  { %8760 = vmatprep.subr.bf16.mxu1 %v9543_v13  ;;  %v9583_v13 = vld [vmem:[#allocation19 + $0xa10] sm:$0xff]  }
 0x542   :  { %8739 = vmatpush3.bf16.msra.mxu0 %v9542_v23  ;;  %v9586_v23 = vld [vmem:[#allocation19 + $0xa48] sm:$0xff]  }
 0x543   :  { %8740 = vmatprep.subr.bf16.mxu0 %v9545_v0  ;;  %v3023_v0 = vld [vmem:[#allocation3 + $0x58] sm:$0xff] }
 0x544   :  { %8761 = vmatpush3.bf16.msra.mxu1 %v9544_v14  ;;  %v9585_v14 = vld [vmem:[#allocation19 + $0xa90] sm:$0xff]  }
 0x545   :  { %8762 = vmatprep.subr.bf16.mxu1 %v9547_v2  ;;  %v9588_v2 = vld [vmem:[#allocation19 + $0xac8] sm:$0xff]  }
 0x546   :  { %8741 = vmatpush3.bf16.msra.mxu0 %v9546_v12  ;;  %v9587_v12 = vld [vmem:[#allocation19 + $0xa08] sm:$0xff]  }
 0x547   :  { %8742 = vmatprep.subr.bf16.mxu0 %v9549_v34  ;;  %v3225_v34 = vcombine.high %v3023_v0, %v3023_v0 }
 0x548   :  { %8763 = vmatpush3.bf16.msra.mxu1 %v9548_v63  ;;  %v9590_v63 = vld [vmem:[#allocation19 + $0xa40] sm:$0xff]  }
 0x549   :  { %8764 = vmatprep.subr.bf16.mxu1 %v9551_v46  ;;  %v9589_v46 = vld [vmem:[#allocation19 + $0xa88] sm:$0xff]  }
 0x54a   :  { %8743 = vmatpush3.bf16.msra.mxu0 %v9550_v28  ;;  %v11457_v28 = vrot.slane %v3023_v0, %v11180_v62 }
 0x54b   :  { %8744 = vmatprep.subr.bf16.mxu0 %v9553_v47  ;;  %v9592_v47 = vld [vmem:[#allocation19 + $0xac0] sm:$0xff]  }
 0x54c   :  { %8765 = vmatpush3.bf16.msra.mxu1 %v9552_v29  ;;  %v11460_v29 = vrot.slane %v3225_v34, %v11180_v62  ;;  %v3240_v42 = vcombine.high %v11457_v28, %v11457_v28  ;;  %v9599_v62 = vld [vmem:[#allocation19 + $0xb70] sm:$0xff]  }
 0x54d   :  { %8766 = vmatprep.subr.bf16.mxu1 %v9555_v5  ;;  %v9594_v5 = vld [vmem:[#allocation19 + $0xb78] sm:$0xff]  }
 0x54e   :  { %8745 = vmatpush3.bf16.msra.mxu0 %v9554_v32  ;;  %v9593_v32 = vld [vmem:[#allocation19 + $0xa80] sm:$0xff]  }
 0x54f   :  { %8746 = vmatprep.subr.bf16.mxu0 %v9557_v1  ;;  %v9596_v1 = vld [vmem:[#allocation19 + $0xbf8] sm:$0xff]  }
 0x550   :  { %8767 = vmatpush3.bf16.msra.mxu1 %v9556_v37  ;;  %v9595_v37 = vld [vmem:[#allocation19 + $0xb38] sm:$0xff]  }
 0x551   :  { %8768 = vmatprep.subr.bf16.mxu1 %v9559_v55  ;;  %v3241_v55 = vcombine.high %v11460_v29, %v11460_v29 }
 0x552   :  { %8747 = vmatpush3.bf16.msra.mxu0 %v9558_v22  ;;  %v3340_v22 = vpack.c.bf16 %v11440_v48, %v11440_v48  ;;  %v9603_v48 = vld [vmem:[#allocation19 + $0xb68] sm:$0xff]  }
 0x553   :  { %8776 = vmatprep.subr.bf16.mxu0 %v9561_v30  ;;  %v3345_v30 = vpack.c.bf16 %v3240_v42, %v3240_v42  ;;  %v3347_v21 = vpack.c.bf16 %v3241_v55, %v3241_v55  ;;  %v9631_v42 = vld [vmem:[#allocation19 + $0xc68] sm:$0xff]  }
 0x554   :  { %8769 = vmatpush3.bf16.msra.mxu1 %v9560_v49  ;;  %v9597_v49 = vld [vmem:[#allocation19 + $0xbb8] sm:$0xff]  }
 0x555   :  { %v8484_v58 = vpop.f32.mrf.mxu0  ;;  %7310 = vmatmul.mubr.bf16.vlgmr.msra.gmra.mxu0 %v3336_v50  ;;  %8798 = vmatprep.subr.bf16.mxu1 %v9563_v53  ;;  %v3342_v53 = vpack.c.bf16 %v11443_v45, %v11443_v45  ;;  %v9600_v50 = vld [vmem:[#allocation19 + $0xb30] sm:$0xff]  }
 0x556   :  { %8777 = vmatpush3.bf16.msra.mxu0 %v9562_v60  ;;  %7389 = vmatprep.mubr.bf16.mxu0 %v3341_v51  ;;  %v9601_v60 = vld [vmem:[#allocation19 + $0xbf0] sm:$0xff]  }
 0x557   :  { %v8485_v24 = vpop.f32.mrf.mxu0  ;;  %v8506_v18 = vpop.f32.mrf.mxu1  ;;  %7350 = vmatmul.mubr.bf16.vlgmr.msra.gmra.mxu1 %v3338_v54  ;;  %8778 = vmatprep.subr.bf16.mxu0 %v9566_v17 }
 0x558   :  { %v8486_v4 = vadd.f32 %v8485_v24, %v8484_v58  ;;  %8799 = vmatpush3.bf16.msra.mxu1 %v9564_v57  ;;  %7429 = vmatprep.mubr.bf16.mxu1 %v3343_v59  ;;  %v9602_v58 = vld [vmem:[#allocation19 + $0xbb0] sm:$0xff]   ;;  %v9605_v59 = vld [vmem:[#allocation19 + $0xbe8] sm:$0xff]  }
 0x559   :  { %v8487_v15 = vpop.f32.mrf.mxu0  ;;  %v8507_v40 = vpop.f32.mrf.mxu1  ;;  %8800 = vmatprep.subr.bf16.mxu1 %v9568_v3  ;;  %v9604_v24 = vld [vmem:[#allocation19 + $0xb28] sm:$0xff]  }
 0x55a   :  { %v6832_v16 = vadd.f32 %v8486_v4, %v11437_v26  ;;  %v8508_v25 = vadd.f32 %v8507_v40, %v8506_v18  ;;  %8779 = vmatpush3.bf16.msra.mxu0 %v9567_v38  ;;  %v9582_v26 = vld [vmem:[#allocation19 + $0xa50] sm:$0xff]   ;;  %v9607_v4 = vld [vmem:[#allocation19 + $0xb60] sm:$0xff]   ;;  %v9606_v15 = vld [vmem:[#allocation19 + $0xba8] sm:$0xff]  }
 0x55b   :  { %v8488_v9 = vpop.f32.mrf.mxu0  ;;  %v8509_v33 = vpop.f32.mrf.mxu1  ;;  %8780 = vmatprep.subr.bf16.mxu0 %v9570_v52 }
 0x55c   :  { %v11454_v10 = vadd.f32 %v8508_v25, %v6832_v16  ;;  %8801 = vmatpush3.bf16.msra.mxu1 %v9569_v6  ;;  %v9608_v16 = vld [vmem:[#allocation19 + $0xb20] sm:$0xff]   ;;  %v9611_v25 = vld [vmem:[#allocation19 + $0xb58] sm:$0xff]  }
 0x55d   :  { %v8510_v31 = vpop.f32.mrf.mxu1  ;;  %8802 = vmatprep.subr.bf16.mxu1 %v9572_v19  ;;  %v9609_v19 = vld [vmem:[#allocation19 + $0xbe0] sm:$0xff]   ;;  %v9613_v9 = vld [vmem:[#allocation19 + $0xbd8] sm:$0xff]  }
 0x55e   :  { %8781 = vmatpush3.bf16.msra.mxu0 %v9571_v56  ;;  %v9610_v56 = vld [vmem:[#allocation19 + $0xba0] sm:$0xff]   ;;  %v9612_v33 = vld [vmem:[#allocation19 + $0xb18] sm:$0xff]   ;;  %v9616_v31 = vld [vmem:[#allocation19 + $0xb10] sm:$0xff]  }
 0x55f   :  { %8782 = vmatprep.subr.bf16.mxu0 %v9574_v7  ;;  %v9615_v7 = vld [vmem:[#allocation19 + $0xb50] sm:$0xff]  }
 0x560   :  { %8803 = vmatpush3.bf16.msra.mxu1 %v9573_v20  ;;  %v9617_v20 = vld [vmem:[#allocation19 + $0xbd0] sm:$0xff]  }
 0x561   :  { %8804 = vmatprep.subr.bf16.mxu1 %v9576_v36  ;;  %v9619_v36 = vld [vmem:[#allocation19 + $0xb48] sm:$0xff]  }
 0x562   :  { %8783 = vmatpush3.bf16.msra.mxu0 %v9575_v43  ;;  %v9618_v43 = vld [vmem:[#allocation19 + $0xb90] sm:$0xff]  }
 0x563   :  { %8784 = vmatprep.subr.bf16.mxu0 %v9578_v41  ;;  %v9621_v41 = vld [vmem:[#allocation19 + $0xbc8] sm:$0xff]  }
 0x564   :  { %8805 = vmatpush3.bf16.msra.mxu1 %v9577_v44  ;;  %v9620_v44 = vld [vmem:[#allocation19 + $0xb08] sm:$0xff]  }
 0x565   :  { %8806 = vmatprep.subr.bf16.mxu1 %v9580_v8  ;;  %v9623_v8 = vld [vmem:[#allocation19 + $0xb40] sm:$0xff]  }
 0x566   :  { %8785 = vmatpush3.bf16.msra.mxu0 %v9579_v39  ;;  %v9622_v39 = vld [vmem:[#allocation19 + $0xb88] sm:$0xff]  }
 0x567   :  { %8786 = vmatprep.subr.bf16.mxu0 %v9582_v26  ;;  %v9625_v26 = vld [vmem:[#allocation19 + $0xbc0] sm:$0xff]  }
 0x568   :  { %8807 = vmatpush3.bf16.msra.mxu1 %v9581_v61  ;;  %v11473_v61 = vld.sshfl [vmem:[#allocation3 + $0x60] sm:$0x33 pattern:$0x76325410] }
 0x569   :  { %8808 = vmatprep.subr.bf16.mxu1 %v9584_v35  ;;  %v9624_v35 = vld [vmem:[#allocation19 + $0xb00] sm:$0xff]   ;;  %v3249_v0 = vcombine.high %v11473_v61, %v11473_v61 }
 0x56a   :  { %8787 = vmatpush3.bf16.msra.mxu0 %v9583_v13  ;;  %v9627_v13 = vld [vmem:[#allocation19 + $0xc78] sm:$0xff]  }
 0x56b   :  { %8788 = vmatprep.subr.bf16.mxu0 %v9586_v23  ;;  %v9626_v23 = vld [vmem:[#allocation19 + $0xb80] sm:$0xff]   ;;  %v3349_v34 = vpack.c.bf16 %v3249_v0, %v3249_v0  ;;  %v7568_v0 = vld [vmem:[%s11566_s13 + $0x40] sm:$0xff] }
 0x56c   :  { %8809 = vmatpush3.bf16.msra.mxu1 %v9585_v14  ;;  %v9628_v14 = vld [vmem:[#allocation19 + $0xc38] sm:$0xff]  }
 0x56d   :  { %8810 = vmatprep.subr.bf16.mxu1 %v9588_v2  ;;  %v3344_v2 = vpack.c.bf16 %v11457_v28, %v11457_v28 }
 0x56e   :  { %8789 = vmatpush3.bf16.msra.mxu0 %v9587_v12  ;;  %v9629_v12 = vld [vmem:[#allocation19 + $0xc70] sm:$0xff]  }
 0x56f   :  { %8790 = vmatprep.subr.bf16.mxu0 %v9590_v63 }
 0x570   :  { %8811 = vmatpush3.bf16.msra.mxu1 %v9589_v46  ;;  %v3346_v46 = vpack.c.bf16 %v11460_v29, %v11460_v29  ;;  %v9632_v29 = vld [vmem:[#allocation19 + $0xc28] sm:$0xff]  }
 0x571   :  { %8812 = vmatprep.subr.bf16.mxu1 %v9592_v47  ;;  %v11627_v47 = vmov 0.0  }
 0x572   :  { %8791 = vmatpush3.bf16.msra.mxu0 %v9591_v27  ;;  %v9630_v27 = vld [vmem:[#allocation19 + $0xc30] sm:$0xff]  }
 0x573   :  { %8820 = vmatprep.subr.bf16.mxu0 %v9594_v5 }
 0x574   :  { %8813 = vmatpush3.bf16.msra.mxu1 %v9593_v32 }
 0x575   :  { %v8528_v11 = vpop.f32.mrf.mxu0  ;;  %7390 = vmatmul.mubr.bf16.vlgmr.msra.gmra.mxu0 %v3340_v22  ;;  %8842 = vmatprep.subr.bf16.mxu1 %v9596_v1 }
 0x576   :  { %8821 = vmatpush3.bf16.msra.mxu0 %v9595_v37  ;;  %7469 = vmatprep.mubr.bf16.mxu0 %v3345_v30 }
 0x577   :  { %v8529_v17 = vpop.f32.mrf.mxu0  ;;  %v8550_v51 = vpop.f32.mrf.mxu1  ;;  %7430 = vmatmul.mubr.bf16.vlgmr.msra.gmra.mxu1 %v3342_v53  ;;  %8822 = vmatprep.subr.bf16.mxu0 %v9599_v62 }
 0x578   :  { %v8530_v57 = vadd.f32 %v8529_v17, %v8528_v11  ;;  %8843 = vmatpush3.bf16.msra.mxu1 %v9597_v49  ;;  %7509 = vmatprep.mubr.bf16.mxu1 %v3347_v21  ;;  %v9633_v49 = vld [vmem:[#allocation19 + $0xc60] sm:$0xff]   ;;  %v9635_v21 = vld [vmem:[#allocation19 + $0xc58] sm:$0xff]   ;;  %v9637_v17 = vld [vmem:[#allocation19 + $0xc50] sm:$0xff]  }
 0x579   :  { %v8531_v54 = vpop.f32.mrf.mxu0  ;;  %v8551_v3 = vpop.f32.mrf.mxu1  ;;  %8844 = vmatprep.subr.bf16.mxu1 %v9601_v60  ;;  %v9634_v60 = vld [vmem:[#allocation19 + $0xc20] sm:$0xff]  }
 0x57a   :  { %v6912_v45 = vadd.f32 %v8530_v57, %v11454_v10  ;;  %v8552_v38 = vadd.f32 %v8551_v3, %v8550_v51  ;;  %8823 = vmatpush3.bf16.msra.mxu0 %v9600_v50  ;;  %v9614_v10 = vld [vmem:[#allocation19 + $0xb98] sm:$0xff]   ;;  %v9638_v51 = vld [vmem:[#allocation19 + $0xc10] sm:$0xff]   ;;  %v9640_v57 = vld [vmem:[#allocation19 + $0xc08] sm:$0xff]   ;;  %v3348_v3 = vpack.c.bf16 %v11473_v61, %v11473_v61 }
 0x57b   :  { %v8532_v18 = vpop.f32.mrf.mxu0  ;;  %v8553_v52 = vpop.f32.mrf.mxu1  ;;  %8824 = vmatprep.subr.bf16.mxu0 %v9603_v48  ;;  %v9636_v50 = vld [vmem:[#allocation19 + $0xc18] sm:$0xff]   ;;  %v9639_v48 = vld [vmem:[#allocation19 + $0xc48] sm:$0xff]   ;;  %v9642_v54 = vld [vmem:[#allocation19 + $0xc00] sm:$0xff]  }
 0x57c   :  { %v11471_v6 = vadd.f32 %v8552_v38, %v6912_v45  ;;  %8845 = vmatpush3.bf16.msra.mxu1 %v9602_v58  ;;  %v9641_v58 = vld [vmem:[#allocation19 + $0xc40] sm:$0xff]   ;;  %v7572_v61 = vld [vmem:[%s11566_s13 + $0x60] sm:$0xff] }
 0x57d   :  { %v8554_v40 = vpop.f32.mrf.mxu1  ;;  %8846 = vmatprep.subr.bf16.mxu1 %v9605_v59 }
 0x57e   :  { %8825 = vmatpush3.bf16.msra.mxu0 %v9604_v24 }
 0x57f   :  { %8826 = vmatprep.subr.bf16.mxu0 %v9607_v4 }
 0x580   :  { %8847 = vmatpush3.bf16.msra.mxu1 %v9606_v15 }
 0x581   :  { %8848 = vmatprep.subr.bf16.mxu1 %v9609_v19 }
 0x582   :  { %8827 = vmatpush3.bf16.msra.mxu0 %v9608_v16 }
 0x583   :  { %8828 = vmatprep.subr.bf16.mxu0 %v9611_v25 }
 0x584   :  { %8849 = vmatpush3.bf16.msra.mxu1 %v9610_v56 }
 0x585   :  { %8850 = vmatprep.subr.bf16.mxu1 %v9613_v9 }
 0x586   :  { %8829 = vmatpush3.bf16.msra.mxu0 %v9612_v33 }
 0x587   :  { %8830 = vmatprep.subr.bf16.mxu0 %v9615_v7 }
 0x588   :  { %8851 = vmatpush3.bf16.msra.mxu1 %v9614_v10 }
 0x589   :  { %8852 = vmatprep.subr.bf16.mxu1 %v9617_v20 }
 0x58a   :  { %8831 = vmatpush3.bf16.msra.mxu0 %v9616_v31 }
 0x58b   :  { %8832 = vmatprep.subr.bf16.mxu0 %v9619_v36 }
 0x58c   :  { %8853 = vmatpush3.bf16.msra.mxu1 %v9618_v43 }
 0x58d   :  { %8854 = vmatprep.subr.bf16.mxu1 %v9621_v41 }
 0x58e   :  { %8833 = vmatpush3.bf16.msra.mxu0 %v9620_v44 }
 0x58f   :  { %8834 = vmatprep.subr.bf16.mxu0 %v9623_v8  ;;  %v7575_v8 = vld [vmem:[%s11566_s13 + $0x78] sm:$0xff] }
 0x590   :  { %8855 = vmatpush3.bf16.msra.mxu1 %v9622_v39  ;;  %v7574_v39 = vld [vmem:[%s11566_s13 + $0x70] sm:$0xff] }
 0x591   :  { %8856 = vmatprep.subr.bf16.mxu1 %v9625_v26  ;;  %v7573_v26 = vld [vmem:[%s11566_s13 + $0x68] sm:$0xff] }
 0x592   :  { %8835 = vmatpush3.bf16.msra.mxu0 %v9624_v35  ;;  %v7571_v35 = vld [vmem:[%s11566_s13 + $0x58] sm:$0xff] }
 0x593   :  { %8864 = vmatprep.subr.bf16.mxu0 %v9627_v13  ;;  %v7570_v13 = vld [vmem:[%s11566_s13 + $0x50] sm:$0xff] }
 0x594   :  { %8857 = vmatpush3.bf16.msra.mxu1 %v9626_v23  ;;  %v7569_v23 = vld [vmem:[%s11566_s13 + $0x48] sm:$0xff] }
 0x595   :  { %v8572_v63 = vpop.f32.mrf.mxu0  ;;  %7470 = vmatmul.mubr.bf16.vlgmr.msra.gmra.mxu0 %v3344_v2  ;;  %9175 = vmatprep.subr.mxu1 %v11627_v47  ;;  %v7566_v2 = vld [vmem:[%s11566_s13 + $0x30] sm:$0xff] }
 0x596   :  { %8865 = vmatpush3.bf16.msra.mxu0 %v9628_v14  ;;  %7549 = vmatprep.mubr.bf16.mxu0 %v3349_v34  ;;  %v7567_v14 = vld [vmem:[%s11566_s13 + $0x38] sm:$0xff] }
 0x597   :  { %v8573_v5 = vpop.f32.mrf.mxu0  ;;  %v8594_v32 = vpop.f32.mrf.mxu1  ;;  %7510 = vmatmul.mubr.bf16.vlgmr.msra.gmra.mxu1 %v3346_v46  ;;  %8866 = vmatprep.subr.bf16.mxu0 %v9629_v12  ;;  %v7565_v12 = vld [vmem:[%s11566_s13 + $0x28] sm:$0xff] }
 0x598   :  { %v8574_v28 = vadd.f32 %v8573_v5, %v8572_v63  ;;  %9207 = vmatprep.mubr.msk.f32.mxu1 %vm9941_vm0, %v11627_v47  ;;  %9176 = vmatpush3.msra.mxu1 %v7575_v8  ;;  %v7564_v63 = vld [vmem:[%s11566_s13 + $0x20] sm:$0xff] }
 0x599   :  { %v8575_v1 = vpop.f32.mrf.mxu0  ;;  %v8595_v37 = vpop.f32.mrf.mxu1  ;;  %9177 = vmatprep.subr.mxu1 %v11627_v47 }
 0x59a   :  { %v6992_v55 = vadd.f32 %v8574_v28, %v11471_v6  ;;  %v8596_v22 = vadd.f32 %v8595_v37, %v8594_v32  ;;  %8867 = vmatpush3.bf16.msra.mxu0 %v9630_v27  ;;  %9178 = vmatpush3.msra.mxu1 %v7574_v39 }
 0x59b   :  { %v8576_v62 = vpop.f32.mrf.mxu0  ;;  %v8597_v30 = vpop.f32.mrf.mxu1  ;;  %8868 = vmatprep.subr.bf16.mxu0 %v9631_v42  ;;  %9179 = vmatprep.subr.mxu1 %v11627_v47 }
 0x59c   :  { %v7032_v11 = vadd.f32 %v8596_v22, %v6992_v55  ;;  %9180 = vmatpush3.msra.mxu1 %v7573_v26  ;;  %v7562_v62 = vld [vmem:[%s11566_s13 + $0x10] sm:$0xff] }
 0x59d   :  { %v8598_v53 = vpop.f32.mrf.mxu1  ;;  %9181 = vmatprep.subr.mxu1 %v11627_v47 }
 0x59e   :  { %8869 = vmatpush3.bf16.msra.mxu0 %v9632_v29  ;;  %9182 = vmatpush3.msra.mxu1 %v7572_v61  ;;  %v7563_v29 = vld [vmem:[%s11566_s13 + $0x18] sm:$0xff] }
 0x59f   :  { %8870 = vmatprep.subr.bf16.mxu0 %v9633_v49  ;;  %9183 = vmatprep.subr.mxu1 %v11627_v47  ;;  %v7561_v49 = vld [vmem:[%s11566_s13 + $0x8] sm:$0xff] }
 0x5a0   :  { %9184 = vmatpush3.msra.mxu1 %v7571_v35 }
 0x5a1   :  { %9185 = vmatprep.subr.mxu1 %v11627_v47 }
 0x5a2   :  { %8871 = vmatpush3.bf16.msra.mxu0 %v9634_v60  ;;  %9186 = vmatpush3.msra.mxu1 %v7570_v13 }
 0x5a3   :  { %8872 = vmatprep.subr.bf16.mxu0 %v9635_v21  ;;  %9187 = vmatprep.subr.mxu1 %v11627_v47 }
 0x5a4   :  { %9188 = vmatpush3.msra.mxu1 %v7569_v23 }
 0x5a5   :  { %9189 = vmatprep.subr.mxu1 %v11627_v47 }
 0x5a6   :  { %8873 = vmatpush3.bf16.msra.mxu0 %v9636_v50  ;;  %9190 = vmatpush3.msra.mxu1 %v7568_v0 }
 0x5a7   :  { %8874 = vmatprep.subr.bf16.mxu0 %v9637_v17  ;;  %9191 = vmatprep.subr.mxu1 %v11627_v47 }
 0x5a8   :  { %9192 = vmatpush3.msra.mxu1 %v7567_v14  ;;  %v8225_v14 = vld [vmem:[#allocation22] ss:$0 sm:$0xff] }
 0x5a9   :  { %9193 = vmatprep.subr.mxu1 %v11627_v47 }
 0x5aa   :  { %8875 = vmatpush3.bf16.msra.mxu0 %v9638_v51  ;;  %9194 = vmatpush3.msra.mxu1 %v7566_v2 }
 0x5ab   :  { %8876 = vmatprep.subr.bf16.mxu0 %v9639_v48  ;;  %9195 = vmatprep.subr.mxu1 %v11627_v47 }
 0x5ac   :  { %9196 = vmatpush3.msra.mxu1 %v7565_v12 }
 0x5ad   :  { %9197 = vmatprep.subr.mxu1 %v11627_v47 }
 0x5ae   :  { %8877 = vmatpush3.bf16.msra.mxu0 %v9640_v57  ;;  %9198 = vmatpush3.msra.mxu1 %v7564_v63 }
 0x5af   :  { %8878 = vmatprep.subr.bf16.mxu0 %v9641_v58  ;;  %9199 = vmatprep.subr.mxu1 %v11627_v47 }
 0x5b0   :  { %9200 = vmatpush3.msra.mxu1 %v7563_v29 }
 0x5b1   :  { %9201 = vmatprep.subr.mxu1 %v11627_v47 }
 0x5b2   :  { %8879 = vmatpush3.bf16.msra.mxu0 %v9642_v54  ;;  %9202 = vmatpush3.msra.mxu1 %v7562_v62 }
 0x5b3   :  { %9203 = vmatprep.subr.mxu1 %v11627_v47 }
 0x5b4   :  { %9204 = vmatpush3.msra.mxu1 %v7561_v49 }
 0x5b5   :  { %v8616_v59 = vpop.f32.mrf.mxu0  ;;  %7550 = vmatmul.mubr.bf16.vlgmr.msra.gmra.mxu0 %v3348_v3  ;;  %9205 = vmatprep.subr.mxu1 %v11627_v47 }
 0x5b7   :  { %v8617_v45 = vpop.f32.mrf.mxu0  ;;  %v8638_v38 = vpop.f32.mrf.mxu1 }
 0x5b8   :  { %v8618_v24 = vadd.f32 %v8617_v45, %v8616_v59 }
 0x5b9   :  { %v8619_v18 = vpop.f32.mrf.mxu0  ;;  %v8639_v52 = vpop.f32.mrf.mxu1 }
 0x5ba   :  { %v7072_v4 = vadd.f32 %v8618_v24, %v7032_v11  ;;  %v8640_v6 = vadd.f32 %v8639_v52, %v8638_v38  ;;  %v7560_v11 = vld [vmem:[%s11566_s13] sm:$0xff]  ;;  %s9943_s13 = smov [#allocation24]  }
 0x5bb   :  { %v8620_v15 = vpop.f32.mrf.mxu0  ;;  %v8641_v40 = vpop.f32.mrf.mxu1  ;;  %9206 = vmatpush3.msra.mxu1 %v7560_v11  ;;  %s7664_s12 = sshll.u32 %s9943_s13, 4  ;;  %s7665_s12 = int_to_ptr.vmem [resolvable:$true] %s7664_s12 }
 0x5bc   :  { %v7112_v19 = vadd.f32 %v8640_v6, %v7072_v4  ;;  %s9887_s14 = scalar_lea.vmem %s7665_s12, 32  ;;  %p9892_p5 = scmp.lt.s32.totalorder %s7665_s12, %s7665_s12 }
 0x5bd   :  { %v8642_v16 = vpop.f32.mrf.mxu1  ;;  %p9888_p4 = scmp.ne.s32.totalorder %s7665_s12, %s9887_s14  ;;  %p9893_p6 = scmp.lt.s32.totalorder %s9887_s14, %s9887_s14 }
 0x5bf   :  { %p9894_p7 = por %p9893_p6, %p9892_p5 }
 0x5c1   :  { %p9895_p8 = pnand %p9894_p7, %p9888_p4 }
 0x5d5   :  { %v8660_v25 = vpop.f32.mrf.mxu0 }
 0x5d7   :  { %v8661_v56 = vpop.f32.mrf.mxu0  ;;  %v8682_v9 = vpop.f32.mrf.mxu1 }
 0x5d8   :  { %v8662_v33 = vadd.f32 %v8661_v56, %v8660_v25 }
 0x5d9   :  { %v8663_v7 = vpop.f32.mrf.mxu0  ;;  %v8683_v10 = vpop.f32.mrf.mxu1 }
 0x5da   :  { %v7152_v20 = vadd.f32 %v8662_v33, %v7112_v19  ;;  %v8684_v31 = vadd.f32 %v8683_v10, %v8682_v9 }
 0x5db   :  { %v8664_v36 = vpop.f32.mrf.mxu0  ;;  %v8685_v43 = vpop.f32.mrf.mxu1 }
 0x5dc   :  { %v7192_v41 = vadd.f32 %v8684_v31, %v7152_v20 }
 0x5dd   :  { %v8686_v44 = vpop.f32.mrf.mxu1 }
 0x5f5   :  { %v8704_v34 = vpop.f32.mrf.mxu0 }
 0x5f7   :  { %v8705_v46 = vpop.f32.mrf.mxu0  ;;  %v8726_v27 = vpop.f32.mrf.mxu1 }
 0x5f8   :  { %v8706_v5 = vadd.f32 %v8705_v46, %v8704_v34 }
 0x5f9   :  { %v8707_v32 = vpop.f32.mrf.mxu0  ;;  %v8727_v42 = vpop.f32.mrf.mxu1 }
 0x5fa   :  { %v7232_v28 = vadd.f32 %v8706_v5, %v7192_v41  ;;  %v8728_v1 = vadd.f32 %v8727_v42, %v8726_v27 }
 0x5fb   :  { %v8708_v37 = vpop.f32.mrf.mxu0  ;;  %v8729_v55 = vpop.f32.mrf.mxu1 }
 0x5fc   :  { %v7272_v22 = vadd.f32 %v8728_v1, %v7232_v28 }
 0x5fd   :  { %v8730_v30 = vpop.f32.mrf.mxu1 }
 0x615   :  { %v8748_v53 = vpop.f32.mrf.mxu0 }
 0x617   :  { %v8749_v60 = vpop.f32.mrf.mxu0  ;;  %v8770_v21 = vpop.f32.mrf.mxu1 }
 0x618   :  { %v8750_v50 = vadd.f32 %v8749_v60, %v8748_v53 }
 0x619   :  { %v8751_v17 = vpop.f32.mrf.mxu0  ;;  %v8771_v51 = vpop.f32.mrf.mxu1 }
 0x61a   :  { %v7312_v48 = vadd.f32 %v8750_v50, %v7272_v22  ;;  %v8772_v57 = vadd.f32 %v8771_v51, %v8770_v21 }
 0x61b   :  { %v8752_v58 = vpop.f32.mrf.mxu0  ;;  %v8773_v54 = vpop.f32.mrf.mxu1 }
 0x61c   :  { %v7352_v3 = vadd.f32 %v8772_v57, %v7312_v48 }
 0x61d   :  { %v8774_v59 = vpop.f32.mrf.mxu1 }
 0x635   :  { %v8792_v45 = vpop.f32.mrf.mxu0 }
 0x637   :  { %v8793_v38 = vpop.f32.mrf.mxu0  ;;  %v8814_v24 = vpop.f32.mrf.mxu1 }
 0x638   :  { %v8794_v7 = vadd.f32 %v8793_v38, %v8792_v45 }
 0x639   :  { %v8795_v18 = vpop.f32.mrf.mxu0  ;;  %v8815_v52 = vpop.f32.mrf.mxu1 }
 0x63a   :  { %v7392_v10 = vadd.f32 %v8794_v7, %v7352_v3  ;;  %v8816_v20 = vadd.f32 %v8815_v52, %v8814_v24 }
 0x63b   :  { %v8796_v4 = vpop.f32.mrf.mxu0  ;;  %v8817_v47 = vpop.f32.mrf.mxu1 }
 0x63c   :  { %v7432_v36 = vadd.f32 %v8816_v20, %v7392_v10 }
 0x63d   :  { %v8818_v6 = vpop.f32.mrf.mxu1 }
 0x655   :  { %v8836_v15 = vpop.f32.mrf.mxu0 }
 0x657   :  { %v8837_v40 = vpop.f32.mrf.mxu0  ;;  %v8858_v19 = vpop.f32.mrf.mxu1 }
 0x658   :  { %v8838_v31 = vadd.f32 %v8837_v40, %v8836_v15 }
 0x659   :  { %v8839_v16 = vpop.f32.mrf.mxu0  ;;  %v8859_v25 = vpop.f32.mrf.mxu1 }
 0x65a   :  { %v7472_v43 = vadd.f32 %v8838_v31, %v7432_v36  ;;  %v8860_v41 = vadd.f32 %v8859_v25, %v8858_v19 }
 0x65b   :  { %v8840_v56 = vpop.f32.mrf.mxu0  ;;  %v8861_v9 = vpop.f32.mrf.mxu1 }
 0x65c   :  { %v7512_v39 = vadd.f32 %v8860_v41, %v7472_v43 }
 0x65d   :  { %v8862_v33 = vpop.f32.mrf.mxu1 }
 0x675   :  { %v8880_v44 = vpop.f32.mrf.mxu0 }
 0x677   :  { %v8881_v8 = vpop.f32.mrf.mxu0 }
 0x678   :  { %v8882_v26 = vadd.f32 %v8881_v8, %v8880_v44 }
 0x679   :  { %v8883_v61 = vpop.f32.mrf.mxu0 }
 0x67a   :  { %v7552_v35 = vadd.f32 %v8882_v26, %v7512_v39 }
 0x67b   :  { %v8884_v13 = vpop.f32.mrf.mxu0 }
 0x67c   :  { %v7558_v23 = vmul.f32 0.01, %v7552_v35  ;;  %vm7557_vm5 = vcmp.ge.f32.partialorder %v7552_v35, 0.0 }
 0x67e   :  { %v7559_v0 = vsel %vm7557_vm5, %v7552_v35, %v7558_v23 }
 0x67f   :  { %9208 = vmatmul.mubr.f32.vlgmr.msra.gmra.mxu1 %v7559_v0 }
 0x73f   :  { %v7649_v2 = vpop.f32.mrf.mxu1 }
 0x740   :  { %v7650_v12 = vadd.f32 %v8225_v14, %v7649_v2 }
 0x741   :  { %v9209_v34 = vpop.f32.mrf.mxu1 }
 0x742   :  { %vm7653_vm6 = vcmp.ge.f32.partialorder %v7650_v12, 0.0  ;;  %v7654_v63 = vmul.f32 0.01, %v7650_v12 }
 0x744   :  { %v7655_v46 = vsel %vm7653_vm6, %v7650_v12, %v7654_v63 }
 0x745   :  { %7657 = vst.msk [vmem:[#allocation24] sm:$0x3] %vm7656_vm7, %v7655_v46 }
 0x746   :  { %9898 = shalt.err (!%p9895_p8)
}
 0x747   :  { %7667 = dma.vmem_to_hbm [thread:$0]  %s7665_s12, 32, %s11568_s15, [#allocation6]  }
 0x748   :  { %9921 = dma.done.wait [#allocation6], 32  }
 0x749   :  { %9922 = vsyncadd [#allocation6], 4294967264 }
 0x74a   :  { %7671 = vsyncpa [#allocation5], 1 }
 0x74b   :  { %7672 = vsyncpa [#allocation8], 1 }
 0x74c   :  { %7673 = vsyncpa [#allocation11], 1 }
 0x74d   :  { %7674 = vsyncpa [#allocation14], 1 }
 0x74e   :  { %7675 = vsyncpa [#allocation17], 1 }
 0x74f   :  { %7676 = vsyncpa [#allocation20], 1 }
 0x750   :  { %7677 = vsyncpa [#allocation23], 1 }
 0x751   :  { %7678 = vsyncpa [#allocation6], 1 }

</bundles_post_ra>
